<compile_context>
chip_gen: v7x
topology: tpu7x:2x2x1
jax: 0.10.0
libtpu: 0.0.40
codegen_flags: <defaults>
</compile_context>

<pallas_src>
import functools
import math

import numpy as np
import jax
import jax.numpy as jnp
from jax import lax
from jax.experimental import pallas as pl
from jax.experimental.pallas import tpu as pltpu

# ----------------------------- small config ---------------------------------
B = 2
ENC_IN = 4
DEC_IN = 4
C_OUT = 4
SEQ_LEN = 16          # encoder input length
LABEL_LEN = 8
PRED_LEN = 8          # out_len
DEC_LEN = LABEL_LEN + PRED_LEN
D_MODEL = 32
N_HEADS = 4
HEAD_DIM = D_MODEL // N_HEADS
D_FF = 32
E_LAYERS = 3
D_LAYERS = 2
LN_EPS = 1e-5
BN_EPS = 1e-5
SCALE = 1.0 / math.sqrt(HEAD_DIM)
NEG = -1e30           # additive mask sentinel (more robust than -inf)
LANES = 128
F32 = jnp.float32


# ----------------------- in-kernel elementwise helpers -----------------------
def _erf(x):
    # Abramowitz & Stegun 7.1.26 (|err| < 1.5e-7); Mosaic has no erf primitive.
    a1, a2, a3, a4, a5 = 0.254829592, -0.284496736, 1.421413741, -1.453152027, 1.061405429
    pc = 0.3275911
    sgn = jnp.where(x >= 0.0, 1.0, -1.0)
    ax = jnp.abs(x)
    t = 1.0 / (1.0 + pc * ax)
    poly = ((((a5 * t + a4) * t + a3) * t + a2) * t + a1) * t
    return sgn * (1.0 - poly * jnp.exp(-ax * ax))


def _gelu(x):
    # exact (erf-based) GELU, matching torch.nn.functional.gelu default
    return 0.5 * x * (1.0 + _erf(x * (1.0 / math.sqrt(2.0))))


# ----------------------------- the fused kernel -------------------------------
def _informer_kernel(w_ref, enc_in_ref, dec_in_ref, out_ref, *, idx):
    # Every weight AND every precomputed constant lives in one packed (rows,128)
    # VMEM buffer; `g` carves out a static, lane-0-aligned (rows, cols) view.
    def g(name):
        off, r, c = idx[name]
        return w_ref[off:off + r, 0:c]

    def layernorm(x, gname, bname):
        mu = jnp.mean(x, axis=-1, keepdims=True)
        xc = x - mu
        var = jnp.mean(xc * xc, axis=-1, keepdims=True)
        return xc * lax.rsqrt(var + LN_EPS) * g(gname) + g(bname)

    def attention(xq, xkv, pfx, C, mask_name):
        """AttentionLayer(FullAttention), batch-fused rows, heads packed on lanes.

        xq: (R, 32) queries, xkv: (C, 32) keys/values (R = B*Lq, C = B*Lk).
        Wq is (32,64) with zero right half, Wkv = [Wk|Wv] (32,64),
        Wo is (64,32) with zero top half -> no sub-vreg lane slicing anywhere.
        """
        q = jnp.dot(xq, g(pfx + '_wq'), preferred_element_type=F32) + g(pfx + '_bq')      # (R,64)
        kv = jnp.dot(xkv, g(pfx + '_wkv'), preferred_element_type=F32) + g(pfx + '_bkv')  # (C,64)
        # replicate KV rows per head and keep only that head's 8 lanes (K and V)
        kvb = jnp.dot(g(f'rep_{C}'), kv, preferred_element_type=F32) * g(f'hm_{C}')       # (4C,64)
        # packed per-head scores: q lanes 32:64 are zero, so only K lanes contract
        s = lax.dot_general(q, kvb, (((1,), (1,)), ((), ())),
                            preferred_element_type=F32)                                   # (R,4C)
        s = s * SCALE + g(mask_name)              # batch block-diag (+ causal) mask
        m = jnp.max(s, axis=-1, keepdims=True)
        p = jnp.exp(s - m)
        den = jnp.dot(p, g(f'bd_{C}'), preferred_element_type=F32)   # per-head row sums
        a = p * pl.reciprocal(den, approx=True)
        o = jnp.dot(a, kvb, preferred_element_type=F32)              # (R,64); V half = heads concat
        return jnp.dot(o, g(pfx + '_wo'), preferred_element_type=F32) + g(pfx + '_bo')    # (R,32)

    def ffn(x, pfx):   # conv1(k=1) + gelu, conv2(k=1)
        h = _gelu(jnp.dot(x, g(pfx + '_w1'), preferred_element_type=F32) + g(pfx + '_b1'))
        return jnp.dot(h, g(pfx + '_w2'), preferred_element_type=F32) + g(pfx + '_b2')

    def enc_layer(x, L):                       # AttentionConvLayer (EncoderLayer)
        C = B * L
        x = x + attention(x, x, 'enc_attn', C, f'amask_enc_{L}')
        y = layernorm(x, 'enc_ln1_g', 'enc_ln1_b')
        return layernorm(y + ffn(y, 'enc'), 'enc_ln2_g', 'enc_ln2_b')

    def distil(x, i, L):
        """ConvLayer: circular Conv1d(k=3)+folded BN -> ELU -> MaxPool1d(3,2,1),
        per-batch shifts/pooling done with precomputed selection matmuls."""
        xm = jnp.dot(g(f'shift_m_{L}'), x, preferred_element_type=F32)   # x[t-1 mod L]
        xp = jnp.dot(g(f'shift_p_{L}'), x, preferred_element_type=F32)   # x[t+1 mod L]
        y = (jnp.dot(xm, g(f'distil{i}_w0'), preferred_element_type=F32)
             + jnp.dot(x, g(f'distil{i}_w1'), preferred_element_type=F32)
             + jnp.dot(xp, g(f'distil{i}_w2'), preferred_element_type=F32)
             + g(f'distil{i}_b'))
        y = jnp.where(y > 0, y, jnp.exp(jnp.minimum(y, 0.0)) - 1.0)      # ELU(alpha=1)
        ya = jnp.dot(g(f'pool_a_{L}'), y, preferred_element_type=F32)
        yb = jnp.dot(g(f'pool_b_{L}'), y, preferred_element_type=F32)
        yc = jnp.dot(g(f'pool_c_{L}'), y, preferred_element_type=F32) + g(f'pool_neg_{L}')
        return jnp.maximum(ya, jnp.maximum(yb, yc))

    def dec_layer(x, cross):
        x = x + attention(x, x, 'dec_self', B * DEC_LEN, 'amask_dec_self')
        x = layernorm(x, 'dec_ln1_g', 'dec_ln1_b')
        x = x + attention(x, cross, 'dec_cross', B * (SEQ_LEN // 4), 'amask_cross')
        y = layernorm(x, 'dec_ln2_g', 'dec_ln2_b')
        return layernorm(y + ffn(y, 'dec'), 'dec_ln3_g', 'dec_ln3_b')

    # ---------------- encoder ----------------
    # DataEmbedding: token conv (k=3 circular) + positional + temporal, all
    # folded into one matmul against [W_tok ; I].
    x = jnp.dot(enc_in_ref[...], g('emb_enc_w'), preferred_element_type=F32) + g('emb_enc_b')
    L = SEQ_LEN
    for i in range(E_LAYERS - 1):
        x = enc_layer(x, L)        # shared weights: the spec reuses one module instance
        x = distil(x, i, L)        # distinct ConvLayer weights per distil stage
        L //= 2
    x = enc_layer(x, L)
    enc_out = layernorm(x, 'enc_norm_g', 'enc_norm_b')      # (B*4, 32)

    # ---------------- decoder ----------------
    y = jnp.dot(dec_in_ref[...], g('emb_dec_w'), preferred_element_type=F32) + g('emb_dec_b')
    for _ in range(D_LAYERS):
        y = dec_layer(y, enc_out)  # shared weights (faithful to the spec's module reuse)
    y = layernorm(y, 'dec_norm_g', 'dec_norm_b')

    # ---------------- projection (full length; host slices last pred_len) ----
    out_ref[...] = jnp.dot(y, g('proj_w'), preferred_element_type=F32) + g('proj_b')


# ----------------------------- host-side packing ------------------------------
class _Packer:
    """Packs every weight / constant into one (rows,128) f32 array.
    Each entry starts at an 8-aligned sublane offset and lane 0, so in-kernel
    views are plain static slices (no relayouts)."""

    def __init__(self):
        self._bufs, self._idx, self._off = [], {}, 0

    def add(self, name, arr):
        a = np.asarray(arr, np.float32)
        if a.ndim == 1:
            a = a[None, :]
        r, c = a.shape
        assert c <= LANES and name not in self._idx
        rp = ((r + 7) // 8) * 8
        buf = np.zeros((rp, LANES), np.float32)
        buf[:r, :c] = a
        self._bufs.append(buf)
        self._idx[name] = (self._off, r, c)
        self._off += rp

    def finalize(self):
        return jnp.asarray(np.concatenate(self._bufs, axis=0)), self._idx


def _add_constants(pk):
    H, D, HD = N_HEADS, D_MODEL, HEAD_DIM
    # per key-row-count C = B*Lk: head replication, head lane mask, per-head sum matrix
    for C in sorted({B * SEQ_LEN, B * (SEQ_LEN // 2), B * (SEQ_LEN // 4)}):
        pk.add(f'rep_{C}', np.tile(np.eye(C, dtype=np.float32), (H, 1)))          # (H*C, C)
        lane_head = (np.arange(2 * D) % D) // HD                                  # head id per lane
        hm = np.repeat((lane_head[None, :] == np.arange(H)[:, None]).astype(np.float32),
                       C, axis=0)                                                 # (H*C, 64)
        pk.add(f'hm_{C}', hm)
        blk = np.arange(H * C) // C
        pk.add(f'bd_{C}', (blk[:, None] == blk[None, :]).astype(np.float32))      # (H*C, H*C)

    def amask(Lq, Lk, causal):
        R, C = B * Lq, B * Lk
        r, c = np.arange(R), np.arange(C)
        ok = (r[:, None] // Lq) == (c[None, :] // Lk)                 # same batch
        if causal:
            ok = ok & ((c[None, :] % Lk) <= (r[:, None] % Lq))        # TriangularCausalMask
        m1 = np.where(ok, 0.0, NEG).astype(np.float32)
        return np.tile(m1, (1, N_HEADS))                              # (R, H*C)

    pk.add('amask_enc_16', amask(SEQ_LEN, SEQ_LEN, False))
    pk.add('amask_enc_8', amask(SEQ_LEN // 2, SEQ_LEN // 2, False))
    pk.add('amask_enc_4', amask(SEQ_LEN // 4, SEQ_LEN // 4, False))
    pk.add('amask_dec_self', amask(DEC_LEN, DEC_LEN, True))
    pk.add('amask_cross', amask(DEC_LEN, SEQ_LEN // 4, False))

    # distil constants: per-batch circular shifts + MaxPool1d(3,2,1) selectors
    for L in (SEQ_LEN, SEQ_LEN // 2):
        R = B * L
        r, c = np.arange(R), np.arange(R)
        same = (r[:, None] // L) == (c[None, :] // L)
        pk.add(f'shift_m_{L}', (same & ((c[None, :] - r[:, None]) % L == L - 1)).astype(np.float32))
        pk.add(f'shift_p_{L}', (same & ((c[None, :] - r[:, None]) % L == 1)).astype(np.float32))
        Lo = (L - 1) // 2 + 1
        Ro = B * Lo
        sa = np.zeros((Ro, R), np.float32)
        sb = np.zeros((Ro, R), np.float32)
        sc = np.zeros((Ro, R), np.float32)
        ng = np.zeros((Ro, D), np.float32)
        for b in range(B):
            for t in range(Lo):
                o = b * Lo + t
                sa[o, b * L + 2 * t] = 1.0
                if 2 * t + 1 < L:
                    sb[o, b * L + 2 * t + 1] = 1.0
                if t >= 1:
                    sc[o, b * L + 2 * t - 1] = 1.0
                else:
                    ng[o, :] = NEG            # window 0 has no left neighbor
        pk.add(f'pool_a_{L}', sa)
        pk.add(f'pool_b_{L}', sb)
        pk.add(f'pool_c_{L}', sc)
        pk.add(f'pool_neg_{L}', ng)


def pack_params(raw):
    pk = _Packer()
    eye = np.eye(D_MODEL, dtype=np.float32)
    z32 = np.zeros((D_MODEL, D_MODEL), np.float32)
    npf = lambda x: np.asarray(x, np.float32)

    # embeddings: token conv taps stacked + identity (folds in the pos/temporal add)
    for tag, d in (('enc', raw['enc_emb']), ('dec', raw['dec_emb'])):
        pk.add(f'emb_{tag}_w',
               np.concatenate([npf(d['w'][0]), npf(d['w'][1]), npf(d['w'][2]), eye], axis=0))
        pk.add(f'emb_{tag}_b', npf(d['b']))

    def add_attn(prefix, a):
        pk.add(prefix + '_wq', np.concatenate([npf(a['wq']), z32], axis=1))              # (32,64)
        pk.add(prefix + '_bq', np.concatenate([npf(a['bq']), np.zeros(D_MODEL, np.float32)]))
        pk.add(prefix + '_wkv', np.concatenate([npf(a['wk']), npf(a['wv'])], axis=1))    # (32,64)
        pk.add(prefix + '_bkv', np.concatenate([npf(a['bk']), npf(a['bv'])]))
        pk.add(prefix + '_wo', np.concatenate([z32, npf(a['wo'])], axis=0))              # (64,32)
        pk.add(prefix + '_bo', npf(a['bo']))

    el = raw['enc_layer']
    add_attn('enc_attn', el['attn'])
    for nm in ('w1', 'b1', 'w2', 'b2', 'ln1_g', 'ln1_b', 'ln2_g', 'ln2_b'):
        pk.add('enc_' + nm, npf(el[nm]))

    # distil conv layers: exact eval-mode BatchNorm1d fold into weights/bias
    for i, d in enumerate(raw['distil']):
        scale = npf(d['bn_g']) / np.sqrt(npf(d['bn_var']) + BN_EPS)
        for k in range(3):
            pk.add(f'distil{i}_w{k}', npf(d['w'][k]) * scale[None, :])
        pk.add(f'distil{i}_b', (npf(d['b']) - npf(d['bn_mean'])) * scale + npf(d['bn_b']))

    pk.add('enc_norm_g', npf(raw['enc_norm_g']))
    pk.add('enc_norm_b', npf(raw['enc_norm_b']))

    dl = raw['dec_layer']
    add_attn('dec_self', dl['self_attn'])
    add_attn('dec_cross', dl['cross_attn'])
    for nm in ('w1', 'b1', 'w2', 'b2', 'ln1_g', 'ln1_b', 'ln2_g', 'ln2_b', 'ln3_g', 'ln3_b'):
        pk.add('dec_' + nm, npf(dl[nm]))
    pk.add('dec_norm_g', npf(raw['dec_norm_g']))
    pk.add('dec_norm_b', npf(raw['dec_norm_b']))
    pk.add('proj_w', npf(raw['proj_w']))
    pk.add('proj_b', npf(raw['proj_b']))

    _add_constants(pk)
    return pk.finalize()


# ----------------------------- host-side forward ------------------------------
def make_forward(idx, tables):
    kern = functools.partial(_informer_kernel, idx=idx)
    vmem = pl.BlockSpec(memory_space=pltpu.MemorySpace.VMEM)
    call = pl.pallas_call(
        kern,
        out_shape=jax.ShapeDtypeStruct((B * DEC_LEN, C_OUT), F32),
        in_specs=[vmem, vmem, vmem],
        out_specs=vmem,
    )

    def embed_input(x, x_mark, L):
        # circular k=3 conv input [x[t-1] | x[t] | x[t+1]] plus (pos + temporal)
        # addend; integer table gathers stay in plain JAX glue (data-dependent).
        xcat = jnp.concatenate([jnp.roll(x, 1, axis=1), x, jnp.roll(x, -1, axis=1)], axis=-1)
        pos = tables['pos'][:L][None]
        temporal = (tables['month'][x_mark[..., 0]] + tables['day'][x_mark[..., 1]]
                    + tables['weekday'][x_mark[..., 2]] + tables['hour'][x_mark[..., 3]])
        return jnp.concatenate([xcat, pos + temporal], axis=-1).reshape(B * L, -1)

    @jax.jit
    def fwd(packed_w, x_enc, x_mark_enc, x_dec, x_mark_dec):
        enc_in = embed_input(x_enc, x_mark_enc, SEQ_LEN)      # (B*SEQ_LEN, 44)
        dec_in = embed_input(x_dec, x_mark_dec, DEC_LEN)      # (B*DEC_LEN, 44)
        dec_out = call(packed_w, enc_in, dec_in)              # (B*DEC_LEN, C_OUT)
        return dec_out.reshape(B, DEC_LEN, C_OUT)[:, -PRED_LEN:, :]

    return fwd


# ----------------------------- parameter init --------------------------------
def sinusoid_table(n, d):
    pos = jnp.arange(n, dtype=jnp.float32)[:, None]
    div = jnp.exp(jnp.arange(0, d, 2, dtype=jnp.float32) * -(math.log(10000.0) / d))
    tab = jnp.zeros((n, d), jnp.float32)
    tab = tab.at[:, 0::2].set(jnp.sin(pos * div))
    tab = tab.at[:, 1::2].set(jnp.cos(pos * div))
    return tab


def init_params(key):
    ks = iter(jax.random.split(key, 256))

    def w(shape, fan_in):
        return jax.random.normal(next(ks), shape, jnp.float32) * (1.0 / math.sqrt(fan_in))

    def bvec(n):
        return jax.random.normal(next(ks), (n,), jnp.float32) * 0.02

    def attn_params():
        return dict(wq=w((D_MODEL, D_MODEL), D_MODEL), bq=bvec(D_MODEL),
                    wk=w((D_MODEL, D_MODEL), D_MODEL), bk=bvec(D_MODEL),
                    wv=w((D_MODEL, D_MODEL), D_MODEL), bv=bvec(D_MODEL),
                    wo=w((D_MODEL, D_MODEL), D_MODEL), bo=bvec(D_MODEL))

    def ffn_ln(n_norms):
        d = dict(w1=w((D_MODEL, D_FF), D_MODEL), b1=bvec(D_FF),
                 w2=w((D_FF, D_MODEL), D_FF), b2=bvec(D_MODEL))
        for i in range(n_norms):
            d[f'ln{i + 1}_g'] = jnp.ones((D_MODEL,), jnp.float32)
            d[f'ln{i + 1}_b'] = jnp.zeros((D_MODEL,), jnp.float32)
        return d

    params = {}
    params['enc_emb'] = dict(w=[w((ENC_IN, D_MODEL), 3 * ENC_IN) for _ in range(3)],
                             b=bvec(D_MODEL))
    params['dec_emb'] = dict(w=[w((DEC_IN, D_MODEL), 3 * DEC_IN) for _ in range(3)],
                             b=bvec(D_MODEL))

    enc_layer = dict(attn=attn_params())
    enc_layer.update(ffn_ln(2))
    params['enc_layer'] = enc_layer                  # shared across e_layers (module reuse)

    params['distil'] = []
    for _ in range(E_LAYERS - 1):
        params['distil'].append(dict(
            w=[w((D_MODEL, D_MODEL), 3 * D_MODEL) for _ in range(3)],
            b=bvec(D_MODEL),
            bn_g=jnp.ones((D_MODEL,), jnp.float32),
            bn_b=jnp.zeros((D_MODEL,), jnp.float32),
            bn_mean=jnp.zeros((D_MODEL,), jnp.float32),
            bn_var=jnp.ones((D_MODEL,), jnp.float32)))

    params['enc_norm_g'] = jnp.ones((D_MODEL,), jnp.float32)
    params['enc_norm_b'] = jnp.zeros((D_MODEL,), jnp.float32)

    dec_layer = dict(self_attn=attn_params(), cross_attn=attn_params())
    dec_layer.update(ffn_ln(3))
    params['dec_layer'] = dec_layer                  # shared across d_layers (module reuse)

    params['dec_norm_g'] = jnp.ones((D_MODEL,), jnp.float32)
    params['dec_norm_b'] = jnp.zeros((D_MODEL,), jnp.float32)

    params['proj_w'] = w((D_MODEL, C_OUT), D_MODEL)
    params['proj_b'] = bvec(C_OUT)

    # fixed (non-trainable) sinusoid tables: positional + temporal ('fixed', freq='h')
    params['tables'] = dict(
        pos=sinusoid_table(64, D_MODEL),
        month=sinusoid_table(13, D_MODEL),
        day=sinusoid_table(32, D_MODEL),
        weekday=sinusoid_table(7, D_MODEL),
        hour=sinusoid_table(24, D_MODEL))
    return params


# ----------------------------- main ------------------------------------------
if __name__ == "__main__":
    raw = init_params(jax.random.PRNGKey(0))
    packed_w, idx = pack_params(raw)
    fwd = make_forward(idx, raw['tables'])

    dk = jax.random.split(jax.random.PRNGKey(0), 8)
    x_enc = jax.random.normal(dk[0], (B, SEQ_LEN, ENC_IN), jnp.float32)
    x_dec = jax.random.normal(dk[1], (B, DEC_LEN, DEC_IN), jnp.float32)

    def make_marks(key, L):
        k1, k2, k3, k4 = jax.random.split(key, 4)
        return jnp.stack([
            jax.random.randint(k1, (B, L), 1, 13),    # month
            jax.random.randint(k2, (B, L), 1, 32),    # day
            jax.random.randint(k3, (B, L), 0, 7),     # weekday
            jax.random.randint(k4, (B, L), 0, 24),    # hour
        ], axis=-1).astype(jnp.int32)

    x_mark_enc = make_marks(dk[2], SEQ_LEN)
    x_mark_dec = make_marks(dk[3], DEC_LEN)

    out = fwd(packed_w, x_enc, x_mark_enc, x_dec, x_mark_dec)
    out = jax.block_until_ready(out)

    assert out.shape == (B, PRED_LEN, C_OUT), out.shape
    assert bool(jnp.all(jnp.isfinite(out)))
    print("KERNEL_OK")
</pallas_src>

<mosaic_0001>
module attributes {stable_mosaic.version = 11 : i64} {
  func.func @_informer_kernel(%arg0: memref<2072x128xf32, #tpu.memory_space<vmem>>, %arg1: memref<32x44xf32, #tpu.memory_space<vmem>>, %arg2: memref<32x44xf32, #tpu.memory_space<vmem>>, %arg3: memref<32x4xf32, #tpu.memory_space<vmem>>) attributes {dimension_semantics = [], scalar_prefetch = 0 : i64, scratch_operands = 0 : i64, tpu.core_type = #tpu.core_type<tc>} {
    %c0 = arith.constant 0 : index
    %c0_0 = arith.constant 0 : index
    %0 = vector.load %arg1[%c0, %c0_0] : memref<32x44xf32, #tpu.memory_space<vmem>>, vector<32x44xf32>
    %c0_1 = arith.constant 0 : index
    %c0_2 = arith.constant 0 : index
    %1 = vector.load %arg0[%c0_1, %c0_2] : memref<2072x128xf32, #tpu.memory_space<vmem>>, vector<44x32xf32>
    %cst = arith.constant dense<0.000000e+00> : vector<32x32xf32>
    %2 = tpu.matmul %0, %1, %cst {dimension_numbers = #tpu.dot_dimension_numbers<[1], [0], [0], [1], [0, 0, 1, 1], [], []>} : vector<32x44xf32>, vector<44x32xf32>, vector<32x32xf32> -> vector<32x32xf32>
    %c48 = arith.constant 48 : index
    %c0_3 = arith.constant 0 : index
    %3 = vector.load %arg0[%c48, %c0_3] : memref<2072x128xf32, #tpu.memory_space<vmem>>, vector<1x32xf32>
    %4 = vector.broadcast %3 : vector<1x32xf32> to vector<32x32xf32>
    %5 = arith.addf %2, %4 : vector<32x32xf32>
    %c112 = arith.constant 112 : index
    %c0_4 = arith.constant 0 : index
    %6 = vector.load %arg0[%c112, %c0_4] : memref<2072x128xf32, #tpu.memory_space<vmem>>, vector<32x64xf32>
    %cst_5 = arith.constant dense<0.000000e+00> : vector<32x64xf32>
    %7 = tpu.matmul %5, %6, %cst_5 {dimension_numbers = #tpu.dot_dimension_numbers<[1], [0], [0], [1], [0, 0, 1, 1], [], []>} : vector<32x32xf32>, vector<32x64xf32>, vector<32x64xf32> -> vector<32x64xf32>
    %c144 = arith.constant 144 : index
    %c0_6 = arith.constant 0 : index
    %8 = vector.load %arg0[%c144, %c0_6] : memref<2072x128xf32, #tpu.memory_space<vmem>>, vector<1x64xf32>
    %9 = vector.broadcast %8 : vector<1x64xf32> to vector<32x64xf32>
    %10 = arith.addf %7, %9 : vector<32x64xf32>
    %c152 = arith.constant 152 : index
    %c0_7 = arith.constant 0 : index
    %11 = vector.load %arg0[%c152, %c0_7] : memref<2072x128xf32, #tpu.memory_space<vmem>>, vector<32x64xf32>
    %cst_8 = arith.constant dense<0.000000e+00> : vector<32x64xf32>
    %12 = tpu.matmul %5, %11, %cst_8 {dimension_numbers = #tpu.dot_dimension_numbers<[1], [0], [0], [1], [0, 0, 1, 1], [], []>} : vector<32x32xf32>, vector<32x64xf32>, vector<32x64xf32> -> vector<32x64xf32>
    %c184 = arith.constant 184 : index
    %c0_9 = arith.constant 0 : index
    %13 = vector.load %arg0[%c184, %c0_9] : memref<2072x128xf32, #tpu.memory_space<vmem>>, vector<1x64xf32>
    %14 = vector.broadcast %13 : vector<1x64xf32> to vector<32x64xf32>
    %15 = arith.addf %12, %14 : vector<32x64xf32>
    %c1376 = arith.constant 1376 : index
    %c0_10 = arith.constant 0 : index
    %16 = vector.load %arg0[%c1376, %c0_10] : memref<2072x128xf32, #tpu.memory_space<vmem>>, vector<128x32xf32>
    %cst_11 = arith.constant dense<0.000000e+00> : vector<128x64xf32>
    %17 = tpu.matmul %16, %15, %cst_11 {dimension_numbers = #tpu.dot_dimension_numbers<[1], [0], [0], [1], [0, 0, 1, 1], [], []>} : vector<128x32xf32>, vector<32x64xf32>, vector<128x64xf32> -> vector<128x64xf32>
    %c1504 = arith.constant 1504 : index
    %c0_12 = arith.constant 0 : index
    %18 = vector.load %arg0[%c1504, %c0_12] : memref<2072x128xf32, #tpu.memory_space<vmem>>, vector<128x64xf32>
    %19 = arith.mulf %17, %18 : vector<128x64xf32>
    %cst_13 = arith.constant dense<0.000000e+00> : vector<32x128xf32>
    %20 = tpu.matmul %10, %19, %cst_13 {dimension_numbers = #tpu.dot_dimension_numbers<[1], [1], [0], [0], [0, 0, 1, 0], [], []>} : vector<32x64xf32>, vector<128x64xf32>, vector<32x128xf32> -> vector<32x128xf32>
    %cst_14 = arith.constant 0.353553385 : f32
    %21 = vector.broadcast %cst_14 : f32 to vector<32x128xf32>
    %22 = arith.mulf %20, %21 : vector<32x128xf32>
    %c1760 = arith.constant 1760 : index
    %c0_15 = arith.constant 0 : index
    %23 = vector.load %arg0[%c1760, %c0_15] : memref<2072x128xf32, #tpu.memory_space<vmem>>, vector<32x128xf32>
    %24 = arith.addf %22, %23 : vector<32x128xf32>
    %cst_16 = arith.constant dense<0xFF800000> : vector<32xf32>
    %25 = vector.multi_reduction <maximumf>, %24, %cst_16 [1] : vector<32x128xf32> to vector<32xf32>
    %26 = vector.shape_cast %25 : vector<32xf32> to vector<32x1xf32>
    %27 = vector.broadcast %26 : vector<32x1xf32> to vector<32x128xf32>
    %28 = arith.subf %24, %27 : vector<32x128xf32>
    %29 = math.exp %28 : vector<32x128xf32>
    %c1632 = arith.constant 1632 : index
    %c0_17 = arith.constant 0 : index
    %30 = vector.load %arg0[%c1632, %c0_17] : memref<2072x128xf32, #tpu.memory_space<vmem>>, vector<128x128xf32>
    %cst_18 = arith.constant dense<0.000000e+00> : vector<32x128xf32>
    %31 = tpu.matmul %29, %30, %cst_18 {dimension_numbers = #tpu.dot_dimension_numbers<[1], [0], [0], [1], [0, 0, 1, 1], [], []>} : vector<32x128xf32>, vector<128x128xf32>, vector<32x128xf32> -> vector<32x128xf32>
    %32 = tpu.reciprocal %31 {approx = true} : vector<32x128xf32> -> vector<32x128xf32>
    %33 = arith.mulf %29, %32 : vector<32x128xf32>
    %cst_19 = arith.constant dense<0.000000e+00> : vector<32x64xf32>
    %34 = tpu.matmul %33, %19, %cst_19 {dimension_numbers = #tpu.dot_dimension_numbers<[1], [0], [0], [1], [0, 0, 1, 1], [], []>} : vector<32x128xf32>, vector<128x64xf32>, vector<32x64xf32> -> vector<32x64xf32>
    %c192 = arith.constant 192 : index
    %c0_20 = arith.constant 0 : index
    %35 = vector.load %arg0[%c192, %c0_20] : memref<2072x128xf32, #tpu.memory_space<vmem>>, vector<64x32xf32>
    %cst_21 = arith.constant dense<0.000000e+00> : vector<32x32xf32>
    %36 = tpu.matmul %34, %35, %cst_21 {dimension_numbers = #tpu.dot_dimension_numbers<[1], [0], [0], [1], [0, 0, 1, 1], [], []>} : vector<32x64xf32>, vector<64x32xf32>, vector<32x32xf32> -> vector<32x32xf32>
    %c256 = arith.constant 256 : index
    %c0_22 = arith.constant 0 : index
    %37 = vector.load %arg0[%c256, %c0_22] : memref<2072x128xf32, #tpu.memory_space<vmem>>, vector<1x32xf32>
    %38 = vector.broadcast %37 : vector<1x32xf32> to vector<32x32xf32>
    %39 = arith.addf %36, %38 : vector<32x32xf32>
    %40 = arith.addf %5, %39 : vector<32x32xf32>
    %cst_23 = arith.constant dense<0.000000e+00> : vector<32xf32>
    %41 = vector.multi_reduction <add>, %40, %cst_23 [1] : vector<32x32xf32> to vector<32xf32>
    %42 = vector.shape_cast %41 : vector<32xf32> to vector<32x1xf32>
    %cst_24 = arith.constant 3.200000e+01 : f32
    %43 = vector.broadcast %cst_24 : f32 to vector<32x1xf32>
    %44 = arith.divf %42, %43 : vector<32x1xf32>
    %45 = vector.broadcast %44 : vector<32x1xf32> to vector<32x32xf32>
    %46 = arith.subf %40, %45 : vector<32x32xf32>
    %47 = arith.mulf %46, %46 : vector<32x32xf32>
    %cst_25 = arith.constant dense<0.000000e+00> : vector<32xf32>
    %48 = vector.multi_reduction <add>, %47, %cst_25 [1] : vector<32x32xf32> to vector<32xf32>
    %49 = vector.shape_cast %48 : vector<32xf32> to vector<32x1xf32>
    %cst_26 = arith.constant 3.200000e+01 : f32
    %50 = vector.broadcast %cst_26 : f32 to vector<32x1xf32>
    %51 = arith.divf %49, %50 : vector<32x1xf32>
    %cst_27 = arith.constant 9.99999974E-6 : f32
    %52 = vector.broadcast %cst_27 : f32 to vector<32x1xf32>
    %53 = arith.addf %51, %52 : vector<32x1xf32>
    %54 = math.rsqrt %53 : vector<32x1xf32>
    %55 = vector.broadcast %54 : vector<32x1xf32> to vector<32x32xf32>
    %56 = arith.mulf %46, %55 : vector<32x32xf32>
    %c344 = arith.constant 344 : index
    %c0_28 = arith.constant 0 : index
    %57 = vector.load %arg0[%c344, %c0_28] : memref<2072x128xf32, #tpu.memory_space<vmem>>, vector<1x32xf32>
    %58 = vector.broadcast %57 : vector<1x32xf32> to vector<32x32xf32>
    %59 = arith.mulf %56, %58 : vector<32x32xf32>
    %c352 = arith.constant 352 : index
    %c0_29 = arith.constant 0 : index
    %60 = vector.load %arg0[%c352, %c0_29] : memref<2072x128xf32, #tpu.memory_space<vmem>>, vector<1x32xf32>
    %61 = vector.broadcast %60 : vector<1x32xf32> to vector<32x32xf32>
    %62 = arith.addf %59, %61 : vector<32x32xf32>
    %c264 = arith.constant 264 : index
    %c0_30 = arith.constant 0 : index
    %63 = vector.load %arg0[%c264, %c0_30] : memref<2072x128xf32, #tpu.memory_space<vmem>>, vector<32x32xf32>
    %cst_31 = arith.constant dense<0.000000e+00> : vector<32x32xf32>
    %64 = tpu.matmul %62, %63, %cst_31 {dimension_numbers = #tpu.dot_dimension_numbers<[1], [0], [0], [1], [0, 0, 1, 1], [], []>} : vector<32x32xf32>, vector<32x32xf32>, vector<32x32xf32> -> vector<32x32xf32>
    %c296 = arith.constant 296 : index
    %c0_32 = arith.constant 0 : index
    %65 = vector.load %arg0[%c296, %c0_32] : memref<2072x128xf32, #tpu.memory_space<vmem>>, vector<1x32xf32>
    %66 = vector.broadcast %65 : vector<1x32xf32> to vector<32x32xf32>
    %67 = arith.addf %64, %66 : vector<32x32xf32>
    %cst_33 = arith.constant 5.000000e-01 : f32
    %68 = vector.broadcast %cst_33 : f32 to vector<32x32xf32>
    %69 = arith.mulf %68, %67 : vector<32x32xf32>
    %cst_34 = arith.constant 0.707106769 : f32
    %70 = vector.broadcast %cst_34 : f32 to vector<32x32xf32>
    %71 = arith.mulf %67, %70 : vector<32x32xf32>
    %cst_35 = arith.constant 0.000000e+00 : f32
    %72 = vector.broadcast %cst_35 : f32 to vector<32x32xf32>
    %73 = arith.cmpf oge, %71, %72 : vector<32x32xf32>
    %cst_36 = arith.constant 1.000000e+00 : f32
    %cst_37 = arith.constant -1.000000e+00 : f32
    %74 = vector.broadcast %cst_36 : f32 to vector<32x32xf32>
    %75 = vector.broadcast %cst_37 : f32 to vector<32x32xf32>
    %76 = arith.select %73, %74, %75 : vector<32x32xi1>, vector<32x32xf32>
    %77 = math.absf %71 : vector<32x32xf32>
    %cst_38 = arith.constant 0.327591091 : f32
    %78 = vector.broadcast %cst_38 : f32 to vector<32x32xf32>
    %79 = arith.mulf %78, %77 : vector<32x32xf32>
    %cst_39 = arith.constant 1.000000e+00 : f32
    %80 = vector.broadcast %cst_39 : f32 to vector<32x32xf32>
    %81 = arith.addf %80, %79 : vector<32x32xf32>
    %cst_40 = arith.constant 1.000000e+00 : f32
    %82 = vector.broadcast %cst_40 : f32 to vector<32x32xf32>
    %83 = arith.divf %82, %81 : vector<32x32xf32>
    %cst_41 = arith.constant 1.06140542 : f32
    %84 = vector.broadcast %cst_41 : f32 to vector<32x32xf32>
    %85 = arith.mulf %84, %83 : vector<32x32xf32>
    %cst_42 = arith.constant -1.45315206 : f32
    %86 = vector.broadcast %cst_42 : f32 to vector<32x32xf32>
    %87 = arith.addf %85, %86 : vector<32x32xf32>
    %88 = arith.mulf %87, %83 : vector<32x32xf32>
    %cst_43 = arith.constant 1.42141378 : f32
    %89 = vector.broadcast %cst_43 : f32 to vector<32x32xf32>
    %90 = arith.addf %88, %89 : vector<32x32xf32>
    %91 = arith.mulf %90, %83 : vector<32x32xf32>
    %cst_44 = arith.constant -0.284496725 : f32
    %92 = vector.broadcast %cst_44 : f32 to vector<32x32xf32>
    %93 = arith.addf %91, %92 : vector<32x32xf32>
    %94 = arith.mulf %93, %83 : vector<32x32xf32>
    %cst_45 = arith.constant 0.254829586 : f32
    %95 = vector.broadcast %cst_45 : f32 to vector<32x32xf32>
    %96 = arith.addf %94, %95 : vector<32x32xf32>
    %97 = arith.mulf %96, %83 : vector<32x32xf32>
    %cst_46 = arith.constant 0.000000e+00 : f32
    %98 = vector.broadcast %cst_46 : f32 to vector<32x32xf32>
    %99 = arith.subf %98, %77 : vector<32x32xf32>
    %100 = arith.mulf %99, %77 : vector<32x32xf32>
    %101 = math.exp %100 : vector<32x32xf32>
    %102 = arith.mulf %97, %101 : vector<32x32xf32>
    %cst_47 = arith.constant 1.000000e+00 : f32
    %103 = vector.broadcast %cst_47 : f32 to vector<32x32xf32>
    %104 = arith.subf %103, %102 : vector<32x32xf32>
    %105 = arith.mulf %76, %104 : vector<32x32xf32>
    %cst_48 = arith.constant 1.000000e+00 : f32
    %106 = vector.broadcast %cst_48 : f32 to vector<32x32xf32>
    %107 = arith.addf %106, %105 : vector<32x32xf32>
    %108 = arith.mulf %69, %107 : vector<32x32xf32>
    %c304 = arith.constant 304 : index
    %c0_49 = arith.constant 0 : index
    %109 = vector.load %arg0[%c304, %c0_49] : memref<2072x128xf32, #tpu.memory_space<vmem>>, vector<32x32xf32>
    %cst_50 = arith.constant dense<0.000000e+00> : vector<32x32xf32>
    %110 = tpu.matmul %108, %109, %cst_50 {dimension_numbers = #tpu.dot_dimension_numbers<[1], [0], [0], [1], [0, 0, 1, 1], [], []>} : vector<32x32xf32>, vector<32x32xf32>, vector<32x32xf32> -> vector<32x32xf32>
    %c336 = arith.constant 336 : index
    %c0_51 = arith.constant 0 : index
    %111 = vector.load %arg0[%c336, %c0_51] : memref<2072x128xf32, #tpu.memory_space<vmem>>, vector<1x32xf32>
    %112 = vector.broadcast %111 : vector<1x32xf32> to vector<32x32xf32>
    %113 = arith.addf %110, %112 : vector<32x32xf32>
    %114 = arith.addf %62, %113 : vector<32x32xf32>
    %cst_52 = arith.constant dense<0.000000e+00> : vector<32xf32>
    %115 = vector.multi_reduction <add>, %114, %cst_52 [1] : vector<32x32xf32> to vector<32xf32>
    %116 = vector.shape_cast %115 : vector<32xf32> to vector<32x1xf32>
    %cst_53 = arith.constant 3.200000e+01 : f32
    %117 = vector.broadcast %cst_53 : f32 to vector<32x1xf32>
    %118 = arith.divf %116, %117 : vector<32x1xf32>
    %119 = vector.broadcast %118 : vector<32x1xf32> to vector<32x32xf32>
    %120 = arith.subf %114, %119 : vector<32x32xf32>
    %121 = arith.mulf %120, %120 : vector<32x32xf32>
    %cst_54 = arith.constant dense<0.000000e+00> : vector<32xf32>
    %122 = vector.multi_reduction <add>, %121, %cst_54 [1] : vector<32x32xf32> to vector<32xf32>
    %123 = vector.shape_cast %122 : vector<32xf32> to vector<32x1xf32>
    %cst_55 = arith.constant 3.200000e+01 : f32
    %124 = vector.broadcast %cst_55 : f32 to vector<32x1xf32>
    %125 = arith.divf %123, %124 : vector<32x1xf32>
    %cst_56 = arith.constant 9.99999974E-6 : f32
    %126 = vector.broadcast %cst_56 : f32 to vector<32x1xf32>
    %127 = arith.addf %125, %126 : vector<32x1xf32>
    %128 = math.rsqrt %127 : vector<32x1xf32>
    %129 = vector.broadcast %128 : vector<32x1xf32> to vector<32x32xf32>
    %130 = arith.mulf %120, %129 : vector<32x32xf32>
    %c360 = arith.constant 360 : index
    %c0_57 = arith.constant 0 : index
    %131 = vector.load %arg0[%c360, %c0_57] : memref<2072x128xf32, #tpu.memory_space<vmem>>, vector<1x32xf32>
    %132 = vector.broadcast %131 : vector<1x32xf32> to vector<32x32xf32>
    %133 = arith.mulf %130, %132 : vector<32x32xf32>
    %c368 = arith.constant 368 : index
    %c0_58 = arith.constant 0 : index
    %134 = vector.load %arg0[%c368, %c0_58] : memref<2072x128xf32, #tpu.memory_space<vmem>>, vector<1x32xf32>
    %135 = vector.broadcast %134 : vector<1x32xf32> to vector<32x32xf32>
    %136 = arith.addf %133, %135 : vector<32x32xf32>
    %c1880 = arith.constant 1880 : index
    %c0_59 = arith.constant 0 : index
    %137 = vector.load %arg0[%c1880, %c0_59] : memref<2072x128xf32, #tpu.memory_space<vmem>>, vector<32x32xf32>
    %cst_60 = arith.constant dense<0.000000e+00> : vector<32x32xf32>
    %138 = tpu.matmul %137, %136, %cst_60 {dimension_numbers = #tpu.dot_dimension_numbers<[1], [0], [0], [1], [0, 0, 1, 1], [], []>} : vector<32x32xf32>, vector<32x32xf32>, vector<32x32xf32> -> vector<32x32xf32>
    %c1912 = arith.constant 1912 : index
    %c0_61 = arith.constant 0 : index
    %139 = vector.load %arg0[%c1912, %c0_61] : memref<2072x128xf32, #tpu.memory_space<vmem>>, vector<32x32xf32>
    %cst_62 = arith.constant dense<0.000000e+00> : vector<32x32xf32>
    %140 = tpu.matmul %139, %136, %cst_62 {dimension_numbers = #tpu.dot_dimension_numbers<[1], [0], [0], [1], [0, 0, 1, 1], [], []>} : vector<32x32xf32>, vector<32x32xf32>, vector<32x32xf32> -> vector<32x32xf32>
    %c376 = arith.constant 376 : index
    %c0_63 = arith.constant 0 : index
    %141 = vector.load %arg0[%c376, %c0_63] : memref<2072x128xf32, #tpu.memory_space<vmem>>, vector<32x32xf32>
    %cst_64 = arith.constant dense<0.000000e+00> : vector<32x32xf32>
    %142 = tpu.matmul %138, %141, %cst_64 {dimension_numbers = #tpu.dot_dimension_numbers<[1], [0], [0], [1], [0, 0, 1, 1], [], []>} : vector<32x32xf32>, vector<32x32xf32>, vector<32x32xf32> -> vector<32x32xf32>
    %c408 = arith.constant 408 : index
    %c0_65 = arith.constant 0 : index
    %143 = vector.load %arg0[%c408, %c0_65] : memref<2072x128xf32, #tpu.memory_space<vmem>>, vector<32x32xf32>
    %cst_66 = arith.constant dense<0.000000e+00> : vector<32x32xf32>
    %144 = tpu.matmul %136, %143, %cst_66 {dimension_numbers = #tpu.dot_dimension_numbers<[1], [0], [0], [1], [0, 0, 1, 1], [], []>} : vector<32x32xf32>, vector<32x32xf32>, vector<32x32xf32> -> vector<32x32xf32>
    %145 = arith.addf %142, %144 : vector<32x32xf32>
    %c440 = arith.constant 440 : index
    %c0_67 = arith.constant 0 : index
    %146 = vector.load %arg0[%c440, %c0_67] : memref<2072x128xf32, #tpu.memory_space<vmem>>, vector<32x32xf32>
    %cst_68 = arith.constant dense<0.000000e+00> : vector<32x32xf32>
    %147 = tpu.matmul %140, %146, %cst_68 {dimension_numbers = #tpu.dot_dimension_numbers<[1], [0], [0], [1], [0, 0, 1, 1], [], []>} : vector<32x32xf32>, vector<32x32xf32>, vector<32x32xf32> -> vector<32x32xf32>
    %148 = arith.addf %145, %147 : vector<32x32xf32>
    %c472 = arith.constant 472 : index
    %c0_69 = arith.constant 0 : index
    %149 = vector.load %arg0[%c472, %c0_69] : memref<2072x128xf32, #tpu.memory_space<vmem>>, vector<1x32xf32>
    %150 = vector.broadcast %149 : vector<1x32xf32> to vector<32x32xf32>
    %151 = arith.addf %148, %150 : vector<32x32xf32>
    %cst_70 = arith.constant 0.000000e+00 : f32
    %152 = vector.broadcast %cst_70 : f32 to vector<32x32xf32>
    %153 = arith.cmpf ogt, %151, %152 : vector<32x32xf32>
    %cst_71 = arith.constant 0.000000e+00 : f32
    %154 = vector.broadcast %cst_71 : f32 to vector<32x32xf32>
    %155 = arith.minimumf %151, %154 : vector<32x32xf32>
    %156 = math.exp %155 : vector<32x32xf32>
    %cst_72 = arith.constant 1.000000e+00 : f32
    %157 = vector.broadcast %cst_72 : f32 to vector<32x32xf32>
    %158 = arith.subf %156, %157 : vector<32x32xf32>
    %159 = arith.select %153, %151, %158 : vector<32x32xi1>, vector<32x32xf32>
    %c1944 = arith.constant 1944 : index
    %c0_73 = arith.constant 0 : index
    %160 = vector.load %arg0[%c1944, %c0_73] : memref<2072x128xf32, #tpu.memory_space<vmem>>, vector<16x32xf32>
    %cst_74 = arith.constant dense<0.000000e+00> : vector<16x32xf32>
    %161 = tpu.matmul %160, %159, %cst_74 {dimension_numbers = #tpu.dot_dimension_numbers<[1], [0], [0], [1], [0, 0, 1, 1], [], []>} : vector<16x32xf32>, vector<32x32xf32>, vector<16x32xf32> -> vector<16x32xf32>
    %c1960 = arith.constant 1960 : index
    %c0_75 = arith.constant 0 : index
    %162 = vector.load %arg0[%c1960, %c0_75] : memref<2072x128xf32, #tpu.memory_space<vmem>>, vector<16x32xf32>
    %cst_76 = arith.constant dense<0.000000e+00> : vector<16x32xf32>
    %163 = tpu.matmul %162, %159, %cst_76 {dimension_numbers = #tpu.dot_dimension_numbers<[1], [0], [0], [1], [0, 0, 1, 1], [], []>} : vector<16x32xf32>, vector<32x32xf32>, vector<16x32xf32> -> vector<16x32xf32>
    %c1976 = arith.constant 1976 : index
    %c0_77 = arith.constant 0 : index
    %164 = vector.load %arg0[%c1976, %c0_77] : memref<2072x128xf32, #tpu.memory_space<vmem>>, vector<16x32xf32>
    %cst_78 = arith.constant dense<0.000000e+00> : vector<16x32xf32>
    %165 = tpu.matmul %164, %159, %cst_78 {dimension_numbers = #tpu.dot_dimension_numbers<[1], [0], [0], [1], [0, 0, 1, 1], [], []>} : vector<16x32xf32>, vector<32x32xf32>, vector<16x32xf32> -> vector<16x32xf32>
    %c1992 = arith.constant 1992 : index
    %c0_79 = arith.constant 0 : index
    %166 = vector.load %arg0[%c1992, %c0_79] : memref<2072x128xf32, #tpu.memory_space<vmem>>, vector<16x32xf32>
    %167 = arith.addf %165, %166 : vector<16x32xf32>
    %168 = arith.maximumf %163, %167 : vector<16x32xf32>
    %169 = arith.maximumf %161, %168 : vector<16x32xf32>
    %c112_80 = arith.constant 112 : index
    %c0_81 = arith.constant 0 : index
    %170 = vector.load %arg0[%c112_80, %c0_81] : memref<2072x128xf32, #tpu.memory_space<vmem>>, vector<32x64xf32>
    %cst_82 = arith.constant dense<0.000000e+00> : vector<16x64xf32>
    %171 = tpu.matmul %169, %170, %cst_82 {dimension_numbers = #tpu.dot_dimension_numbers<[1], [0], [0], [1], [0, 0, 1, 1], [], []>} : vector<16x32xf32>, vector<32x64xf32>, vector<16x64xf32> -> vector<16x64xf32>
    %c144_83 = arith.constant 144 : index
    %c0_84 = arith.constant 0 : index
    %172 = vector.load %arg0[%c144_83, %c0_84] : memref<2072x128xf32, #tpu.memory_space<vmem>>, vector<1x64xf32>
    %173 = vector.broadcast %172 : vector<1x64xf32> to vector<16x64xf32>
    %174 = arith.addf %171, %173 : vector<16x64xf32>
    %c152_85 = arith.constant 152 : index
    %c0_86 = arith.constant 0 : index
    %175 = vector.load %arg0[%c152_85, %c0_86] : memref<2072x128xf32, #tpu.memory_space<vmem>>, vector<32x64xf32>
    %cst_87 = arith.constant dense<0.000000e+00> : vector<16x64xf32>
    %176 = tpu.matmul %169, %175, %cst_87 {dimension_numbers = #tpu.dot_dimension_numbers<[1], [0], [0], [1], [0, 0, 1, 1], [], []>} : vector<16x32xf32>, vector<32x64xf32>, vector<16x64xf32> -> vector<16x64xf32>
    %c184_88 = arith.constant 184 : index
    %c0_89 = arith.constant 0 : index
    %177 = vector.load %arg0[%c184_88, %c0_89] : memref<2072x128xf32, #tpu.memory_space<vmem>>, vector<1x64xf32>
    %178 = vector.broadcast %177 : vector<1x64xf32> to vector<16x64xf32>
    %179 = arith.addf %176, %178 : vector<16x64xf32>
    %c1184 = arith.constant 1184 : index
    %c0_90 = arith.constant 0 : index
    %180 = vector.load %arg0[%c1184, %c0_90] : memref<2072x128xf32, #tpu.memory_space<vmem>>, vector<64x16xf32>
    %cst_91 = arith.constant dense<0.000000e+00> : vector<64x64xf32>
    %181 = tpu.matmul %180, %179, %cst_91 {dimension_numbers = #tpu.dot_dimension_numbers<[1], [0], [0], [1], [0, 0, 1, 1], [], []>} : vector<64x16xf32>, vector<16x64xf32>, vector<64x64xf32> -> vector<64x64xf32>
    %c1248 = arith.constant 1248 : index
    %c0_92 = arith.constant 0 : index
    %182 = vector.load %arg0[%c1248, %c0_92] : memref<2072x128xf32, #tpu.memory_space<vmem>>, vector<64x64xf32>
    %183 = arith.mulf %181, %182 : vector<64x64xf32>
    %cst_93 = arith.constant dense<0.000000e+00> : vector<16x64xf32>
    %184 = tpu.matmul %174, %183, %cst_93 {dimension_numbers = #tpu.dot_dimension_numbers<[1], [1], [0], [0], [0, 0, 1, 0], [], []>} : vector<16x64xf32>, vector<64x64xf32>, vector<16x64xf32> -> vector<16x64xf32>
    %cst_94 = arith.constant 0.353553385 : f32
    %185 = vector.broadcast %cst_94 : f32 to vector<16x64xf32>
    %186 = arith.mulf %184, %185 : vector<16x64xf32>
    %c1792 = arith.constant 1792 : index
    %c0_95 = arith.constant 0 : index
    %187 = vector.load %arg0[%c1792, %c0_95] : memref<2072x128xf32, #tpu.memory_space<vmem>>, vector<16x64xf32>
    %188 = arith.addf %186, %187 : vector<16x64xf32>
    %cst_96 = arith.constant dense<0xFF800000> : vector<16xf32>
    %189 = vector.multi_reduction <maximumf>, %188, %cst_96 [1] : vector<16x64xf32> to vector<16xf32>
    %190 = vector.shape_cast %189 : vector<16xf32> to vector<16x1xf32>
    %191 = vector.broadcast %190 : vector<16x1xf32> to vector<16x64xf32>
    %192 = arith.subf %188, %191 : vector<16x64xf32>
    %193 = math.exp %192 : vector<16x64xf32>
    %c1312 = arith.constant 1312 : index
    %c0_97 = arith.constant 0 : index
    %194 = vector.load %arg0[%c1312, %c0_97] : memref<2072x128xf32, #tpu.memory_space<vmem>>, vector<64x64xf32>
    %cst_98 = arith.constant dense<0.000000e+00> : vector<16x64xf32>
    %195 = tpu.matmul %193, %194, %cst_98 {dimension_numbers = #tpu.dot_dimension_numbers<[1], [0], [0], [1], [0, 0, 1, 1], [], []>} : vector<16x64xf32>, vector<64x64xf32>, vector<16x64xf32> -> vector<16x64xf32>
    %196 = tpu.reciprocal %195 {approx = true} : vector<16x64xf32> -> vector<16x64xf32>
    %197 = arith.mulf %193, %196 : vector<16x64xf32>
    %cst_99 = arith.constant dense<0.000000e+00> : vector<16x64xf32>
    %198 = tpu.matmul %197, %183, %cst_99 {dimension_numbers = #tpu.dot_dimension_numbers<[1], [0], [0], [1], [0, 0, 1, 1], [], []>} : vector<16x64xf32>, vector<64x64xf32>, vector<16x64xf32> -> vector<16x64xf32>
    %c192_100 = arith.constant 192 : index
    %c0_101 = arith.constant 0 : index
    %199 = vector.load %arg0[%c192_100, %c0_101] : memref<2072x128xf32, #tpu.memory_space<vmem>>, vector<64x32xf32>
    %cst_102 = arith.constant dense<0.000000e+00> : vector<16x32xf32>
    %200 = tpu.matmul %198, %199, %cst_102 {dimension_numbers = #tpu.dot_dimension_numbers<[1], [0], [0], [1], [0, 0, 1, 1], [], []>} : vector<16x64xf32>, vector<64x32xf32>, vector<16x32xf32> -> vector<16x32xf32>
    %c256_103 = arith.constant 256 : index
    %c0_104 = arith.constant 0 : index
    %201 = vector.load %arg0[%c256_103, %c0_104] : memref<2072x128xf32, #tpu.memory_space<vmem>>, vector<1x32xf32>
    %202 = vector.broadcast %201 : vector<1x32xf32> to vector<16x32xf32>
    %203 = arith.addf %200, %202 : vector<16x32xf32>
    %204 = arith.addf %169, %203 : vector<16x32xf32>
    %cst_105 = arith.constant dense<0.000000e+00> : vector<16xf32>
    %205 = vector.multi_reduction <add>, %204, %cst_105 [1] : vector<16x32xf32> to vector<16xf32>
    %206 = vector.shape_cast %205 : vector<16xf32> to vector<16x1xf32>
    %cst_106 = arith.constant 3.200000e+01 : f32
    %207 = vector.broadcast %cst_106 : f32 to vector<16x1xf32>
    %208 = arith.divf %206, %207 : vector<16x1xf32>
    %209 = vector.broadcast %208 : vector<16x1xf32> to vector<16x32xf32>
    %210 = arith.subf %204, %209 : vector<16x32xf32>
    %211 = arith.mulf %210, %210 : vector<16x32xf32>
    %cst_107 = arith.constant dense<0.000000e+00> : vector<16xf32>
    %212 = vector.multi_reduction <add>, %211, %cst_107 [1] : vector<16x32xf32> to vector<16xf32>
    %213 = vector.shape_cast %212 : vector<16xf32> to vector<16x1xf32>
    %cst_108 = arith.constant 3.200000e+01 : f32
    %214 = vector.broadcast %cst_108 : f32 to vector<16x1xf32>
    %215 = arith.divf %213, %214 : vector<16x1xf32>
    %cst_109 = arith.constant 9.99999974E-6 : f32
    %216 = vector.broadcast %cst_109 : f32 to vector<16x1xf32>
    %217 = arith.addf %215, %216 : vector<16x1xf32>
    %218 = math.rsqrt %217 : vector<16x1xf32>
    %219 = vector.broadcast %218 : vector<16x1xf32> to vector<16x32xf32>
    %220 = arith.mulf %210, %219 : vector<16x32xf32>
    %c344_110 = arith.constant 344 : index
    %c0_111 = arith.constant 0 : index
    %221 = vector.load %arg0[%c344_110, %c0_111] : memref<2072x128xf32, #tpu.memory_space<vmem>>, vector<1x32xf32>
    %222 = vector.broadcast %221 : vector<1x32xf32> to vector<16x32xf32>
    %223 = arith.mulf %220, %222 : vector<16x32xf32>
    %c352_112 = arith.constant 352 : index
    %c0_113 = arith.constant 0 : index
    %224 = vector.load %arg0[%c352_112, %c0_113] : memref<2072x128xf32, #tpu.memory_space<vmem>>, vector<1x32xf32>
    %225 = vector.broadcast %224 : vector<1x32xf32> to vector<16x32xf32>
    %226 = arith.addf %223, %225 : vector<16x32xf32>
    %c264_114 = arith.constant 264 : index
    %c0_115 = arith.constant 0 : index
    %227 = vector.load %arg0[%c264_114, %c0_115] : memref<2072x128xf32, #tpu.memory_space<vmem>>, vector<32x32xf32>
    %cst_116 = arith.constant dense<0.000000e+00> : vector<16x32xf32>
    %228 = tpu.matmul %226, %227, %cst_116 {dimension_numbers = #tpu.dot_dimension_numbers<[1], [0], [0], [1], [0, 0, 1, 1], [], []>} : vector<16x32xf32>, vector<32x32xf32>, vector<16x32xf32> -> vector<16x32xf32>
    %c296_117 = arith.constant 296 : index
    %c0_118 = arith.constant 0 : index
    %229 = vector.load %arg0[%c296_117, %c0_118] : memref<2072x128xf32, #tpu.memory_space<vmem>>, vector<1x32xf32>
    %230 = vector.broadcast %229 : vector<1x32xf32> to vector<16x32xf32>
    %231 = arith.addf %228, %230 : vector<16x32xf32>
    %cst_119 = arith.constant 5.000000e-01 : f32
    %232 = vector.broadcast %cst_119 : f32 to vector<16x32xf32>
    %233 = arith.mulf %232, %231 : vector<16x32xf32>
    %cst_120 = arith.constant 0.707106769 : f32
    %234 = vector.broadcast %cst_120 : f32 to vector<16x32xf32>
    %235 = arith.mulf %231, %234 : vector<16x32xf32>
    %cst_121 = arith.constant 0.000000e+00 : f32
    %236 = vector.broadcast %cst_121 : f32 to vector<16x32xf32>
    %237 = arith.cmpf oge, %235, %236 : vector<16x32xf32>
    %cst_122 = arith.constant 1.000000e+00 : f32
    %cst_123 = arith.constant -1.000000e+00 : f32
    %238 = vector.broadcast %cst_122 : f32 to vector<16x32xf32>
    %239 = vector.broadcast %cst_123 : f32 to vector<16x32xf32>
    %240 = arith.select %237, %238, %239 : vector<16x32xi1>, vector<16x32xf32>
    %241 = math.absf %235 : vector<16x32xf32>
    %cst_124 = arith.constant 0.327591091 : f32
    %242 = vector.broadcast %cst_124 : f32 to vector<16x32xf32>
    %243 = arith.mulf %242, %241 : vector<16x32xf32>
    %cst_125 = arith.constant 1.000000e+00 : f32
    %244 = vector.broadcast %cst_125 : f32 to vector<16x32xf32>
    %245 = arith.addf %244, %243 : vector<16x32xf32>
    %cst_126 = arith.constant 1.000000e+00 : f32
    %246 = vector.broadcast %cst_126 : f32 to vector<16x32xf32>
    %247 = arith.divf %246, %245 : vector<16x32xf32>
    %cst_127 = arith.constant 1.06140542 : f32
    %248 = vector.broadcast %cst_127 : f32 to vector<16x32xf32>
    %249 = arith.mulf %248, %247 : vector<16x32xf32>
    %cst_128 = arith.constant -1.45315206 : f32
    %250 = vector.broadcast %cst_128 : f32 to vector<16x32xf32>
    %251 = arith.addf %249, %250 : vector<16x32xf32>
    %252 = arith.mulf %251, %247 : vector<16x32xf32>
    %cst_129 = arith.constant 1.42141378 : f32
    %253 = vector.broadcast %cst_129 : f32 to vector<16x32xf32>
    %254 = arith.addf %252, %253 : vector<16x32xf32>
    %255 = arith.mulf %254, %247 : vector<16x32xf32>
    %cst_130 = arith.constant -0.284496725 : f32
    %256 = vector.broadcast %cst_130 : f32 to vector<16x32xf32>
    %257 = arith.addf %255, %256 : vector<16x32xf32>
    %258 = arith.mulf %257, %247 : vector<16x32xf32>
    %cst_131 = arith.constant 0.254829586 : f32
    %259 = vector.broadcast %cst_131 : f32 to vector<16x32xf32>
    %260 = arith.addf %258, %259 : vector<16x32xf32>
    %261 = arith.mulf %260, %247 : vector<16x32xf32>
    %cst_132 = arith.constant 0.000000e+00 : f32
    %262 = vector.broadcast %cst_132 : f32 to vector<16x32xf32>
    %263 = arith.subf %262, %241 : vector<16x32xf32>
    %264 = arith.mulf %263, %241 : vector<16x32xf32>
    %265 = math.exp %264 : vector<16x32xf32>
    %266 = arith.mulf %261, %265 : vector<16x32xf32>
    %cst_133 = arith.constant 1.000000e+00 : f32
    %267 = vector.broadcast %cst_133 : f32 to vector<16x32xf32>
    %268 = arith.subf %267, %266 : vector<16x32xf32>
    %269 = arith.mulf %240, %268 : vector<16x32xf32>
    %cst_134 = arith.constant 1.000000e+00 : f32
    %270 = vector.broadcast %cst_134 : f32 to vector<16x32xf32>
    %271 = arith.addf %270, %269 : vector<16x32xf32>
    %272 = arith.mulf %233, %271 : vector<16x32xf32>
    %c304_135 = arith.constant 304 : index
    %c0_136 = arith.constant 0 : index
    %273 = vector.load %arg0[%c304_135, %c0_136] : memref<2072x128xf32, #tpu.memory_space<vmem>>, vector<32x32xf32>
    %cst_137 = arith.constant dense<0.000000e+00> : vector<16x32xf32>
    %274 = tpu.matmul %272, %273, %cst_137 {dimension_numbers = #tpu.dot_dimension_numbers<[1], [0], [0], [1], [0, 0, 1, 1], [], []>} : vector<16x32xf32>, vector<32x32xf32>, vector<16x32xf32> -> vector<16x32xf32>
    %c336_138 = arith.constant 336 : index
    %c0_139 = arith.constant 0 : index
    %275 = vector.load %arg0[%c336_138, %c0_139] : memref<2072x128xf32, #tpu.memory_space<vmem>>, vector<1x32xf32>
    %276 = vector.broadcast %275 : vector<1x32xf32> to vector<16x32xf32>
    %277 = arith.addf %274, %276 : vector<16x32xf32>
    %278 = arith.addf %226, %277 : vector<16x32xf32>
    %cst_140 = arith.constant dense<0.000000e+00> : vector<16xf32>
    %279 = vector.multi_reduction <add>, %278, %cst_140 [1] : vector<16x32xf32> to vector<16xf32>
    %280 = vector.shape_cast %279 : vector<16xf32> to vector<16x1xf32>
    %cst_141 = arith.constant 3.200000e+01 : f32
    %281 = vector.broadcast %cst_141 : f32 to vector<16x1xf32>
    %282 = arith.divf %280, %281 : vector<16x1xf32>
    %283 = vector.broadcast %282 : vector<16x1xf32> to vector<16x32xf32>
    %284 = arith.subf %278, %283 : vector<16x32xf32>
    %285 = arith.mulf %284, %284 : vector<16x32xf32>
    %cst_142 = arith.constant dense<0.000000e+00> : vector<16xf32>
    %286 = vector.multi_reduction <add>, %285, %cst_142 [1] : vector<16x32xf32> to vector<16xf32>
    %287 = vector.shape_cast %286 : vector<16xf32> to vector<16x1xf32>
    %cst_143 = arith.constant 3.200000e+01 : f32
    %288 = vector.broadcast %cst_143 : f32 to vector<16x1xf32>
    %289 = arith.divf %287, %288 : vector<16x1xf32>
    %cst_144 = arith.constant 9.99999974E-6 : f32
    %290 = vector.broadcast %cst_144 : f32 to vector<16x1xf32>
    %291 = arith.addf %289, %290 : vector<16x1xf32>
    %292 = math.rsqrt %291 : vector<16x1xf32>
    %293 = vector.broadcast %292 : vector<16x1xf32> to vector<16x32xf32>
    %294 = arith.mulf %284, %293 : vector<16x32xf32>
    %c360_145 = arith.constant 360 : index
    %c0_146 = arith.constant 0 : index
    %295 = vector.load %arg0[%c360_145, %c0_146] : memref<2072x128xf32, #tpu.memory_space<vmem>>, vector<1x32xf32>
    %296 = vector.broadcast %295 : vector<1x32xf32> to vector<16x32xf32>
    %297 = arith.mulf %294, %296 : vector<16x32xf32>
    %c368_147 = arith.constant 368 : index
    %c0_148 = arith.constant 0 : index
    %298 = vector.load %arg0[%c368_147, %c0_148] : memref<2072x128xf32, #tpu.memory_space<vmem>>, vector<1x32xf32>
    %299 = vector.broadcast %298 : vector<1x32xf32> to vector<16x32xf32>
    %300 = arith.addf %297, %299 : vector<16x32xf32>
    %c2008 = arith.constant 2008 : index
    %c0_149 = arith.constant 0 : index
    %301 = vector.load %arg0[%c2008, %c0_149] : memref<2072x128xf32, #tpu.memory_space<vmem>>, vector<16x16xf32>
    %cst_150 = arith.constant dense<0.000000e+00> : vector<16x32xf32>
    %302 = tpu.matmul %301, %300, %cst_150 {dimension_numbers = #tpu.dot_dimension_numbers<[1], [0], [0], [1], [0, 0, 1, 1], [], []>} : vector<16x16xf32>, vector<16x32xf32>, vector<16x32xf32> -> vector<16x32xf32>
    %c2024 = arith.constant 2024 : index
    %c0_151 = arith.constant 0 : index
    %303 = vector.load %arg0[%c2024, %c0_151] : memref<2072x128xf32, #tpu.memory_space<vmem>>, vector<16x16xf32>
    %cst_152 = arith.constant dense<0.000000e+00> : vector<16x32xf32>
    %304 = tpu.matmul %303, %300, %cst_152 {dimension_numbers = #tpu.dot_dimension_numbers<[1], [0], [0], [1], [0, 0, 1, 1], [], []>} : vector<16x16xf32>, vector<16x32xf32>, vector<16x32xf32> -> vector<16x32xf32>
    %c480 = arith.constant 480 : index
    %c0_153 = arith.constant 0 : index
    %305 = vector.load %arg0[%c480, %c0_153] : memref<2072x128xf32, #tpu.memory_space<vmem>>, vector<32x32xf32>
    %cst_154 = arith.constant dense<0.000000e+00> : vector<16x32xf32>
    %306 = tpu.matmul %302, %305, %cst_154 {dimension_numbers = #tpu.dot_dimension_numbers<[1], [0], [0], [1], [0, 0, 1, 1], [], []>} : vector<16x32xf32>, vector<32x32xf32>, vector<16x32xf32> -> vector<16x32xf32>
    %c512 = arith.constant 512 : index
    %c0_155 = arith.constant 0 : index
    %307 = vector.load %arg0[%c512, %c0_155] : memref<2072x128xf32, #tpu.memory_space<vmem>>, vector<32x32xf32>
    %cst_156 = arith.constant dense<0.000000e+00> : vector<16x32xf32>
    %308 = tpu.matmul %300, %307, %cst_156 {dimension_numbers = #tpu.dot_dimension_numbers<[1], [0], [0], [1], [0, 0, 1, 1], [], []>} : vector<16x32xf32>, vector<32x32xf32>, vector<16x32xf32> -> vector<16x32xf32>
    %309 = arith.addf %306, %308 : vector<16x32xf32>
    %c544 = arith.constant 544 : index
    %c0_157 = arith.constant 0 : index
    %310 = vector.load %arg0[%c544, %c0_157] : memref<2072x128xf32, #tpu.memory_space<vmem>>, vector<32x32xf32>
    %cst_158 = arith.constant dense<0.000000e+00> : vector<16x32xf32>
    %311 = tpu.matmul %304, %310, %cst_158 {dimension_numbers = #tpu.dot_dimension_numbers<[1], [0], [0], [1], [0, 0, 1, 1], [], []>} : vector<16x32xf32>, vector<32x32xf32>, vector<16x32xf32> -> vector<16x32xf32>
    %312 = arith.addf %309, %311 : vector<16x32xf32>
    %c576 = arith.constant 576 : index
    %c0_159 = arith.constant 0 : index
    %313 = vector.load %arg0[%c576, %c0_159] : memref<2072x128xf32, #tpu.memory_space<vmem>>, vector<1x32xf32>
    %314 = vector.broadcast %313 : vector<1x32xf32> to vector<16x32xf32>
    %315 = arith.addf %312, %314 : vector<16x32xf32>
    %cst_160 = arith.constant 0.000000e+00 : f32
    %316 = vector.broadcast %cst_160 : f32 to vector<16x32xf32>
    %317 = arith.cmpf ogt, %315, %316 : vector<16x32xf32>
    %cst_161 = arith.constant 0.000000e+00 : f32
    %318 = vector.broadcast %cst_161 : f32 to vector<16x32xf32>
    %319 = arith.minimumf %315, %318 : vector<16x32xf32>
    %320 = math.exp %319 : vector<16x32xf32>
    %cst_162 = arith.constant 1.000000e+00 : f32
    %321 = vector.broadcast %cst_162 : f32 to vector<16x32xf32>
    %322 = arith.subf %320, %321 : vector<16x32xf32>
    %323 = arith.select %317, %315, %322 : vector<16x32xi1>, vector<16x32xf32>
    %c2040 = arith.constant 2040 : index
    %c0_163 = arith.constant 0 : index
    %324 = vector.load %arg0[%c2040, %c0_163] : memref<2072x128xf32, #tpu.memory_space<vmem>>, vector<8x16xf32>
    %cst_164 = arith.constant dense<0.000000e+00> : vector<8x32xf32>
    %325 = tpu.matmul %324, %323, %cst_164 {dimension_numbers = #tpu.dot_dimension_numbers<[1], [0], [0], [1], [0, 0, 1, 1], [], []>} : vector<8x16xf32>, vector<16x32xf32>, vector<8x32xf32> -> vector<8x32xf32>
    %c2048 = arith.constant 2048 : index
    %c0_165 = arith.constant 0 : index
    %326 = vector.load %arg0[%c2048, %c0_165] : memref<2072x128xf32, #tpu.memory_space<vmem>>, vector<8x16xf32>
    %cst_166 = arith.constant dense<0.000000e+00> : vector<8x32xf32>
    %327 = tpu.matmul %326, %323, %cst_166 {dimension_numbers = #tpu.dot_dimension_numbers<[1], [0], [0], [1], [0, 0, 1, 1], [], []>} : vector<8x16xf32>, vector<16x32xf32>, vector<8x32xf32> -> vector<8x32xf32>
    %c2056 = arith.constant 2056 : index
    %c0_167 = arith.constant 0 : index
    %328 = vector.load %arg0[%c2056, %c0_167] : memref<2072x128xf32, #tpu.memory_space<vmem>>, vector<8x16xf32>
    %cst_168 = arith.constant dense<0.000000e+00> : vector<8x32xf32>
    %329 = tpu.matmul %328, %323, %cst_168 {dimension_numbers = #tpu.dot_dimension_numbers<[1], [0], [0], [1], [0, 0, 1, 1], [], []>} : vector<8x16xf32>, vector<16x32xf32>, vector<8x32xf32> -> vector<8x32xf32>
    %c2064 = arith.constant 2064 : index
    %c0_169 = arith.constant 0 : index
    %330 = vector.load %arg0[%c2064, %c0_169] : memref<2072x128xf32, #tpu.memory_space<vmem>>, vector<8x32xf32>
    %331 = arith.addf %329, %330 : vector<8x32xf32>
    %332 = arith.maximumf %327, %331 : vector<8x32xf32>
    %333 = arith.maximumf %325, %332 : vector<8x32xf32>
    %c112_170 = arith.constant 112 : index
    %c0_171 = arith.constant 0 : index
    %334 = vector.load %arg0[%c112_170, %c0_171] : memref<2072x128xf32, #tpu.memory_space<vmem>>, vector<32x64xf32>
    %cst_172 = arith.constant dense<0.000000e+00> : vector<8x64xf32>
    %335 = tpu.matmul %333, %334, %cst_172 {dimension_numbers = #tpu.dot_dimension_numbers<[1], [0], [0], [1], [0, 0, 1, 1], [], []>} : vector<8x32xf32>, vector<32x64xf32>, vector<8x64xf32> -> vector<8x64xf32>
    %c144_173 = arith.constant 144 : index
    %c0_174 = arith.constant 0 : index
    %336 = vector.load %arg0[%c144_173, %c0_174] : memref<2072x128xf32, #tpu.memory_space<vmem>>, vector<1x64xf32>
    %337 = vector.broadcast %336 : vector<1x64xf32> to vector<8x64xf32>
    %338 = arith.addf %335, %337 : vector<8x64xf32>
    %c152_175 = arith.constant 152 : index
    %c0_176 = arith.constant 0 : index
    %339 = vector.load %arg0[%c152_175, %c0_176] : memref<2072x128xf32, #tpu.memory_space<vmem>>, vector<32x64xf32>
    %cst_177 = arith.constant dense<0.000000e+00> : vector<8x64xf32>
    %340 = tpu.matmul %333, %339, %cst_177 {dimension_numbers = #tpu.dot_dimension_numbers<[1], [0], [0], [1], [0, 0, 1, 1], [], []>} : vector<8x32xf32>, vector<32x64xf32>, vector<8x64xf32> -> vector<8x64xf32>
    %c184_178 = arith.constant 184 : index
    %c0_179 = arith.constant 0 : index
    %341 = vector.load %arg0[%c184_178, %c0_179] : memref<2072x128xf32, #tpu.memory_space<vmem>>, vector<1x64xf32>
    %342 = vector.broadcast %341 : vector<1x64xf32> to vector<8x64xf32>
    %343 = arith.addf %340, %342 : vector<8x64xf32>
    %c1088 = arith.constant 1088 : index
    %c0_180 = arith.constant 0 : index
    %344 = vector.load %arg0[%c1088, %c0_180] : memref<2072x128xf32, #tpu.memory_space<vmem>>, vector<32x8xf32>
    %cst_181 = arith.constant dense<0.000000e+00> : vector<32x64xf32>
    %345 = tpu.matmul %344, %343, %cst_181 {dimension_numbers = #tpu.dot_dimension_numbers<[1], [0], [0], [1], [0, 0, 1, 1], [], []>} : vector<32x8xf32>, vector<8x64xf32>, vector<32x64xf32> -> vector<32x64xf32>
    %c1120 = arith.constant 1120 : index
    %c0_182 = arith.constant 0 : index
    %346 = vector.load %arg0[%c1120, %c0_182] : memref<2072x128xf32, #tpu.memory_space<vmem>>, vector<32x64xf32>
    %347 = arith.mulf %345, %346 : vector<32x64xf32>
    %cst_183 = arith.constant dense<0.000000e+00> : vector<8x32xf32>
    %348 = tpu.matmul %338, %347, %cst_183 {dimension_numbers = #tpu.dot_dimension_numbers<[1], [1], [0], [0], [0, 0, 1, 0], [], []>} : vector<8x64xf32>, vector<32x64xf32>, vector<8x32xf32> -> vector<8x32xf32>
    %cst_184 = arith.constant 0.353553385 : f32
    %349 = vector.broadcast %cst_184 : f32 to vector<8x32xf32>
    %350 = arith.mulf %348, %349 : vector<8x32xf32>
    %c1808 = arith.constant 1808 : index
    %c0_185 = arith.constant 0 : index
    %351 = vector.load %arg0[%c1808, %c0_185] : memref<2072x128xf32, #tpu.memory_space<vmem>>, vector<8x32xf32>
    %352 = arith.addf %350, %351 : vector<8x32xf32>
    %cst_186 = arith.constant dense<0xFF800000> : vector<8xf32>
    %353 = vector.multi_reduction <maximumf>, %352, %cst_186 [1] : vector<8x32xf32> to vector<8xf32>
    %354 = vector.shape_cast %353 : vector<8xf32> to vector<8x1xf32>
    %355 = vector.broadcast %354 : vector<8x1xf32> to vector<8x32xf32>
    %356 = arith.subf %352, %355 : vector<8x32xf32>
    %357 = math.exp %356 : vector<8x32xf32>
    %c1152 = arith.constant 1152 : index
    %c0_187 = arith.constant 0 : index
    %358 = vector.load %arg0[%c1152, %c0_187] : memref<2072x128xf32, #tpu.memory_space<vmem>>, vector<32x32xf32>
    %cst_188 = arith.constant dense<0.000000e+00> : vector<8x32xf32>
    %359 = tpu.matmul %357, %358, %cst_188 {dimension_numbers = #tpu.dot_dimension_numbers<[1], [0], [0], [1], [0, 0, 1, 1], [], []>} : vector<8x32xf32>, vector<32x32xf32>, vector<8x32xf32> -> vector<8x32xf32>
    %360 = tpu.reciprocal %359 {approx = true} : vector<8x32xf32> -> vector<8x32xf32>
    %361 = arith.mulf %357, %360 : vector<8x32xf32>
    %cst_189 = arith.constant dense<0.000000e+00> : vector<8x64xf32>
    %362 = tpu.matmul %361, %347, %cst_189 {dimension_numbers = #tpu.dot_dimension_numbers<[1], [0], [0], [1], [0, 0, 1, 1], [], []>} : vector<8x32xf32>, vector<32x64xf32>, vector<8x64xf32> -> vector<8x64xf32>
    %c192_190 = arith.constant 192 : index
    %c0_191 = arith.constant 0 : index
    %363 = vector.load %arg0[%c192_190, %c0_191] : memref<2072x128xf32, #tpu.memory_space<vmem>>, vector<64x32xf32>
    %cst_192 = arith.constant dense<0.000000e+00> : vector<8x32xf32>
    %364 = tpu.matmul %362, %363, %cst_192 {dimension_numbers = #tpu.dot_dimension_numbers<[1], [0], [0], [1], [0, 0, 1, 1], [], []>} : vector<8x64xf32>, vector<64x32xf32>, vector<8x32xf32> -> vector<8x32xf32>
    %c256_193 = arith.constant 256 : index
    %c0_194 = arith.constant 0 : index
    %365 = vector.load %arg0[%c256_193, %c0_194] : memref<2072x128xf32, #tpu.memory_space<vmem>>, vector<1x32xf32>
    %366 = vector.broadcast %365 : vector<1x32xf32> to vector<8x32xf32>
    %367 = arith.addf %364, %366 : vector<8x32xf32>
    %368 = arith.addf %333, %367 : vector<8x32xf32>
    %cst_195 = arith.constant dense<0.000000e+00> : vector<8xf32>
    %369 = vector.multi_reduction <add>, %368, %cst_195 [1] : vector<8x32xf32> to vector<8xf32>
    %370 = vector.shape_cast %369 : vector<8xf32> to vector<8x1xf32>
    %cst_196 = arith.constant 3.200000e+01 : f32
    %371 = vector.broadcast %cst_196 : f32 to vector<8x1xf32>
    %372 = arith.divf %370, %371 : vector<8x1xf32>
    %373 = vector.broadcast %372 : vector<8x1xf32> to vector<8x32xf32>
    %374 = arith.subf %368, %373 : vector<8x32xf32>
    %375 = arith.mulf %374, %374 : vector<8x32xf32>
    %cst_197 = arith.constant dense<0.000000e+00> : vector<8xf32>
    %376 = vector.multi_reduction <add>, %375, %cst_197 [1] : vector<8x32xf32> to vector<8xf32>
    %377 = vector.shape_cast %376 : vector<8xf32> to vector<8x1xf32>
    %cst_198 = arith.constant 3.200000e+01 : f32
    %378 = vector.broadcast %cst_198 : f32 to vector<8x1xf32>
    %379 = arith.divf %377, %378 : vector<8x1xf32>
    %cst_199 = arith.constant 9.99999974E-6 : f32
    %380 = vector.broadcast %cst_199 : f32 to vector<8x1xf32>
    %381 = arith.addf %379, %380 : vector<8x1xf32>
    %382 = math.rsqrt %381 : vector<8x1xf32>
    %383 = vector.broadcast %382 : vector<8x1xf32> to vector<8x32xf32>
    %384 = arith.mulf %374, %383 : vector<8x32xf32>
    %c344_200 = arith.constant 344 : index
    %c0_201 = arith.constant 0 : index
    %385 = vector.load %arg0[%c344_200, %c0_201] : memref<2072x128xf32, #tpu.memory_space<vmem>>, vector<1x32xf32>
    %386 = vector.broadcast %385 : vector<1x32xf32> to vector<8x32xf32>
    %387 = arith.mulf %384, %386 : vector<8x32xf32>
    %c352_202 = arith.constant 352 : index
    %c0_203 = arith.constant 0 : index
    %388 = vector.load %arg0[%c352_202, %c0_203] : memref<2072x128xf32, #tpu.memory_space<vmem>>, vector<1x32xf32>
    %389 = vector.broadcast %388 : vector<1x32xf32> to vector<8x32xf32>
    %390 = arith.addf %387, %389 : vector<8x32xf32>
    %c264_204 = arith.constant 264 : index
    %c0_205 = arith.constant 0 : index
    %391 = vector.load %arg0[%c264_204, %c0_205] : memref<2072x128xf32, #tpu.memory_space<vmem>>, vector<32x32xf32>
    %cst_206 = arith.constant dense<0.000000e+00> : vector<8x32xf32>
    %392 = tpu.matmul %390, %391, %cst_206 {dimension_numbers = #tpu.dot_dimension_numbers<[1], [0], [0], [1], [0, 0, 1, 1], [], []>} : vector<8x32xf32>, vector<32x32xf32>, vector<8x32xf32> -> vector<8x32xf32>
    %c296_207 = arith.constant 296 : index
    %c0_208 = arith.constant 0 : index
    %393 = vector.load %arg0[%c296_207, %c0_208] : memref<2072x128xf32, #tpu.memory_space<vmem>>, vector<1x32xf32>
    %394 = vector.broadcast %393 : vector<1x32xf32> to vector<8x32xf32>
    %395 = arith.addf %392, %394 : vector<8x32xf32>
    %cst_209 = arith.constant 5.000000e-01 : f32
    %396 = vector.broadcast %cst_209 : f32 to vector<8x32xf32>
    %397 = arith.mulf %396, %395 : vector<8x32xf32>
    %cst_210 = arith.constant 0.707106769 : f32
    %398 = vector.broadcast %cst_210 : f32 to vector<8x32xf32>
    %399 = arith.mulf %395, %398 : vector<8x32xf32>
    %cst_211 = arith.constant 0.000000e+00 : f32
    %400 = vector.broadcast %cst_211 : f32 to vector<8x32xf32>
    %401 = arith.cmpf oge, %399, %400 : vector<8x32xf32>
    %cst_212 = arith.constant 1.000000e+00 : f32
    %cst_213 = arith.constant -1.000000e+00 : f32
    %402 = vector.broadcast %cst_212 : f32 to vector<8x32xf32>
    %403 = vector.broadcast %cst_213 : f32 to vector<8x32xf32>
    %404 = arith.select %401, %402, %403 : vector<8x32xi1>, vector<8x32xf32>
    %405 = math.absf %399 : vector<8x32xf32>
    %cst_214 = arith.constant 0.327591091 : f32
    %406 = vector.broadcast %cst_214 : f32 to vector<8x32xf32>
    %407 = arith.mulf %406, %405 : vector<8x32xf32>
    %cst_215 = arith.constant 1.000000e+00 : f32
    %408 = vector.broadcast %cst_215 : f32 to vector<8x32xf32>
    %409 = arith.addf %408, %407 : vector<8x32xf32>
    %cst_216 = arith.constant 1.000000e+00 : f32
    %410 = vector.broadcast %cst_216 : f32 to vector<8x32xf32>
    %411 = arith.divf %410, %409 : vector<8x32xf32>
    %cst_217 = arith.constant 1.06140542 : f32
    %412 = vector.broadcast %cst_217 : f32 to vector<8x32xf32>
    %413 = arith.mulf %412, %411 : vector<8x32xf32>
    %cst_218 = arith.constant -1.45315206 : f32
    %414 = vector.broadcast %cst_218 : f32 to vector<8x32xf32>
    %415 = arith.addf %413, %414 : vector<8x32xf32>
    %416 = arith.mulf %415, %411 : vector<8x32xf32>
    %cst_219 = arith.constant 1.42141378 : f32
    %417 = vector.broadcast %cst_219 : f32 to vector<8x32xf32>
    %418 = arith.addf %416, %417 : vector<8x32xf32>
    %419 = arith.mulf %418, %411 : vector<8x32xf32>
    %cst_220 = arith.constant -0.284496725 : f32
    %420 = vector.broadcast %cst_220 : f32 to vector<8x32xf32>
    %421 = arith.addf %419, %420 : vector<8x32xf32>
    %422 = arith.mulf %421, %411 : vector<8x32xf32>
    %cst_221 = arith.constant 0.254829586 : f32
    %423 = vector.broadcast %cst_221 : f32 to vector<8x32xf32>
    %424 = arith.addf %422, %423 : vector<8x32xf32>
    %425 = arith.mulf %424, %411 : vector<8x32xf32>
    %cst_222 = arith.constant 0.000000e+00 : f32
    %426 = vector.broadcast %cst_222 : f32 to vector<8x32xf32>
    %427 = arith.subf %426, %405 : vector<8x32xf32>
    %428 = arith.mulf %427, %405 : vector<8x32xf32>
    %429 = math.exp %428 : vector<8x32xf32>
    %430 = arith.mulf %425, %429 : vector<8x32xf32>
    %cst_223 = arith.constant 1.000000e+00 : f32
    %431 = vector.broadcast %cst_223 : f32 to vector<8x32xf32>
    %432 = arith.subf %431, %430 : vector<8x32xf32>
    %433 = arith.mulf %404, %432 : vector<8x32xf32>
    %cst_224 = arith.constant 1.000000e+00 : f32
    %434 = vector.broadcast %cst_224 : f32 to vector<8x32xf32>
    %435 = arith.addf %434, %433 : vector<8x32xf32>
    %436 = arith.mulf %397, %435 : vector<8x32xf32>
    %c304_225 = arith.constant 304 : index
    %c0_226 = arith.constant 0 : index
    %437 = vector.load %arg0[%c304_225, %c0_226] : memref<2072x128xf32, #tpu.memory_space<vmem>>, vector<32x32xf32>
    %cst_227 = arith.constant dense<0.000000e+00> : vector<8x32xf32>
    %438 = tpu.matmul %436, %437, %cst_227 {dimension_numbers = #tpu.dot_dimension_numbers<[1], [0], [0], [1], [0, 0, 1, 1], [], []>} : vector<8x32xf32>, vector<32x32xf32>, vector<8x32xf32> -> vector<8x32xf32>
    %c336_228 = arith.constant 336 : index
    %c0_229 = arith.constant 0 : index
    %439 = vector.load %arg0[%c336_228, %c0_229] : memref<2072x128xf32, #tpu.memory_space<vmem>>, vector<1x32xf32>
    %440 = vector.broadcast %439 : vector<1x32xf32> to vector<8x32xf32>
    %441 = arith.addf %438, %440 : vector<8x32xf32>
    %442 = arith.addf %390, %441 : vector<8x32xf32>
    %cst_230 = arith.constant dense<0.000000e+00> : vector<8xf32>
    %443 = vector.multi_reduction <add>, %442, %cst_230 [1] : vector<8x32xf32> to vector<8xf32>
    %444 = vector.shape_cast %443 : vector<8xf32> to vector<8x1xf32>
    %cst_231 = arith.constant 3.200000e+01 : f32
    %445 = vector.broadcast %cst_231 : f32 to vector<8x1xf32>
    %446 = arith.divf %444, %445 : vector<8x1xf32>
    %447 = vector.broadcast %446 : vector<8x1xf32> to vector<8x32xf32>
    %448 = arith.subf %442, %447 : vector<8x32xf32>
    %449 = arith.mulf %448, %448 : vector<8x32xf32>
    %cst_232 = arith.constant dense<0.000000e+00> : vector<8xf32>
    %450 = vector.multi_reduction <add>, %449, %cst_232 [1] : vector<8x32xf32> to vector<8xf32>
    %451 = vector.shape_cast %450 : vector<8xf32> to vector<8x1xf32>
    %cst_233 = arith.constant 3.200000e+01 : f32
    %452 = vector.broadcast %cst_233 : f32 to vector<8x1xf32>
    %453 = arith.divf %451, %452 : vector<8x1xf32>
    %cst_234 = arith.constant 9.99999974E-6 : f32
    %454 = vector.broadcast %cst_234 : f32 to vector<8x1xf32>
    %455 = arith.addf %453, %454 : vector<8x1xf32>
    %456 = math.rsqrt %455 : vector<8x1xf32>
    %457 = vector.broadcast %456 : vector<8x1xf32> to vector<8x32xf32>
    %458 = arith.mulf %448, %457 : vector<8x32xf32>
    %c360_235 = arith.constant 360 : index
    %c0_236 = arith.constant 0 : index
    %459 = vector.load %arg0[%c360_235, %c0_236] : memref<2072x128xf32, #tpu.memory_space<vmem>>, vector<1x32xf32>
    %460 = vector.broadcast %459 : vector<1x32xf32> to vector<8x32xf32>
    %461 = arith.mulf %458, %460 : vector<8x32xf32>
    %c368_237 = arith.constant 368 : index
    %c0_238 = arith.constant 0 : index
    %462 = vector.load %arg0[%c368_237, %c0_238] : memref<2072x128xf32, #tpu.memory_space<vmem>>, vector<1x32xf32>
    %463 = vector.broadcast %462 : vector<1x32xf32> to vector<8x32xf32>
    %464 = arith.addf %461, %463 : vector<8x32xf32>
    %cst_239 = arith.constant dense<0.000000e+00> : vector<8xf32>
    %465 = vector.multi_reduction <add>, %464, %cst_239 [1] : vector<8x32xf32> to vector<8xf32>
    %466 = vector.shape_cast %465 : vector<8xf32> to vector<8x1xf32>
    %cst_240 = arith.constant 3.200000e+01 : f32
    %467 = vector.broadcast %cst_240 : f32 to vector<8x1xf32>
    %468 = arith.divf %466, %467 : vector<8x1xf32>
    %469 = vector.broadcast %468 : vector<8x1xf32> to vector<8x32xf32>
    %470 = arith.subf %464, %469 : vector<8x32xf32>
    %471 = arith.mulf %470, %470 : vector<8x32xf32>
    %cst_241 = arith.constant dense<0.000000e+00> : vector<8xf32>
    %472 = vector.multi_reduction <add>, %471, %cst_241 [1] : vector<8x32xf32> to vector<8xf32>
    %473 = vector.shape_cast %472 : vector<8xf32> to vector<8x1xf32>
    %cst_242 = arith.constant 3.200000e+01 : f32
    %474 = vector.broadcast %cst_242 : f32 to vector<8x1xf32>
    %475 = arith.divf %473, %474 : vector<8x1xf32>
    %cst_243 = arith.constant 9.99999974E-6 : f32
    %476 = vector.broadcast %cst_243 : f32 to vector<8x1xf32>
    %477 = arith.addf %475, %476 : vector<8x1xf32>
    %478 = math.rsqrt %477 : vector<8x1xf32>
    %479 = vector.broadcast %478 : vector<8x1xf32> to vector<8x32xf32>
    %480 = arith.mulf %470, %479 : vector<8x32xf32>
    %c584 = arith.constant 584 : index
    %c0_244 = arith.constant 0 : index
    %481 = vector.load %arg0[%c584, %c0_244] : memref<2072x128xf32, #tpu.memory_space<vmem>>, vector<1x32xf32>
    %482 = vector.broadcast %481 : vector<1x32xf32> to vector<8x32xf32>
    %483 = arith.mulf %480, %482 : vector<8x32xf32>
    %c592 = arith.constant 592 : index
    %c0_245 = arith.constant 0 : index
    %484 = vector.load %arg0[%c592, %c0_245] : memref<2072x128xf32, #tpu.memory_space<vmem>>, vector<1x32xf32>
    %485 = vector.broadcast %484 : vector<1x32xf32> to vector<8x32xf32>
    %486 = arith.addf %483, %485 : vector<8x32xf32>
    %c0_246 = arith.constant 0 : index
    %c0_247 = arith.constant 0 : index
    %487 = vector.load %arg2[%c0_246, %c0_247] : memref<32x44xf32, #tpu.memory_space<vmem>>, vector<32x44xf32>
    %c56 = arith.constant 56 : index
    %c0_248 = arith.constant 0 : index
    %488 = vector.load %arg0[%c56, %c0_248] : memref<2072x128xf32, #tpu.memory_space<vmem>>, vector<44x32xf32>
    %cst_249 = arith.constant dense<0.000000e+00> : vector<32x32xf32>
    %489 = tpu.matmul %487, %488, %cst_249 {dimension_numbers = #tpu.dot_dimension_numbers<[1], [0], [0], [1], [0, 0, 1, 1], [], []>} : vector<32x44xf32>, vector<44x32xf32>, vector<32x32xf32> -> vector<32x32xf32>
    %c104 = arith.constant 104 : index
    %c0_250 = arith.constant 0 : index
    %490 = vector.load %arg0[%c104, %c0_250] : memref<2072x128xf32, #tpu.memory_space<vmem>>, vector<1x32xf32>
    %491 = vector.broadcast %490 : vector<1x32xf32> to vector<32x32xf32>
    %492 = arith.addf %489, %491 : vector<32x32xf32>
    %c600 = arith.constant 600 : index
    %c0_251 = arith.constant 0 : index
    %493 = vector.load %arg0[%c600, %c0_251] : memref<2072x128xf32, #tpu.memory_space<vmem>>, vector<32x64xf32>
    %cst_252 = arith.constant dense<0.000000e+00> : vector<32x64xf32>
    %494 = tpu.matmul %492, %493, %cst_252 {dimension_numbers = #tpu.dot_dimension_numbers<[1], [0], [0], [1], [0, 0, 1, 1], [], []>} : vector<32x32xf32>, vector<32x64xf32>, vector<32x64xf32> -> vector<32x64xf32>
    %c632 = arith.constant 632 : index
    %c0_253 = arith.constant 0 : index
    %495 = vector.load %arg0[%c632, %c0_253] : memref<2072x128xf32, #tpu.memory_space<vmem>>, vector<1x64xf32>
    %496 = vector.broadcast %495 : vector<1x64xf32> to vector<32x64xf32>
    %497 = arith.addf %494, %496 : vector<32x64xf32>
    %c640 = arith.constant 640 : index
    %c0_254 = arith.constant 0 : index
    %498 = vector.load %arg0[%c640, %c0_254] : memref<2072x128xf32, #tpu.memory_space<vmem>>, vector<32x64xf32>
    %cst_255 = arith.constant dense<0.000000e+00> : vector<32x64xf32>
    %499 = tpu.matmul %492, %498, %cst_255 {dimension_numbers = #tpu.dot_dimension_numbers<[1], [0], [0], [1], [0, 0, 1, 1], [], []>} : vector<32x32xf32>, vector<32x64xf32>, vector<32x64xf32> -> vector<32x64xf32>
    %c672 = arith.constant 672 : index
    %c0_256 = arith.constant 0 : index
    %500 = vector.load %arg0[%c672, %c0_256] : memref<2072x128xf32, #tpu.memory_space<vmem>>, vector<1x64xf32>
    %501 = vector.broadcast %500 : vector<1x64xf32> to vector<32x64xf32>
    %502 = arith.addf %499, %501 : vector<32x64xf32>
    %c1376_257 = arith.constant 1376 : index
    %c0_258 = arith.constant 0 : index
    %503 = vector.load %arg0[%c1376_257, %c0_258] : memref<2072x128xf32, #tpu.memory_space<vmem>>, vector<128x32xf32>
    %cst_259 = arith.constant dense<0.000000e+00> : vector<128x64xf32>
    %504 = tpu.matmul %503, %502, %cst_259 {dimension_numbers = #tpu.dot_dimension_numbers<[1], [0], [0], [1], [0, 0, 1, 1], [], []>} : vector<128x32xf32>, vector<32x64xf32>, vector<128x64xf32> -> vector<128x64xf32>
    %c1504_260 = arith.constant 1504 : index
    %c0_261 = arith.constant 0 : index
    %505 = vector.load %arg0[%c1504_260, %c0_261] : memref<2072x128xf32, #tpu.memory_space<vmem>>, vector<128x64xf32>
    %506 = arith.mulf %504, %505 : vector<128x64xf32>
    %cst_262 = arith.constant dense<0.000000e+00> : vector<32x128xf32>
    %507 = tpu.matmul %497, %506, %cst_262 {dimension_numbers = #tpu.dot_dimension_numbers<[1], [1], [0], [0], [0, 0, 1, 0], [], []>} : vector<32x64xf32>, vector<128x64xf32>, vector<32x128xf32> -> vector<32x128xf32>
    %cst_263 = arith.constant 0.353553385 : f32
    %508 = vector.broadcast %cst_263 : f32 to vector<32x128xf32>
    %509 = arith.mulf %507, %508 : vector<32x128xf32>
    %c1816 = arith.constant 1816 : index
    %c0_264 = arith.constant 0 : index
    %510 = vector.load %arg0[%c1816, %c0_264] : memref<2072x128xf32, #tpu.memory_space<vmem>>, vector<32x128xf32>
    %511 = arith.addf %509, %510 : vector<32x128xf32>
    %cst_265 = arith.constant dense<0xFF800000> : vector<32xf32>
    %512 = vector.multi_reduction <maximumf>, %511, %cst_265 [1] : vector<32x128xf32> to vector<32xf32>
    %513 = vector.shape_cast %512 : vector<32xf32> to vector<32x1xf32>
    %514 = vector.broadcast %513 : vector<32x1xf32> to vector<32x128xf32>
    %515 = arith.subf %511, %514 : vector<32x128xf32>
    %516 = math.exp %515 : vector<32x128xf32>
    %c1632_266 = arith.constant 1632 : index
    %c0_267 = arith.constant 0 : index
    %517 = vector.load %arg0[%c1632_266, %c0_267] : memref<2072x128xf32, #tpu.memory_space<vmem>>, vector<128x128xf32>
    %cst_268 = arith.constant dense<0.000000e+00> : vector<32x128xf32>
    %518 = tpu.matmul %516, %517, %cst_268 {dimension_numbers = #tpu.dot_dimension_numbers<[1], [0], [0], [1], [0, 0, 1, 1], [], []>} : vector<32x128xf32>, vector<128x128xf32>, vector<32x128xf32> -> vector<32x128xf32>
    %519 = tpu.reciprocal %518 {approx = true} : vector<32x128xf32> -> vector<32x128xf32>
    %520 = arith.mulf %516, %519 : vector<32x128xf32>
    %cst_269 = arith.constant dense<0.000000e+00> : vector<32x64xf32>
    %521 = tpu.matmul %520, %506, %cst_269 {dimension_numbers = #tpu.dot_dimension_numbers<[1], [0], [0], [1], [0, 0, 1, 1], [], []>} : vector<32x128xf32>, vector<128x64xf32>, vector<32x64xf32> -> vector<32x64xf32>
    %c680 = arith.constant 680 : index
    %c0_270 = arith.constant 0 : index
    %522 = vector.load %arg0[%c680, %c0_270] : memref<2072x128xf32, #tpu.memory_space<vmem>>, vector<64x32xf32>
    %cst_271 = arith.constant dense<0.000000e+00> : vector<32x32xf32>
    %523 = tpu.matmul %521, %522, %cst_271 {dimension_numbers = #tpu.dot_dimension_numbers<[1], [0], [0], [1], [0, 0, 1, 1], [], []>} : vector<32x64xf32>, vector<64x32xf32>, vector<32x32xf32> -> vector<32x32xf32>
    %c744 = arith.constant 744 : index
    %c0_272 = arith.constant 0 : index
    %524 = vector.load %arg0[%c744, %c0_272] : memref<2072x128xf32, #tpu.memory_space<vmem>>, vector<1x32xf32>
    %525 = vector.broadcast %524 : vector<1x32xf32> to vector<32x32xf32>
    %526 = arith.addf %523, %525 : vector<32x32xf32>
    %527 = arith.addf %492, %526 : vector<32x32xf32>
    %cst_273 = arith.constant dense<0.000000e+00> : vector<32xf32>
    %528 = vector.multi_reduction <add>, %527, %cst_273 [1] : vector<32x32xf32> to vector<32xf32>
    %529 = vector.shape_cast %528 : vector<32xf32> to vector<32x1xf32>
    %cst_274 = arith.constant 3.200000e+01 : f32
    %530 = vector.broadcast %cst_274 : f32 to vector<32x1xf32>
    %531 = arith.divf %529, %530 : vector<32x1xf32>
    %532 = vector.broadcast %531 : vector<32x1xf32> to vector<32x32xf32>
    %533 = arith.subf %527, %532 : vector<32x32xf32>
    %534 = arith.mulf %533, %533 : vector<32x32xf32>
    %cst_275 = arith.constant dense<0.000000e+00> : vector<32xf32>
    %535 = vector.multi_reduction <add>, %534, %cst_275 [1] : vector<32x32xf32> to vector<32xf32>
    %536 = vector.shape_cast %535 : vector<32xf32> to vector<32x1xf32>
    %cst_276 = arith.constant 3.200000e+01 : f32
    %537 = vector.broadcast %cst_276 : f32 to vector<32x1xf32>
    %538 = arith.divf %536, %537 : vector<32x1xf32>
    %cst_277 = arith.constant 9.99999974E-6 : f32
    %539 = vector.broadcast %cst_277 : f32 to vector<32x1xf32>
    %540 = arith.addf %538, %539 : vector<32x1xf32>
    %541 = math.rsqrt %540 : vector<32x1xf32>
    %542 = vector.broadcast %541 : vector<32x1xf32> to vector<32x32xf32>
    %543 = arith.mulf %533, %542 : vector<32x32xf32>
    %c984 = arith.constant 984 : index
    %c0_278 = arith.constant 0 : index
    %544 = vector.load %arg0[%c984, %c0_278] : memref<2072x128xf32, #tpu.memory_space<vmem>>, vector<1x32xf32>
    %545 = vector.broadcast %544 : vector<1x32xf32> to vector<32x32xf32>
    %546 = arith.mulf %543, %545 : vector<32x32xf32>
    %c992 = arith.constant 992 : index
    %c0_279 = arith.constant 0 : index
    %547 = vector.load %arg0[%c992, %c0_279] : memref<2072x128xf32, #tpu.memory_space<vmem>>, vector<1x32xf32>
    %548 = vector.broadcast %547 : vector<1x32xf32> to vector<32x32xf32>
    %549 = arith.addf %546, %548 : vector<32x32xf32>
    %c752 = arith.constant 752 : index
    %c0_280 = arith.constant 0 : index
    %550 = vector.load %arg0[%c752, %c0_280] : memref<2072x128xf32, #tpu.memory_space<vmem>>, vector<32x64xf32>
    %cst_281 = arith.constant dense<0.000000e+00> : vector<32x64xf32>
    %551 = tpu.matmul %549, %550, %cst_281 {dimension_numbers = #tpu.dot_dimension_numbers<[1], [0], [0], [1], [0, 0, 1, 1], [], []>} : vector<32x32xf32>, vector<32x64xf32>, vector<32x64xf32> -> vector<32x64xf32>
    %c784 = arith.constant 784 : index
    %c0_282 = arith.constant 0 : index
    %552 = vector.load %arg0[%c784, %c0_282] : memref<2072x128xf32, #tpu.memory_space<vmem>>, vector<1x64xf32>
    %553 = vector.broadcast %552 : vector<1x64xf32> to vector<32x64xf32>
    %554 = arith.addf %551, %553 : vector<32x64xf32>
    %c792 = arith.constant 792 : index
    %c0_283 = arith.constant 0 : index
    %555 = vector.load %arg0[%c792, %c0_283] : memref<2072x128xf32, #tpu.memory_space<vmem>>, vector<32x64xf32>
    %cst_284 = arith.constant dense<0.000000e+00> : vector<8x64xf32>
    %556 = tpu.matmul %486, %555, %cst_284 {dimension_numbers = #tpu.dot_dimension_numbers<[1], [0], [0], [1], [0, 0, 1, 1], [], []>} : vector<8x32xf32>, vector<32x64xf32>, vector<8x64xf32> -> vector<8x64xf32>
    %c824 = arith.constant 824 : index
    %c0_285 = arith.constant 0 : index
    %557 = vector.load %arg0[%c824, %c0_285] : memref<2072x128xf32, #tpu.memory_space<vmem>>, vector<1x64xf32>
    %558 = vector.broadcast %557 : vector<1x64xf32> to vector<8x64xf32>
    %559 = arith.addf %556, %558 : vector<8x64xf32>
    %c1088_286 = arith.constant 1088 : index
    %c0_287 = arith.constant 0 : index
    %560 = vector.load %arg0[%c1088_286, %c0_287] : memref<2072x128xf32, #tpu.memory_space<vmem>>, vector<32x8xf32>
    %cst_288 = arith.constant dense<0.000000e+00> : vector<32x64xf32>
    %561 = tpu.matmul %560, %559, %cst_288 {dimension_numbers = #tpu.dot_dimension_numbers<[1], [0], [0], [1], [0, 0, 1, 1], [], []>} : vector<32x8xf32>, vector<8x64xf32>, vector<32x64xf32> -> vector<32x64xf32>
    %c1120_289 = arith.constant 1120 : index
    %c0_290 = arith.constant 0 : index
    %562 = vector.load %arg0[%c1120_289, %c0_290] : memref<2072x128xf32, #tpu.memory_space<vmem>>, vector<32x64xf32>
    %563 = arith.mulf %561, %562 : vector<32x64xf32>
    %cst_291 = arith.constant dense<0.000000e+00> : vector<32x32xf32>
    %564 = tpu.matmul %554, %563, %cst_291 {dimension_numbers = #tpu.dot_dimension_numbers<[1], [1], [0], [0], [0, 0, 1, 0], [], []>} : vector<32x64xf32>, vector<32x64xf32>, vector<32x32xf32> -> vector<32x32xf32>
    %cst_292 = arith.constant 0.353553385 : f32
    %565 = vector.broadcast %cst_292 : f32 to vector<32x32xf32>
    %566 = arith.mulf %564, %565 : vector<32x32xf32>
    %c1848 = arith.constant 1848 : index
    %c0_293 = arith.constant 0 : index
    %567 = vector.load %arg0[%c1848, %c0_293] : memref<2072x128xf32, #tpu.memory_space<vmem>>, vector<32x32xf32>
    %568 = arith.addf %566, %567 : vector<32x32xf32>
    %cst_294 = arith.constant dense<0xFF800000> : vector<32xf32>
    %569 = vector.multi_reduction <maximumf>, %568, %cst_294 [1] : vector<32x32xf32> to vector<32xf32>
    %570 = vector.shape_cast %569 : vector<32xf32> to vector<32x1xf32>
    %571 = vector.broadcast %570 : vector<32x1xf32> to vector<32x32xf32>
    %572 = arith.subf %568, %571 : vector<32x32xf32>
    %573 = math.exp %572 : vector<32x32xf32>
    %c1152_295 = arith.constant 1152 : index
    %c0_296 = arith.constant 0 : index
    %574 = vector.load %arg0[%c1152_295, %c0_296] : memref<2072x128xf32, #tpu.memory_space<vmem>>, vector<32x32xf32>
    %cst_297 = arith.constant dense<0.000000e+00> : vector<32x32xf32>
    %575 = tpu.matmul %573, %574, %cst_297 {dimension_numbers = #tpu.dot_dimension_numbers<[1], [0], [0], [1], [0, 0, 1, 1], [], []>} : vector<32x32xf32>, vector<32x32xf32>, vector<32x32xf32> -> vector<32x32xf32>
    %576 = tpu.reciprocal %575 {approx = true} : vector<32x32xf32> -> vector<32x32xf32>
    %577 = arith.mulf %573, %576 : vector<32x32xf32>
    %cst_298 = arith.constant dense<0.000000e+00> : vector<32x64xf32>
    %578 = tpu.matmul %577, %563, %cst_298 {dimension_numbers = #tpu.dot_dimension_numbers<[1], [0], [0], [1], [0, 0, 1, 1], [], []>} : vector<32x32xf32>, vector<32x64xf32>, vector<32x64xf32> -> vector<32x64xf32>
    %c832 = arith.constant 832 : index
    %c0_299 = arith.constant 0 : index
    %579 = vector.load %arg0[%c832, %c0_299] : memref<2072x128xf32, #tpu.memory_space<vmem>>, vector<64x32xf32>
    %cst_300 = arith.constant dense<0.000000e+00> : vector<32x32xf32>
    %580 = tpu.matmul %578, %579, %cst_300 {dimension_numbers = #tpu.dot_dimension_numbers<[1], [0], [0], [1], [0, 0, 1, 1], [], []>} : vector<32x64xf32>, vector<64x32xf32>, vector<32x32xf32> -> vector<32x32xf32>
    %c896 = arith.constant 896 : index
    %c0_301 = arith.constant 0 : index
    %581 = vector.load %arg0[%c896, %c0_301] : memref<2072x128xf32, #tpu.memory_space<vmem>>, vector<1x32xf32>
    %582 = vector.broadcast %581 : vector<1x32xf32> to vector<32x32xf32>
    %583 = arith.addf %580, %582 : vector<32x32xf32>
    %584 = arith.addf %549, %583 : vector<32x32xf32>
    %cst_302 = arith.constant dense<0.000000e+00> : vector<32xf32>
    %585 = vector.multi_reduction <add>, %584, %cst_302 [1] : vector<32x32xf32> to vector<32xf32>
    %586 = vector.shape_cast %585 : vector<32xf32> to vector<32x1xf32>
    %cst_303 = arith.constant 3.200000e+01 : f32
    %587 = vector.broadcast %cst_303 : f32 to vector<32x1xf32>
    %588 = arith.divf %586, %587 : vector<32x1xf32>
    %589 = vector.broadcast %588 : vector<32x1xf32> to vector<32x32xf32>
    %590 = arith.subf %584, %589 : vector<32x32xf32>
    %591 = arith.mulf %590, %590 : vector<32x32xf32>
    %cst_304 = arith.constant dense<0.000000e+00> : vector<32xf32>
    %592 = vector.multi_reduction <add>, %591, %cst_304 [1] : vector<32x32xf32> to vector<32xf32>
    %593 = vector.shape_cast %592 : vector<32xf32> to vector<32x1xf32>
    %cst_305 = arith.constant 3.200000e+01 : f32
    %594 = vector.broadcast %cst_305 : f32 to vector<32x1xf32>
    %595 = arith.divf %593, %594 : vector<32x1xf32>
    %cst_306 = arith.constant 9.99999974E-6 : f32
    %596 = vector.broadcast %cst_306 : f32 to vector<32x1xf32>
    %597 = arith.addf %595, %596 : vector<32x1xf32>
    %598 = math.rsqrt %597 : vector<32x1xf32>
    %599 = vector.broadcast %598 : vector<32x1xf32> to vector<32x32xf32>
    %600 = arith.mulf %590, %599 : vector<32x32xf32>
    %c1000 = arith.constant 1000 : index
    %c0_307 = arith.constant 0 : index
    %601 = vector.load %arg0[%c1000, %c0_307] : memref<2072x128xf32, #tpu.memory_space<vmem>>, vector<1x32xf32>
    %602 = vector.broadcast %601 : vector<1x32xf32> to vector<32x32xf32>
    %603 = arith.mulf %600, %602 : vector<32x32xf32>
    %c1008 = arith.constant 1008 : index
    %c0_308 = arith.constant 0 : index
    %604 = vector.load %arg0[%c1008, %c0_308] : memref<2072x128xf32, #tpu.memory_space<vmem>>, vector<1x32xf32>
    %605 = vector.broadcast %604 : vector<1x32xf32> to vector<32x32xf32>
    %606 = arith.addf %603, %605 : vector<32x32xf32>
    %c904 = arith.constant 904 : index
    %c0_309 = arith.constant 0 : index
    %607 = vector.load %arg0[%c904, %c0_309] : memref<2072x128xf32, #tpu.memory_space<vmem>>, vector<32x32xf32>
    %cst_310 = arith.constant dense<0.000000e+00> : vector<32x32xf32>
    %608 = tpu.matmul %606, %607, %cst_310 {dimension_numbers = #tpu.dot_dimension_numbers<[1], [0], [0], [1], [0, 0, 1, 1], [], []>} : vector<32x32xf32>, vector<32x32xf32>, vector<32x32xf32> -> vector<32x32xf32>
    %c936 = arith.constant 936 : index
    %c0_311 = arith.constant 0 : index
    %609 = vector.load %arg0[%c936, %c0_311] : memref<2072x128xf32, #tpu.memory_space<vmem>>, vector<1x32xf32>
    %610 = vector.broadcast %609 : vector<1x32xf32> to vector<32x32xf32>
    %611 = arith.addf %608, %610 : vector<32x32xf32>
    %cst_312 = arith.constant 5.000000e-01 : f32
    %612 = vector.broadcast %cst_312 : f32 to vector<32x32xf32>
    %613 = arith.mulf %612, %611 : vector<32x32xf32>
    %cst_313 = arith.constant 0.707106769 : f32
    %614 = vector.broadcast %cst_313 : f32 to vector<32x32xf32>
    %615 = arith.mulf %611, %614 : vector<32x32xf32>
    %cst_314 = arith.constant 0.000000e+00 : f32
    %616 = vector.broadcast %cst_314 : f32 to vector<32x32xf32>
    %617 = arith.cmpf oge, %615, %616 : vector<32x32xf32>
    %cst_315 = arith.constant 1.000000e+00 : f32
    %cst_316 = arith.constant -1.000000e+00 : f32
    %618 = vector.broadcast %cst_315 : f32 to vector<32x32xf32>
    %619 = vector.broadcast %cst_316 : f32 to vector<32x32xf32>
    %620 = arith.select %617, %618, %619 : vector<32x32xi1>, vector<32x32xf32>
    %621 = math.absf %615 : vector<32x32xf32>
    %cst_317 = arith.constant 0.327591091 : f32
    %622 = vector.broadcast %cst_317 : f32 to vector<32x32xf32>
    %623 = arith.mulf %622, %621 : vector<32x32xf32>
    %cst_318 = arith.constant 1.000000e+00 : f32
    %624 = vector.broadcast %cst_318 : f32 to vector<32x32xf32>
    %625 = arith.addf %624, %623 : vector<32x32xf32>
    %cst_319 = arith.constant 1.000000e+00 : f32
    %626 = vector.broadcast %cst_319 : f32 to vector<32x32xf32>
    %627 = arith.divf %626, %625 : vector<32x32xf32>
    %cst_320 = arith.constant 1.06140542 : f32
    %628 = vector.broadcast %cst_320 : f32 to vector<32x32xf32>
    %629 = arith.mulf %628, %627 : vector<32x32xf32>
    %cst_321 = arith.constant -1.45315206 : f32
    %630 = vector.broadcast %cst_321 : f32 to vector<32x32xf32>
    %631 = arith.addf %629, %630 : vector<32x32xf32>
    %632 = arith.mulf %631, %627 : vector<32x32xf32>
    %cst_322 = arith.constant 1.42141378 : f32
    %633 = vector.broadcast %cst_322 : f32 to vector<32x32xf32>
    %634 = arith.addf %632, %633 : vector<32x32xf32>
    %635 = arith.mulf %634, %627 : vector<32x32xf32>
    %cst_323 = arith.constant -0.284496725 : f32
    %636 = vector.broadcast %cst_323 : f32 to vector<32x32xf32>
    %637 = arith.addf %635, %636 : vector<32x32xf32>
    %638 = arith.mulf %637, %627 : vector<32x32xf32>
    %cst_324 = arith.constant 0.254829586 : f32
    %639 = vector.broadcast %cst_324 : f32 to vector<32x32xf32>
    %640 = arith.addf %638, %639 : vector<32x32xf32>
    %641 = arith.mulf %640, %627 : vector<32x32xf32>
    %cst_325 = arith.constant 0.000000e+00 : f32
    %642 = vector.broadcast %cst_325 : f32 to vector<32x32xf32>
    %643 = arith.subf %642, %621 : vector<32x32xf32>
    %644 = arith.mulf %643, %621 : vector<32x32xf32>
    %645 = math.exp %644 : vector<32x32xf32>
    %646 = arith.mulf %641, %645 : vector<32x32xf32>
    %cst_326 = arith.constant 1.000000e+00 : f32
    %647 = vector.broadcast %cst_326 : f32 to vector<32x32xf32>
    %648 = arith.subf %647, %646 : vector<32x32xf32>
    %649 = arith.mulf %620, %648 : vector<32x32xf32>
    %cst_327 = arith.constant 1.000000e+00 : f32
    %650 = vector.broadcast %cst_327 : f32 to vector<32x32xf32>
    %651 = arith.addf %650, %649 : vector<32x32xf32>
    %652 = arith.mulf %613, %651 : vector<32x32xf32>
    %c944 = arith.constant 944 : index
    %c0_328 = arith.constant 0 : index
    %653 = vector.load %arg0[%c944, %c0_328] : memref<2072x128xf32, #tpu.memory_space<vmem>>, vector<32x32xf32>
    %cst_329 = arith.constant dense<0.000000e+00> : vector<32x32xf32>
    %654 = tpu.matmul %652, %653, %cst_329 {dimension_numbers = #tpu.dot_dimension_numbers<[1], [0], [0], [1], [0, 0, 1, 1], [], []>} : vector<32x32xf32>, vector<32x32xf32>, vector<32x32xf32> -> vector<32x32xf32>
    %c976 = arith.constant 976 : index
    %c0_330 = arith.constant 0 : index
    %655 = vector.load %arg0[%c976, %c0_330] : memref<2072x128xf32, #tpu.memory_space<vmem>>, vector<1x32xf32>
    %656 = vector.broadcast %655 : vector<1x32xf32> to vector<32x32xf32>
    %657 = arith.addf %654, %656 : vector<32x32xf32>
    %658 = arith.addf %606, %657 : vector<32x32xf32>
    %cst_331 = arith.constant dense<0.000000e+00> : vector<32xf32>
    %659 = vector.multi_reduction <add>, %658, %cst_331 [1] : vector<32x32xf32> to vector<32xf32>
    %660 = vector.shape_cast %659 : vector<32xf32> to vector<32x1xf32>
    %cst_332 = arith.constant 3.200000e+01 : f32
    %661 = vector.broadcast %cst_332 : f32 to vector<32x1xf32>
    %662 = arith.divf %660, %661 : vector<32x1xf32>
    %663 = vector.broadcast %662 : vector<32x1xf32> to vector<32x32xf32>
    %664 = arith.subf %658, %663 : vector<32x32xf32>
    %665 = arith.mulf %664, %664 : vector<32x32xf32>
    %cst_333 = arith.constant dense<0.000000e+00> : vector<32xf32>
    %666 = vector.multi_reduction <add>, %665, %cst_333 [1] : vector<32x32xf32> to vector<32xf32>
    %667 = vector.shape_cast %666 : vector<32xf32> to vector<32x1xf32>
    %cst_334 = arith.constant 3.200000e+01 : f32
    %668 = vector.broadcast %cst_334 : f32 to vector<32x1xf32>
    %669 = arith.divf %667, %668 : vector<32x1xf32>
    %cst_335 = arith.constant 9.99999974E-6 : f32
    %670 = vector.broadcast %cst_335 : f32 to vector<32x1xf32>
    %671 = arith.addf %669, %670 : vector<32x1xf32>
    %672 = math.rsqrt %671 : vector<32x1xf32>
    %673 = vector.broadcast %672 : vector<32x1xf32> to vector<32x32xf32>
    %674 = arith.mulf %664, %673 : vector<32x32xf32>
    %c1016 = arith.constant 1016 : index
    %c0_336 = arith.constant 0 : index
    %675 = vector.load %arg0[%c1016, %c0_336] : memref<2072x128xf32, #tpu.memory_space<vmem>>, vector<1x32xf32>
    %676 = vector.broadcast %675 : vector<1x32xf32> to vector<32x32xf32>
    %677 = arith.mulf %674, %676 : vector<32x32xf32>
    %c1024 = arith.constant 1024 : index
    %c0_337 = arith.constant 0 : index
    %678 = vector.load %arg0[%c1024, %c0_337] : memref<2072x128xf32, #tpu.memory_space<vmem>>, vector<1x32xf32>
    %679 = vector.broadcast %678 : vector<1x32xf32> to vector<32x32xf32>
    %680 = arith.addf %677, %679 : vector<32x32xf32>
    %c600_338 = arith.constant 600 : index
    %c0_339 = arith.constant 0 : index
    %681 = vector.load %arg0[%c600_338, %c0_339] : memref<2072x128xf32, #tpu.memory_space<vmem>>, vector<32x64xf32>
    %cst_340 = arith.constant dense<0.000000e+00> : vector<32x64xf32>
    %682 = tpu.matmul %680, %681, %cst_340 {dimension_numbers = #tpu.dot_dimension_numbers<[1], [0], [0], [1], [0, 0, 1, 1], [], []>} : vector<32x32xf32>, vector<32x64xf32>, vector<32x64xf32> -> vector<32x64xf32>
    %c632_341 = arith.constant 632 : index
    %c0_342 = arith.constant 0 : index
    %683 = vector.load %arg0[%c632_341, %c0_342] : memref<2072x128xf32, #tpu.memory_space<vmem>>, vector<1x64xf32>
    %684 = vector.broadcast %683 : vector<1x64xf32> to vector<32x64xf32>
    %685 = arith.addf %682, %684 : vector<32x64xf32>
    %c640_343 = arith.constant 640 : index
    %c0_344 = arith.constant 0 : index
    %686 = vector.load %arg0[%c640_343, %c0_344] : memref<2072x128xf32, #tpu.memory_space<vmem>>, vector<32x64xf32>
    %cst_345 = arith.constant dense<0.000000e+00> : vector<32x64xf32>
    %687 = tpu.matmul %680, %686, %cst_345 {dimension_numbers = #tpu.dot_dimension_numbers<[1], [0], [0], [1], [0, 0, 1, 1], [], []>} : vector<32x32xf32>, vector<32x64xf32>, vector<32x64xf32> -> vector<32x64xf32>
    %c672_346 = arith.constant 672 : index
    %c0_347 = arith.constant 0 : index
    %688 = vector.load %arg0[%c672_346, %c0_347] : memref<2072x128xf32, #tpu.memory_space<vmem>>, vector<1x64xf32>
    %689 = vector.broadcast %688 : vector<1x64xf32> to vector<32x64xf32>
    %690 = arith.addf %687, %689 : vector<32x64xf32>
    %c1376_348 = arith.constant 1376 : index
    %c0_349 = arith.constant 0 : index
    %691 = vector.load %arg0[%c1376_348, %c0_349] : memref<2072x128xf32, #tpu.memory_space<vmem>>, vector<128x32xf32>
    %cst_350 = arith.constant dense<0.000000e+00> : vector<128x64xf32>
    %692 = tpu.matmul %691, %690, %cst_350 {dimension_numbers = #tpu.dot_dimension_numbers<[1], [0], [0], [1], [0, 0, 1, 1], [], []>} : vector<128x32xf32>, vector<32x64xf32>, vector<128x64xf32> -> vector<128x64xf32>
    %c1504_351 = arith.constant 1504 : index
    %c0_352 = arith.constant 0 : index
    %693 = vector.load %arg0[%c1504_351, %c0_352] : memref<2072x128xf32, #tpu.memory_space<vmem>>, vector<128x64xf32>
    %694 = arith.mulf %692, %693 : vector<128x64xf32>
    %cst_353 = arith.constant dense<0.000000e+00> : vector<32x128xf32>
    %695 = tpu.matmul %685, %694, %cst_353 {dimension_numbers = #tpu.dot_dimension_numbers<[1], [1], [0], [0], [0, 0, 1, 0], [], []>} : vector<32x64xf32>, vector<128x64xf32>, vector<32x128xf32> -> vector<32x128xf32>
    %cst_354 = arith.constant 0.353553385 : f32
    %696 = vector.broadcast %cst_354 : f32 to vector<32x128xf32>
    %697 = arith.mulf %695, %696 : vector<32x128xf32>
    %c1816_355 = arith.constant 1816 : index
    %c0_356 = arith.constant 0 : index
    %698 = vector.load %arg0[%c1816_355, %c0_356] : memref<2072x128xf32, #tpu.memory_space<vmem>>, vector<32x128xf32>
    %699 = arith.addf %697, %698 : vector<32x128xf32>
    %cst_357 = arith.constant dense<0xFF800000> : vector<32xf32>
    %700 = vector.multi_reduction <maximumf>, %699, %cst_357 [1] : vector<32x128xf32> to vector<32xf32>
    %701 = vector.shape_cast %700 : vector<32xf32> to vector<32x1xf32>
    %702 = vector.broadcast %701 : vector<32x1xf32> to vector<32x128xf32>
    %703 = arith.subf %699, %702 : vector<32x128xf32>
    %704 = math.exp %703 : vector<32x128xf32>
    %c1632_358 = arith.constant 1632 : index
    %c0_359 = arith.constant 0 : index
    %705 = vector.load %arg0[%c1632_358, %c0_359] : memref<2072x128xf32, #tpu.memory_space<vmem>>, vector<128x128xf32>
    %cst_360 = arith.constant dense<0.000000e+00> : vector<32x128xf32>
    %706 = tpu.matmul %704, %705, %cst_360 {dimension_numbers = #tpu.dot_dimension_numbers<[1], [0], [0], [1], [0, 0, 1, 1], [], []>} : vector<32x128xf32>, vector<128x128xf32>, vector<32x128xf32> -> vector<32x128xf32>
    %707 = tpu.reciprocal %706 {approx = true} : vector<32x128xf32> -> vector<32x128xf32>
    %708 = arith.mulf %704, %707 : vector<32x128xf32>
    %cst_361 = arith.constant dense<0.000000e+00> : vector<32x64xf32>
    %709 = tpu.matmul %708, %694, %cst_361 {dimension_numbers = #tpu.dot_dimension_numbers<[1], [0], [0], [1], [0, 0, 1, 1], [], []>} : vector<32x128xf32>, vector<128x64xf32>, vector<32x64xf32> -> vector<32x64xf32>
    %c680_362 = arith.constant 680 : index
    %c0_363 = arith.constant 0 : index
    %710 = vector.load %arg0[%c680_362, %c0_363] : memref<2072x128xf32, #tpu.memory_space<vmem>>, vector<64x32xf32>
    %cst_364 = arith.constant dense<0.000000e+00> : vector<32x32xf32>
    %711 = tpu.matmul %709, %710, %cst_364 {dimension_numbers = #tpu.dot_dimension_numbers<[1], [0], [0], [1], [0, 0, 1, 1], [], []>} : vector<32x64xf32>, vector<64x32xf32>, vector<32x32xf32> -> vector<32x32xf32>
    %c744_365 = arith.constant 744 : index
    %c0_366 = arith.constant 0 : index
    %712 = vector.load %arg0[%c744_365, %c0_366] : memref<2072x128xf32, #tpu.memory_space<vmem>>, vector<1x32xf32>
    %713 = vector.broadcast %712 : vector<1x32xf32> to vector<32x32xf32>
    %714 = arith.addf %711, %713 : vector<32x32xf32>
    %715 = arith.addf %680, %714 : vector<32x32xf32>
    %cst_367 = arith.constant dense<0.000000e+00> : vector<32xf32>
    %716 = vector.multi_reduction <add>, %715, %cst_367 [1] : vector<32x32xf32> to vector<32xf32>
    %717 = vector.shape_cast %716 : vector<32xf32> to vector<32x1xf32>
    %cst_368 = arith.constant 3.200000e+01 : f32
    %718 = vector.broadcast %cst_368 : f32 to vector<32x1xf32>
    %719 = arith.divf %717, %718 : vector<32x1xf32>
    %720 = vector.broadcast %719 : vector<32x1xf32> to vector<32x32xf32>
    %721 = arith.subf %715, %720 : vector<32x32xf32>
    %722 = arith.mulf %721, %721 : vector<32x32xf32>
    %cst_369 = arith.constant dense<0.000000e+00> : vector<32xf32>
    %723 = vector.multi_reduction <add>, %722, %cst_369 [1] : vector<32x32xf32> to vector<32xf32>
    %724 = vector.shape_cast %723 : vector<32xf32> to vector<32x1xf32>
    %cst_370 = arith.constant 3.200000e+01 : f32
    %725 = vector.broadcast %cst_370 : f32 to vector<32x1xf32>
    %726 = arith.divf %724, %725 : vector<32x1xf32>
    %cst_371 = arith.constant 9.99999974E-6 : f32
    %727 = vector.broadcast %cst_371 : f32 to vector<32x1xf32>
    %728 = arith.addf %726, %727 : vector<32x1xf32>
    %729 = math.rsqrt %728 : vector<32x1xf32>
    %730 = vector.broadcast %729 : vector<32x1xf32> to vector<32x32xf32>
    %731 = arith.mulf %721, %730 : vector<32x32xf32>
    %c984_372 = arith.constant 984 : index
    %c0_373 = arith.constant 0 : index
    %732 = vector.load %arg0[%c984_372, %c0_373] : memref<2072x128xf32, #tpu.memory_space<vmem>>, vector<1x32xf32>
    %733 = vector.broadcast %732 : vector<1x32xf32> to vector<32x32xf32>
    %734 = arith.mulf %731, %733 : vector<32x32xf32>
    %c992_374 = arith.constant 992 : index
    %c0_375 = arith.constant 0 : index
    %735 = vector.load %arg0[%c992_374, %c0_375] : memref<2072x128xf32, #tpu.memory_space<vmem>>, vector<1x32xf32>
    %736 = vector.broadcast %735 : vector<1x32xf32> to vector<32x32xf32>
    %737 = arith.addf %734, %736 : vector<32x32xf32>
    %c752_376 = arith.constant 752 : index
    %c0_377 = arith.constant 0 : index
    %738 = vector.load %arg0[%c752_376, %c0_377] : memref<2072x128xf32, #tpu.memory_space<vmem>>, vector<32x64xf32>
    %cst_378 = arith.constant dense<0.000000e+00> : vector<32x64xf32>
    %739 = tpu.matmul %737, %738, %cst_378 {dimension_numbers = #tpu.dot_dimension_numbers<[1], [0], [0], [1], [0, 0, 1, 1], [], []>} : vector<32x32xf32>, vector<32x64xf32>, vector<32x64xf32> -> vector<32x64xf32>
    %c784_379 = arith.constant 784 : index
    %c0_380 = arith.constant 0 : index
    %740 = vector.load %arg0[%c784_379, %c0_380] : memref<2072x128xf32, #tpu.memory_space<vmem>>, vector<1x64xf32>
    %741 = vector.broadcast %740 : vector<1x64xf32> to vector<32x64xf32>
    %742 = arith.addf %739, %741 : vector<32x64xf32>
    %c792_381 = arith.constant 792 : index
    %c0_382 = arith.constant 0 : index
    %743 = vector.load %arg0[%c792_381, %c0_382] : memref<2072x128xf32, #tpu.memory_space<vmem>>, vector<32x64xf32>
    %cst_383 = arith.constant dense<0.000000e+00> : vector<8x64xf32>
    %744 = tpu.matmul %486, %743, %cst_383 {dimension_numbers = #tpu.dot_dimension_numbers<[1], [0], [0], [1], [0, 0, 1, 1], [], []>} : vector<8x32xf32>, vector<32x64xf32>, vector<8x64xf32> -> vector<8x64xf32>
    %c824_384 = arith.constant 824 : index
    %c0_385 = arith.constant 0 : index
    %745 = vector.load %arg0[%c824_384, %c0_385] : memref<2072x128xf32, #tpu.memory_space<vmem>>, vector<1x64xf32>
    %746 = vector.broadcast %745 : vector<1x64xf32> to vector<8x64xf32>
    %747 = arith.addf %744, %746 : vector<8x64xf32>
    %c1088_386 = arith.constant 1088 : index
    %c0_387 = arith.constant 0 : index
    %748 = vector.load %arg0[%c1088_386, %c0_387] : memref<2072x128xf32, #tpu.memory_space<vmem>>, vector<32x8xf32>
    %cst_388 = arith.constant dense<0.000000e+00> : vector<32x64xf32>
    %749 = tpu.matmul %748, %747, %cst_388 {dimension_numbers = #tpu.dot_dimension_numbers<[1], [0], [0], [1], [0, 0, 1, 1], [], []>} : vector<32x8xf32>, vector<8x64xf32>, vector<32x64xf32> -> vector<32x64xf32>
    %c1120_389 = arith.constant 1120 : index
    %c0_390 = arith.constant 0 : index
    %750 = vector.load %arg0[%c1120_389, %c0_390] : memref<2072x128xf32, #tpu.memory_space<vmem>>, vector<32x64xf32>
    %751 = arith.mulf %749, %750 : vector<32x64xf32>
    %cst_391 = arith.constant dense<0.000000e+00> : vector<32x32xf32>
    %752 = tpu.matmul %742, %751, %cst_391 {dimension_numbers = #tpu.dot_dimension_numbers<[1], [1], [0], [0], [0, 0, 1, 0], [], []>} : vector<32x64xf32>, vector<32x64xf32>, vector<32x32xf32> -> vector<32x32xf32>
    %cst_392 = arith.constant 0.353553385 : f32
    %753 = vector.broadcast %cst_392 : f32 to vector<32x32xf32>
    %754 = arith.mulf %752, %753 : vector<32x32xf32>
    %c1848_393 = arith.constant 1848 : index
    %c0_394 = arith.constant 0 : index
    %755 = vector.load %arg0[%c1848_393, %c0_394] : memref<2072x128xf32, #tpu.memory_space<vmem>>, vector<32x32xf32>
    %756 = arith.addf %754, %755 : vector<32x32xf32>
    %cst_395 = arith.constant dense<0xFF800000> : vector<32xf32>
    %757 = vector.multi_reduction <maximumf>, %756, %cst_395 [1] : vector<32x32xf32> to vector<32xf32>
    %758 = vector.shape_cast %757 : vector<32xf32> to vector<32x1xf32>
    %759 = vector.broadcast %758 : vector<32x1xf32> to vector<32x32xf32>
    %760 = arith.subf %756, %759 : vector<32x32xf32>
    %761 = math.exp %760 : vector<32x32xf32>
    %c1152_396 = arith.constant 1152 : index
    %c0_397 = arith.constant 0 : index
    %762 = vector.load %arg0[%c1152_396, %c0_397] : memref<2072x128xf32, #tpu.memory_space<vmem>>, vector<32x32xf32>
    %cst_398 = arith.constant dense<0.000000e+00> : vector<32x32xf32>
    %763 = tpu.matmul %761, %762, %cst_398 {dimension_numbers = #tpu.dot_dimension_numbers<[1], [0], [0], [1], [0, 0, 1, 1], [], []>} : vector<32x32xf32>, vector<32x32xf32>, vector<32x32xf32> -> vector<32x32xf32>
    %764 = tpu.reciprocal %763 {approx = true} : vector<32x32xf32> -> vector<32x32xf32>
    %765 = arith.mulf %761, %764 : vector<32x32xf32>
    %cst_399 = arith.constant dense<0.000000e+00> : vector<32x64xf32>
    %766 = tpu.matmul %765, %751, %cst_399 {dimension_numbers = #tpu.dot_dimension_numbers<[1], [0], [0], [1], [0, 0, 1, 1], [], []>} : vector<32x32xf32>, vector<32x64xf32>, vector<32x64xf32> -> vector<32x64xf32>
    %c832_400 = arith.constant 832 : index
    %c0_401 = arith.constant 0 : index
    %767 = vector.load %arg0[%c832_400, %c0_401] : memref<2072x128xf32, #tpu.memory_space<vmem>>, vector<64x32xf32>
    %cst_402 = arith.constant dense<0.000000e+00> : vector<32x32xf32>
    %768 = tpu.matmul %766, %767, %cst_402 {dimension_numbers = #tpu.dot_dimension_numbers<[1], [0], [0], [1], [0, 0, 1, 1], [], []>} : vector<32x64xf32>, vector<64x32xf32>, vector<32x32xf32> -> vector<32x32xf32>
    %c896_403 = arith.constant 896 : index
    %c0_404 = arith.constant 0 : index
    %769 = vector.load %arg0[%c896_403, %c0_404] : memref<2072x128xf32, #tpu.memory_space<vmem>>, vector<1x32xf32>
    %770 = vector.broadcast %769 : vector<1x32xf32> to vector<32x32xf32>
    %771 = arith.addf %768, %770 : vector<32x32xf32>
    %772 = arith.addf %737, %771 : vector<32x32xf32>
    %cst_405 = arith.constant dense<0.000000e+00> : vector<32xf32>
    %773 = vector.multi_reduction <add>, %772, %cst_405 [1] : vector<32x32xf32> to vector<32xf32>
    %774 = vector.shape_cast %773 : vector<32xf32> to vector<32x1xf32>
    %cst_406 = arith.constant 3.200000e+01 : f32
    %775 = vector.broadcast %cst_406 : f32 to vector<32x1xf32>
    %776 = arith.divf %774, %775 : vector<32x1xf32>
    %777 = vector.broadcast %776 : vector<32x1xf32> to vector<32x32xf32>
    %778 = arith.subf %772, %777 : vector<32x32xf32>
    %779 = arith.mulf %778, %778 : vector<32x32xf32>
    %cst_407 = arith.constant dense<0.000000e+00> : vector<32xf32>
    %780 = vector.multi_reduction <add>, %779, %cst_407 [1] : vector<32x32xf32> to vector<32xf32>
    %781 = vector.shape_cast %780 : vector<32xf32> to vector<32x1xf32>
    %cst_408 = arith.constant 3.200000e+01 : f32
    %782 = vector.broadcast %cst_408 : f32 to vector<32x1xf32>
    %783 = arith.divf %781, %782 : vector<32x1xf32>
    %cst_409 = arith.constant 9.99999974E-6 : f32
    %784 = vector.broadcast %cst_409 : f32 to vector<32x1xf32>
    %785 = arith.addf %783, %784 : vector<32x1xf32>
    %786 = math.rsqrt %785 : vector<32x1xf32>
    %787 = vector.broadcast %786 : vector<32x1xf32> to vector<32x32xf32>
    %788 = arith.mulf %778, %787 : vector<32x32xf32>
    %c1000_410 = arith.constant 1000 : index
    %c0_411 = arith.constant 0 : index
    %789 = vector.load %arg0[%c1000_410, %c0_411] : memref<2072x128xf32, #tpu.memory_space<vmem>>, vector<1x32xf32>
    %790 = vector.broadcast %789 : vector<1x32xf32> to vector<32x32xf32>
    %791 = arith.mulf %788, %790 : vector<32x32xf32>
    %c1008_412 = arith.constant 1008 : index
    %c0_413 = arith.constant 0 : index
    %792 = vector.load %arg0[%c1008_412, %c0_413] : memref<2072x128xf32, #tpu.memory_space<vmem>>, vector<1x32xf32>
    %793 = vector.broadcast %792 : vector<1x32xf32> to vector<32x32xf32>
    %794 = arith.addf %791, %793 : vector<32x32xf32>
    %c904_414 = arith.constant 904 : index
    %c0_415 = arith.constant 0 : index
    %795 = vector.load %arg0[%c904_414, %c0_415] : memref<2072x128xf32, #tpu.memory_space<vmem>>, vector<32x32xf32>
    %cst_416 = arith.constant dense<0.000000e+00> : vector<32x32xf32>
    %796 = tpu.matmul %794, %795, %cst_416 {dimension_numbers = #tpu.dot_dimension_numbers<[1], [0], [0], [1], [0, 0, 1, 1], [], []>} : vector<32x32xf32>, vector<32x32xf32>, vector<32x32xf32> -> vector<32x32xf32>
    %c936_417 = arith.constant 936 : index
    %c0_418 = arith.constant 0 : index
    %797 = vector.load %arg0[%c936_417, %c0_418] : memref<2072x128xf32, #tpu.memory_space<vmem>>, vector<1x32xf32>
    %798 = vector.broadcast %797 : vector<1x32xf32> to vector<32x32xf32>
    %799 = arith.addf %796, %798 : vector<32x32xf32>
    %cst_419 = arith.constant 5.000000e-01 : f32
    %800 = vector.broadcast %cst_419 : f32 to vector<32x32xf32>
    %801 = arith.mulf %800, %799 : vector<32x32xf32>
    %cst_420 = arith.constant 0.707106769 : f32
    %802 = vector.broadcast %cst_420 : f32 to vector<32x32xf32>
    %803 = arith.mulf %799, %802 : vector<32x32xf32>
    %cst_421 = arith.constant 0.000000e+00 : f32
    %804 = vector.broadcast %cst_421 : f32 to vector<32x32xf32>
    %805 = arith.cmpf oge, %803, %804 : vector<32x32xf32>
    %cst_422 = arith.constant 1.000000e+00 : f32
    %cst_423 = arith.constant -1.000000e+00 : f32
    %806 = vector.broadcast %cst_422 : f32 to vector<32x32xf32>
    %807 = vector.broadcast %cst_423 : f32 to vector<32x32xf32>
    %808 = arith.select %805, %806, %807 : vector<32x32xi1>, vector<32x32xf32>
    %809 = math.absf %803 : vector<32x32xf32>
    %cst_424 = arith.constant 0.327591091 : f32
    %810 = vector.broadcast %cst_424 : f32 to vector<32x32xf32>
    %811 = arith.mulf %810, %809 : vector<32x32xf32>
    %cst_425 = arith.constant 1.000000e+00 : f32
    %812 = vector.broadcast %cst_425 : f32 to vector<32x32xf32>
    %813 = arith.addf %812, %811 : vector<32x32xf32>
    %cst_426 = arith.constant 1.000000e+00 : f32
    %814 = vector.broadcast %cst_426 : f32 to vector<32x32xf32>
    %815 = arith.divf %814, %813 : vector<32x32xf32>
    %cst_427 = arith.constant 1.06140542 : f32
    %816 = vector.broadcast %cst_427 : f32 to vector<32x32xf32>
    %817 = arith.mulf %816, %815 : vector<32x32xf32>
    %cst_428 = arith.constant -1.45315206 : f32
    %818 = vector.broadcast %cst_428 : f32 to vector<32x32xf32>
    %819 = arith.addf %817, %818 : vector<32x32xf32>
    %820 = arith.mulf %819, %815 : vector<32x32xf32>
    %cst_429 = arith.constant 1.42141378 : f32
    %821 = vector.broadcast %cst_429 : f32 to vector<32x32xf32>
    %822 = arith.addf %820, %821 : vector<32x32xf32>
    %823 = arith.mulf %822, %815 : vector<32x32xf32>
    %cst_430 = arith.constant -0.284496725 : f32
    %824 = vector.broadcast %cst_430 : f32 to vector<32x32xf32>
    %825 = arith.addf %823, %824 : vector<32x32xf32>
    %826 = arith.mulf %825, %815 : vector<32x32xf32>
    %cst_431 = arith.constant 0.254829586 : f32
    %827 = vector.broadcast %cst_431 : f32 to vector<32x32xf32>
    %828 = arith.addf %826, %827 : vector<32x32xf32>
    %829 = arith.mulf %828, %815 : vector<32x32xf32>
    %cst_432 = arith.constant 0.000000e+00 : f32
    %830 = vector.broadcast %cst_432 : f32 to vector<32x32xf32>
    %831 = arith.subf %830, %809 : vector<32x32xf32>
    %832 = arith.mulf %831, %809 : vector<32x32xf32>
    %833 = math.exp %832 : vector<32x32xf32>
    %834 = arith.mulf %829, %833 : vector<32x32xf32>
    %cst_433 = arith.constant 1.000000e+00 : f32
    %835 = vector.broadcast %cst_433 : f32 to vector<32x32xf32>
    %836 = arith.subf %835, %834 : vector<32x32xf32>
    %837 = arith.mulf %808, %836 : vector<32x32xf32>
    %cst_434 = arith.constant 1.000000e+00 : f32
    %838 = vector.broadcast %cst_434 : f32 to vector<32x32xf32>
    %839 = arith.addf %838, %837 : vector<32x32xf32>
    %840 = arith.mulf %801, %839 : vector<32x32xf32>
    %c944_435 = arith.constant 944 : index
    %c0_436 = arith.constant 0 : index
    %841 = vector.load %arg0[%c944_435, %c0_436] : memref<2072x128xf32, #tpu.memory_space<vmem>>, vector<32x32xf32>
    %cst_437 = arith.constant dense<0.000000e+00> : vector<32x32xf32>
    %842 = tpu.matmul %840, %841, %cst_437 {dimension_numbers = #tpu.dot_dimension_numbers<[1], [0], [0], [1], [0, 0, 1, 1], [], []>} : vector<32x32xf32>, vector<32x32xf32>, vector<32x32xf32> -> vector<32x32xf32>
    %c976_438 = arith.constant 976 : index
    %c0_439 = arith.constant 0 : index
    %843 = vector.load %arg0[%c976_438, %c0_439] : memref<2072x128xf32, #tpu.memory_space<vmem>>, vector<1x32xf32>
    %844 = vector.broadcast %843 : vector<1x32xf32> to vector<32x32xf32>
    %845 = arith.addf %842, %844 : vector<32x32xf32>
    %846 = arith.addf %794, %845 : vector<32x32xf32>
    %cst_440 = arith.constant dense<0.000000e+00> : vector<32xf32>
    %847 = vector.multi_reduction <add>, %846, %cst_440 [1] : vector<32x32xf32> to vector<32xf32>
    %848 = vector.shape_cast %847 : vector<32xf32> to vector<32x1xf32>
    %cst_441 = arith.constant 3.200000e+01 : f32
    %849 = vector.broadcast %cst_441 : f32 to vector<32x1xf32>
    %850 = arith.divf %848, %849 : vector<32x1xf32>
    %851 = vector.broadcast %850 : vector<32x1xf32> to vector<32x32xf32>
    %852 = arith.subf %846, %851 : vector<32x32xf32>
    %853 = arith.mulf %852, %852 : vector<32x32xf32>
    %cst_442 = arith.constant dense<0.000000e+00> : vector<32xf32>
    %854 = vector.multi_reduction <add>, %853, %cst_442 [1] : vector<32x32xf32> to vector<32xf32>
    %855 = vector.shape_cast %854 : vector<32xf32> to vector<32x1xf32>
    %cst_443 = arith.constant 3.200000e+01 : f32
    %856 = vector.broadcast %cst_443 : f32 to vector<32x1xf32>
    %857 = arith.divf %855, %856 : vector<32x1xf32>
    %cst_444 = arith.constant 9.99999974E-6 : f32
    %858 = vector.broadcast %cst_444 : f32 to vector<32x1xf32>
    %859 = arith.addf %857, %858 : vector<32x1xf32>
    %860 = math.rsqrt %859 : vector<32x1xf32>
    %861 = vector.broadcast %860 : vector<32x1xf32> to vector<32x32xf32>
    %862 = arith.mulf %852, %861 : vector<32x32xf32>
    %c1016_445 = arith.constant 1016 : index
    %c0_446 = arith.constant 0 : index
    %863 = vector.load %arg0[%c1016_445, %c0_446] : memref<2072x128xf32, #tpu.memory_space<vmem>>, vector<1x32xf32>
    %864 = vector.broadcast %863 : vector<1x32xf32> to vector<32x32xf32>
    %865 = arith.mulf %862, %864 : vector<32x32xf32>
    %c1024_447 = arith.constant 1024 : index
    %c0_448 = arith.constant 0 : index
    %866 = vector.load %arg0[%c1024_447, %c0_448] : memref<2072x128xf32, #tpu.memory_space<vmem>>, vector<1x32xf32>
    %867 = vector.broadcast %866 : vector<1x32xf32> to vector<32x32xf32>
    %868 = arith.addf %865, %867 : vector<32x32xf32>
    %cst_449 = arith.constant dense<0.000000e+00> : vector<32xf32>
    %869 = vector.multi_reduction <add>, %868, %cst_449 [1] : vector<32x32xf32> to vector<32xf32>
    %870 = vector.shape_cast %869 : vector<32xf32> to vector<32x1xf32>
    %cst_450 = arith.constant 3.200000e+01 : f32
    %871 = vector.broadcast %cst_450 : f32 to vector<32x1xf32>
    %872 = arith.divf %870, %871 : vector<32x1xf32>
    %873 = vector.broadcast %872 : vector<32x1xf32> to vector<32x32xf32>
    %874 = arith.subf %868, %873 : vector<32x32xf32>
    %875 = arith.mulf %874, %874 : vector<32x32xf32>
    %cst_451 = arith.constant dense<0.000000e+00> : vector<32xf32>
    %876 = vector.multi_reduction <add>, %875, %cst_451 [1] : vector<32x32xf32> to vector<32xf32>
    %877 = vector.shape_cast %876 : vector<32xf32> to vector<32x1xf32>
    %cst_452 = arith.constant 3.200000e+01 : f32
    %878 = vector.broadcast %cst_452 : f32 to vector<32x1xf32>
    %879 = arith.divf %877, %878 : vector<32x1xf32>
    %cst_453 = arith.constant 9.99999974E-6 : f32
    %880 = vector.broadcast %cst_453 : f32 to vector<32x1xf32>
    %881 = arith.addf %879, %880 : vector<32x1xf32>
    %882 = math.rsqrt %881 : vector<32x1xf32>
    %883 = vector.broadcast %882 : vector<32x1xf32> to vector<32x32xf32>
    %884 = arith.mulf %874, %883 : vector<32x32xf32>
    %c1032 = arith.constant 1032 : index
    %c0_454 = arith.constant 0 : index
    %885 = vector.load %arg0[%c1032, %c0_454] : memref<2072x128xf32, #tpu.memory_space<vmem>>, vector<1x32xf32>
    %886 = vector.broadcast %885 : vector<1x32xf32> to vector<32x32xf32>
    %887 = arith.mulf %884, %886 : vector<32x32xf32>
    %c1040 = arith.constant 1040 : index
    %c0_455 = arith.constant 0 : index
    %888 = vector.load %arg0[%c1040, %c0_455] : memref<2072x128xf32, #tpu.memory_space<vmem>>, vector<1x32xf32>
    %889 = vector.broadcast %888 : vector<1x32xf32> to vector<32x32xf32>
    %890 = arith.addf %887, %889 : vector<32x32xf32>
    %c1048 = arith.constant 1048 : index
    %c0_456 = arith.constant 0 : index
    %891 = vector.load %arg0[%c1048, %c0_456] : memref<2072x128xf32, #tpu.memory_space<vmem>>, vector<32x4xf32>
    %cst_457 = arith.constant dense<0.000000e+00> : vector<32x4xf32>
    %892 = tpu.matmul %890, %891, %cst_457 {dimension_numbers = #tpu.dot_dimension_numbers<[1], [0], [0], [1], [0, 0, 1, 1], [], []>} : vector<32x32xf32>, vector<32x4xf32>, vector<32x4xf32> -> vector<32x4xf32>
    %c1080 = arith.constant 1080 : index
    %c0_458 = arith.constant 0 : index
    %893 = vector.load %arg0[%c1080, %c0_458] : memref<2072x128xf32, #tpu.memory_space<vmem>>, vector<1x4xf32>
    %894 = vector.broadcast %893 : vector<1x4xf32> to vector<32x4xf32>
    %895 = arith.addf %892, %894 : vector<32x4xf32>
    %c0_459 = arith.constant 0 : index
    %c0_460 = arith.constant 0 : index
    %896 = vector.load %arg3[%c0_459, %c0_460] : memref<32x4xf32, #tpu.memory_space<vmem>>, vector<32x4xf32>
    tpu.vector_store %arg3[%c0_459, %c0_460], %895 {strides = array<i32>} : memref<32x4xf32, #tpu.memory_space<vmem>>, vector<32x4xf32>,
    return
  }
}

</mosaic_0001>

<bundles_post_ra>
// kernel: fwd.1
= control target key start
LH: loop header
LB: loop body
LE: loop exit
PB: predicated region body
PF: predicated region fallthrough
CT: control target
= control target key end

     0   :  { %vm29_vm0 = vcmask 359424   ;;  %vm42_vm1 = vcmask 1043456   ;;  %vm12640_vm2 = vmmov 1   ;;  %vm140_vm4 = vcmask 261120   ;;  %s15163_s0 = inlined_call_operand.vmem [shape: f32[2072,128], index: 0, kind: input, shape index: {}]   ;;  %s15164_s1 = inlined_call_operand.vmem [shape: f32[32,44], index: 1, kind: input, shape index: {}]   ;;  %s15165_s2 = inlined_call_operand.vmem [shape: f32[32,44], index: 2, kind: input, shape index: {}]   ;;  %s15166_s3 = inlined_call_operand.vmem [shape: f32[32,4], index: 3, kind: output, shape index: {}]  }
   0x1   :  { %v18_v0 = vld [vmem:[%s15163_s0] sm:$0xff]  ;;  %v19_v1 = vld [vmem:[%s15163_s0 + $0x8] sm:$0xff]  ;;  %v20_v2 = vld [vmem:[%s15163_s0 + $0x10] sm:$0xff]  ;;  %vm573_vm5 = vcmask 523264   ;;  %vm2485_vm15 = vcmask 130048  }
   0x2   :  { %v11352_v3 = vpack.c.bf16 %v19_v1, %v18_v0  ;;  %v21_v4 = vld [vmem:[%s15163_s0 + $0x18] sm:$0xff]  ;;  %v22_v6 = vld [vmem:[%s15163_s0 + $0x20] sm:$0xff]  ;;  %v23_v7 = vld [vmem:[%s15163_s0 + $0x28] sm:$0xf] }
   0x3   :  { %v11356_v5 = vpack.c.bf16 %v21_v4, %v20_v2  ;;  %v14_v8 = vld [vmem:[%s15164_s1] sm:$0xff]  ;;  %v131_v9 = vld [vmem:[%s15163_s0 + $0x70] sm:$0xff]  ;;  %v132_v10 = vld [vmem:[%s15163_s0 + $0x78] sm:$0xff]  ;;  %v11360_v11 = vpack.c.bf16 %v23_v7, %v22_v6 }
   0x4   :  { %11353 = vmatprep.subr.bf16.mxu0 %v11352_v3  ;;  %10056 = vmatprep.mubr.msk.f32.mxu0 %vm29_vm0, %v14_v8  ;;  %v12693_v12 = vpack.c.bf16 %v132_v10, %v131_v9  ;;  %vm12695_vm3 = vmpackc.low %vm42_vm1, %vm12640_vm2  ;;  %v15_v14 = vld [vmem:[%s15164_s1 + $0x8] sm:$0xff]  ;;  %v16_v15 = vld [vmem:[%s15164_s1 + $0x10] sm:$0xff] }
   0x5   :  { %11355 = vmatpush3.bf16.msra.mxu0 %v11352_v3  ;;  %v17_v16 = vld [vmem:[%s15164_s1 + $0x18] sm:$0xff]  ;;  %v133_v17 = vld [vmem:[%s15163_s0 + $0x80] sm:$0xff]  ;;  %v134_v18 = vld [vmem:[%s15163_s0 + $0x88] sm:$0xff] }
   0x6   :  { %11357 = vmatprep.subr.bf16.mxu0 %v11356_v5  ;;  %11367 = vmatprep.subr.bf16.mxu1 %v12693_v12  ;;  %v12723_v19 = vpack.c.bf16 %v134_v18, %v133_v17  ;;  %v238_v20 = vld [vmem:[%s15163_s0 + $0x98] sm:$0xff]  ;;  %v239_v21 = vld [vmem:[%s15163_s0 + $0xa0] sm:$0xff]  ;;  %v8970_v23 = vld [vmem:[%s15163_s0 + $0x30] ss:$0 sm:$0xff] }
   0x7   :  { %11369 = vmatpush3.bf16.msra.mxu1 %v12693_v12  ;;  %v12733_v22 = vpack.c.bf16 %v239_v21, %v238_v20  ;;  %v240_v25 = vld [vmem:[%s15163_s0 + $0xa8] sm:$0xff]  ;;  %v241_v26 = vld [vmem:[%s15163_s0 + $0xb0] sm:$0xff]  ;;  %v332_v35 = vld [vmem:[%s15163_s0 + $0x560] sm:$0xff] }
   0x8   :  { %11371 = vmatprep.subr.bf16.mxu1 %v12723_v19  ;;  %v12749_v30 = vpack.c.bf16 %v241_v26, %v240_v25  ;;  %v12781_v36 = vld [vmem:[%s15163_s0 + $0x90] ss:$0 sm:$0xff]  ;;  %v8981_v42 = vld [vmem:[%s15163_s0 + $0xb8] ss:$0 sm:$0xff]  ;;  %v751_v51 = vld [vmem:[%s15163_s0 + $0x660] sm:$0xff] }
   0x9   :  { %11359 = vmatpush3.bf16.msra.mxu0 %v11356_v5  ;;  %v752_v52 = vld [vmem:[%s15163_s0 + $0x668] sm:$0xff]  ;;  %v753_v56 = vld [vmem:[%s15163_s0 + $0x670] sm:$0xff]  ;;  %v754_v57 = vld [vmem:[%s15163_s0 + $0x678] sm:$0xff] }
   0xa   :  { %11362 = vmatprep.subr.msk.bf16.mxu0 %vm12695_vm3, %v11360_v11  ;;  %v12800_v55 = vpack.c.bf16 %v752_v52, %v751_v51  ;;  %v333_v58 = vld [vmem:[%s15163_s0 + $0x568] sm:$0xff]  ;;  %v334_v59 = vld [vmem:[%s15163_s0 + $0x570] sm:$0xff]  ;;  %v12815_v60 = vpack.c.bf16 %v754_v57, %v753_v56  ;;  %v755_v61 = vld [vmem:[%s15163_s0 + $0x680] sm:$0xff] }
   0xb   :  { %11373 = vmatpush3.bf16.msra.mxu1 %v12723_v19  ;;  %v756_v62 = vld [vmem:[%s15163_s0 + $0x688] sm:$0xff]  ;;  %v335_v63 = vld [vmem:[%s15163_s0 + $0x578] sm:$0xff]  ;;  %v336_v0 = vld [vmem:[%s15163_s0 + $0x580] sm:$0xff] }
   0xc   :  { %11375 = vmatprep.subr.bf16.mxu1 %v12733_v22  ;;  %v12833_v1 = vpack.c.bf16 %v756_v62, %v755_v61  ;;  %v757_v2 = vld [vmem:[%s15163_s0 + $0x690] sm:$0xff]  ;;  %v758_v3 = vld [vmem:[%s15163_s0 + $0x698] sm:$0xff]  ;;  %v337_v4 = vld [vmem:[%s15163_s0 + $0x588] sm:$0xff] }
   0xd   :  { %11365 = vmatpush3.bf16.msk.msra.mxu0 %vm12695_vm3, %v11360_v11  ;;  %v338_v5 = vld [vmem:[%s15163_s0 + $0x590] sm:$0xff]  ;;  %v12851_v6 = vpack.c.bf16 %v758_v3, %v757_v2  ;;  %v759_v7 = vld [vmem:[%s15163_s0 + $0x6a0] sm:$0xff]  ;;  %v760_v8 = vld [vmem:[%s15163_s0 + $0x6a8] sm:$0xff] }
   0xe   :  { %v339_v9 = vld [vmem:[%s15163_s0 + $0x598] sm:$0xff]  ;;  %v340_v10 = vld [vmem:[%s15163_s0 + $0x5a0] sm:$0xff]  ;;  %v12869_v11 = vpack.c.bf16 %v760_v8, %v759_v7  ;;  %v342_v17 = vld [vmem:[%s15163_s0 + $0x5b0] sm:$0xff] }
   0xf   :  { %v343_v20 = vld [vmem:[%s15163_s0 + $0x5b8] sm:$0xff]  ;;  %v344_v21 = vld [vmem:[%s15163_s0 + $0x5c0] sm:$0xff]  ;;  %vm12945_vm6 = vmpackc.low %vm573_vm5, %vm573_vm5 }
  0x10   :  { %10057 = vmatmul.mubr.msk.f32.vlgmr.msra.gmra.mrb[0].mxu0 %vm29_vm0, %v15_v14  ;;  %v761_v14 = vld [vmem:[%s15163_s0 + $0x6b0] sm:$0xff]  ;;  %v347_v25 = vld [vmem:[%s15163_s0 + $0x5d8] sm:$0xff]  ;;  %v763_v26 = vld [vmem:[%s15163_s0 + $0x6c0] sm:$0xff] }
  0x11   :  { %10059 = vmatprep.mubr.msk.f32.mxu0 %vm29_vm0, %v16_v15  ;;  %v762_v15 = vld [vmem:[%s15163_s0 + $0x6b8] sm:$0xff]  ;;  %v546_v56 = vld [vmem:[%s15163_s0 + $0x608] sm:$0xff]  ;;  %v545_v57 = vld [vmem:[%s15163_s0 + $0x600] sm:$0xff] }
  0x12   :  { %v12887_v18 = vpack.c.bf16 %v762_v15, %v761_v14  ;;  %v547_v2 = vld [vmem:[%s15163_s0 + $0x610] sm:$0xff]  ;;  %v12544_v13 = vld [vmem:[%s15163_s0 + $0x560] sm:$0xff] }
  0x14   :  { %10060 = vmatmul.mubr.msk.f32.gmra.mrb[2].mxu0 %vm29_vm0, %v17_v16  ;;  %v341_v16 = vld [vmem:[%s15163_s0 + $0x5a8] sm:$0xff] }
  0x15   :  { %10098 = vmatprep.mubr.msk.f32.mxu0 %vm140_vm4, %v332_v35  ;;  %v766_v35 = vld [vmem:[%s15163_s0 + $0x6d8] sm:$0xff] }
  0xe3   :  { %v10058_v24 = vpop.f32.mrb[0].mxu0 }
  0xe4   :  { %v112_v27 = vpop.f32.mrb[1].mxu0  ;;  %v12747_v29 = vadd.f32 %v10058_v24, %v8970_v23  ;;  %v346_v24 = vld [vmem:[%s15163_s0 + $0x5d0] sm:$0xff] }
  0xe5   :  { %v12745_v28 = vadd.f32 %v8970_v23, %v112_v27  ;;  %v764_v27 = vld [vmem:[%s15163_s0 + $0x6c8] sm:$0xff] }
  0xe7   :  { %v10061_v31 = vpop.f32.mrb[2].mxu0  ;;  %10070 = vmatprep.mubr.msk.f32.mxu1 %vm140_vm4, %v12745_v28 }
  0xe8   :  { %v122_v32 = vpop.f32.mrb[3].mxu0  ;;  %10071 = vmatmul.mubr.msk.f32.vlgmr.msra.gmra.mrb[0].mxu1 %vm140_vm4, %v12747_v29  ;;  %v12758_v34 = vadd.f32 %v10061_v31, %v8970_v23  ;;  %v12920_v31 = vpack.c.bf16 %v764_v27, %v763_v26 }
  0xe9   :  { %v12755_v33 = vadd.f32 %v8970_v23, %v122_v32  ;;  %11377 = vmatpush3.bf16.msra.mxu1 %v12733_v22  ;;  %v345_v23 = vld [vmem:[%s15163_s0 + $0x5c8] sm:$0xff]  ;;  %v765_v32 = vld [vmem:[%s15163_s0 + $0x6d0] sm:$0xff] }
  0xea   :  { %11379 = vmatprep.subr.bf16.mxu1 %v12749_v30 }
  0xeb   :  { %10073 = vmatprep.mubr.msk.f32.mxu1 %vm140_vm4, %v12755_v33 }
  0xec   :  { %10074 = vmatmul.mubr.msk.f32.gmra.mrb[2].mxu1 %vm140_vm4, %v12758_v34 }
  0xed   :  { %11381 = vmatpush3.bf16.msra.mxu1 %v12749_v30  ;;  %10084 = vmatprep.mubr.msk.f32.mxu1 %vm140_vm4, %v12745_v28 }
  0xf0   :  { %10085 = vmatmul.mubr.msk.f32.vlgmr.msra.gmra.mrb[4].mxu1 %vm140_vm4, %v12747_v29 }
  0xf1   :  { %10087 = vmatprep.mubr.msk.f32.mxu1 %vm140_vm4, %v12755_v33 }
  0xf4   :  { %10088 = vmatmul.mubr.msk.f32.gmra.mrb[6].mxu1 %vm140_vm4, %v12758_v34 }
 0x1bb   :  { %v12783_v37 = vpop.f32.mrb[0].mxu1 }
 0x1bc   :  { %v219_v38 = vpop.f32.mrb[1].mxu1 }
 0x1bd   :  { %v220_v39 = vadd.f32 %v12781_v36, %v219_v38  ;;  %v12930_v38 = vpack.c.bf16 %v766_v35, %v765_v32  ;;  %v554_v35 = vld [vmem:[%s15163_s0 + $0x648] sm:$0xff] }
 0x1bf   :  { %v12786_v40 = vpop.f32.mrb[2].mxu1  ;;  %10154 = vmatprep.mubr.msk.f32.mxu1 %vm573_vm5, %v220_v39  ;;  %v542_v39 = vld [vmem:[%s15163_s0 + $0x5e8] sm:$0xff] }
 0x1c0   :  { %v12789_v41 = vpop.f32.mrb[3].mxu1 }
 0x1c3   :  { %v10086_v43 = vpop.f32.mrb[4].mxu1 }
 0x1c4   :  { %v319_v44 = vadd.f32 %v10086_v43, %v8981_v42  ;;  %v313_v45 = vpop.f32.mrb[5].mxu1 }
 0x1c5   :  { %v314_v46 = vadd.f32 %v8981_v42, %v313_v45 }
 0x1c7   :  { %v11382_v47 = vpack.c.bf16 %v319_v44, %v314_v46  ;;  %v10089_v48 = vpop.f32.mrb[6].mxu1 }
 0x1c8   :  { %v329_v49 = vadd.f32 %v10089_v48, %v8981_v42  ;;  %v323_v50 = vpop.f32.mrb[7].mxu1 }
 0x1c9   :  { %v324_v53 = vadd.f32 %v8981_v42, %v323_v50  ;;  %11383 = vmatprep.subr.bf16.mxu0 %v11382_v47  ;;  %v541_v42 = vld [vmem:[%s15163_s0 + $0x5e0] sm:$0xff] }
 0x1ca   :  { %11385 = vmatpush3.bf16.msra.mxu0 %v11382_v47  ;;  %v544_v47 = vld [vmem:[%s15163_s0 + $0x5f8] sm:$0xff] }
 0x1cb   :  { %v11386_v54 = vpack.c.bf16 %v329_v49, %v324_v53  ;;  %v543_v49 = vld [vmem:[%s15163_s0 + $0x5f0] sm:$0xff] }
 0x1cd   :  { %11387 = vmatprep.subr.bf16.mxu0 %v11386_v54 }
 0x1ce   :  { %11389 = vmatpush3.bf16.msra.mxu0 %v11386_v54 }
 0x1cf   :  { %11439 = vmatprep.subr.bf16.mxu0 %v12800_v55 }
 0x1d1   :  { %10099 = vmatmul.mubr.msk.f32.vlgmr.msra.gmra.mrb[4].mxu0 %vm140_vm4, %v333_v58 }
 0x1d2   :  { %10101 = vmatprep.mubr.msk.f32.mxu0 %vm140_vm4, %v334_v59  ;;  %11441 = vmatpush3.bf16.msra.mxu0 %v12800_v55 }
 0x1d3   :  { %11443 = vmatprep.subr.bf16.mxu0 %v12815_v60 }
 0x1d5   :  { %10102 = vmatmul.mubr.msk.f32.gmra.mrb[6].mxu0 %vm140_vm4, %v335_v63 }
 0x1d6   :  { %10104 = vmatprep.mubr.msk.f32.mxu0 %vm140_vm4, %v336_v0  ;;  %11445 = vmatpush3.bf16.msra.mxu0 %v12815_v60  ;;  %v548_v0 = vld [vmem:[%s15163_s0 + $0x618] sm:$0xff] }
 0x1d7   :  { %11447 = vmatprep.subr.bf16.mxu0 %v12833_v1 }
 0x1d9   :  { %10105 = vmatmul.mubr.msk.f32.gmra.mrb[8].mxu0 %vm140_vm4, %v337_v4 }
 0x1da   :  { %10107 = vmatprep.mubr.msk.f32.mxu0 %vm140_vm4, %v338_v5  ;;  %11449 = vmatpush3.bf16.msra.mxu0 %v12833_v1 }
 0x1db   :  { %11451 = vmatprep.subr.bf16.mxu0 %v12851_v6 }
 0x1dd   :  { %10108 = vmatmul.mubr.msk.f32.gmra.mrb[10].mxu0 %vm140_vm4, %v339_v9  ;;  %v550_v9 = vld [vmem:[%s15163_s0 + $0x628] sm:$0xff] }
 0x1de   :  { %10110 = vmatprep.mubr.msk.f32.mxu0 %vm140_vm4, %v340_v10  ;;  %11453 = vmatpush3.bf16.msra.mxu0 %v12851_v6  ;;  %v549_v10 = vld [vmem:[%s15163_s0 + $0x620] sm:$0xff] }
 0x1df   :  { %11455 = vmatprep.subr.bf16.mxu0 %v12869_v11 }
 0x1e1   :  { %10111 = vmatmul.mubr.msk.f32.gmra.mrb[12].mxu0 %vm140_vm4, %v341_v16 }
 0x1e2   :  { %10113 = vmatprep.mubr.msk.f32.mxu0 %vm140_vm4, %v342_v17  ;;  %11457 = vmatpush3.bf16.msra.mxu0 %v12869_v11 }
 0x1e3   :  { %11459 = vmatprep.subr.bf16.mxu0 %v12887_v18 }
 0x1e5   :  { %10114 = vmatmul.mubr.msk.f32.gmra.mrb[14].mxu0 %vm140_vm4, %v343_v20 }
 0x1e6   :  { %10116 = vmatprep.mubr.msk.f32.mxu0 %vm140_vm4, %v344_v21  ;;  %11461 = vmatpush3.bf16.msra.mxu0 %v12887_v18  ;;  %v552_v21 = vld [vmem:[%s15163_s0 + $0x638] sm:$0xff] }
 0x1e7   :  { %11463 = vmatprep.subr.bf16.mxu0 %v12920_v31 }
 0x1e9   :  { %10117 = vmatmul.mubr.msk.f32.gmra.mrb[16].mxu0 %vm140_vm4, %v345_v23  ;;  %v551_v23 = vld [vmem:[%s15163_s0 + $0x630] sm:$0xff] }
 0x1ea   :  { %10119 = vmatprep.mubr.msk.f32.mxu0 %vm140_vm4, %v346_v24  ;;  %11465 = vmatpush3.bf16.msra.mxu0 %v12920_v31 }
 0x1eb   :  { %11467 = vmatprep.subr.bf16.mxu0 %v12930_v38 }
 0x1ed   :  { %10120 = vmatmul.mubr.msk.f32.gmra.mrb[18].mxu0 %vm140_vm4, %v347_v25 }
 0x1ee   :  { %11469 = vmatpush3.bf16.msra.mxu0 %v12930_v38 }
 0x2a4   :  { %v10100_v43 = vpop.f32.mrb[4].mxu0 }
 0x2a5   :  { %v558_v44 = vmul.f32 %v10100_v43, %v542_v39  ;;  %v462_v45 = vpop.f32.mrb[5].mxu0  ;;  %v553_v39 = vld [vmem:[%s15163_s0 + $0x640] sm:$0xff] }
 0x2a6   :  { %v557_v46 = vmul.f32 %v541_v42, %v462_v45 }
 0x2a8   :  { %v12952_v50 = vpack.c.bf16 %v558_v44, %v557_v46  ;;  %v10103_v51 = vpop.f32.mrb[6].mxu0 }
 0x2a9   :  { %v560_v52 = vmul.f32 %v10103_v51, %v544_v47  ;;  %v472_v53 = vpop.f32.mrb[7].mxu0  ;;  %v556_v47 = vld [vmem:[%s15163_s0 + $0x658] sm:$0xff] }
 0x2aa   :  { %11392 = vmatprep.subr.msk.bf16.mxu1 %vm12945_vm6, %v12952_v50  ;;  %11471 = vmatprep.subr.bf16.mxu0 %v12952_v50  ;;  %v559_v54 = vmul.f32 %v543_v49, %v472_v53  ;;  %v555_v49 = vld [vmem:[%s15163_s0 + $0x650] sm:$0xff] }
 0x2ab   :  { %11395 = vmatpush3.bf16.xpose.msk.msra.mxu1 %vm12945_vm6, %v12952_v50 }
 0x2ac   :  { %v12967_v58 = vpack.c.bf16 %v560_v52, %v559_v54  ;;  %v10106_v59 = vpop.f32.mrb[8].mxu0 }
 0x2ad   :  { %v562_v61 = vmul.f32 %v10106_v59, %v546_v56  ;;  %v482_v62 = vpop.f32.mrb[9].mxu0  ;;  %v225_v59 = vadd.f32 %v12783_v37, %v12781_v36 }
 0x2ae   :  { %11398 = vmatprep.subr.msk.bf16.mxu1 %vm12945_vm6, %v12967_v58  ;;  %v561_v63 = vmul.f32 %v545_v57, %v482_v62  ;;  %v235_v62 = vadd.f32 %v12786_v40, %v12781_v36 }
 0x2b0   :  { %v12978_v3 = vpack.c.bf16 %v562_v61, %v561_v63  ;;  %v10109_v4 = vpop.f32.mrb[10].mxu0  ;;  %v230_v61 = vadd.f32 %v12781_v36, %v12789_v41  ;;  %v725_v36 = vld [vmem:[%s15163_s0 + $0x6f0] sm:$0xff] }
 0x2b1   :  { %v564_v5 = vmul.f32 %v10109_v4, %v548_v0  ;;  %v492_v7 = vpop.f32.mrb[11].mxu0 }
 0x2b2   :  { %v563_v8 = vmul.f32 %v547_v2, %v492_v7  ;;  %v723_v2 = vld [vmem:[%s15163_s0 + $0x6e0] sm:$0xff] }
 0x2b3   :  { %11401 = vmatpush3.bf16.xpose.msk.msra.mxu1 %vm12945_vm6, %v12967_v58 }
 0x2b4   :  { %11404 = vmatprep.subr.msk.bf16.mxu1 %vm12945_vm6, %v12978_v3  ;;  %v12992_v14 = vpack.c.bf16 %v564_v5, %v563_v8  ;;  %v10112_v15 = vpop.f32.mrb[12].mxu0  ;;  %v724_v8 = vld [vmem:[%s15163_s0 + $0x6e8] sm:$0xff] }
 0x2b5   :  { %v566_v16 = vmul.f32 %v10112_v15, %v550_v9  ;;  %v502_v17 = vpop.f32.mrb[13].mxu0 }
 0x2b6   :  { %v565_v20 = vmul.f32 %v549_v10, %v502_v17 }
 0x2b8   :  { %v13000_v24 = vpack.c.bf16 %v566_v16, %v565_v20  ;;  %v10115_v25 = vpop.f32.mrb[14].mxu0  ;;  %v726_v16 = vld [vmem:[%s15163_s0 + $0x6f8] sm:$0xff] }
 0x2b9   :  { %v568_v26 = vmul.f32 %v10115_v25, %v552_v21  ;;  %v512_v27 = vpop.f32.mrb[15].mxu0 }
 0x2ba   :  { %v567_v32 = vmul.f32 %v551_v23, %v512_v27 }
 0x2bb   :  { %11407 = vmatpush3.bf16.xpose.msk.msra.mxu1 %vm12945_vm6, %v12978_v3 }
 0x2bc   :  { %11410 = vmatprep.subr.msk.bf16.mxu1 %vm12945_vm6, %v12992_v14  ;;  %v13014_v42 = vpack.c.bf16 %v568_v26, %v567_v32  ;;  %v10118_v43 = vpop.f32.mrb[16].mxu0 }
 0x2bd   :  { %v570_v44 = vmul.f32 %v10118_v43, %v554_v35  ;;  %v522_v45 = vpop.f32.mrb[17].mxu0 }
 0x2be   :  { %v569_v46 = vmul.f32 %v553_v39, %v522_v45 }
 0x2c0   :  { %v13022_v51 = vpack.c.bf16 %v570_v44, %v569_v46  ;;  %v10121_v52 = vpop.f32.mrb[18].mxu0 }
 0x2c1   :  { %v572_v53 = vmul.f32 %v10121_v52, %v556_v47  ;;  %v532_v54 = vpop.f32.mrb[19].mxu0 }
 0x2c2   :  { %v571_v56 = vmul.f32 %v555_v49, %v532_v54 }
 0x2c3   :  { %11413 = vmatpush3.bf16.xpose.msk.msra.mxu1 %vm12945_vm6, %v12992_v14 }
 0x2c4   :  { %11416 = vmatprep.subr.msk.bf16.mxu1 %vm12945_vm6, %v13000_v24  ;;  %v13030_v57 = vpack.c.bf16 %v572_v53, %v571_v56  ;;  %v950_v53 = vld [vmem:[%s15163_s0 + $0xe8] sm:$0xff]  ;;  %v951_v56 = vld [vmem:[%s15163_s0 + $0xf0] sm:$0xff] }
 0x2cb   :  { %11419 = vmatpush3.bf16.xpose.msk.msra.mxu1 %vm12945_vm6, %v13000_v24 }
 0x2cc   :  { %11422 = vmatprep.subr.msk.bf16.mxu1 %vm12945_vm6, %v13014_v42 }
 0x2d3   :  { %11425 = vmatpush3.bf16.xpose.msk.msra.mxu1 %vm12945_vm6, %v13014_v42 }
 0x2d4   :  { %11428 = vmatprep.subr.msk.bf16.mxu1 %vm12945_vm6, %v13022_v51 }
 0x2db   :  { %11431 = vmatpush3.bf16.xpose.msk.msra.mxu1 %vm12945_vm6, %v13022_v51 }
 0x2dc   :  { %11434 = vmatprep.subr.msk.bf16.mxu1 %vm12945_vm6, %v13030_v57 }
 0x2e3   :  { %11437 = vmatpush3.bf16.xpose.msk.msra.mxu1 %vm12945_vm6, %v13030_v57 }
 0x2ea   :  { %10155 = vmatmul.mubr.msk.f32.vlgmr.msra.gmra.mrb[8].mxu1 %vm573_vm5, %v225_v59 }
 0x2eb   :  { %10157 = vmatprep.mubr.msk.f32.mxu1 %vm573_vm5, %v230_v61 }
 0x2ee   :  { %10158 = vmatmul.mubr.msk.f32.gmra.mrb[10].mxu1 %vm573_vm5, %v235_v62 }
 0x3bd   :  { %v10156_v63 = vpop.f32.mrb[8].mxu1 }
 0x3be   :  { %v700_v0 = vpop.f32.mrb[9].mxu1  ;;  %v720_v37 = vmul.f32 0.35355338, %v10156_v63 }
 0x3bf   :  { %v719_v4 = vmul.f32 0.35355338, %v700_v0 }
 0x3c0   :  { %v728_v10 = vadd.f32 %v724_v8, %v720_v37 }
 0x3c1   :  { %v10159_v5 = vpop.f32.mrb[10].mxu1  ;;  %v727_v7 = vadd.f32 %v723_v2, %v719_v4 }
 0x3c2   :  { %v710_v41 = vpop.f32.mrb[11].mxu1  ;;  %v722_v9 = vmul.f32 0.35355338, %v10159_v5 }
 0x3c3   :  { %v721_v40 = vmul.f32 0.35355338, %v710_v41  ;;  %731 = vmax.xlane.f32.xlu0 %v727_v7 }
 0x3c4   :  { %v730_v17 = vadd.f32 %v726_v16, %v722_v9  ;;  %v9022_v16 = vld [vmem:[%s15163_s0 + $0x100] ss:$0 sm:$0xff] }
 0x3c5   :  { %v729_v15 = vadd.f32 %v725_v36, %v721_v40 }
 0x3c7   :  { %733 = vmax.xlane.f32.xlu0 %v728_v10  ;;  %735 = vmax.xlane.f32.xlu1 %v729_v15 }
 0x3cb   :  { %737 = vmax.xlane.f32.xlu1 %v730_v17 }
 0x450   :  { %v732_v20 = vpop.xlane.xlu0 %731 }
 0x451   :  { %v739_v21 = vsub.f32 %v727_v7, %v732_v20 }
 0x453   :  { %v743_v23 = vmul.f32 1.442695, %v739_v21 }
 0x454   :  { %v734_v25 = vpop.xlane.xlu0 %733  ;;  %v736_v26 = vpop.xlane.xlu1 %735 }
 0x455   :  { %12288 = vpow2.f32 %v743_v23  ;;  %v740_v27 = vsub.f32 %v728_v10, %v734_v25  ;;  %v741_v32 = vsub.f32 %v729_v15, %v736_v26 }
 0x457   :  { %v745_v35 = vmul.f32 1.442695, %v740_v27  ;;  %v747_v39 = vmul.f32 1.442695, %v741_v32 }
 0x458   :  { %v738_v43 = vpop.xlane.xlu1 %737 }
 0x459   :  { %12290 = vpow2.f32 %v745_v35  ;;  %v742_v44 = vsub.f32 %v730_v17, %v738_v43 }
 0x45a   :  { %12292 = vpow2.f32 %v747_v39 }
 0x45b   :  { %v749_v45 = vmul.f32 1.442695, %v742_v44 }
 0x45d   :  { %12294 = vpow2.f32 %v749_v45 }
 0x45f   :  { %v12289_v46 = vpop.eup %12288 }
 0x460   :  { %10192 = vmatprep.mubr.f32.mxu0 %v12289_v46 }
 0x463   :  { %v12291_v47 = vpop.eup %12290 }
 0x464   :  { %v12293_v49 = vpop.eup %12292  ;;  %10193 = vmatmul.mubr.f32.vlgmr.msra.gmra.mrb[20].mxu0 %v12291_v47 }
 0x465   :  { %11473 = vmatpush3.bf16.msra.mxu0 %v12952_v50  ;;  %10195 = vmatprep.mubr.f32.mxu0 %v12293_v49  ;;  %v945_v50 = vld [vmem:[%s15163_s0 + $0xc0] sm:$0xff] }
 0x466   :  { %11475 = vmatprep.subr.bf16.mxu0 %v12967_v58 }
 0x467   :  { %v12295_v52 = vpop.eup %12294 }
 0x468   :  { %10196 = vmatmul.mubr.f32.gmra.mrb[22].mxu0 %v12295_v52 }
 0x469   :  { %11477 = vmatpush3.bf16.msra.mxu0 %v12967_v58  ;;  %v946_v58 = vld [vmem:[%s15163_s0 + $0xc8] sm:$0xff] }
 0x46a   :  { %11479 = vmatprep.subr.bf16.mxu0 %v12978_v3 }
 0x46d   :  { %11481 = vmatpush3.bf16.msra.mxu0 %v12978_v3  ;;  %v947_v3 = vld [vmem:[%s15163_s0 + $0xd0] sm:$0xff] }
 0x46e   :  { %11483 = vmatprep.subr.bf16.mxu0 %v12992_v14 }
 0x471   :  { %11485 = vmatpush3.bf16.msra.mxu0 %v12992_v14  ;;  %v13098_v14 = vpack.c.bf16 %v946_v58, %v945_v50 }
 0x472   :  { %11487 = vmatprep.subr.bf16.mxu0 %v13000_v24 }
 0x473   :  { %11503 = vmatprep.subr.bf16.mxu1 %v13098_v14 }
 0x474   :  { %11505 = vmatpush3.bf16.msra.mxu1 %v13098_v14 }
 0x475   :  { %11489 = vmatpush3.bf16.msra.mxu0 %v13000_v24  ;;  %v948_v24 = vld [vmem:[%s15163_s0 + $0xd8] sm:$0xff] }
 0x476   :  { %11491 = vmatprep.subr.bf16.mxu0 %v13014_v42 }
 0x479   :  { %11493 = vmatpush3.bf16.msra.mxu0 %v13014_v42  ;;  %v13103_v42 = vpack.c.bf16 %v948_v24, %v947_v3 }
 0x47a   :  { %11495 = vmatprep.subr.bf16.mxu0 %v13022_v51 }
 0x47b   :  { %11507 = vmatprep.subr.bf16.mxu1 %v13103_v42 }
 0x47c   :  { %11509 = vmatpush3.bf16.msra.mxu1 %v13103_v42 }
 0x47d   :  { %11497 = vmatpush3.bf16.msra.mxu0 %v13022_v51  ;;  %v949_v51 = vld [vmem:[%s15163_s0 + $0xe0] sm:$0xff] }
 0x47e   :  { %11499 = vmatprep.subr.bf16.mxu0 %v13030_v57  ;;  %v13114_v54 = vpack.c.bf16 %v950_v53, %v949_v51 }
 0x480   :  { %11511 = vmatprep.subr.bf16.mxu1 %v13114_v54 }
 0x481   :  { %11501 = vmatpush3.bf16.msra.mxu0 %v13030_v57  ;;  %v952_v57 = vld [vmem:[%s15163_s0 + $0xf8] sm:$0xff]  ;;  %11513 = vmatpush3.bf16.msra.mxu1 %v13114_v54 }
 0x482   :  { %v13124_v59 = vpack.c.bf16 %v952_v57, %v951_v56 }
 0x484   :  { %11515 = vmatprep.subr.bf16.mxu1 %v13124_v59 }
 0x485   :  { %11517 = vmatpush3.bf16.msra.mxu1 %v13124_v59 }
 0x537   :  { %v10194_v61 = vpop.f32.mrb[20].mxu0 }
 0x538   :  { %12296 = vrcp.f32 %v10194_v61  ;;  %v833_v62 = vpop.f32.mrb[21].mxu0 }
 0x539   :  { %12298 = vrcp.f32 %v833_v62 }
 0x53b   :  { %v10197_v63 = vpop.f32.mrb[22].mxu0 }
 0x53c   :  { %12300 = vrcp.f32 %v10197_v63  ;;  %v843_v0 = vpop.f32.mrb[23].mxu0 }
 0x53d   :  { %12302 = vrcp.f32 %v843_v0 }
 0x542   :  { %v12297_v2 = vpop.eup %12296 }
 0x543   :  { %v12299_v4 = vpop.eup %12298  ;;  %v857_v5 = vmul.f32 %v12297_v2, %v12291_v47 }
 0x544   :  { %v856_v37 = vmul.f32 %v12299_v4, %v12289_v46 }
 0x546   :  { %v12301_v7 = vpop.eup %12300  ;;  %10230 = vmatprep.mubr.f32.mxu0 %v856_v37 }
 0x547   :  { %v12303_v41 = vpop.eup %12302  ;;  %10231 = vmatmul.mubr.f32.vlgmr.msra.gmra.mrb[24].mxu0 %v857_v5  ;;  %v859_v36 = vmul.f32 %v12301_v7, %v12295_v52  ;;  %v1130_v5 = vld [vmem:[%s15163_s0 + $0x108] sm:$0xff]  ;;  %v1131_v7 = vld [vmem:[%s15163_s0 + $0x110] sm:$0xff] }
 0x548   :  { %v858_v8 = vmul.f32 %v12303_v41, %v12293_v49  ;;  %v13154_v41 = vpack.c.bf16 %v1131_v7, %v1130_v5 }
 0x54a   :  { %10233 = vmatprep.mubr.f32.mxu0 %v858_v8  ;;  %11519 = vmatprep.subr.bf16.mxu0 %v13154_v41  ;;  %v1132_v8 = vld [vmem:[%s15163_s0 + $0x118] sm:$0xff] }
 0x54b   :  { %10234 = vmatmul.mubr.f32.gmra.mrb[26].mxu0 %v859_v36  ;;  %v1133_v36 = vld [vmem:[%s15163_s0 + $0x120] sm:$0xff] }
 0x54c   :  { %11521 = vmatpush3.bf16.msra.mxu0 %v13154_v41 }
 0x61a   :  { %v10232_v40 = vpop.f32.mrb[24].mxu0 }
 0x61b   :  { %v926_v9 = vpop.f32.mrb[25].mxu0 }
 0x61c   :  { %10252 = vmatprep.mubr.msk.f32.mxu1 %vm573_vm5, %v926_v9 }
 0x61d   :  { %10253 = vmatmul.mubr.msk.f32.vlgmr.msra.gmra.mrb[12].mxu1 %vm573_vm5, %v10232_v40  ;;  %v13164_v40 = vpack.c.bf16 %v1133_v36, %v1132_v8 }
 0x61e   :  { %v10235_v10 = vpop.f32.mrb[26].mxu0 }
 0x61f   :  { %v936_v15 = vpop.f32.mrb[27].mxu0  ;;  %11523 = vmatprep.subr.bf16.mxu0 %v13164_v40 }
 0x620   :  { %10255 = vmatprep.mubr.msk.f32.mxu1 %vm573_vm5, %v936_v15  ;;  %11525 = vmatpush3.bf16.msra.mxu0 %v13164_v40 }
 0x621   :  { %10256 = vmatmul.mubr.msk.f32.gmra.mrb[14].mxu1 %vm573_vm5, %v10235_v10 }
 0x6f0   :  { %v10254_v17 = vpop.f32.mrb[12].mxu1 }
 0x6f1   :  { %v1042_v20 = vadd.f32 %v10254_v17, %v9022_v16  ;;  %v1036_v21 = vpop.f32.mrb[13].mxu1 }
 0x6f2   :  { %v1037_v23 = vadd.f32 %v9022_v16, %v1036_v21 }
 0x6f3   :  { %v1056_v25 = vadd.f32 %v1042_v20, %v12747_v29 }
 0x6f4   :  { %v10257_v26 = vpop.f32.mrb[14].mxu1  ;;  %v1055_v27 = vadd.f32 %v1037_v23, %v12745_v28 }
 0x6f5   :  { %v1052_v32 = vadd.f32 %v10257_v26, %v9022_v16  ;;  %v1046_v35 = vpop.f32.mrb[15].mxu1  ;;  %v1062_v39 = vsel %vm140_vm4, %v1056_v25, 0.0 }
 0x6f6   :  { %v1047_v43 = vadd.f32 %v9022_v16, %v1046_v35  ;;  %1063 = vadd.xlane.f32.xlu1 %v1062_v39  ;;  %v1059_v44 = vsel %vm140_vm4, %v1055_v27, 0.0  ;;  %v9027_v39 = vld [vmem:[%s15163_s0 + $0x158] ss:$0 sm:$0xff] }
 0x6f7   :  { %1060 = vadd.xlane.f32.xlu0 %v1059_v44  ;;  %v1058_v45 = vadd.f32 %v1052_v32, %v12758_v34 }
 0x6f8   :  { %v1057_v46 = vadd.f32 %v1047_v43, %v12755_v33 }
 0x6f9   :  { %v1068_v47 = vsel %vm140_vm4, %v1058_v45, 0.0 }
 0x6fa   :  { %1069 = vadd.xlane.f32.xlu1 %v1068_v47  ;;  %v1065_v29 = vsel %vm140_vm4, %v1057_v46, 0.0  ;;  %v9028_v47 = vld [vmem:[%s15163_s0 + $0x160] ss:$0 sm:$0xff] }
 0x6fb   :  { %1066 = vadd.xlane.f32.xlu0 %v1065_v29 }
 0x783   :  { %v1064_v28 = vpop.xlane.xlu1 %1063 }
 0x784   :  { %v1073_v49 = vmul.f32 0.03125, %v1064_v28  ;;  %v1061_v52 = vpop.xlane.xlu0 %1060 }
 0x785   :  { %v1072_v50 = vmul.f32 0.03125, %v1061_v52 }
 0x786   :  { %v1077_v58 = vsub.f32 %v1056_v25, %v1073_v49 }
 0x787   :  { %v1076_v3 = vsub.f32 %v1055_v27, %v1072_v50  ;;  %v1070_v24 = vpop.xlane.xlu1 %1069 }
 0x788   :  { %v1075_v51 = vmul.f32 0.03125, %v1070_v24  ;;  %v1067_v53 = vpop.xlane.xlu0 %1066  ;;  %v1081_v56 = vmul.f32 %v1077_v58, %v1077_v58 }
 0x789   :  { %v1074_v57 = vmul.f32 0.03125, %v1067_v53  ;;  %v1080_v34 = vmul.f32 %v1076_v3, %v1076_v3 }
 0x78a   :  { %v1079_v61 = vsub.f32 %v1058_v45, %v1075_v51  ;;  %v1087_v33 = vsel %vm140_vm4, %v1081_v56, 0.0 }
 0x78b   :  { %v1078_v62 = vsub.f32 %v1057_v46, %v1074_v57  ;;  %1088 = vadd.xlane.f32.xlu1 %v1087_v33  ;;  %v1084_v63 = vsel %vm140_vm4, %v1080_v34, 0.0  ;;  %v1344_v57 = vld [vmem:[%s15163_s0 + $0x130] sm:$0xff]  ;;  %v1345_v34 = vld [vmem:[%s15163_s0 + $0x138] sm:$0xff]  ;;  %v1346_v33 = vld [vmem:[%s15163_s0 + $0x140] sm:$0xff] }
 0x78c   :  { %1085 = vadd.xlane.f32.xlu0 %v1084_v63  ;;  %v1083_v0 = vmul.f32 %v1079_v61, %v1079_v61 }
 0x78d   :  { %v1082_v2 = vmul.f32 %v1078_v62, %v1078_v62 }
 0x78e   :  { %v1093_v4 = vsel %vm140_vm4, %v1083_v0, 0.0  ;;  %v9029_v0 = vld [vmem:[%s15163_s0 + $0x128] ss:$0 sm:$0xff] }
 0x78f   :  { %1094 = vadd.xlane.f32.xlu1 %v1093_v4  ;;  %v1090_v37 = vsel %vm140_vm4, %v1082_v2, 0.0 }
 0x790   :  { %1091 = vadd.xlane.f32.xlu0 %v1090_v37 }
 0x818   :  { %v1089_v9 = vpop.xlane.xlu1 %1088 }
 0x819   :  { %v1097_v10 = vmul.f32 0.03125, %v1089_v9  ;;  %v1086_v15 = vpop.xlane.xlu0 %1085 }
 0x81a   :  { %v1096_v16 = vmul.f32 0.03125, %v1086_v15 }
 0x81b   :  { %v1101_v17 = vadd.f32 1e-05, %v1097_v10 }
 0x81c   :  { %v1100_v20 = vadd.f32 1e-05, %v1096_v16  ;;  %v1095_v21 = vpop.xlane.xlu1 %1094 }
 0x81d   :  { %12304 = vrsqrt.f32 %v1101_v17  ;;  %v1099_v23 = vmul.f32 0.03125, %v1095_v21  ;;  %v1092_v25 = vpop.xlane.xlu0 %1091 }
 0x81e   :  { %12306 = vrsqrt.f32 %v1100_v20  ;;  %v1098_v26 = vmul.f32 0.03125, %v1092_v25 }
 0x81f   :  { %v1103_v27 = vadd.f32 1e-05, %v1099_v23 }
 0x820   :  { %v1102_v32 = vadd.f32 1e-05, %v1098_v26 }
 0x821   :  { %12308 = vrsqrt.f32 %v1103_v27 }
 0x822   :  { %12310 = vrsqrt.f32 %v1102_v32 }
 0x827   :  { %v12305_v35 = vpop.eup %12304 }
 0x828   :  { %v12307_v43 = vpop.eup %12306  ;;  %v1109_v44 = vmul.f32 %v12305_v35, %v1077_v58 }
 0x829   :  { %v1108_v45 = vmul.f32 %v12307_v43, %v1076_v3 }
 0x82a   :  { %v1118_v46 = vmul.f32 %v9027_v39, %v1109_v44 }
 0x82b   :  { %v12309_v29 = vpop.eup %12308  ;;  %v1117_v28 = vmul.f32 %v9027_v39, %v1108_v45 }
 0x82c   :  { %v12311_v49 = vpop.eup %12310  ;;  %v1111_v52 = vmul.f32 %v12309_v29, %v1079_v61  ;;  %v13176_v51 = vadd.f32 %v9028_v47, %v1118_v46  ;;  %v13196_v61 = vpack.c.bf16 %v1345_v34, %v1344_v57 }
 0x82d   :  { %v13174_v50 = vadd.f32 %v9028_v47, %v1117_v28  ;;  %v1110_v24 = vmul.f32 %v12311_v49, %v1078_v62  ;;  %v1347_v62 = vld [vmem:[%s15163_s0 + $0x148] sm:$0xff] }
 0x82e   :  { %v1120_v53 = vmul.f32 %v9027_v39, %v1111_v52  ;;  %11527 = vmatprep.subr.bf16.mxu0 %v13196_v61  ;;  %v13206_v63 = vpack.c.bf16 %v1347_v62, %v1346_v33 }
 0x82f   :  { %10266 = vmatprep.mubr.msk.f32.mxu0 %vm140_vm4, %v13174_v50  ;;  %v1119_v58 = vmul.f32 %v9027_v39, %v1110_v24 }
 0x830   :  { %10267 = vmatmul.mubr.msk.f32.vlgmr.msra.gmra.mrb[28].mxu0 %vm140_vm4, %v13176_v51  ;;  %v13184_v56 = vadd.f32 %v9028_v47, %v1120_v53 }
 0x831   :  { %v13182_v3 = vadd.f32 %v9028_v47, %v1119_v58  ;;  %11529 = vmatpush3.bf16.msra.mxu0 %v13196_v61 }
 0x832   :  { %11531 = vmatprep.subr.bf16.mxu0 %v13206_v63 }
 0x833   :  { %10269 = vmatprep.mubr.msk.f32.mxu0 %vm140_vm4, %v13182_v3 }
 0x834   :  { %10270 = vmatmul.mubr.msk.f32.gmra.mrb[30].mxu0 %vm140_vm4, %v13184_v56 }
 0x835   :  { %11533 = vmatpush3.bf16.msra.mxu0 %v13206_v63 }
 0x903   :  { %v10268_v2 = vpop.f32.mrb[28].mxu0 }
 0x904   :  { %v13213_v4 = vadd.f32 %v10268_v2, %v9029_v0  ;;  %v1217_v37 = vpop.f32.mrb[29].mxu0 }
 0x905   :  { %v13215_v5 = vadd.f32 %v9029_v0, %v1217_v37 }
 0x906   :  { %v13218_v7 = vmul.f32 0.70710677, %v13213_v4 }
 0x907   :  { %v13221_v8 = vmul.f32 0.70710677, %v13215_v5  ;;  %v10271_v36 = vpop.f32.mrb[30].mxu0 }
 0x908   :  { %v1253_v9 = vand.u32 2147483647, %v13218_v7  ;;  %v13224_v10 = vadd.f32 %v10271_v36, %v9029_v0  ;;  %v1227_v15 = vpop.f32.mrb[31].mxu0  ;;  %vm1245_vm7 = vcmp.ge.f32.partialorder %v13218_v7, 0.0 }
 0x909   :  { %v1252_v16 = vand.u32 2147483647, %v13221_v8  ;;  %v13227_v17 = vadd.f32 %v9029_v0, %v1227_v15  ;;  %vm1244_vm8 = vcmp.ge.f32.partialorder %v13221_v8, 0.0 }
 0x90a   :  { %v1257_v20 = vmul.f32 0.3275911, %v1253_v9  ;;  %v13230_v23 = vmul.f32 0.70710677, %v13224_v10  ;;  %v1309_v45 = vsub.f32 0.0, %v1253_v9 }
 0x90b   :  { %v1256_v21 = vmul.f32 0.3275911, %v1252_v16  ;;  %v13233_v26 = vmul.f32 0.70710677, %v13227_v17  ;;  %v1308_v47 = vsub.f32 0.0, %v1252_v16 }
 0x90c   :  { %v1261_v25 = vadd.f32 1.0, %v1257_v20  ;;  %v1255_v32 = vand.u32 2147483647, %v13230_v23  ;;  %v1313_v28 = vmul.f32 %v1309_v45, %v1253_v9  ;;  %vm1247_vm9 = vcmp.ge.f32.partialorder %v13230_v23, 0.0 }
 0x90d   :  { %v1260_v27 = vadd.f32 1.0, %v1256_v21  ;;  %v1254_v39 = vand.u32 2147483647, %v13233_v26  ;;  %v1312_v24 = vmul.f32 %v1308_v47, %v1252_v16  ;;  %vm1246_vm10 = vcmp.ge.f32.partialorder %v13233_v26, 0.0 }
 0x90e   :  { %12312 = vrcp.f32 %v1261_v25  ;;  %v1259_v35 = vmul.f32 0.3275911, %v1255_v32  ;;  %v1311_v53 = vsub.f32 0.0, %v1255_v32  ;;  %v1318_v34 = vmul.f32 1.442695, %v1313_v28 }
 0x90f   :  { %12314 = vrcp.f32 %v1260_v27  ;;  %v1258_v44 = vmul.f32 0.3275911, %v1254_v39  ;;  %v1310_v62 = vsub.f32 0.0, %v1254_v39  ;;  %v1316_v37 = vmul.f32 1.442695, %v1312_v24 }
 0x910   :  { %v1263_v43 = vadd.f32 1.0, %v1259_v35  ;;  %v1315_v36 = vmul.f32 %v1311_v53, %v1255_v32 }
 0x911   :  { %v1262_v46 = vadd.f32 1.0, %v1258_v44  ;;  %v1314_v35 = vmul.f32 %v1310_v62, %v1254_v39 }
 0x912   :  { %12316 = vrcp.f32 %v1263_v43  ;;  %v1322_v16 = vmul.f32 1.442695, %v1315_v36 }
 0x913   :  { %12318 = vrcp.f32 %v1262_v46  ;;  %v1320_v24 = vmul.f32 1.442695, %v1314_v35 }
 0x914   :  { %12320 = vpow2.f32 %v1318_v34 }
 0x915   :  { %12322 = vpow2.f32 %v1316_v37 }
 0x916   :  { %12324 = vpow2.f32 %v1322_v16 }
 0x917   :  { %12326 = vpow2.f32 %v1320_v24 }
 0x918   :  { %v12313_v29 = vpop.eup %12312 }
 0x919   :  { %v12315_v49 = vpop.eup %12314  ;;  %v1273_v52 = vmul.f32 1.0614054, %v12313_v29 }
 0x91a   :  { %v1272_v58 = vmul.f32 1.0614054, %v12315_v49 }
 0x91b   :  { %v1277_v57 = vadd.f32 -1.4531521, %v1273_v52 }
 0x91c   :  { %v1276_v33 = vadd.f32 -1.4531521, %v1272_v58  ;;  %v12317_v0 = vpop.eup %12316 }
 0x91d   :  { %v1281_v2 = vmul.f32 %v12313_v29, %v1277_v57  ;;  %v1275_v20 = vmul.f32 1.0614054, %v12317_v0  ;;  %v12319_v25 = vpop.eup %12318 }
 0x91e   :  { %v1280_v15 = vmul.f32 %v12315_v49, %v1276_v33  ;;  %v1274_v44 = vmul.f32 1.0614054, %v12319_v25  ;;  %v12321_v36 = vpop.eup %12320 }
 0x91f   :  { %v1285_v21 = vadd.f32 1.4214138, %v1281_v2  ;;  %v1279_v9 = vadd.f32 -1.4531521, %v1275_v20 }
 0x920   :  { %v1284_v27 = vadd.f32 1.4214138, %v1280_v15  ;;  %v1278_v28 = vadd.f32 -1.4531521, %v1274_v44 }
 0x921   :  { %v1289_v43 = vmul.f32 %v12313_v29, %v1285_v21  ;;  %v1283_v46 = vmul.f32 %v12317_v0, %v1279_v9 }
 0x922   :  { %v1288_v45 = vmul.f32 %v12315_v49, %v1284_v27  ;;  %v1282_v53 = vmul.f32 %v12319_v25, %v1278_v28  ;;  %v12323_v27 = vpop.eup %12322 }
 0x923   :  { %v1293_v47 = vadd.f32 -0.28449672, %v1289_v43  ;;  %v1287_v58 = vadd.f32 1.4214138, %v1283_v46  ;;  %v15167_v46 = vmov -1.0  }
 0x924   :  { %v1292_v52 = vadd.f32 -0.28449672, %v1288_v45  ;;  %v1286_v2 = vadd.f32 1.4214138, %v1282_v53  ;;  %v1250_v23 = vsel %vm1246_vm10, 1.0, %v15167_v46  ;;  %vm4103_vm10 = vcmask 64512  }
 0x925   :  { %v1297_v32 = vmul.f32 %v12313_v29, %v1293_v47  ;;  %v1291_v33 = vmul.f32 %v12317_v0, %v1287_v58  ;;  %v1249_v47 = vsel %vm1245_vm7, 1.0, %v15167_v46  ;;  %vm12643_vm7 = vmmov 0  }
 0x926   :  { %v1296_v57 = vmul.f32 %v12315_v49, %v1292_v52  ;;  %v1290_v37 = vmul.f32 %v12319_v25, %v1286_v2  ;;  %v12325_v52 = vpop.eup %12324 }
 0x927   :  { %v1301_v34 = vadd.f32 0.2548296, %v1297_v32  ;;  %v1295_v39 = vadd.f32 -0.28449672, %v1291_v33  ;;  %v1236_v33 = vmul.f32 0.5, %v13215_v5 }
 0x928   :  { %v1300_v15 = vadd.f32 0.2548296, %v1296_v57  ;;  %v1294_v35 = vadd.f32 -0.28449672, %v1290_v37  ;;  %v12327_v57 = vpop.eup %12326 }
 0x929   :  { %v1305_v62 = vmul.f32 %v12313_v29, %v1301_v34  ;;  %v1299_v21 = vmul.f32 %v12317_v0, %v1295_v39 }
 0x92a   :  { %v1304_v20 = vmul.f32 %v12315_v49, %v1300_v15  ;;  %v1298_v45 = vmul.f32 %v12319_v25, %v1294_v35  ;;  %v1248_v49 = vsel %vm1244_vm8, 1.0, %v15167_v46  ;;  %v1237_v15 = vmul.f32 0.5, %v13213_v4  ;;  %v13256_v35 = vld [vmem:[%s15163_s0 + $0x150] ss:$0 sm:$0xff] }
 0x92b   :  { %v1325_v9 = vmul.f32 %v12321_v36, %v1305_v62  ;;  %v1303_v16 = vadd.f32 0.2548296, %v1299_v21  ;;  %v1238_v21 = vmul.f32 0.5, %v13227_v17 }
 0x92c   :  { %v1324_v43 = vmul.f32 %v12323_v27, %v1304_v20  ;;  %v1302_v24 = vadd.f32 0.2548296, %v1298_v45  ;;  %v1239_v27 = vmul.f32 0.5, %v13224_v10 }
 0x92d   :  { %v1329_v44 = vsub.f32 1.0, %v1325_v9  ;;  %v1307_v29 = vmul.f32 %v12317_v0, %v1303_v16  ;;  %v1251_v0 = vsel %vm1247_vm9, 1.0, %v15167_v46 }
 0x92e   :  { %v1328_v28 = vsub.f32 1.0, %v1324_v43  ;;  %v1306_v8 = vmul.f32 %v12319_v25, %v1302_v24 }
 0x92f   :  { %v1333_v58 = vmul.f32 %v1329_v44, %v1249_v47  ;;  %v1327_v7 = vmul.f32 %v12325_v52, %v1307_v29 }
 0x930   :  { %v1332_v32 = vmul.f32 %v1328_v28, %v1248_v49  ;;  %v1326_v39 = vmul.f32 %v12327_v57, %v1306_v8 }
 0x931   :  { %v1337_v53 = vadd.f32 1.0, %v1333_v58  ;;  %v1331_v2 = vsub.f32 1.0, %v1327_v7 }
 0x932   :  { %v1336_v34 = vadd.f32 1.0, %v1332_v32  ;;  %v1330_v20 = vsub.f32 1.0, %v1326_v39 }
 0x933   :  { %v1335_v37 = vmul.f32 %v1331_v2, %v1251_v0  ;;  %v1341_v36 = vmul.f32 %v1337_v53, %v1237_v15 }
 0x934   :  { %v1340_v62 = vmul.f32 %v1336_v34, %v1236_v33  ;;  %v1334_v25 = vmul.f32 %v1330_v20, %v1250_v23 }
 0x935   :  { %v1339_v5 = vadd.f32 1.0, %v1335_v37 }
 0x936   :  { %10280 = vmatprep.mubr.msk.f32.mxu0 %vm140_vm4, %v1340_v62  ;;  %v1338_v4 = vadd.f32 1.0, %v1334_v25 }
 0x937   :  { %10281 = vmatmul.mubr.msk.f32.vlgmr.msra.gmra.mrb[32].mxu0 %vm140_vm4, %v1341_v36  ;;  %v1343_v26 = vmul.f32 %v1339_v5, %v1239_v27  ;;  %v1625_v27 = vld [vmem:[%s15163_s0 + $0x778] sm:$0xff] }
 0x938   :  { %v1342_v9 = vmul.f32 %v1338_v4, %v1238_v21  ;;  %v1524_v4 = vld [vmem:[%s15163_s0 + $0x758] sm:$0xff] }
 0x939   :  { %10294 = vmatprep.mubr.msk.f32.mxu1 %vm140_vm4, %v1524_v4  ;;  %v1626_v4 = vld [vmem:[%s15163_s0 + $0x780] sm:$0xff] }
 0x93a   :  { %10283 = vmatprep.mubr.msk.f32.mxu0 %vm140_vm4, %v1342_v9 }
 0x93b   :  { %10284 = vmatmul.mubr.msk.f32.gmra.mrb[34].mxu0 %vm140_vm4, %v1343_v26 }
 0x93c   :  { %10308 = vmatprep.mubr.msk.f32.mxu0 %vm140_vm4, %v1625_v27  ;;  %v1526_v27 = vld [vmem:[%s15163_s0 + $0x768] sm:$0xff] }
 0xa0a   :  { %v10282_v43 = vpop.f32.mrb[32].mxu0 }
 0xa0b   :  { %v1437_v16 = vadd.f32 %v10282_v43, %v13256_v35  ;;  %v1431_v44 = vpop.f32.mrb[33].mxu0 }
 0xa0c   :  { %v1432_v17 = vadd.f32 %v13256_v35, %v1431_v44 }
 0xa0d   :  { %v1451_v45 = vadd.f32 %v1437_v16, %v13176_v51 }
 0xa0e   :  { %v1450_v10 = vadd.f32 %v1432_v17, %v13174_v50  ;;  %v10285_v29 = vpop.f32.mrb[34].mxu0 }
 0xa0f   :  { %v1457_v47 = vsel %vm140_vm4, %v1451_v45, 0.0  ;;  %v1447_v52 = vadd.f32 %v10285_v29, %v13256_v35  ;;  %v1441_v58 = vpop.f32.mrb[35].mxu0 }
 0xa10   :  { %1458 = vadd.xlane.f32.xlu1 %v1457_v47  ;;  %v1454_v28 = vsel %vm140_vm4, %v1450_v10, 0.0  ;;  %v1442_v49 = vadd.f32 %v13256_v35, %v1441_v58 }
 0xa11   :  { %1455 = vadd.xlane.f32.xlu0 %v1454_v28  ;;  %v1453_v24 = vadd.f32 %v1447_v52, %v13184_v56 }
 0xa12   :  { %v1452_v32 = vadd.f32 %v1442_v49, %v13182_v3  ;;  %v13285_v49 = vld [vmem:[%s15163_s0 + $0x168] ss:$0 sm:$0xff] }
 0xa13   :  { %v1463_v51 = vsel %vm140_vm4, %v1453_v24, 0.0 }
 0xa14   :  { %1464 = vadd.xlane.f32.xlu1 %v1463_v51  ;;  %v1460_v50 = vsel %vm140_vm4, %v1452_v32, 0.0 }
 0xa15   :  { %1461 = vadd.xlane.f32.xlu0 %v1460_v50  ;;  %v13290_v50 = vld [vmem:[%s15163_s0 + $0x170] ss:$0 sm:$0xff] }
 0xa9d   :  { %v1459_v7 = vpop.xlane.xlu1 %1458 }
 0xa9e   :  { %v1467_v53 = vmul.f32 0.03125, %v1459_v7  ;;  %v1456_v8 = vpop.xlane.xlu0 %1455 }
 0xa9f   :  { %v1466_v57 = vmul.f32 0.03125, %v1456_v8 }
 0xaa0   :  { %v1471_v33 = vsub.f32 %v1451_v45, %v1467_v53 }
 0xaa1   :  { %v1470_v34 = vsub.f32 %v1450_v10, %v1466_v57  ;;  %v1465_v0 = vpop.xlane.xlu1 %1464 }
 0xaa2   :  { %v1475_v2 = vmul.f32 %v1471_v33, %v1471_v33  ;;  %v1469_v56 = vmul.f32 0.03125, %v1465_v0  ;;  %v1462_v62 = vpop.xlane.xlu0 %1461 }
 0xaa3   :  { %v1474_v15 = vmul.f32 %v1470_v34, %v1470_v34  ;;  %v1468_v37 = vmul.f32 0.03125, %v1462_v62 }
 0xaa4   :  { %v1481_v39 = vsel %vm140_vm4, %v1475_v2, 0.0  ;;  %v1473_v36 = vsub.f32 %v1453_v24, %v1469_v56 }
 0xaa5   :  { %1482 = vadd.xlane.f32.xlu1 %v1481_v39  ;;  %v1478_v3 = vsel %vm140_vm4, %v1474_v15, 0.0  ;;  %v1472_v20 = vsub.f32 %v1452_v32, %v1468_v37  ;;  %v1731_v37 = vld [vmem:[%s15163_s0 + $0x1a0] sm:$0xff] }
 0xaa6   :  { %1479 = vadd.xlane.f32.xlu0 %v1478_v3  ;;  %v1477_v23 = vmul.f32 %v1473_v36, %v1473_v36  ;;  %v1730_v3 = vld [vmem:[%s15163_s0 + $0x198] sm:$0xff] }
 0xaa7   :  { %v1476_v25 = vmul.f32 %v1472_v20, %v1472_v20 }
 0xaa8   :  { %v1487_v5 = vsel %vm140_vm4, %v1477_v23, 0.0  ;;  %v11550_v23 = vpack.c.bf16 %v1731_v37, %v1730_v3 }
 0xaa9   :  { %1488 = vadd.xlane.f32.xlu1 %v1487_v5  ;;  %v1484_v21 = vsel %vm140_vm4, %v1476_v25, 0.0  ;;  %v1732_v25 = vld [vmem:[%s15163_s0 + $0x1a8] sm:$0xff]  ;;  %v1733_v5 = vld [vmem:[%s15163_s0 + $0x1b0] sm:$0xff] }
 0xaaa   :  { %1485 = vadd.xlane.f32.xlu0 %v1484_v21  ;;  %v1525_v21 = vld [vmem:[%s15163_s0 + $0x760] sm:$0xff] }
 0xb32   :  { %v1483_v9 = vpop.xlane.xlu1 %1482 }
 0xb33   :  { %v1491_v26 = vmul.f32 0.03125, %v1483_v9  ;;  %v1480_v43 = vpop.xlane.xlu0 %1479  ;;  %v11554_v9 = vpack.c.bf16 %v1733_v5, %v1732_v25 }
 0xb34   :  { %v1490_v16 = vmul.f32 0.03125, %v1480_v43  ;;  %v1726_v43 = vld [vmem:[%s15163_s0 + $0x178] sm:$0xff] }
 0xb35   :  { %v1495_v44 = vadd.f32 1e-05, %v1491_v26  ;;  %v1627_v26 = vld [vmem:[%s15163_s0 + $0x788] sm:$0xff] }
 0xb36   :  { %v1494_v17 = vadd.f32 1e-05, %v1490_v16  ;;  %v1489_v45 = vpop.xlane.xlu1 %1488  ;;  %v1727_v16 = vld [vmem:[%s15163_s0 + $0x180] sm:$0xff] }
 0xb37   :  { %12328 = vrsqrt.f32 %v1495_v44  ;;  %v1493_v10 = vmul.f32 0.03125, %v1489_v45  ;;  %v1486_v47 = vpop.xlane.xlu0 %1485  ;;  %v1527_v44 = vld [vmem:[%s15163_s0 + $0x770] sm:$0xff]  ;;  %v11558_v45 = vpack.c.bf16 %v1727_v16, %v1726_v43 }
 0xb38   :  { %12330 = vrsqrt.f32 %v1494_v17  ;;  %v1492_v28 = vmul.f32 0.03125, %v1486_v47  ;;  %v1628_v17 = vld [vmem:[%s15163_s0 + $0x790] sm:$0xff] }
 0xb39   :  { %v1497_v29 = vadd.f32 1e-05, %v1493_v10  ;;  %v1728_v10 = vld [vmem:[%s15163_s0 + $0x188] sm:$0xff]  ;;  %v1729_v47 = vld [vmem:[%s15163_s0 + $0x190] sm:$0xff] }
 0xb3a   :  { %v1496_v52 = vadd.f32 1e-05, %v1492_v28  ;;  %v11562_v28 = vpack.c.bf16 %v1729_v47, %v1728_v10 }
 0xb3b   :  { %12332 = vrsqrt.f32 %v1497_v29  ;;  %v1928_v29 = vld [vmem:[%s15163_s0 + $0x1b8] sm:$0xff] }
 0xb3c   :  { %12334 = vrsqrt.f32 %v1496_v52  ;;  %v1929_v52 = vld [vmem:[%s15163_s0 + $0x1c0] sm:$0xff] }
 0xb41   :  { %v12329_v58 = vpop.eup %12328 }
 0xb42   :  { %v12331_v24 = vpop.eup %12330  ;;  %v1503_v32 = vmul.f32 %v12329_v58, %v1471_v33  ;;  %v11566_v58 = vpack.c.bf16 %v1929_v52, %v1928_v29 }
 0xb43   :  { %v1502_v51 = vmul.f32 %v12331_v24, %v1470_v34  ;;  %v1930_v24 = vld [vmem:[%s15163_s0 + $0x1c8] sm:$0xff] }
 0xb44   :  { %v1512_v7 = vmul.f32 %v13285_v49, %v1503_v32  ;;  %v1931_v32 = vld [vmem:[%s15163_s0 + $0x1d0] sm:$0xff] }
 0xb45   :  { %v1511_v53 = vmul.f32 %v13285_v49, %v1502_v51  ;;  %v12333_v2 = vpop.eup %12332 }
 0xb46   :  { %v1521_v8 = vadd.f32 %v13290_v50, %v1512_v7  ;;  %v12335_v15 = vpop.eup %12334  ;;  %v1505_v0 = vmul.f32 %v12333_v2, %v1473_v36 }
 0xb47   :  { %v1520_v57 = vadd.f32 %v13290_v50, %v1511_v53  ;;  %v1504_v56 = vmul.f32 %v12335_v15, %v1472_v20 }
 0xb48   :  { %v1514_v33 = vmul.f32 %v13285_v49, %v1505_v0 }
 0xb49   :  { %v11534_v39 = vpack.c.bf16 %v1521_v8, %v1520_v57  ;;  %v1513_v34 = vmul.f32 %v13285_v49, %v1504_v56  ;;  %v2066_v56 = vld [vmem:[%s15163_s0 + $0x798] sm:$0xff] }
 0xb4a   :  { %v1523_v62 = vadd.f32 %v13290_v50, %v1514_v33  ;;  %v9061_v33 = vld [vmem:[%s15163_s0 + $0x1d8] ss:$0 sm:$0xff] }
 0xb4b   :  { %11535 = vmatprep.subr.bf16.mxu1 %v11534_v39  ;;  %11543 = vmatprep.subr.bf16.mxu0 %v11534_v39  ;;  %v1522_v36 = vadd.f32 %v13290_v50, %v1513_v34 }
 0xb4c   :  { %11537 = vmatpush3.bf16.msra.mxu1 %v11534_v39  ;;  %11545 = vmatpush3.bf16.msra.mxu0 %v11534_v39 }
 0xb4d   :  { %v11538_v20 = vpack.c.bf16 %v1523_v62, %v1522_v36 }
 0xb4f   :  { %11539 = vmatprep.subr.bf16.mxu1 %v11538_v20  ;;  %11547 = vmatprep.subr.bf16.mxu0 %v11538_v20 }
 0xb50   :  { %11541 = vmatpush3.bf16.msra.mxu1 %v11538_v20  ;;  %11549 = vmatpush3.bf16.msra.mxu0 %v11538_v20 }
 0xb51   :  { %11551 = vmatprep.subr.bf16.mxu1 %v11550_v23 }
 0xb53   :  { %10295 = vmatmul.mubr.msk.f32.vlgmr.msra.gmra.mrb[16].mxu1 %vm140_vm4, %v1525_v21  ;;  %10309 = vmatmul.mubr.msk.f32.vlgmr.msra.gmra.mrb[36].mxu0 %vm140_vm4, %v1626_v4 }
 0xb54   :  { %11553 = vmatpush3.bf16.msra.mxu1 %v11550_v23  ;;  %10297 = vmatprep.mubr.msk.f32.mxu1 %vm140_vm4, %v1526_v27 }
 0xb55   :  { %11555 = vmatprep.subr.bf16.mxu1 %v11554_v9  ;;  %10311 = vmatprep.mubr.msk.f32.mxu0 %vm140_vm4, %v1627_v26 }
 0xb57   :  { %10298 = vmatmul.mubr.msk.f32.gmra.mrb[18].mxu1 %vm140_vm4, %v1527_v44  ;;  %10312 = vmatmul.mubr.msk.f32.gmra.mrb[38].mxu0 %vm140_vm4, %v1628_v17 }
 0xb58   :  { %11557 = vmatpush3.bf16.msra.mxu1 %v11554_v9  ;;  %10322 = vmatprep.mubr.msk.f32.mxu1 %vm140_vm4, %v1520_v57 }
 0xb59   :  { %11559 = vmatprep.subr.bf16.mxu1 %v11558_v45  ;;  %10364 = vmatprep.mubr.msk.f32.mxu0 %vm140_vm4, %v2066_v56 }
 0xb5b   :  { %10323 = vmatmul.mubr.msk.f32.vlgmr.msra.gmra.mrb[20].mxu1 %vm140_vm4, %v1521_v8  ;;  %v11570_v8 = vpack.c.bf16 %v1931_v32, %v1930_v24 }
 0xb5c   :  { %10325 = vmatprep.mubr.msk.f32.mxu1 %vm140_vm4, %v1522_v36  ;;  %11561 = vmatpush3.bf16.msra.mxu1 %v11558_v45 }
 0xb5d   :  { %11563 = vmatprep.subr.bf16.mxu1 %v11562_v28 }
 0xb5f   :  { %10326 = vmatmul.mubr.msk.f32.gmra.mrb[22].mxu1 %vm140_vm4, %v1523_v62 }
 0xb60   :  { %11565 = vmatpush3.bf16.msra.mxu1 %v11562_v28 }
 0xb61   :  { %11567 = vmatprep.subr.bf16.mxu1 %v11566_v58 }
 0xc26   :  { %v10296_v51 = vpop.f32.mrb[16].mxu1  ;;  %v10310_v7 = vpop.f32.mrb[36].mxu0 }
 0xc27   :  { %v1606_v53 = vpop.f32.mrb[17].mxu1  ;;  %v1707_v57 = vpop.f32.mrb[37].mxu0 }
 0xc28   :  { %10336 = vmatprep.mubr.msk.f32.mxu1 %vm140_vm4, %v1606_v53 }
 0xc29   :  { %10337 = vmatmul.mubr.msk.f32.vlgmr.msra.gmra.mrb[20].mxu1 %vm140_vm4, %v10296_v51 }
 0xc2a   :  { %v10299_v2 = vpop.f32.mrb[18].mxu1  ;;  %11569 = vmatpush3.bf16.msra.mxu1 %v11566_v58  ;;  %v10313_v15 = vpop.f32.mrb[38].mxu0 }
 0xc2b   :  { %v1616_v0 = vpop.f32.mrb[19].mxu1  ;;  %11571 = vmatprep.subr.bf16.mxu1 %v11570_v8  ;;  %v1717_v39 = vpop.f32.mrb[39].mxu0 }
 0xc2c   :  { %10339 = vmatprep.mubr.msk.f32.mxu1 %vm140_vm4, %v1616_v0  ;;  %v2233_v0 = vld [vmem:[%s15163_s0 + $0x7c0] sm:$0xff] }
 0xc2d   :  { %10340 = vmatmul.mubr.msk.f32.gmra.mrb[22].mxu1 %vm140_vm4, %v10299_v2  ;;  %v2150_v2 = vld [vmem:[%s15163_s0 + $0x7b0] sm:$0xff] }
 0xc2e   :  { %11573 = vmatpush3.bf16.msra.mxu1 %v11570_v8  ;;  %10350 = vmatprep.mubr.msk.f32.mxu1 %vm140_vm4, %v1707_v57  ;;  %v2067_v8 = vld [vmem:[%s15163_s0 + $0x7a0] sm:$0xff]  ;;  %v2149_v57 = vld [vmem:[%s15163_s0 + $0x7a8] sm:$0xff] }
 0xc2f   :  { %11599 = vmatprep.subr.bf16.mxu1 %v12693_v12 }
 0xc31   :  { %10351 = vmatmul.mubr.msk.f32.vlgmr.msra.gmra.mrb[20].mxu1 %vm140_vm4, %v10310_v7 }
 0xc32   :  { %10353 = vmatprep.mubr.msk.f32.mxu1 %vm140_vm4, %v1717_v39  ;;  %11601 = vmatpush3.bf16.msra.mxu1 %v12693_v12 }
 0xc33   :  { %11603 = vmatprep.subr.bf16.mxu1 %v12723_v19 }
 0xc35   :  { %10354 = vmatmul.mubr.msk.f32.gmra.mrb[22].mxu1 %vm140_vm4, %v10313_v15  ;;  %v2232_v15 = vld [vmem:[%s15163_s0 + $0x7b8] sm:$0xff] }
 0xc36   :  { %11605 = vmatpush3.bf16.msra.mxu1 %v12723_v19 }
 0xd04   :  { %v10352_v34 = vpop.f32.mrb[20].mxu1 }
 0xd05   :  { %v2039_v62 = vadd.f32 %v10352_v34, %v9061_v33  ;;  %v2010_v3 = vpop.f32.mrb[21].mxu1 }
 0xd06   :  { %v2038_v37 = vadd.f32 %v9061_v33, %v2010_v3  ;;  %v2234_v3 = vld [vmem:[%s15163_s0 + $0x7c8] sm:$0xff] }
 0xd07   :  { %v2047_v36 = vmin.f32 %v2039_v62, 0.0  ;;  %vm2043_vm11 = vcmp.gt.f32.partialorder %v2039_v62, 0.0 }
 0xd08   :  { %v2046_v20 = vmin.f32 %v2038_v37, 0.0  ;;  %v10355_v23 = vpop.f32.mrb[22].mxu1  ;;  %vm2042_vm12 = vcmp.gt.f32.partialorder %v2038_v37, 0.0 }
 0xd09   :  { %v2052_v25 = vmul.f32 1.442695, %v2047_v36  ;;  %v2041_v5 = vadd.f32 %v10355_v23, %v9061_v33  ;;  %v2020_v21 = vpop.f32.mrb[23].mxu1 }
 0xd0a   :  { %v2050_v4 = vmul.f32 1.442695, %v2046_v20  ;;  %v2040_v27 = vadd.f32 %v9061_v33, %v2020_v21 }
 0xd0b   :  { %12336 = vpow2.f32 %v2052_v25  ;;  %v2049_v9 = vmin.f32 %v2041_v5, 0.0  ;;  %vm2045_vm13 = vcmp.gt.f32.partialorder %v2041_v5, 0.0 }
 0xd0c   :  { %12338 = vpow2.f32 %v2050_v4  ;;  %v2048_v26 = vmin.f32 %v2040_v27, 0.0  ;;  %vm2044_vm14 = vcmp.gt.f32.partialorder %v2040_v27, 0.0 }
 0xd0d   :  { %v2056_v43 = vmul.f32 1.442695, %v2049_v9 }
 0xd0e   :  { %v2054_v16 = vmul.f32 1.442695, %v2048_v26 }
 0xd0f   :  { %12340 = vpow2.f32 %v2056_v43  ;;  %v13434_v43 = vld [vmem:[%s15163_s0 + $0xb8] ss:$0 sm:$0xff] }
 0xd10   :  { %12342 = vpow2.f32 %v2054_v16 }
 0xd15   :  { %v12337_v44 = vpop.eup %12336 }
 0xd16   :  { %v12339_v17 = vpop.eup %12338  ;;  %v9063_v45 = vadd.f32 -1.0, %v12337_v44 }
 0xd17   :  { %v9062_v10 = vadd.f32 -1.0, %v12339_v17 }
 0xd18   :  { %v2063_v47 = vsel %vm2043_vm11, %v2039_v62, %v9063_v45  ;;  %v2235_v62 = vld [vmem:[%s15163_s0 + $0x7d0] sm:$0xff]  ;;  %v2754_v45 = vld [vmem:[%s15163_s0 + $0x520] sm:$0xff] }
 0xd19   :  { %v12341_v28 = vpop.eup %12340  ;;  %v2062_v29 = vsel %vm2042_vm12, %v2038_v37, %v9062_v10  ;;  %v2755_v10 = vld [vmem:[%s15163_s0 + $0x528] sm:$0xff] }
 0xd1a   :  { %v12343_v52 = vpop.eup %12342  ;;  %v11574_v58 = vpack.c.bf16 %v2063_v47, %v2062_v29  ;;  %v9065_v24 = vadd.f32 -1.0, %v12341_v28  ;;  %v13446_v47 = vld [vmem:[%s15163_s0 + $0x90] ss:$0 sm:$0xff] }
 0xd1b   :  { %v9064_v32 = vadd.f32 -1.0, %v12343_v52 }
 0xd1c   :  { %v2065_v51 = vsel %vm2045_vm13, %v2041_v5, %v9065_v24  ;;  %11575 = vmatprep.subr.bf16.mxu0 %v11574_v58  ;;  %v2756_v24 = vld [vmem:[%s15163_s0 + $0x530] sm:$0xff] }
 0xd1d   :  { %v2064_v7 = vsel %vm2044_vm14, %v2040_v27, %v9064_v32  ;;  %11577 = vmatpush3.bf16.msra.mxu0 %v11574_v58  ;;  %v2477_v27 = vld [vmem:[%s15163_s0 + $0x4a0] sm:$0xff]  ;;  %v2757_v32 = vld [vmem:[%s15163_s0 + $0x538] sm:$0xff] }
 0xd1e   :  { %v11578_v53 = vpack.c.bf16 %v2065_v51, %v2064_v7  ;;  %v2478_v51 = vld [vmem:[%s15163_s0 + $0x4a8] sm:$0xff]  ;;  %v2479_v7 = vld [vmem:[%s15163_s0 + $0x4b0] sm:$0xff] }
 0xd20   :  { %11579 = vmatprep.subr.bf16.mxu0 %v11578_v53 }
 0xd21   :  { %11581 = vmatpush3.bf16.msra.mxu0 %v11578_v53 }
 0xd22   :  { %11583 = vmatprep.subr.bf16.mxu0 %v11574_v58 }
 0xd24   :  { %10365 = vmatmul.mubr.msk.f32.vlgmr.msra.gmra.mrb[40].mxu0 %vm140_vm4, %v2067_v8  ;;  %v2480_v8 = vld [vmem:[%s15163_s0 + $0x4b8] sm:$0xff] }
 0xd25   :  { %11585 = vmatpush3.bf16.msra.mxu0 %v11574_v58  ;;  %10375 = vmatprep.mubr.msk.f32.mxu0 %vm140_vm4, %v2149_v57  ;;  %v2481_v57 = vld [vmem:[%s15163_s0 + $0x4c0] sm:$0xff] }
 0xd26   :  { %11587 = vmatprep.subr.bf16.mxu0 %v11578_v53 }
 0xd29   :  { %11589 = vmatpush3.bf16.msra.mxu0 %v11578_v53 }
 0xd2a   :  { %11591 = vmatprep.subr.bf16.mxu0 %v11574_v58 }
 0xd2c   :  { %10376 = vmatmul.mubr.msk.f32.vlgmr.msra.gmra.mrb[42].mxu0 %vm140_vm4, %v2150_v2  ;;  %v2482_v2 = vld [vmem:[%s15163_s0 + $0x4c8] sm:$0xff] }
 0xd2d   :  { %11593 = vmatpush3.bf16.msra.mxu0 %v11574_v58  ;;  %10386 = vmatprep.mubr.msk.f32.mxu0 %vm140_vm4, %v2232_v15  ;;  %v11642_v58 = vpack.c.bf16 %v2755_v10, %v2754_v45  ;;  %v2483_v15 = vld [vmem:[%s15163_s0 + $0x4d0] sm:$0xff] }
 0xd2e   :  { %11595 = vmatprep.subr.bf16.mxu0 %v11578_v53 }
 0xd31   :  { %11597 = vmatpush3.bf16.msra.mxu0 %v11578_v53  ;;  %v11646_v53 = vpack.c.bf16 %v2757_v32, %v2756_v24 }
 0xd32   :  { %11607 = vmatprep.subr.bf16.mxu0 %v12733_v22 }
 0xd34   :  { %10387 = vmatmul.mubr.msk.f32.vlgmr.msra.gmra.mrb[44].mxu0 %vm140_vm4, %v2233_v0  ;;  %v2484_v0 = vld [vmem:[%s15163_s0 + $0x4d8] sm:$0xff] }
 0xd35   :  { %11609 = vmatpush3.bf16.msra.mxu0 %v12733_v22 }
 0xd36   :  { %11611 = vmatprep.subr.bf16.mxu0 %v12749_v30 }
 0xd39   :  { %11613 = vmatpush3.bf16.msra.mxu0 %v12749_v30 }
 0xdf7   :  { %v10366_v39 = vpop.f32.mrb[40].mxu0 }
 0xdf8   :  { %v2140_v56 = vpop.f32.mrb[41].mxu0 }
 0xdff   :  { %v10377_v33 = vpop.f32.mrb[42].mxu0 }
 0xe00   :  { %v2223_v34 = vpop.f32.mrb[43].mxu0 }
 0xe07   :  { %v10388_v37 = vpop.f32.mrb[44].mxu0 }
 0xe08   :  { %v2314_v36 = vadd.f32 %v10388_v37, %v2235_v62  ;;  %v2308_v20 = vpop.f32.mrb[45].mxu0  ;;  %v2761_v62 = vld [vmem:[%s15163_s0 + $0x558] sm:$0xff]  ;;  %v2616_v37 = vld [vmem:[%s15163_s0 + $0x4e8] sm:$0xff] }
 0xe09   :  { %v2309_v23 = vadd.f32 %v2308_v20, %v2234_v3 }
 0xe0a   :  { %v2318_v25 = vmax.f32 %v10377_v33, %v2314_v36  ;;  %v2615_v36 = vld [vmem:[%s15163_s0 + $0x4e0] sm:$0xff] }
 0xe0b   :  { %v2317_v5 = vmax.f32 %v2223_v34, %v2309_v23  ;;  %v2760_v34 = vld [vmem:[%s15163_s0 + $0x550] sm:$0xff] }
 0xe0c   :  { %v13413_v21 = vmax.f32 %v10366_v39, %v2318_v25  ;;  %v2758_v39 = vld [vmem:[%s15163_s0 + $0x540] sm:$0xff]  ;;  %v11654_v3 = vpack.c.bf16 %v2761_v62, %v2760_v34 }
 0xe0d   :  { %v13415_v4 = vmax.f32 %v2140_v56, %v2317_v5  ;;  %v2759_v56 = vld [vmem:[%s15163_s0 + $0x548] sm:$0xff] }
 0xe0e   :  { %v11650_v33 = vpack.c.bf16 %v2759_v56, %v2758_v39 }
 0xe0f   :  { %10397 = vmatprep.mubr.msk.f32.mxu1 %vm140_vm4, %v13415_v4  ;;  %10408 = vmatprep.mubr.msk.f32.mxu0 %vm140_vm4, %v13415_v4 }
 0xe10   :  { %10398 = vmatmul.mubr.msk.f32.vlgmr.msra.gmra.mrb[24].mxu1 %vm140_vm4, %v13413_v21  ;;  %10409 = vmatmul.mubr.msk.f32.vlgmr.msra.gmra.mrb[46].mxu0 %vm140_vm4, %v13413_v21 }
 0xe11   :  { %10415 = vmatprep.mubr.msk.f32.mxu1 %vm2485_vm15, %v2477_v27  ;;  %v2618_v27 = vld [vmem:[%s15163_s0 + $0x4f8] sm:$0xff] }
 0xee3   :  { %v13429_v9 = vpop.f32.mrb[24].mxu1  ;;  %v10410_v26 = vpop.f32.mrb[46].mxu0 }
 0xee4   :  { %v2474_v16 = vadd.f32 %v13434_v43, %v10410_v26  ;;  %v2393_v44 = vpop.f32.mrb[25].mxu1  ;;  %v2468_v17 = vpop.f32.mrb[47].mxu0  ;;  %v2617_v26 = vld [vmem:[%s15163_s0 + $0x4f0] sm:$0xff]  ;;  %v2399_v56 = vadd.f32 %v13446_v47, %v13429_v9  ;;  %v2739_v9 = vld [vmem:[%s15163_s0 + $0x708] sm:$0xff] }
 0xee5   :  { %v2394_v28 = vadd.f32 %v13446_v47, %v2393_v44  ;;  %v2469_v29 = vadd.f32 %v13434_v43, %v2468_v17 }
 0xee7   :  { %v11614_v52 = vpack.c.bf16 %v2474_v16, %v2469_v29  ;;  %10443 = vmatprep.mubr.msk.f32.mxu0 %vm573_vm5, %v2394_v28  ;;  %v2620_v28 = vld [vmem:[%s15163_s0 + $0x508] sm:$0xff]  ;;  %v2619_v29 = vld [vmem:[%s15163_s0 + $0x500] sm:$0xff] }
 0xee9   :  { %11615 = vmatprep.subr.bf16.mxu1 %v11614_v52 }
 0xeea   :  { %11617 = vmatpush3.bf16.msra.mxu1 %v11614_v52 }
 0xeeb   :  { %11643 = vmatprep.subr.bf16.mxu1 %v11642_v58 }
 0xeed   :  { %10416 = vmatmul.mubr.msk.f32.vlgmr.msra.gmra.mrb[26].mxu1 %vm2485_vm15, %v2478_v51 }
 0xeee   :  { %10418 = vmatprep.mubr.msk.f32.mxu1 %vm2485_vm15, %v2479_v7  ;;  %11645 = vmatpush3.bf16.msra.mxu1 %v11642_v58  ;;  %v2622_v7 = vld [vmem:[%s15163_s0 + $0x518] sm:$0xff] }
 0xeef   :  { %11647 = vmatprep.subr.bf16.mxu1 %v11646_v53 }
 0xef1   :  { %10419 = vmatmul.mubr.msk.f32.gmra.mrb[28].mxu1 %vm2485_vm15, %v2480_v8 }
 0xef2   :  { %10421 = vmatprep.mubr.msk.f32.mxu1 %vm2485_vm15, %v2481_v57  ;;  %11649 = vmatpush3.bf16.msra.mxu1 %v11646_v53  ;;  %v2621_v53 = vld [vmem:[%s15163_s0 + $0x510] sm:$0xff] }
 0xef3   :  { %11651 = vmatprep.subr.bf16.mxu1 %v11650_v33 }
 0xef5   :  { %10422 = vmatmul.mubr.msk.f32.gmra.mrb[30].mxu1 %vm2485_vm15, %v2482_v2 }
 0xef6   :  { %10424 = vmatprep.mubr.msk.f32.mxu1 %vm2485_vm15, %v2483_v15  ;;  %11653 = vmatpush3.bf16.msra.mxu1 %v11650_v33 }
 0xef7   :  { %11655 = vmatprep.subr.bf16.mxu1 %v11654_v3 }
 0xef9   :  { %10425 = vmatmul.mubr.msk.f32.gmra.mrb[32].mxu1 %vm2485_vm15, %v2484_v0 }
 0xefa   :  { %11657 = vmatpush3.bf16.msra.mxu1 %v11654_v3  ;;  %v2738_v3 = vld [vmem:[%s15163_s0 + $0x700] sm:$0xff] }
 0xfc0   :  { %v10417_v20 = vpop.f32.mrb[26].mxu1 }
 0xfc1   :  { %v2624_v23 = vmul.f32 %v10417_v20, %v2616_v37  ;;  %v2576_v25 = vpop.f32.mrb[27].mxu1 }
 0xfc2   :  { %v2623_v5 = vmul.f32 %v2615_v36, %v2576_v25 }
 0xfc4   :  { %v13509_v16 = vpack.c.bf16 %v2624_v23, %v2623_v5  ;;  %v10420_v44 = vpop.f32.mrb[28].mxu1 }
 0xfc5   :  { %v2626_v17 = vmul.f32 %v10420_v44, %v2618_v27  ;;  %v2586_v45 = vpop.f32.mrb[29].mxu1 }
 0xfc6   :  { %11620 = vmatprep.subr.msk.bf16.mxu0 %vm12945_vm6, %v13509_v16  ;;  %11659 = vmatprep.subr.bf16.mxu1 %v13509_v16  ;;  %v2625_v10 = vmul.f32 %v2617_v26, %v2586_v45 }
 0xfc7   :  { %11623 = vmatpush3.bf16.xpose.msk.msra.mxu0 %vm12945_vm6, %v13509_v16 }
 0xfc8   :  { %v11624_v52 = vpack.c.bf16 %v2626_v17, %v2625_v10  ;;  %v10423_v58 = vpop.f32.mrb[30].mxu1 }
 0xfc9   :  { %v2628_v24 = vmul.f32 %v10423_v58, %v2620_v28  ;;  %v2596_v32 = vpop.f32.mrb[31].mxu1 }
 0xfca   :  { %11626 = vmatprep.subr.msk.bf16.mxu0 %vm12945_vm6, %v11624_v52  ;;  %v2627_v51 = vmul.f32 %v2619_v29, %v2596_v32 }
 0xfcc   :  { %v11630_v8 = vpack.c.bf16 %v2628_v24, %v2627_v51  ;;  %v10426_v57 = vpop.f32.mrb[32].mxu1 }
 0xfcd   :  { %v2630_v2 = vmul.f32 %v10426_v57, %v2622_v7  ;;  %v2606_v15 = vpop.f32.mrb[33].mxu1 }
 0xfce   :  { %v2629_v0 = vmul.f32 %v2621_v53, %v2606_v15 }
 0xfcf   :  { %11629 = vmatpush3.bf16.xpose.msk.msra.mxu0 %vm12945_vm6, %v11624_v52 }
 0xfd0   :  { %11632 = vmatprep.subr.msk.bf16.mxu0 %vm12945_vm6, %v11630_v8  ;;  %v11636_v39 = vpack.c.bf16 %v2630_v2, %v2629_v0 }
 0xfd7   :  { %11635 = vmatpush3.bf16.xpose.msk.msra.mxu0 %vm12945_vm6, %v11630_v8 }
 0xfd8   :  { %11638 = vmatprep.subr.msk.bf16.mxu0 %vm12945_vm6, %v11636_v39 }
 0xfdf   :  { %11641 = vmatpush3.bf16.xpose.msk.msra.mxu0 %vm12945_vm6, %v11636_v39 }
 0xfe0   :  { %11675 = vmatprep.subr.bf16.mxu0 %v13098_v14 }
 0xfe6   :  { %10444 = vmatmul.mubr.msk.f32.vlgmr.msra.gmra.mrb[48].mxu0 %vm573_vm5, %v2399_v56 }
 0xfe7   :  { %11677 = vmatpush3.bf16.msra.mxu0 %v13098_v14 }
 0xfe8   :  { %11679 = vmatprep.subr.bf16.mxu0 %v13103_v42 }
 0xfeb   :  { %11681 = vmatpush3.bf16.msra.mxu0 %v13103_v42 }
 0xfec   :  { %11683 = vmatprep.subr.bf16.mxu0 %v13114_v54 }
 0xfef   :  { %11685 = vmatpush3.bf16.msra.mxu0 %v13114_v54 }
 0xff0   :  { %11687 = vmatprep.subr.bf16.mxu0 %v13124_v59 }
 0xff3   :  { %11689 = vmatpush3.bf16.msra.mxu0 %v13124_v59 }
0x10b9   :  { %v10445_v33 = vpop.f32.mrb[48].mxu0 }
0x10ba   :  { %v2737_v34 = vmul.f32 0.35355338, %v10445_v33  ;;  %v2727_v62 = vpop.f32.mrb[49].mxu0 }
0x10bb   :  { %v2736_v37 = vmul.f32 0.35355338, %v2727_v62 }
0x10bc   :  { %v2741_v36 = vadd.f32 %v2739_v9, %v2737_v34 }
0x10bd   :  { %v2740_v20 = vadd.f32 %v2738_v3, %v2736_v37 }
0x10be   :  { %v2745_v23 = vsel %vm573_vm5, %v2741_v36, -inf }
0x10bf   :  { %2746 = vmax.xlane.f32.xlu1 %v2745_v23  ;;  %v2742_v25 = vsel %vm573_vm5, %v2740_v20, -inf }
0x10c0   :  { %2743 = vmax.xlane.f32.xlu0 %v2742_v25 }
0x114c   :  { %v2747_v5 = vpop.xlane.xlu1 %2746 }
0x114d   :  { %v2749_v27 = vsub.f32 %v2741_v36, %v2747_v5  ;;  %v2744_v26 = vpop.xlane.xlu0 %2743 }
0x114e   :  { %v2748_v44 = vsub.f32 %v2740_v20, %v2744_v26 }
0x114f   :  { %v2752_v17 = vmul.f32 1.442695, %v2749_v27 }
0x1150   :  { %v2750_v45 = vmul.f32 1.442695, %v2748_v44 }
0x1152   :  { %12344 = vpow2.f32 %v2750_v45 }
0x1153   :  { %12346 = vpow2.f32 %v2752_v17 }
0x115c   :  { %v12345_v10 = vpop.eup %12344 }
0x115d   :  { %v12347_v28 = vpop.eup %12346  ;;  %10462 = vmatprep.mubr.msk.f32.mxu1 %vm573_vm5, %v12345_v10 }
0x115e   :  { %10463 = vmatmul.mubr.msk.f32.vlgmr.msra.gmra.mrb[34].mxu1 %vm573_vm5, %v12347_v28 }
0x115f   :  { %11661 = vmatpush3.bf16.msra.mxu1 %v13509_v16 }
0x1160   :  { %11663 = vmatprep.subr.bf16.mxu1 %v11624_v52 }
0x1163   :  { %11665 = vmatpush3.bf16.msra.mxu1 %v11624_v52 }
0x1164   :  { %11667 = vmatprep.subr.bf16.mxu1 %v11630_v8 }
0x1167   :  { %11669 = vmatpush3.bf16.msra.mxu1 %v11630_v8  ;;  %v13576_v8 = vld [vmem:[%s15163_s0 + $0x100] ss:$0 sm:$0xff] }
0x1168   :  { %11671 = vmatprep.subr.bf16.mxu1 %v11636_v39 }
0x116b   :  { %11673 = vmatpush3.bf16.msra.mxu1 %v11636_v39 }
0x116c   :  { %11691 = vmatprep.subr.bf16.mxu1 %v13154_v41 }
0x1231   :  { %v10464_v29 = vpop.f32.mrb[34].mxu1 }
0x1232   :  { %12348 = vrcp.f32 %v10464_v29  ;;  %v2834_v58 = vpop.f32.mrb[35].mxu1 }
0x1233   :  { %12350 = vrcp.f32 %v2834_v58  ;;  %v13589_v58 = vld [vmem:[%s15163_s0 + $0x158] ss:$0 sm:$0xff] }
0x123c   :  { %v12349_v24 = vpop.eup %12348 }
0x123d   :  { %v12351_v32 = vpop.eup %12350  ;;  %v2846_v7 = vmul.f32 %v12349_v24, %v12347_v28 }
0x123e   :  { %v2845_v51 = vmul.f32 %v12351_v32, %v12345_v10 }
0x1240   :  { %10481 = vmatprep.mubr.msk.f32.mxu1 %vm573_vm5, %v2845_v51  ;;  %v13596_v51 = vld [vmem:[%s15163_s0 + $0x160] ss:$0 sm:$0xff] }
0x1241   :  { %10482 = vmatmul.mubr.msk.f32.vlgmr.msra.gmra.mrb[36].mxu1 %vm573_vm5, %v2846_v7 }
0x1242   :  { %11693 = vmatpush3.bf16.msra.mxu1 %v13154_v41 }
0x1243   :  { %11695 = vmatprep.subr.bf16.mxu1 %v13164_v40 }
0x1246   :  { %11697 = vmatpush3.bf16.msra.mxu1 %v13164_v40 }
0x1247   :  { %11699 = vmatprep.subr.bf16.mxu1 %v13196_v61 }
0x1314   :  { %v10483_v16 = vpop.f32.mrb[36].mxu1 }
0x1315   :  { %v2919_v52 = vpop.f32.mrb[37].mxu1 }
0x1316   :  { %10500 = vmatprep.mubr.msk.f32.mxu0 %vm573_vm5, %v2919_v52 }
0x1317   :  { %10501 = vmatmul.mubr.msk.f32.vlgmr.msra.gmra.mrb[50].mxu0 %vm573_vm5, %v10483_v16 }
0x13ea   :  { %v10502_v53 = vpop.f32.mrb[50].mxu0 }
0x13eb   :  { %v3006_v57 = vadd.f32 %v13576_v8, %v10502_v53  ;;  %v3000_v2 = vpop.f32.mrb[51].mxu0  ;;  %v13614_v53 = vld [vmem:[%s15163_s0 + $0x128] ss:$0 sm:$0xff] }
0x13ec   :  { %v3001_v15 = vadd.f32 %v13576_v8, %v3000_v2 }
0x13ed   :  { %v3010_v0 = vadd.f32 %v3006_v57, %v13413_v21 }
0x13ee   :  { %v3009_v39 = vadd.f32 %v3001_v15, %v13415_v4 }
0x13ef   :  { %v3014_v56 = vsel %vm140_vm4, %v3010_v0, 0.0 }
0x13f0   :  { %3015 = vadd.xlane.f32.xlu1 %v3014_v56  ;;  %v3011_v33 = vsel %vm140_vm4, %v3009_v39, 0.0 }
0x13f1   :  { %3012 = vadd.xlane.f32.xlu0 %v3011_v33 }
0x147d   :  { %v3016_v9 = vpop.xlane.xlu1 %3015 }
0x147e   :  { %v3018_v34 = vmul.f32 0.03125, %v3016_v9  ;;  %v3013_v62 = vpop.xlane.xlu0 %3012 }
0x147f   :  { %v3017_v3 = vmul.f32 0.03125, %v3013_v62 }
0x1480   :  { %v3020_v37 = vsub.f32 %v3010_v0, %v3018_v34 }
0x1481   :  { %v3019_v36 = vsub.f32 %v3009_v39, %v3017_v3 }
0x1482   :  { %v3022_v20 = vmul.f32 %v3020_v37, %v3020_v37 }
0x1483   :  { %v3021_v23 = vmul.f32 %v3019_v36, %v3019_v36 }
0x1484   :  { %v3026_v25 = vsel %vm140_vm4, %v3022_v20, 0.0 }
0x1485   :  { %3027 = vadd.xlane.f32.xlu1 %v3026_v25  ;;  %v3023_v21 = vsel %vm140_vm4, %v3021_v23, 0.0 }
0x1486   :  { %3024 = vadd.xlane.f32.xlu0 %v3023_v21 }
0x1512   :  { %v3028_v4 = vpop.xlane.xlu1 %3027 }
0x1513   :  { %v3030_v5 = vmul.f32 0.03125, %v3028_v4  ;;  %v3025_v27 = vpop.xlane.xlu0 %3024 }
0x1514   :  { %v3029_v26 = vmul.f32 0.03125, %v3025_v27 }
0x1515   :  { %v3032_v44 = vadd.f32 1e-05, %v3030_v5 }
0x1516   :  { %v3031_v17 = vadd.f32 1e-05, %v3029_v26 }
0x1517   :  { %12352 = vrsqrt.f32 %v3032_v44 }
0x1518   :  { %12354 = vrsqrt.f32 %v3031_v17 }
0x1521   :  { %v12353_v45 = vpop.eup %12352 }
0x1522   :  { %v12355_v10 = vpop.eup %12354  ;;  %v3036_v28 = vmul.f32 %v12353_v45, %v3020_v37 }
0x1523   :  { %v3035_v29 = vmul.f32 %v12355_v10, %v3019_v36 }
0x1524   :  { %v3038_v24 = vmul.f32 %v13589_v58, %v3036_v28 }
0x1525   :  { %v3037_v32 = vmul.f32 %v13589_v58, %v3035_v29 }
0x1526   :  { %v13602_v16 = vadd.f32 %v13596_v51, %v3038_v24 }
0x1527   :  { %v13599_v7 = vadd.f32 %v13596_v51, %v3037_v32 }
0x1529   :  { %10511 = vmatprep.mubr.msk.f32.mxu1 %vm140_vm4, %v13599_v7 }
0x152a   :  { %10512 = vmatmul.mubr.msk.f32.vlgmr.msra.gmra.mrb[38].mxu1 %vm140_vm4, %v13602_v16 }
0x152b   :  { %11701 = vmatpush3.bf16.msra.mxu1 %v13196_v61 }
0x152c   :  { %11703 = vmatprep.subr.bf16.mxu1 %v13206_v63 }
0x152f   :  { %11705 = vmatpush3.bf16.msra.mxu1 %v13206_v63 }
0x15fd   :  { %v10513_v52 = vpop.f32.mrb[38].mxu1 }
0x15fe   :  { %v3119_v57 = vadd.f32 %v13614_v53, %v10513_v52  ;;  %v3113_v2 = vpop.f32.mrb[39].mxu1 }
0x15ff   :  { %v3114_v15 = vadd.f32 %v13614_v53, %v3113_v2 }
0x1600   :  { %v3125_v0 = vmul.f32 0.70710677, %v3119_v57 }
0x1601   :  { %v3124_v39 = vmul.f32 0.70710677, %v3114_v15 }
0x1602   :  { %v3131_v56 = vand.u32 2147483647, %v3125_v0  ;;  %vm3127_vm1 = vcmp.ge.f32.partialorder %v3125_v0, 0.0 }
0x1603   :  { %v3130_v33 = vand.u32 2147483647, %v3124_v39  ;;  %vm3126_vm2 = vcmp.ge.f32.partialorder %v3124_v39, 0.0 }
0x1604   :  { %v3133_v9 = vmul.f32 0.3275911, %v3131_v56  ;;  %v3159_v37 = vsub.f32 0.0, %v3131_v56 }
0x1605   :  { %v3132_v34 = vmul.f32 0.3275911, %v3130_v33  ;;  %v3158_v36 = vsub.f32 0.0, %v3130_v33 }
0x1606   :  { %v3135_v62 = vadd.f32 1.0, %v3133_v9  ;;  %v3161_v23 = vmul.f32 %v3159_v37, %v3131_v56 }
0x1607   :  { %v3134_v3 = vadd.f32 1.0, %v3132_v34  ;;  %v3160_v4 = vmul.f32 %v3158_v36, %v3130_v33 }
0x1608   :  { %12356 = vrcp.f32 %v3135_v62  ;;  %v3164_v26 = vmul.f32 1.442695, %v3161_v23 }
0x1609   :  { %12358 = vrcp.f32 %v3134_v3  ;;  %v3162_v45 = vmul.f32 1.442695, %v3160_v4 }
0x160a   :  { %12360 = vpow2.f32 %v3164_v26 }
0x160b   :  { %12362 = vpow2.f32 %v3162_v45 }
0x1612   :  { %v12357_v20 = vpop.eup %12356 }
0x1613   :  { %v12359_v25 = vpop.eup %12358  ;;  %v3141_v21 = vmul.f32 1.0614054, %v12357_v20 }
0x1614   :  { %v3140_v5 = vmul.f32 1.0614054, %v12359_v25  ;;  %v12361_v3 = vpop.eup %12360 }
0x1615   :  { %v3143_v27 = vadd.f32 -1.4531521, %v3141_v21  ;;  %v12363_v36 = vpop.eup %12362 }
0x1616   :  { %v3142_v44 = vadd.f32 -1.4531521, %v3140_v5  ;;  %v3129_v5 = vsel %vm3127_vm1, 1.0, %v15167_v46  ;;  %vm8961_vm1 = vcmask 31744  }
0x1617   :  { %v3145_v17 = vmul.f32 %v12357_v20, %v3143_v27 }
0x1618   :  { %v3144_v10 = vmul.f32 %v12359_v25, %v3142_v44  ;;  %v3128_v44 = vsel %vm3126_vm2, 1.0, %v15167_v46 }
0x1619   :  { %v3147_v28 = vadd.f32 1.4214138, %v3145_v17 }
0x161a   :  { %v3146_v29 = vadd.f32 1.4214138, %v3144_v10  ;;  %v3122_v10 = vmul.f32 0.5, %v3114_v15 }
0x161b   :  { %v3149_v24 = vmul.f32 %v12357_v20, %v3147_v28 }
0x161c   :  { %v3148_v32 = vmul.f32 %v12359_v25, %v3146_v29  ;;  %v3123_v29 = vmul.f32 0.5, %v3119_v57 }
0x161d   :  { %v3151_v52 = vadd.f32 -0.28449672, %v3149_v24 }
0x161e   :  { %v3150_v2 = vadd.f32 -0.28449672, %v3148_v32 }
0x161f   :  { %v3153_v9 = vmul.f32 %v12357_v20, %v3151_v52 }
0x1620   :  { %v3152_v56 = vmul.f32 %v12359_v25, %v3150_v2 }
0x1621   :  { %v3155_v34 = vadd.f32 0.2548296, %v3153_v9 }
0x1622   :  { %v3154_v62 = vadd.f32 0.2548296, %v3152_v56 }
0x1623   :  { %v3157_v33 = vmul.f32 %v12357_v20, %v3155_v34 }
0x1624   :  { %v3156_v37 = vmul.f32 %v12359_v25, %v3154_v62 }
0x1625   :  { %v3167_v23 = vmul.f32 %v12361_v3, %v3157_v33 }
0x1626   :  { %v3166_v21 = vmul.f32 %v12363_v36, %v3156_v37 }
0x1627   :  { %v3169_v4 = vsub.f32 1.0, %v3167_v23  ;;  %v3372_v23 = vld [vmem:[%s15163_s0 + $0x7e8] sm:$0xff] }
0x1628   :  { %v3168_v27 = vsub.f32 1.0, %v3166_v21 }
0x1629   :  { %v3171_v26 = vmul.f32 %v3169_v4, %v3129_v5 }
0x162a   :  { %v3170_v17 = vmul.f32 %v3168_v27, %v3128_v44 }
0x162b   :  { %v3173_v45 = vadd.f32 1.0, %v3171_v26 }
0x162c   :  { %v3172_v28 = vadd.f32 1.0, %v3170_v17 }
0x162d   :  { %v3175_v24 = vmul.f32 %v3173_v45, %v3123_v29 }
0x162e   :  { %v3174_v20 = vmul.f32 %v3172_v28, %v3122_v10 }
0x1630   :  { %10522 = vmatprep.mubr.msk.f32.mxu1 %vm140_vm4, %v3174_v20 }
0x1631   :  { %10523 = vmatmul.mubr.msk.f32.vlgmr.msra.gmra.mrb[40].mxu1 %vm140_vm4, %v3175_v24 }
0x1632   :  { %10536 = vmatprep.mubr.msk.f32.mxu1 %vm2485_vm15, %v3372_v23 }
0x1704   :  { %v10524_v0 = vpop.f32.mrb[40].mxu1 }
0x1705   :  { %v3254_v39 = vadd.f32 %v10524_v0, %v13256_v35  ;;  %v3248_v25 = vpop.f32.mrb[41].mxu1  ;;  %v3459_v0 = vld [vmem:[%s15163_s0 + $0x200] sm:$0xff] }
0x1706   :  { %v3249_v32 = vadd.f32 %v13256_v35, %v3248_v25 }
0x1707   :  { %v3258_v52 = vadd.f32 %v3254_v39, %v13602_v16  ;;  %v3460_v39 = vld [vmem:[%s15163_s0 + $0x208] sm:$0xff] }
0x1708   :  { %v3257_v2 = vadd.f32 %v3249_v32, %v13599_v7  ;;  %v3289_v7 = vld [vmem:[%s15163_s0 + $0x7d8] sm:$0xff] }
0x1709   :  { %v3262_v15 = vsel %vm140_vm4, %v3258_v52, 0.0  ;;  %10529 = vmatprep.mubr.msk.f32.mxu0 %vm2485_vm15, %v3289_v7  ;;  %v3628_v7 = vld [vmem:[%s15163_s0 + $0x238] sm:$0xff] }
0x170a   :  { %3263 = vadd.xlane.f32.xlu1 %v3262_v15  ;;  %v3259_v57 = vsel %vm140_vm4, %v3257_v2, 0.0  ;;  %v3290_v15 = vld [vmem:[%s15163_s0 + $0x7e0] sm:$0xff] }
0x170b   :  { %3260 = vadd.xlane.f32.xlu0 %v3259_v57 }
0x1797   :  { %v3264_v9 = vpop.xlane.xlu1 %3263 }
0x1798   :  { %v3266_v56 = vmul.f32 0.03125, %v3264_v9  ;;  %v3261_v34 = vpop.xlane.xlu0 %3260  ;;  %v3455_v9 = vld [vmem:[%s15163_s0 + $0x1e0] sm:$0xff] }
0x1799   :  { %v3265_v62 = vmul.f32 0.03125, %v3261_v34 }
0x179a   :  { %v3268_v33 = vsub.f32 %v3258_v52, %v3266_v56  ;;  %v11714_v52 = vpack.c.bf16 %v3460_v39, %v3459_v0  ;;  %v3456_v56 = vld [vmem:[%s15163_s0 + $0x1e8] sm:$0xff] }
0x179b   :  { %v3267_v3 = vsub.f32 %v3257_v2, %v3265_v62  ;;  %v3461_v2 = vld [vmem:[%s15163_s0 + $0x210] sm:$0xff]  ;;  %v11722_v34 = vpack.c.bf16 %v3456_v56, %v3455_v9  ;;  %v3805_v9 = vld [vmem:[%s15163_s0 + $0x800] sm:$0xff]  ;;  %v3879_v56 = vld [vmem:[%s15163_s0 + $0x808] sm:$0xff] }
0x179c   :  { %v3270_v37 = vmul.f32 %v3268_v33, %v3268_v33  ;;  %v3457_v62 = vld [vmem:[%s15163_s0 + $0x1f0] sm:$0xff] }
0x179d   :  { %v3269_v36 = vmul.f32 %v3267_v3, %v3267_v3 }
0x179e   :  { %v3274_v35 = vsel %vm140_vm4, %v3270_v37, 0.0  ;;  %v3625_v37 = vld [vmem:[%s15163_s0 + $0x220] sm:$0xff] }
0x179f   :  { %3275 = vadd.xlane.f32.xlu1 %v3274_v35  ;;  %v3271_v16 = vsel %vm140_vm4, %v3269_v36, 0.0  ;;  %v3626_v36 = vld [vmem:[%s15163_s0 + $0x228] sm:$0xff] }
0x17a0   :  { %3272 = vadd.xlane.f32.xlu0 %v3271_v16  ;;  %v11730_v35 = vpack.c.bf16 %v3626_v36, %v3625_v37  ;;  %v3627_v16 = vld [vmem:[%s15163_s0 + $0x230] sm:$0xff] }
0x17a1   :  { %v3880_v37 = vld [vmem:[%s15163_s0 + $0x810] sm:$0xff] }
0x182c   :  { %v3276_v21 = vpop.xlane.xlu1 %3275 }
0x182d   :  { %v3278_v4 = vmul.f32 0.03125, %v3276_v21  ;;  %v3273_v5 = vpop.xlane.xlu0 %3272 }
0x182e   :  { %v3277_v27 = vmul.f32 0.03125, %v3273_v5  ;;  %v11734_v5 = vpack.c.bf16 %v3628_v7, %v3627_v16 }
0x182f   :  { %v3280_v26 = vadd.f32 1e-05, %v3278_v4 }
0x1830   :  { %v3279_v44 = vadd.f32 1e-05, %v3277_v27 }
0x1831   :  { %12364 = vrsqrt.f32 %v3280_v26  ;;  %v12642_v26 = vmov 0.0|0.0  }
0x1832   :  { %12366 = vrsqrt.f32 %v3279_v44  ;;  %v12644_v44 = vmov 0.0  }
0x183b   :  { %v12365_v17 = vpop.eup %12364 }
0x183c   :  { %v12367_v45 = vpop.eup %12366  ;;  %v3284_v10 = vmul.f32 %v12365_v17, %v3268_v33  ;;  %v3458_v33 = vld [vmem:[%s15163_s0 + $0x1f8] sm:$0xff]  ;;  %v9114_v17 = vld [vmem:[%s15163_s0 + $0x240] ss:$0 sm:$0xff] }
0x183d   :  { %v3283_v28 = vmul.f32 %v12367_v45, %v3267_v3  ;;  %v11726_v3 = vpack.c.bf16 %v3458_v33, %v3457_v62 }
0x183e   :  { %v3286_v29 = vmul.f32 %v13285_v49, %v3284_v10 }
0x183f   :  { %v3285_v20 = vmul.f32 %v13285_v49, %v3283_v28  ;;  %v3462_v49 = vld [vmem:[%s15163_s0 + $0x218] sm:$0xff] }
0x1840   :  { %v3288_v24 = vadd.f32 %v13290_v50, %v3286_v29  ;;  %v11718_v57 = vpack.c.bf16 %v3462_v49, %v3461_v2 }
0x1841   :  { %v3287_v25 = vadd.f32 %v13290_v50, %v3285_v20  ;;  %v3373_v50 = vld [vmem:[%s15163_s0 + $0x7f0] sm:$0xff] }
0x1843   :  { %v11706_v32 = vpack.c.bf16 %v3288_v24, %v3287_v25 }
0x1845   :  { %11707 = vmatprep.subr.bf16.mxu0 %v11706_v32  ;;  %11711 = vmatprep.subr.bf16.mxu1 %v11706_v32 }
0x1846   :  { %11709 = vmatpush3.bf16.msra.mxu0 %v11706_v32  ;;  %11713 = vmatpush3.bf16.msra.mxu1 %v11706_v32 }
0x1847   :  { %11715 = vmatprep.subr.bf16.mxu0 %v11714_v52  ;;  %11738 = vmatprep.subr.bf16.mxu1 %v12642_v26 }
0x1849   :  { %10530 = vmatmul.mubr.msk.f32.vlgmr.msra.gmra.mrb[52].mxu0 %vm2485_vm15, %v3290_v15  ;;  %10537 = vmatmul.mubr.msk.f32.vlgmr.msra.gmra.mrb[42].mxu1 %vm2485_vm15, %v3373_v50 }
0x184a   :  { %11717 = vmatpush3.bf16.msra.mxu0 %v11714_v52  ;;  %10547 = vmatprep.mubr.msk.f32.mxu0 %vm140_vm4, %v3287_v25 }
0x184b   :  { %11719 = vmatprep.subr.bf16.mxu0 %v11718_v57  ;;  %10576 = vmatprep.mubr.msk.f32.mxu1 %vm12643_vm7, %v12644_v44 }
0x184e   :  { %11721 = vmatpush3.bf16.msra.mxu0 %v11718_v57  ;;  %v3731_v57 = vld [vmem:[%s15163_s0 + $0x7f8] sm:$0xff] }
0x184f   :  { %11723 = vmatprep.subr.bf16.mxu0 %v11722_v34 }
0x1851   :  { %10548 = vmatmul.mubr.msk.f32.vlgmr.msra.gmra.mrb[54].mxu0 %vm140_vm4, %v3288_v24 }
0x1852   :  { %11725 = vmatpush3.bf16.msra.mxu0 %v11722_v34 }
0x1853   :  { %11727 = vmatprep.subr.bf16.mxu0 %v11726_v3 }
0x1856   :  { %11729 = vmatpush3.bf16.msra.mxu0 %v11726_v3 }
0x1857   :  { %11731 = vmatprep.subr.bf16.mxu0 %v11730_v35 }
0x191c   :  { %v10531_v23 = vpop.f32.mrb[52].mxu0  ;;  %v10538_v21 = vpop.f32.mrb[42].mxu1 }
0x191d   :  { %v3363_v4 = vpop.f32.mrb[53].mxu0  ;;  %v3446_v27 = vpop.f32.mrb[43].mxu1 }
0x191e   :  { %10558 = vmatprep.mubr.msk.f32.mxu0 %vm140_vm4, %v3363_v4 }
0x191f   :  { %10559 = vmatmul.mubr.msk.f32.vlgmr.msra.gmra.mrb[54].mxu0 %vm140_vm4, %v10531_v23 }
0x1920   :  { %11733 = vmatpush3.bf16.msra.mxu0 %v11730_v35  ;;  %10569 = vmatprep.mubr.msk.f32.mxu0 %vm140_vm4, %v3446_v27  ;;  %v4101_v27 = vld [vmem:[%s15163_s0 + $0x450] sm:$0xff] }
0x1921   :  { %11735 = vmatprep.subr.bf16.mxu0 %v11734_v5 }
0x1924   :  { %11737 = vmatpush3.bf16.msra.mxu0 %v11734_v5  ;;  %v4100_v5 = vld [vmem:[%s15163_s0 + $0x448] sm:$0xff] }
0x1927   :  { %10570 = vmatmul.mubr.msk.f32.vlgmr.msra.gmra.mrb[54].mxu0 %vm140_vm4, %v10538_v21 }
0x19fa   :  { %v10571_v45 = vpop.f32.mrb[54].mxu0 }
0x19fb   :  { %v3718_v10 = vadd.f32 %v10571_v45, %v9114_v17  ;;  %v3701_v28 = vpop.f32.mrb[55].mxu0  ;;  %v4201_v45 = vld [vmem:[%s15163_s0 + $0x460] sm:$0xff] }
0x19fc   :  { %v3717_v29 = vadd.f32 %v9114_v17, %v3701_v28  ;;  %v4202_v17 = vld [vmem:[%s15163_s0 + $0x468] sm:$0xff] }
0x19fd   :  { %v3722_v20 = vmin.f32 %v3718_v10, 0.0  ;;  %vm3720_vm8 = vcmp.gt.f32.partialorder %v3718_v10, 0.0 }
0x19fe   :  { %v3721_v24 = vmin.f32 %v3717_v29, 0.0  ;;  %vm3719_vm9 = vcmp.gt.f32.partialorder %v3717_v29, 0.0 }
0x19ff   :  { %v3725_v0 = vmul.f32 1.442695, %v3722_v20 }
0x1a00   :  { %v3723_v39 = vmul.f32 1.442695, %v3721_v24  ;;  %v4204_v24 = vld [vmem:[%s15163_s0 + $0x478] sm:$0xff] }
0x1a01   :  { %12368 = vpow2.f32 %v3725_v0  ;;  %v4203_v0 = vld [vmem:[%s15163_s0 + $0x470] sm:$0xff] }
0x1a02   :  { %12370 = vpow2.f32 %v3723_v39 }
0x1a0b   :  { %v12369_v25 = vpop.eup %12368 }
0x1a0c   :  { %v12371_v32 = vpop.eup %12370  ;;  %v9116_v52 = vadd.f32 -1.0, %v12369_v25 }
0x1a0d   :  { %v9115_v2 = vadd.f32 -1.0, %v12371_v32 }
0x1a0e   :  { %v3730_v49 = vsel %vm3720_vm8, %v3718_v10, %v9116_v52 }
0x1a0f   :  { %v3729_v15 = vsel %vm3719_vm9, %v3717_v29, %v9115_v2 }
0x1a10   :  { %v11739_v50 = vpack.c.bf16 %v3730_v49, %v3729_v15 }
0x1a12   :  { %11740 = vmatpush3.bf16.msra.mxu1 %v11739_v50 }
0x1a13   :  { %11741 = vmatprep.subr.bf16.mxu1 %v12642_v26 }
0x1a15   :  { %10577 = vmatmul.mubr.msk.f32.vlgmr.msra.gmra.mrb[44].mxu1 %vm2485_vm15, %v3731_v57 }
0x1a16   :  { %11743 = vmatpush3.bf16.msra.mxu1 %v11739_v50  ;;  %10583 = vmatprep.mubr.msk.f32.mxu1 %vm12643_vm7, %v12644_v44 }
0x1a17   :  { %11744 = vmatprep.subr.bf16.mxu1 %v12642_v26 }
0x1a19   :  { %10584 = vmatmul.mubr.msk.f32.vlgmr.msra.gmra.mrb[46].mxu1 %vm2485_vm15, %v3805_v9 }
0x1a1a   :  { %11746 = vmatpush3.bf16.msra.mxu1 %v11739_v50  ;;  %10590 = vmatprep.mubr.msk.f32.mxu1 %vm12643_vm7, %v12644_v44 }
0x1a1b   :  { %11747 = vmatprep.subr.bf16.mxu1 %v12642_v26 }
0x1a1d   :  { %10591 = vmatmul.mubr.msk.f32.vlgmr.msra.gmra.mrb[48].mxu1 %vm2485_vm15, %v3879_v56 }
0x1a1e   :  { %11749 = vmatpush3.bf16.msra.mxu1 %v12693_v12  ;;  %10601 = vmatprep.mubr.msk.f32.mxu1 %vm12643_vm7, %v12644_v44 }
0x1a1f   :  { %11750 = vmatprep.subr.bf16.mxu1 %v12642_v26 }
0x1a22   :  { %11752 = vmatpush3.bf16.msra.mxu1 %v12723_v19  ;;  %v4099_v19 = vld [vmem:[%s15163_s0 + $0x440] sm:$0xff] }
0x1a23   :  { %11753 = vmatprep.subr.bf16.mxu1 %v12642_v26  ;;  %10617 = vmatprep.mubr.msk.f32.mxu0 %vm4103_vm10, %v4099_v19 }
0x1ae8   :  { %v3801_v34 = vpop.f32.mrb[44].mxu1 }
0x1ae9   :  { %v10578_v62 = vpop.f32.mrb[45].mxu1 }
0x1aea   :  { %v4306_v62 = vld [vmem:[%s15163_s0 + $0x498] sm:$0xff] }
0x1aec   :  { %v3875_v33 = vpop.f32.mrb[46].mxu1 }
0x1aed   :  { %v10585_v3 = vpop.f32.mrb[47].mxu1 }
0x1af0   :  { %v3950_v36 = vpop.f32.mrb[48].mxu1 }
0x1af1   :  { %v3951_v35 = vadd.f32 %v3950_v36, %v3880_v37  ;;  %v10592_v12 = vpop.f32.mrb[49].mxu1 }
0x1af3   :  { %v3954_v16 = vmax.f32 %v3875_v33, %v3951_v35 }
0x1af5   :  { %v13726_v7 = vmax.f32 %v3801_v34, %v3954_v16 }
0x1af7   :  { %10602 = vmatmul.mubr.msk.f32.vlgmr.msra.gmra.mrb[50].mxu1 %vm140_vm4, %v13726_v7 }
0x1af8   :  { %11755 = vmatpush3.bf16.msra.mxu1 %v12733_v22  ;;  %10612 = vmatprep.mubr.msk.f32.mxu1 %vm12643_vm7, %v12644_v44 }
0x1af9   :  { %11756 = vmatprep.subr.bf16.mxu1 %v12642_v26 }
0x1afc   :  { %11758 = vmatpush3.bf16.msra.mxu1 %v12749_v30 }
0x1afd   :  { %11767 = vmatprep.subr.bf16.mxu1 %v12642_v26 }
0x1aff   :  { %10613 = vmatmul.mubr.msk.f32.vlgmr.msra.gmra.mrb[52].mxu1 %vm140_vm4, %v13726_v7 }
0x1b00   :  { %10642 = vmatprep.mubr.msk.f32.mxu1 %vm12643_vm7, %v12644_v44 }
0x1bca   :  { %v4025_v22 = vpop.f32.mrb[50].mxu1 }
0x1bcb   :  { %v10603_v23 = vpop.f32.mrb[51].mxu1  ;;  %v4026_v15 = vadd.f32 %v13446_v47, %v4025_v22 }
0x1bd2   :  { %v4095_v21 = vpop.f32.mrb[52].mxu1 }
0x1bd3   :  { %v4096_v30 = vadd.f32 %v13434_v43, %v4095_v21  ;;  %v10614_v4 = vpop.f32.mrb[53].mxu1  ;;  %v4102_v43 = vld [vmem:[%s15163_s0 + $0x458] sm:$0xff] }
0x1bd5   :  { %10615 = vmatprep.subr.mxu0 %v4096_v30 }
0x1bd6   :  { %10616 = vmatpush3.msra.mxu0 %v4096_v30 }
0x1bd7   :  { %10618 = vmatmul.mubr.msk.f32.vlgmr.msra.gmra.mrb[56].mxu0 %vm4103_vm10, %v4100_v5  ;;  %11759 = vmatprep.subr.bf16.mxu0 %v12642_v26 }
0x1bd8   :  { %10620 = vmatprep.mubr.msk.f32.mxu0 %vm4103_vm10, %v4101_v27 }
0x1bdb   :  { %10621 = vmatmul.mubr.msk.f32.gmra.mrb[58].mxu0 %vm4103_vm10, %v4102_v43 }
0x1bdc   :  { %10631 = vmatprep.mubr.msk.f32.mxu0 %vm12643_vm7, %v12644_v44 }
0x1caa   :  { %v10619_v10 = vpop.f32.mrb[56].mxu0 }
0x1cab   :  { %v4206_v28 = vmul.f32 %v10619_v10, %v4202_v17  ;;  %v4182_v29 = vpop.f32.mrb[57].mxu0 }
0x1cac   :  { %v4205_v20 = vmul.f32 %v4201_v45, %v4182_v29 }
0x1cae   :  { %v11760_v39 = vpack.c.bf16 %v4206_v28, %v4205_v20  ;;  %v10622_v25 = vpop.f32.mrb[58].mxu0  ;;  %v4762_v28 = vld [vmem:[%s15163_s0 + $0x38] sm:$0xff]  ;;  %v4765_v20 = vld [vmem:[%s15163_s0 + $0x50] sm:$0xff] }
0x1caf   :  { %v4208_v32 = vmul.f32 %v10622_v25, %v4204_v24  ;;  %v4192_v52 = vpop.f32.mrb[59].mxu0  ;;  %v4758_v25 = vld [vmem:[%s15165_s2] sm:$0xff] }
0x1cb0   :  { %11762 = vmatpush3.bf16.xpose.msk.msra.mxu0 %vm12945_vm6, %v11760_v39  ;;  %v4207_v2 = vmul.f32 %v4203_v0, %v4192_v52  ;;  %v4766_v0 = vld [vmem:[%s15163_s0 + $0x58] sm:$0xff]  ;;  %v4759_v52 = vld [vmem:[%s15165_s2 + $0x8] sm:$0xff] }
0x1cb1   :  { %11763 = vmatprep.subr.bf16.mxu0 %v12642_v26 }
0x1cb2   :  { %v11764_v49 = vpack.c.bf16 %v4208_v32, %v4207_v2  ;;  %v4760_v2 = vld [vmem:[%s15165_s2 + $0x10] sm:$0xff] }
0x1cb8   :  { %11766 = vmatpush3.bf16.xpose.msk.msra.mxu0 %vm12945_vm6, %v11764_v49 }
0x1cb9   :  { %11779 = vmatprep.subr.bf16.mxu0 %v12642_v26 }
0x1cbf   :  { %10632 = vmatmul.mubr.msk.f32.vlgmr.msra.gmra.mrb[60].mxu0 %vm573_vm5, %v4026_v15 }
0x1cc0   :  { %11781 = vmatpush3.bf16.msra.mxu0 %v13098_v14  ;;  %10672 = vmatprep.mubr.msk.f32.mxu0 %vm12643_vm7, %v12644_v44  ;;  %v4295_v14 = vld [vmem:[%s15163_s0 + $0x710] sm:$0xff] }
0x1cc1   :  { %11782 = vmatprep.subr.bf16.mxu0 %v12642_v26 }
0x1cc4   :  { %11784 = vmatpush3.bf16.msra.mxu0 %v13103_v42  ;;  %v4303_v42 = vld [vmem:[%s15163_s0 + $0x480] sm:$0xff] }
0x1cc5   :  { %11785 = vmatprep.subr.bf16.mxu0 %v12642_v26 }
0x1cc8   :  { %11787 = vmatpush3.bf16.msra.mxu0 %v13114_v54  ;;  %v4304_v54 = vld [vmem:[%s15163_s0 + $0x488] sm:$0xff] }
0x1cc9   :  { %11788 = vmatprep.subr.bf16.mxu0 %v12642_v26  ;;  %v13802_v34 = vpack.c.bf16 %v4304_v54, %v4303_v42  ;;  %v4873_v42 = vld [vmem:[%s15163_s0 + $0x258] sm:$0xff] }
0x1ccb   :  { %11769 = vmatpush3.bf16.msra.mxu1 %v13802_v34 }
0x1ccc   :  { %11790 = vmatpush3.bf16.msra.mxu0 %v13124_v59  ;;  %v4305_v59 = vld [vmem:[%s15163_s0 + $0x490] sm:$0xff]  ;;  %11770 = vmatprep.subr.bf16.mxu1 %v12642_v26 }
0x1ccd   :  { %v13808_v33 = vpack.c.bf16 %v4306_v62, %v4305_v59 }
0x1ccf   :  { %11772 = vmatpush3.bf16.msra.mxu1 %v13808_v33 }
0x1cd0   :  { %11773 = vmatprep.subr.bf16.mxu1 %v12642_v26 }
0x1d92   :  { %v4290_v47 = vpop.f32.mrb[60].mxu0 }
0x1d93   :  { %v4294_v50 = vmul.f32 0.35355338, %v4290_v47  ;;  %v10633_v57 = vpop.f32.mrb[61].mxu0 }
0x1d95   :  { %v4296_v9 = vadd.f32 %v4295_v14, %v4294_v50 }
0x1d97   :  { %v4297_v56 = vsel %vm140_vm4, %v4296_v9, -inf }
0x1d98   :  { %4298 = vmax.xlane.f32.xlu0 %v4297_v56 }
0x1e25   :  { %v4299_v3 = vpop.xlane.xlu0 %4298 }
0x1e26   :  { %v4300_v37 = vsub.f32 %v4296_v9, %v4299_v3 }
0x1e28   :  { %v4301_v36 = vmul.f32 1.442695, %v4300_v37 }
0x1e2a   :  { %12372 = vpow2.f32 %v4301_v36 }
0x1e34   :  { %v12373_v35 = vpop.eup %12372 }
0x1e35   :  { %10643 = vmatmul.mubr.msk.f32.vlgmr.msra.gmra.mrb[54].mxu1 %vm140_vm4, %v12373_v35 }
0x1e36   :  { %11775 = vmatpush3.bf16.msra.mxu1 %v11760_v39  ;;  %10653 = vmatprep.mubr.msk.f32.mxu1 %vm12643_vm7, %v12644_v44  ;;  %v4767_v39 = vld [vmem:[%s15163_s0 + $0x60] sm:$0xf] }
0x1e37   :  { %11776 = vmatprep.subr.bf16.mxu1 %v12642_v26  ;;  %v11811_v32 = vpack.c.bf16 %v4767_v39, %v4766_v0 }
0x1e3a   :  { %11778 = vmatpush3.bf16.msra.mxu1 %v11764_v49  ;;  %v4761_v49 = vld [vmem:[%s15165_s2 + $0x18] sm:$0xff] }
0x1e3b   :  { %11791 = vmatprep.subr.bf16.mxu1 %v12642_v26 }
0x1f08   :  { %v4376_v12 = vpop.f32.mrb[54].mxu1 }
0x1f09   :  { %12374 = vrcp.f32 %v4376_v12  ;;  %v10644_v16 = vpop.f32.mrb[55].mxu1 }
0x1f13   :  { %v12375_v19 = vpop.eup %12374 }
0x1f14   :  { %v4381_v22 = vmul.f32 %v12375_v19, %v12373_v35 }
0x1f16   :  { %10654 = vmatmul.mubr.msk.f32.vlgmr.msra.gmra.mrb[56].mxu1 %vm140_vm4, %v4381_v22 }
0x1f17   :  { %11793 = vmatpush3.bf16.msra.mxu1 %v13154_v41  ;;  %10683 = vmatprep.mubr.msk.f32.mxu1 %vm12643_vm7, %v12644_v44 }
0x1f18   :  { %11794 = vmatprep.subr.bf16.mxu1 %v12642_v26 }
0x1f1b   :  { %11796 = vmatpush3.bf16.msra.mxu1 %v13164_v40 }
0x1f1c   :  { %11797 = vmatprep.subr.bf16.mxu1 %v12642_v26 }
0x1fe9   :  { %v4451_v23 = vpop.f32.mrb[56].mxu1 }
0x1fea   :  { %v10655_v21 = vpop.f32.mrb[57].mxu1  ;;  %10673 = vmatmul.mubr.msk.f32.vlgmr.msra.gmra.mrb[62].mxu0 %vm573_vm5, %v4451_v23 }
0x1feb   :  { %10709 = vmatprep.mubr.msk.f32.mxu0 %vm29_vm0, %v4758_v25 }
0x20bd   :  { %v4524_v30 = vpop.f32.mrb[62].mxu0 }
0x20be   :  { %v4525_v4 = vadd.f32 %v13576_v8, %v4524_v30  ;;  %v10674_v5 = vpop.f32.mrb[63].mxu0  ;;  %v4763_v8 = vld [vmem:[%s15163_s0 + $0x40] sm:$0xff] }
0x20bf   :  { %v11803_v29 = vpack.c.bf16 %v4763_v8, %v4762_v28 }
0x20c0   :  { %v4528_v27 = vadd.f32 %v4525_v4, %v13726_v7  ;;  %v4764_v7 = vld [vmem:[%s15163_s0 + $0x48] sm:$0xff] }
0x20c1   :  { %v11807_v24 = vpack.c.bf16 %v4765_v20, %v4764_v7  ;;  %11804 = vmatprep.subr.bf16.mxu0 %v11803_v29  ;;  %v4875_v20 = vld [vmem:[%s15163_s0 + $0x268] sm:$0xff] }
0x20c2   :  { %v4529_v41 = vsel %vm140_vm4, %v4528_v27, 0.0  ;;  %11806 = vmatpush3.bf16.msra.mxu0 %v11803_v29  ;;  %v9138_v29 = vld [vmem:[%s15163_s0 + $0x68] ss:$0 sm:$0xff] }
0x20c3   :  { %4530 = vadd.xlane.f32.xlu1 %v4529_v41  ;;  %11808 = vmatprep.subr.bf16.mxu0 %v11807_v24 }
0x20c6   :  { %11810 = vmatpush3.bf16.msra.mxu0 %v11807_v24  ;;  %v4876_v24 = vld [vmem:[%s15163_s0 + $0x270] sm:$0xff] }
0x20c7   :  { %11813 = vmatprep.subr.msk.bf16.mxu0 %vm12695_vm3, %v11811_v32 }
0x20ca   :  { %11816 = vmatpush3.bf16.msk.msra.mxu0 %vm12695_vm3, %v11811_v32 }
0x20cd   :  { %10710 = vmatmul.mubr.msk.f32.vlgmr.msra.gmra.mrb[64].mxu0 %vm29_vm0, %v4759_v52  ;;  %v13905_v52 = vpack.c.bf16 %v4876_v24, %v4875_v20  ;;  %v12558_v20 = vld [vmem:[%s15163_s0 + $0x5d0] sm:$0xff]  ;;  %v12559_v24 = vld [vmem:[%s15163_s0 + $0x5d8] sm:$0xff] }
0x20ce   :  { %10712 = vmatprep.mubr.msk.f32.mxu0 %vm29_vm0, %v4760_v2  ;;  %v4979_v2 = vld [vmem:[%s15163_s0 + $0x280] sm:$0xff] }
0x20d1   :  { %10713 = vmatmul.mubr.msk.f32.gmra.mrb[66].mxu0 %vm29_vm0, %v4761_v49  ;;  %v4980_v49 = vld [vmem:[%s15163_s0 + $0x288] sm:$0xff] }
0x20d2   :  { %10751 = vmatprep.mubr.msk.f32.mxu0 %vm140_vm4, %v12544_v13  ;;  %v13918_v13 = vpack.c.bf16 %v4980_v49, %v4979_v2  ;;  %v12561_v49 = vld [vmem:[%s15163_s0 + $0x5e0] sm:$0xff] }
0x2150   :  { %v4531_v43 = vpop.xlane.xlu1 %4530 }
0x2151   :  { %v4532_v17 = vmul.f32 0.03125, %v4531_v43 }
0x2153   :  { %v4533_v45 = vsub.f32 %v4528_v27, %v4532_v17 }
0x2155   :  { %v4534_v10 = vmul.f32 %v4533_v45, %v4533_v45 }
0x2157   :  { %v4535_v40 = vsel %vm140_vm4, %v4534_v10, 0.0 }
0x2158   :  { %4536 = vadd.xlane.f32.xlu0 %v4535_v40 }
0x21e5   :  { %v4537_v15 = vpop.xlane.xlu0 %4536 }
0x21e6   :  { %v4538_v47 = vmul.f32 0.03125, %v4537_v15  ;;  %v4981_v15 = vld [vmem:[%s15163_s0 + $0x290] sm:$0xff] }
0x21e8   :  { %v4539_v14 = vadd.f32 1e-05, %v4538_v47  ;;  %v4982_v47 = vld [vmem:[%s15163_s0 + $0x298] sm:$0xff] }
0x21ea   :  { %12376 = vrsqrt.f32 %v4539_v14 }
0x21f4   :  { %v12377_v50 = vpop.eup %12376 }
0x21f5   :  { %v4541_v57 = vmul.f32 %v12377_v50, %v4533_v45 }
0x21f7   :  { %v4542_v9 = vmul.f32 %v13589_v58, %v4541_v57  ;;  %v4874_v58 = vld [vmem:[%s15163_s0 + $0x260] sm:$0xff]  ;;  %v13932_v57 = vpack.c.bf16 %v4982_v47, %v4981_v15 }
0x21f9   :  { %v13874_v56 = vadd.f32 %v13596_v51, %v4542_v9  ;;  %v13889_v51 = vpack.c.bf16 %v4874_v58, %v4873_v42 }
0x21fb   :  { %10684 = vmatmul.mubr.msk.f32.vlgmr.msra.gmra.mrb[58].mxu1 %vm140_vm4, %v13874_v56 }
0x21fc   :  { %11799 = vmatpush3.bf16.msra.mxu1 %v13196_v61  ;;  %10694 = vmatprep.mubr.msk.f32.mxu1 %vm12643_vm7, %v12644_v44  ;;  %v10711_v61 = vpop.f32.mrb[64].mxu0 }
0x21fd   :  { %11800 = vmatprep.subr.bf16.mxu1 %v12642_v26  ;;  %v4854_v54 = vpop.f32.mrb[65].mxu0  ;;  %v13929_v50 = vadd.f32 %v10711_v61, %v9138_v29  ;;  %v13958_v61 = vld [vmem:[%s15163_s0 + $0x278] ss:$0 sm:$0xff] }
0x21fe   :  { %v10714_v59 = vpop.f32.mrb[66].mxu0  ;;  %v13903_v25 = vadd.f32 %v9138_v29, %v4854_v54 }
0x21ff   :  { %v4864_v62 = vpop.f32.mrb[67].mxu0  ;;  %v13939_v9 = vadd.f32 %v10714_v59, %v9138_v29 }
0x2200   :  { %11802 = vmatpush3.bf16.msra.mxu1 %v13206_v63  ;;  %v13927_v14 = vadd.f32 %v9138_v29, %v4864_v62  ;;  %v12557_v29 = vld [vmem:[%s15163_s0 + $0x5c8] sm:$0xff] }
0x2201   :  { %11818 = vmatprep.subr.bf16.mxu1 %v13889_v51 }
0x22ce   :  { %v4613_v3 = vpop.f32.mrb[58].mxu1 }
0x22cf   :  { %v4614_v37 = vadd.f32 %v13614_v53, %v4613_v3  ;;  %v10685_v63 = vpop.f32.mrb[59].mxu1 }
0x22d0   :  { %v9149_v63 = vld [vmem:[%s15163_s0 + $0x2a0] ss:$0 sm:$0xff] }
0x22d1   :  { %v4618_v36 = vmul.f32 0.70710677, %v4614_v37  ;;  %v4617_v0 = vmul.f32 0.5, %v4614_v37 }
0x22d3   :  { %v4621_v35 = vand.u32 2147483647, %v4618_v36  ;;  %vm4619_vm0 = vcmp.ge.f32.partialorder %v4618_v36, 0.0 }
0x22d4   :  { %v4620_v8 = vsel %vm4619_vm0, 1.0, %v15167_v46 }
0x22d5   :  { %v4622_v12 = vmul.f32 0.3275911, %v4621_v35  ;;  %v4635_v19 = vsub.f32 0.0, %v4621_v35 }
0x22d7   :  { %v4623_v16 = vadd.f32 1.0, %v4622_v12  ;;  %v4636_v23 = vmul.f32 %v4635_v19, %v4621_v35 }
0x22d9   :  { %12378 = vrcp.f32 %v4623_v16  ;;  %v4637_v4 = vmul.f32 1.442695, %v4636_v23 }
0x22db   :  { %12380 = vpow2.f32 %v4637_v4 }
0x22e3   :  { %v12379_v22 = vpop.eup %12378 }
0x22e4   :  { %v4626_v21 = vmul.f32 1.0614054, %v12379_v22 }
0x22e5   :  { %v12381_v10 = vpop.eup %12380 }
0x22e6   :  { %v4627_v30 = vadd.f32 -1.4531521, %v4626_v21 }
0x22e8   :  { %v4628_v5 = vmul.f32 %v12379_v22, %v4627_v30 }
0x22ea   :  { %v4629_v27 = vadd.f32 1.4214138, %v4628_v5  ;;  %v12545_v5 = vld [vmem:[%s15163_s0 + $0x568] sm:$0xff] }
0x22ec   :  { %v4630_v41 = vmul.f32 %v12379_v22, %v4629_v27  ;;  %v12546_v27 = vld [vmem:[%s15163_s0 + $0x570] sm:$0xff] }
0x22ee   :  { %v4631_v43 = vadd.f32 -0.28449672, %v4630_v41  ;;  %v12547_v41 = vld [vmem:[%s15163_s0 + $0x578] sm:$0xff] }
0x22f0   :  { %v4632_v17 = vmul.f32 %v12379_v22, %v4631_v43  ;;  %v12548_v43 = vld [vmem:[%s15163_s0 + $0x580] sm:$0xff] }
0x22f2   :  { %v4633_v45 = vadd.f32 0.2548296, %v4632_v17  ;;  %v12549_v17 = vld [vmem:[%s15163_s0 + $0x588] sm:$0xff] }
0x22f4   :  { %v4634_v53 = vmul.f32 %v12379_v22, %v4633_v45  ;;  %v12550_v45 = vld [vmem:[%s15163_s0 + $0x590] sm:$0xff] }
0x22f6   :  { %v4639_v40 = vmul.f32 %v12381_v10, %v4634_v53  ;;  %v12551_v53 = vld [vmem:[%s15163_s0 + $0x598] sm:$0xff]  ;;  %v12552_v10 = vld [vmem:[%s15163_s0 + $0x5a0] sm:$0xff] }
0x22f8   :  { %v4640_v28 = vsub.f32 1.0, %v4639_v40  ;;  %v12553_v40 = vld [vmem:[%s15163_s0 + $0x5a8] sm:$0xff] }
0x22fa   :  { %v4641_v7 = vmul.f32 %v4640_v28, %v4620_v8  ;;  %v12554_v28 = vld [vmem:[%s15163_s0 + $0x5b0] sm:$0xff]  ;;  %v12555_v8 = vld [vmem:[%s15163_s0 + $0x5b8] sm:$0xff] }
0x22fc   :  { %v4642_v39 = vadd.f32 1.0, %v4641_v7  ;;  %v12556_v7 = vld [vmem:[%s15163_s0 + $0x5c0] sm:$0xff] }
0x22fe   :  { %v4643_v32 = vmul.f32 %v4642_v39, %v4617_v0  ;;  %v12560_v39 = vld [vmem:[%s15163_s0 + $0x5e8] sm:$0xff] }
0x2300   :  { %10695 = vmatmul.mubr.msk.f32.vlgmr.msra.gmra.mrb[60].mxu1 %vm140_vm4, %v4643_v32 }
0x2301   :  { %11820 = vmatpush3.bf16.msra.mxu1 %v13889_v51  ;;  %10723 = vmatprep.mubr.msk.f32.mxu1 %vm140_vm4, %v13903_v25 }
0x2302   :  { %11822 = vmatprep.subr.bf16.mxu1 %v13905_v52 }
0x2305   :  { %11824 = vmatpush3.bf16.msra.mxu1 %v13905_v52 }
0x2306   :  { %11826 = vmatprep.subr.bf16.mxu1 %v13918_v13 }
0x2308   :  { %10724 = vmatmul.mubr.msk.f32.vlgmr.msra.gmra.mrb[62].mxu1 %vm140_vm4, %v13929_v50 }
0x2309   :  { %11828 = vmatpush3.bf16.msra.mxu1 %v13918_v13  ;;  %10726 = vmatprep.mubr.msk.f32.mxu1 %vm140_vm4, %v13927_v14 }
0x230a   :  { %11830 = vmatprep.subr.bf16.mxu1 %v13932_v57 }
0x230c   :  { %10727 = vmatmul.mubr.msk.f32.gmra.mrb[64].mxu1 %vm140_vm4, %v13939_v9 }
0x230d   :  { %11832 = vmatpush3.bf16.msra.mxu1 %v13932_v57  ;;  %10737 = vmatprep.mubr.msk.f32.mxu1 %vm140_vm4, %v13903_v25 }
0x2310   :  { %10738 = vmatmul.mubr.msk.f32.vlgmr.msra.gmra.mrb[66].mxu1 %vm140_vm4, %v13929_v50 }
0x2311   :  { %10740 = vmatprep.mubr.msk.f32.mxu1 %vm140_vm4, %v13927_v14 }
0x2314   :  { %10741 = vmatmul.mubr.msk.f32.gmra.mrb[68].mxu1 %vm140_vm4, %v13939_v9 }
0x23d3   :  { %v13953_v42 = vpop.f32.mrb[60].mxu1 }
0x23d4   :  { %v10696_v58 = vpop.f32.mrb[61].mxu1 }
0x23db   :  { %v13960_v54 = vpop.f32.mrb[62].mxu1 }
0x23dc   :  { %v4960_v59 = vpop.f32.mrb[63].mxu1 }
0x23dd   :  { %v4961_v62 = vadd.f32 %v13958_v61, %v4960_v59  ;;  %v12562_v59 = vld [vmem:[%s15163_s0 + $0x5f8] sm:$0xff] }
0x23df   :  { %v13963_v3 = vpop.f32.mrb[64].mxu1  ;;  %10807 = vmatprep.mubr.msk.f32.mxu1 %vm573_vm5, %v4961_v62 }
0x23e0   :  { %v13966_v37 = vpop.f32.mrb[65].mxu1 }
0x23e3   :  { %v10739_v36 = vpop.f32.mrb[66].mxu1 }
0x23e4   :  { %v5060_v35 = vadd.f32 %v10739_v36, %v9149_v63  ;;  %v5054_v12 = vpop.f32.mrb[67].mxu1  ;;  %v12563_v36 = vld [vmem:[%s15163_s0 + $0x5f0] sm:$0xff] }
0x23e5   :  { %v5055_v16 = vadd.f32 %v9149_v63, %v5054_v12 }
0x23e7   :  { %v11833_v19 = vpack.c.bf16 %v5060_v35, %v5055_v16  ;;  %v10742_v22 = vpop.f32.mrb[68].mxu1 }
0x23e8   :  { %v5070_v23 = vadd.f32 %v10742_v22, %v9149_v63  ;;  %v5064_v21 = vpop.f32.mrb[69].mxu1 }
0x23e9   :  { %v5065_v30 = vadd.f32 %v9149_v63, %v5064_v21  ;;  %11834 = vmatprep.subr.bf16.mxu0 %v11833_v19  ;;  %v12565_v21 = vld [vmem:[%s15163_s0 + $0x600] sm:$0xff] }
0x23ea   :  { %11836 = vmatpush3.bf16.msra.mxu0 %v11833_v19  ;;  %v12564_v19 = vld [vmem:[%s15163_s0 + $0x608] sm:$0xff] }
0x23eb   :  { %v11837_v4 = vpack.c.bf16 %v5070_v23, %v5065_v30 }
0x23ed   :  { %11838 = vmatprep.subr.bf16.mxu0 %v11837_v4 }
0x23ee   :  { %11840 = vmatpush3.bf16.msra.mxu0 %v11837_v4 }
0x23ef   :  { %11890 = vmatprep.subr.bf16.mxu0 %v12800_v55 }
0x23f1   :  { %10752 = vmatmul.mubr.msk.f32.vlgmr.msra.gmra.mrb[68].mxu0 %vm140_vm4, %v12545_v5 }
0x23f2   :  { %10754 = vmatprep.mubr.msk.f32.mxu0 %vm140_vm4, %v12546_v27  ;;  %11892 = vmatpush3.bf16.msra.mxu0 %v12800_v55  ;;  %v12566_v27 = vld [vmem:[%s15163_s0 + $0x618] sm:$0xff] }
0x23f3   :  { %11894 = vmatprep.subr.bf16.mxu0 %v12815_v60 }
0x23f5   :  { %10755 = vmatmul.mubr.msk.f32.gmra.mrb[70].mxu0 %vm140_vm4, %v12547_v41 }
0x23f6   :  { %10757 = vmatprep.mubr.msk.f32.mxu0 %vm140_vm4, %v12548_v43  ;;  %11896 = vmatpush3.bf16.msra.mxu0 %v12815_v60 }
0x23f7   :  { %11898 = vmatprep.subr.bf16.mxu0 %v12833_v1 }
0x23f9   :  { %10758 = vmatmul.mubr.msk.f32.gmra.mrb[72].mxu0 %vm140_vm4, %v12549_v17  ;;  %v12567_v17 = vld [vmem:[%s15163_s0 + $0x610] sm:$0xff] }
0x23fa   :  { %10760 = vmatprep.mubr.msk.f32.mxu0 %vm140_vm4, %v12550_v45  ;;  %11900 = vmatpush3.bf16.msra.mxu0 %v12833_v1 }
0x23fb   :  { %11902 = vmatprep.subr.bf16.mxu0 %v12851_v6 }
0x23fd   :  { %10761 = vmatmul.mubr.msk.f32.gmra.mrb[74].mxu0 %vm140_vm4, %v12551_v53 }
0x23fe   :  { %10763 = vmatprep.mubr.msk.f32.mxu0 %vm140_vm4, %v12552_v10  ;;  %11904 = vmatpush3.bf16.msra.mxu0 %v12851_v6 }
0x23ff   :  { %11906 = vmatprep.subr.bf16.mxu0 %v12869_v11 }
0x2401   :  { %10764 = vmatmul.mubr.msk.f32.gmra.mrb[76].mxu0 %vm140_vm4, %v12553_v40  ;;  %v12568_v40 = vld [vmem:[%s15163_s0 + $0x628] sm:$0xff] }
0x2402   :  { %10766 = vmatprep.mubr.msk.f32.mxu0 %vm140_vm4, %v12554_v28  ;;  %11908 = vmatpush3.bf16.msra.mxu0 %v12869_v11 }
0x2403   :  { %11910 = vmatprep.subr.bf16.mxu0 %v12887_v18 }
0x2405   :  { %10767 = vmatmul.mubr.msk.f32.gmra.mrb[78].mxu0 %vm140_vm4, %v12555_v8 }
0x2406   :  { %10769 = vmatprep.mubr.msk.f32.mxu0 %vm140_vm4, %v12556_v7  ;;  %11912 = vmatpush3.bf16.msra.mxu0 %v12887_v18  ;;  %v12569_v7 = vld [vmem:[%s15163_s0 + $0x620] sm:$0xff] }
0x2407   :  { %11914 = vmatprep.subr.bf16.mxu0 %v12920_v31 }
0x2409   :  { %10770 = vmatmul.mubr.msk.f32.gmra.mrb[80].mxu0 %vm140_vm4, %v12557_v29 }
0x240a   :  { %10772 = vmatprep.mubr.msk.f32.mxu0 %vm140_vm4, %v12558_v20  ;;  %11916 = vmatpush3.bf16.msra.mxu0 %v12920_v31 }
0x240b   :  { %11918 = vmatprep.subr.bf16.mxu0 %v12930_v38 }
0x240d   :  { %10773 = vmatmul.mubr.msk.f32.gmra.mrb[82].mxu0 %vm140_vm4, %v12559_v24 }
0x240e   :  { %11920 = vmatpush3.bf16.msra.mxu0 %v12930_v38 }
0x24c4   :  { %v10753_v0 = vpop.f32.mrb[68].mxu0 }
0x24c5   :  { %v5219_v32 = vmul.f32 %v12560_v39, %v10753_v0  ;;  %v5139_v2 = vpop.f32.mrb[69].mxu0  ;;  %v12570_v0 = vld [vmem:[%s15163_s0 + $0x638] sm:$0xff] }
0x24c6   :  { %v5218_v15 = vmul.f32 %v12561_v49, %v5139_v2  ;;  %v12571_v2 = vld [vmem:[%s15163_s0 + $0x630] sm:$0xff] }
0x24c8   :  { %v14053_v47 = vpack.c.bf16 %v5219_v32, %v5218_v15  ;;  %v10756_v58 = vpop.f32.mrb[70].mxu0 }
0x24c9   :  { %v5221_v62 = vmul.f32 %v12562_v59, %v10756_v58  ;;  %v5149_v63 = vpop.f32.mrb[71].mxu0  ;;  %v12572_v59 = vld [vmem:[%s15163_s0 + $0x648] sm:$0xff] }
0x24ca   :  { %11843 = vmatprep.subr.msk.bf16.mxu1 %vm12945_vm6, %v14053_v47  ;;  %11922 = vmatprep.subr.bf16.mxu0 %v14053_v47  ;;  %v5220_v35 = vmul.f32 %v12563_v36, %v5149_v63  ;;  %v12573_v36 = vld [vmem:[%s15163_s0 + $0x640] sm:$0xff] }
0x24cb   :  { %11846 = vmatpush3.bf16.xpose.msk.msra.mxu1 %vm12945_vm6, %v14053_v47 }
0x24cc   :  { %v14068_v12 = vpack.c.bf16 %v5221_v62, %v5220_v35  ;;  %v10759_v16 = vpop.f32.mrb[72].mxu0 }
0x24cd   :  { %v5223_v22 = vmul.f32 %v12564_v19, %v10759_v16  ;;  %v5159_v23 = vpop.f32.mrb[73].mxu0 }
0x24ce   :  { %11849 = vmatprep.subr.msk.bf16.mxu1 %vm12945_vm6, %v14068_v12  ;;  %v5222_v30 = vmul.f32 %v12565_v21, %v5159_v23 }
0x24d0   :  { %v14079_v4 = vpack.c.bf16 %v5223_v22, %v5222_v30  ;;  %v10762_v5 = vpop.f32.mrb[74].mxu0  ;;  %v12574_v22 = vld [vmem:[%s15163_s0 + $0x658] sm:$0xff]  ;;  %v12575_v30 = vld [vmem:[%s15163_s0 + $0x650] sm:$0xff] }
0x24d1   :  { %v5225_v41 = vmul.f32 %v12566_v27, %v10762_v5  ;;  %v5169_v43 = vpop.f32.mrb[75].mxu0 }
0x24d2   :  { %v5224_v45 = vmul.f32 %v12567_v17, %v5169_v43  ;;  %v4971_v43 = vadd.f32 %v13958_v61, %v13966_v37  ;;  %v4976_v17 = vadd.f32 %v13963_v3, %v13958_v61  ;;  %v12576_v3 = vld [vmem:[%s15163_s0 + $0x150] ss:$0 sm:$0xff] }
0x24d3   :  { %11852 = vmatpush3.bf16.xpose.msk.msra.mxu1 %vm12945_vm6, %v14068_v12 }
0x24d4   :  { %11855 = vmatprep.subr.msk.bf16.mxu1 %vm12945_vm6, %v14079_v4  ;;  %v14093_v53 = vpack.c.bf16 %v5225_v41, %v5224_v45  ;;  %v10765_v10 = vpop.f32.mrb[76].mxu0  ;;  %v4966_v41 = vadd.f32 %v13960_v54, %v13958_v61  ;;  %v5383_v54 = vld [vmem:[%s15163_s0 + $0x718] sm:$0xff]  ;;  %v5386_v61 = vld [vmem:[%s15163_s0 + $0x730] sm:$0xff] }
0x24d5   :  { %v5227_v28 = vmul.f32 %v12568_v40, %v10765_v10  ;;  %v5179_v8 = vpop.f32.mrb[77].mxu0  ;;  %v5384_v10 = vld [vmem:[%s15163_s0 + $0x720] sm:$0xff] }
0x24d6   :  { %v5226_v29 = vmul.f32 %v12569_v7, %v5179_v8 }
0x24d8   :  { %v14101_v20 = vpack.c.bf16 %v5227_v28, %v5226_v29  ;;  %v10768_v24 = vpop.f32.mrb[78].mxu0 }
0x24d9   :  { %v5229_v39 = vmul.f32 %v12570_v0, %v10768_v24  ;;  %v5189_v32 = vpop.f32.mrb[79].mxu0  ;;  %v4714_v24 = vadd.f32 %v12576_v3, %v13953_v42 }
0x24da   :  { %v5228_v49 = vmul.f32 %v12571_v2, %v5189_v32  ;;  %v5385_v32 = vld [vmem:[%s15163_s0 + $0x728] sm:$0xff] }
0x24db   :  { %11858 = vmatpush3.bf16.xpose.msk.msra.mxu1 %vm12945_vm6, %v14079_v4 }
0x24dc   :  { %11861 = vmatprep.subr.msk.bf16.mxu1 %vm12945_vm6, %v14093_v53  ;;  %v14115_v15 = vpack.c.bf16 %v5229_v39, %v5228_v49  ;;  %v10771_v58 = vpop.f32.mrb[80].mxu0 }
0x24dd   :  { %v5231_v62 = vmul.f32 %v12572_v59, %v10771_v58  ;;  %v5199_v63 = vpop.f32.mrb[81].mxu0  ;;  %v4717_v59 = vadd.f32 %v4714_v24, %v13874_v56 }
0x24de   :  { %v5230_v35 = vmul.f32 %v12573_v36, %v5199_v63 }
0x24e0   :  { %v14123_v16 = vpack.c.bf16 %v5231_v62, %v5230_v35  ;;  %v10774_v19 = vpop.f32.mrb[82].mxu0  ;;  %v4718_v62 = vsel %vm140_vm4, %v4717_v59, 0.0 }
0x24e1   :  { %v5233_v23 = vmul.f32 %v12574_v22, %v10774_v19  ;;  %v5209_v21 = vpop.f32.mrb[83].mxu0 }
0x24e2   :  { %v5232_v5 = vmul.f32 %v12575_v30, %v5209_v21 }
0x24e3   :  { %11864 = vmatpush3.bf16.xpose.msk.msra.mxu1 %vm12945_vm6, %v14093_v53 }
0x24e4   :  { %11867 = vmatprep.subr.msk.bf16.mxu1 %vm12945_vm6, %v14101_v20  ;;  %v14137_v27 = vpack.c.bf16 %v5233_v23, %v5232_v5 }
0x24eb   :  { %11870 = vmatpush3.bf16.xpose.msk.msra.mxu1 %vm12945_vm6, %v14101_v20 }
0x24ec   :  { %11873 = vmatprep.subr.msk.bf16.mxu1 %vm12945_vm6, %v14115_v15 }
0x24f3   :  { %11876 = vmatpush3.bf16.xpose.msk.msra.mxu1 %vm12945_vm6, %v14115_v15 }
0x24f4   :  { %11879 = vmatprep.subr.msk.bf16.mxu1 %vm12945_vm6, %v14123_v16 }
0x24fb   :  { %11882 = vmatpush3.bf16.xpose.msk.msra.mxu1 %vm12945_vm6, %v14123_v16 }
0x24fc   :  { %11885 = vmatprep.subr.msk.bf16.mxu1 %vm12945_vm6, %v14137_v27 }
0x2503   :  { %11888 = vmatpush3.bf16.xpose.msk.msra.mxu1 %vm12945_vm6, %v14137_v27 }
0x250a   :  { %10808 = vmatmul.mubr.msk.f32.vlgmr.msra.gmra.mrb[70].mxu1 %vm573_vm5, %v4966_v41 }
0x250b   :  { %10810 = vmatprep.mubr.msk.f32.mxu1 %vm573_vm5, %v4971_v43 }
0x250e   :  { %10811 = vmatmul.mubr.msk.f32.gmra.mrb[72].mxu1 %vm573_vm5, %v4976_v17 }
0x25dd   :  { %v10809_v45 = vpop.f32.mrb[70].mxu1 }
0x25de   :  { %v5380_v40 = vmul.f32 0.35355338, %v10809_v45  ;;  %v5360_v28 = vpop.f32.mrb[71].mxu1 }
0x25df   :  { %v5379_v37 = vmul.f32 0.35355338, %v5360_v28 }
0x25e0   :  { %v5388_v8 = vadd.f32 %v5384_v10, %v5380_v40 }
0x25e1   :  { %v10812_v7 = vpop.f32.mrb[72].mxu1  ;;  %v5387_v29 = vadd.f32 %v5383_v54, %v5379_v37 }
0x25e2   :  { %v5382_v0 = vmul.f32 0.35355338, %v10812_v7  ;;  %5393 = vmax.xlane.f32.xlu0 %v5388_v8  ;;  %v5370_v39 = vpop.f32.mrb[73].mxu1 }
0x25e3   :  { %v5381_v2 = vmul.f32 0.35355338, %v5370_v39  ;;  %5391 = vmax.xlane.f32.xlu1 %v5387_v29 }
0x25e4   :  { %v5390_v49 = vadd.f32 %v5386_v61, %v5382_v0  ;;  %v5596_v61 = vld [vmem:[%s15163_s0 + $0x2e0] sm:$0xff] }
0x25e5   :  { %v5389_v58 = vadd.f32 %v5385_v32, %v5381_v2 }
0x25e6   :  { %5397 = vmax.xlane.f32.xlu0 %v5390_v49 }
0x25e7   :  { %5395 = vmax.xlane.f32.xlu1 %v5389_v58 }
0x25eb   :  { %4719 = vadd.xlane.f32.xlu1 %v4718_v62 }
0x266f   :  { %v5394_v63 = vpop.xlane.xlu0 %5393 }
0x2670   :  { %v5400_v42 = vsub.f32 %v5388_v8, %v5394_v63  ;;  %v5392_v36 = vpop.xlane.xlu1 %5391 }
0x2671   :  { %v5399_v35 = vsub.f32 %v5387_v29, %v5392_v36  ;;  %v5595_v29 = vld [vmem:[%s15163_s0 + $0x2d8] sm:$0xff] }
0x2672   :  { %v5405_v19 = vmul.f32 1.442695, %v5400_v42  ;;  %v14242_v3 = vpack.c.bf16 %v5596_v61, %v5595_v29 }
0x2673   :  { %v5403_v22 = vmul.f32 1.442695, %v5399_v35  ;;  %v5398_v23 = vpop.xlane.xlu0 %5397 }
0x2674   :  { %v5402_v21 = vsub.f32 %v5390_v49, %v5398_v23  ;;  %v5396_v30 = vpop.xlane.xlu1 %5395 }
0x2675   :  { %12382 = vpow2.f32 %v5403_v22  ;;  %v5401_v5 = vsub.f32 %v5389_v58, %v5396_v30 }
0x2676   :  { %12384 = vpow2.f32 %v5405_v19  ;;  %v5409_v41 = vmul.f32 1.442695, %v5402_v21 }
0x2677   :  { %v5407_v43 = vmul.f32 1.442695, %v5401_v5 }
0x2678   :  { %v4720_v17 = vpop.xlane.xlu1 %4719 }
0x2679   :  { %12386 = vpow2.f32 %v5407_v43  ;;  %v4721_v56 = vmul.f32 0.03125, %v4720_v17 }
0x267a   :  { %12388 = vpow2.f32 %v5409_v41  ;;  %v9190_v41 = vld [vmem:[%s15163_s0 + $0x2e8] ss:$0 sm:$0xff] }
0x267b   :  { %v14187_v45 = vsub.f32 %v4717_v59, %v4721_v56 }
0x267d   :  { %v4723_v10 = vmul.f32 %v14187_v45, %v14187_v45 }
0x267f   :  { %v12383_v40 = vpop.eup %12382  ;;  %v4724_v28 = vsel %vm140_vm4, %v4723_v10, 0.0 }
0x2680   :  { %v12385_v54 = vpop.eup %12384  ;;  %10845 = vmatprep.mubr.f32.mxu0 %v12383_v40  ;;  %4725 = vadd.xlane.f32.xlu0 %v4724_v28 }
0x2681   :  { %10846 = vmatmul.mubr.f32.vlgmr.msra.gmra.mrb[84].mxu0 %v12385_v54 }
0x2682   :  { %11924 = vmatpush3.bf16.msra.mxu0 %v14053_v47  ;;  %v5589_v47 = vld [vmem:[%s15163_s0 + $0x2a8] sm:$0xff] }
0x2683   :  { %v12387_v37 = vpop.eup %12386  ;;  %11926 = vmatprep.subr.bf16.mxu0 %v14068_v12 }
0x2684   :  { %v12389_v8 = vpop.eup %12388  ;;  %10848 = vmatprep.mubr.f32.mxu0 %v12387_v37 }
0x2685   :  { %10849 = vmatmul.mubr.f32.gmra.mrb[86].mxu0 %v12389_v8 }
0x2686   :  { %11928 = vmatpush3.bf16.msra.mxu0 %v14068_v12  ;;  %v5590_v12 = vld [vmem:[%s15163_s0 + $0x2b0] sm:$0xff] }
0x2687   :  { %11930 = vmatprep.subr.bf16.mxu0 %v14079_v4 }
0x268a   :  { %11932 = vmatpush3.bf16.msra.mxu0 %v14079_v4  ;;  %v5591_v4 = vld [vmem:[%s15163_s0 + $0x2b8] sm:$0xff] }
0x268b   :  { %11934 = vmatprep.subr.bf16.mxu0 %v14093_v53 }
0x268e   :  { %11936 = vmatpush3.bf16.msra.mxu0 %v14093_v53  ;;  %v14216_v53 = vpack.c.bf16 %v5590_v12, %v5589_v47 }
0x268f   :  { %11938 = vmatprep.subr.bf16.mxu0 %v14101_v20 }
0x2690   :  { %11954 = vmatprep.subr.bf16.mxu1 %v14216_v53 }
0x2691   :  { %11956 = vmatpush3.bf16.msra.mxu1 %v14216_v53 }
0x2692   :  { %11940 = vmatpush3.bf16.msra.mxu0 %v14101_v20  ;;  %v5592_v20 = vld [vmem:[%s15163_s0 + $0x2c0] sm:$0xff] }
0x2693   :  { %11942 = vmatprep.subr.bf16.mxu0 %v14115_v15 }
0x2696   :  { %11944 = vmatpush3.bf16.msra.mxu0 %v14115_v15  ;;  %v14221_v15 = vpack.c.bf16 %v5592_v20, %v5591_v4 }
0x2697   :  { %11946 = vmatprep.subr.bf16.mxu0 %v14123_v16 }
0x2698   :  { %11958 = vmatprep.subr.bf16.mxu1 %v14221_v15 }
0x2699   :  { %11960 = vmatpush3.bf16.msra.mxu1 %v14221_v15 }
0x269a   :  { %11948 = vmatpush3.bf16.msra.mxu0 %v14123_v16  ;;  %v5593_v16 = vld [vmem:[%s15163_s0 + $0x2c8] sm:$0xff] }
0x269b   :  { %11950 = vmatprep.subr.bf16.mxu0 %v14137_v27 }
0x269e   :  { %11952 = vmatpush3.bf16.msra.mxu0 %v14137_v27  ;;  %v5594_v27 = vld [vmem:[%s15163_s0 + $0x2d0] sm:$0xff] }
0x269f   :  { %v14232_v7 = vpack.c.bf16 %v5594_v27, %v5593_v16  ;;  %v12577_v27 = vld [vmem:[%s15163_s0 + $0x168] ss:$0 sm:$0xff] }
0x26a1   :  { %11962 = vmatprep.subr.bf16.mxu1 %v14232_v7 }
0x26a2   :  { %11964 = vmatpush3.bf16.msra.mxu1 %v14232_v7 }
0x26a3   :  { %11966 = vmatprep.subr.bf16.mxu1 %v14242_v3 }
0x26a6   :  { %11968 = vmatpush3.bf16.msra.mxu1 %v14242_v3 }
0x270d   :  { %v4726_v21 = vpop.xlane.xlu0 %4725 }
0x270e   :  { %v4727_v30 = vmul.f32 0.03125, %v4726_v21 }
0x2710   :  { %v4728_v5 = vadd.f32 1e-05, %v4727_v30 }
0x2754   :  { %v10847_v24 = vpop.f32.mrb[84].mxu0 }
0x2755   :  { %12390 = vrcp.f32 %v10847_v24  ;;  %v5477_v0 = vpop.f32.mrb[85].mxu0  ;;  %v12578_v24 = vld [vmem:[%s15163_s0 + $0x170] ss:$0 sm:$0xff] }
0x2756   :  { %12392 = vrcp.f32 %v5477_v0 }
0x2758   :  { %v10850_v39 = vpop.f32.mrb[86].mxu0 }
0x2759   :  { %12394 = vrcp.f32 %v10850_v39  ;;  %v5487_v32 = vpop.f32.mrb[87].mxu0 }
0x275a   :  { %12396 = vrcp.f32 %v5487_v32 }
0x275b   :  { %12398 = vrsqrt.f32 %v4728_v5 }
0x275f   :  { %v12391_v2 = vpop.eup %12390 }
0x2760   :  { %v12393_v49 = vpop.eup %12392  ;;  %v5501_v59 = vmul.f32 %v12391_v2, %v12385_v54 }
0x2761   :  { %v5500_v58 = vmul.f32 %v12393_v49, %v12383_v40 }
0x2763   :  { %v12395_v62 = vpop.eup %12394  ;;  %10883 = vmatprep.mubr.f32.mxu0 %v5500_v58 }
0x2764   :  { %v12397_v63 = vpop.eup %12396  ;;  %10884 = vmatmul.mubr.f32.vlgmr.msra.gmra.mrb[88].mxu0 %v5501_v59  ;;  %v5503_v36 = vmul.f32 %v12395_v62, %v12389_v8 }
0x2765   :  { %v5502_v42 = vmul.f32 %v12397_v63, %v12387_v37  ;;  %v12399_v43 = vpop.eup %12398 }
0x2766   :  { %v4730_v28 = vmul.f32 %v12399_v43, %v14187_v45 }
0x2767   :  { %10886 = vmatprep.mubr.f32.mxu0 %v5502_v42 }
0x2768   :  { %10887 = vmatmul.mubr.f32.gmra.mrb[90].mxu0 %v5503_v36  ;;  %v4731_v29 = vmul.f32 %v12577_v27, %v4730_v28 }
0x276a   :  { %v4732_v0 = vadd.f32 %v12578_v24, %v4731_v29 }
0x276c   :  { %v4733_v39 = vsel %vm140_vm4, %v4732_v0, 0.0 }
0x2837   :  { %v10885_v35 = vpop.f32.mrb[88].mxu0 }
0x2838   :  { %v5570_v19 = vpop.f32.mrb[89].mxu0 }
0x2839   :  { %10905 = vmatprep.mubr.msk.f32.mxu1 %vm573_vm5, %v5570_v19 }
0x283a   :  { %10906 = vmatmul.mubr.msk.f32.vlgmr.msra.gmra.mrb[74].mxu1 %vm573_vm5, %v10885_v35 }
0x283b   :  { %v10888_v22 = vpop.f32.mrb[90].mxu0 }
0x283c   :  { %v5580_v23 = vpop.f32.mrb[91].mxu0 }
0x283d   :  { %10908 = vmatprep.mubr.msk.f32.mxu1 %vm573_vm5, %v5580_v23 }
0x283e   :  { %10909 = vmatmul.mubr.msk.f32.gmra.mrb[76].mxu1 %vm573_vm5, %v10888_v22 }
0x290d   :  { %v10907_v17 = vpop.f32.mrb[74].mxu1 }
0x290e   :  { %v5686_v56 = vadd.f32 %v10907_v17, %v9190_v41  ;;  %v5680_v10 = vpop.f32.mrb[75].mxu1 }
0x290f   :  { %v5681_v40 = vadd.f32 %v9190_v41, %v5680_v10 }
0x2910   :  { %v5700_v54 = vadd.f32 %v5686_v56, %v13929_v50 }
0x2911   :  { %v10910_v37 = vpop.f32.mrb[76].mxu1  ;;  %v5699_v8 = vadd.f32 %v5681_v40, %v13903_v25 }
0x2912   :  { %v5696_v47 = vadd.f32 %v10910_v37, %v9190_v41  ;;  %v5690_v12 = vpop.f32.mrb[77].mxu1  ;;  %v5706_v4 = vsel %vm140_vm4, %v5700_v54, 0.0  ;;  %v5774_v37 = vld [vmem:[%s15163_s0 + $0x2f8] sm:$0xff] }
0x2913   :  { %v5691_v20 = vadd.f32 %v9190_v41, %v5690_v12  ;;  %5707 = vadd.xlane.f32.xlu0 %v5706_v4  ;;  %v5703_v16 = vsel %vm140_vm4, %v5699_v8, 0.0  ;;  %v5776_v12 = vld [vmem:[%s15163_s0 + $0x308] sm:$0xff] }
0x2914   :  { %5704 = vadd.xlane.f32.xlu1 %v5703_v16  ;;  %v5702_v45 = vadd.f32 %v5696_v47, %v13939_v9  ;;  %v5775_v47 = vld [vmem:[%s15163_s0 + $0x300] sm:$0xff] }
0x2915   :  { %v5701_v50 = vadd.f32 %v5691_v20, %v13927_v14  ;;  %v14295_v4 = vpack.c.bf16 %v5776_v12, %v5775_v47 }
0x2916   :  { %v5712_v25 = vsel %vm140_vm4, %v5702_v45, 0.0 }
0x2917   :  { %5713 = vadd.xlane.f32.xlu0 %v5712_v25  ;;  %v5709_v61 = vsel %vm140_vm4, %v5701_v50, 0.0 }
0x2918   :  { %5710 = vadd.xlane.f32.xlu1 %v5709_v61 }
0x291c   :  { %4734 = vadd.xlane.f32.xlu1 %v4733_v39 }
0x29a0   :  { %v5708_v32 = vpop.xlane.xlu0 %5707 }
0x29a1   :  { %v5716_v2 = vmul.f32 0.03125, %v5708_v32  ;;  %v5705_v49 = vpop.xlane.xlu1 %5704 }
0x29a2   :  { %v5715_v9 = vmul.f32 0.03125, %v5705_v49 }
0x29a3   :  { %v5720_v58 = vsub.f32 %v5700_v54, %v5716_v2  ;;  %v5773_v54 = vld [vmem:[%s15163_s0 + $0x2f0] sm:$0xff] }
0x29a4   :  { %v5719_v14 = vsub.f32 %v5699_v8, %v5715_v9  ;;  %v5714_v59 = vpop.xlane.xlu0 %5713  ;;  %v14285_v8 = vpack.c.bf16 %v5774_v37, %v5773_v54  ;;  %v5881_v54 = vld [vmem:[%s15163_s0 + $0x328] sm:$0xff]  ;;  %v5882_v37 = vld [vmem:[%s15163_s0 + $0x330] sm:$0xff] }
0x29a5   :  { %v5718_v62 = vmul.f32 0.03125, %v5714_v59  ;;  %v5711_v63 = vpop.xlane.xlu1 %5710  ;;  %v5724_v42 = vmul.f32 %v5720_v58, %v5720_v58 }
0x29a6   :  { %v5717_v36 = vmul.f32 0.03125, %v5711_v63  ;;  %v5723_v35 = vmul.f32 %v5719_v14, %v5719_v14  ;;  %11970 = vmatprep.subr.bf16.mxu0 %v14285_v8 }
0x29a7   :  { %v5722_v19 = vsub.f32 %v5702_v45, %v5718_v62  ;;  %v5730_v22 = vsel %vm140_vm4, %v5724_v42, 0.0  ;;  %11972 = vmatpush3.bf16.msra.mxu0 %v14285_v8  ;;  %v9195_v62 = vld [vmem:[%s15163_s0 + $0x3d8] ss:$0 sm:$0xff] }
0x29a8   :  { %v5721_v23 = vsub.f32 %v5701_v50, %v5717_v36  ;;  %5731 = vadd.xlane.f32.xlu1 %v5730_v22  ;;  %v5727_v21 = vsel %vm140_vm4, %v5723_v35, 0.0  ;;  %11974 = vmatprep.subr.bf16.mxu0 %v14295_v4  ;;  %v9196_v35 = vld [vmem:[%s15163_s0 + $0x3e0] ss:$0 sm:$0xff] }
0x29a9   :  { %5728 = vadd.xlane.f32.xlu0 %v5727_v21  ;;  %v4735_v30 = vpop.xlane.xlu1 %4734  ;;  %v5726_v5 = vmul.f32 %v5722_v19, %v5722_v19  ;;  %v5879_v21 = vld [vmem:[%s15163_s0 + $0x318] sm:$0xff] }
0x29aa   :  { %v4736_v41 = vmul.f32 0.03125, %v4735_v30  ;;  %v5725_v43 = vmul.f32 %v5721_v23, %v5721_v23  ;;  %v5880_v30 = vld [vmem:[%s15163_s0 + $0x320] sm:$0xff] }
0x29ab   :  { %v5736_v17 = vsel %vm140_vm4, %v5726_v5, 0.0  ;;  %11976 = vmatpush3.bf16.msra.mxu0 %v14295_v4 }
0x29ac   :  { %v14273_v56 = vsub.f32 %v4732_v0, %v4736_v41  ;;  %5737 = vadd.xlane.f32.xlu1 %v5736_v17  ;;  %v5733_v10 = vsel %vm140_vm4, %v5725_v43, 0.0  ;;  %11977 = vmatprep.subr.bf16.mxu0 %v12642_v26 }
0x29ad   :  { %5734 = vadd.xlane.f32.xlu0 %v5733_v10 }
0x29ae   :  { %v4738_v40 = vmul.f32 %v14273_v56, %v14273_v56 }
0x29b0   :  { %v4739_v28 = vsel %vm140_vm4, %v4738_v40, 0.0 }
0x29b1   :  { %4740 = vadd.xlane.f32.xlu0 %v4739_v28 }
0x2a35   :  { %v5732_v20 = vpop.xlane.xlu1 %5731 }
0x2a36   :  { %v5740_v16 = vmul.f32 0.03125, %v5732_v20  ;;  %v5729_v27 = vpop.xlane.xlu0 %5728 }
0x2a37   :  { %v5739_v29 = vmul.f32 0.03125, %v5729_v27  ;;  %v9137_v27 = vld [vmem:[%s15163_s0 + $0x250] ss:$0 sm:$0xff] }
0x2a38   :  { %v5744_v45 = vadd.f32 1e-05, %v5740_v16  ;;  %v11981_v16 = vpack.c.bf16 %v5882_v37, %v5881_v54 }
0x2a39   :  { %v5743_v50 = vadd.f32 1e-05, %v5739_v29  ;;  %v5738_v25 = vpop.xlane.xlu1 %5737 }
0x2a3a   :  { %12400 = vrsqrt.f32 %v5744_v45  ;;  %v5742_v61 = vmul.f32 0.03125, %v5738_v25  ;;  %v5735_v24 = vpop.xlane.xlu0 %5734 }
0x2a3b   :  { %12402 = vrsqrt.f32 %v5743_v50  ;;  %v5741_v0 = vmul.f32 0.03125, %v5735_v24  ;;  %v12579_v50 = vld [vmem:[%s15163_s0 + $0x440] sm:$0xff] }
0x2a3c   :  { %v5746_v39 = vadd.f32 1e-05, %v5742_v61 }
0x2a3d   :  { %v5745_v32 = vadd.f32 1e-05, %v5741_v0 }
0x2a3e   :  { %12404 = vrsqrt.f32 %v5746_v39  ;;  %v4741_v2 = vpop.xlane.xlu0 %4740 }
0x2a3f   :  { %12406 = vrsqrt.f32 %v5745_v32  ;;  %v4742_v49 = vmul.f32 0.03125, %v4741_v2 }
0x2a41   :  { %v4743_v9 = vadd.f32 1e-05, %v4742_v49 }
0x2a43   :  { %12408 = vrsqrt.f32 %v4743_v9  ;;  %v12580_v9 = vld [vmem:[%s15163_s0 + $0x448] sm:$0xff] }
0x2a44   :  { %v12401_v59 = vpop.eup %12400 }
0x2a45   :  { %v12403_v63 = vpop.eup %12402  ;;  %v5752_v42 = vmul.f32 %v12401_v59, %v5720_v58  ;;  %v11978_v58 = vpack.c.bf16 %v5880_v30, %v5879_v21  ;;  %v12581_v59 = vld [vmem:[%s15163_s0 + $0x450] sm:$0xff] }
0x2a46   :  { %v5751_v36 = vmul.f32 %v12403_v63, %v5719_v14 }
0x2a47   :  { %v5761_v22 = vmul.f32 %v9195_v62, %v5752_v42  ;;  %v12583_v42 = vld [vmem:[%s15163_s0 + $0x468] sm:$0xff] }
0x2a48   :  { %v12405_v5 = vpop.eup %12404  ;;  %v5760_v41 = vmul.f32 %v9195_v62, %v5751_v36 }
0x2a49   :  { %v12407_v43 = vpop.eup %12406  ;;  %v5754_v17 = vmul.f32 %v12405_v5, %v5722_v19  ;;  %v14314_v40 = vadd.f32 %v9196_v35, %v5761_v22  ;;  %v12584_v22 = vld [vmem:[%s15163_s0 + $0x460] sm:$0xff] }
0x2a4a   :  { %v14312_v10 = vadd.f32 %v9196_v35, %v5760_v41  ;;  %v5753_v14 = vmul.f32 %v12407_v43, %v5721_v23  ;;  %v9136_v23 = vld [vmem:[%s15163_s0 + $0x248] ss:$0 sm:$0xff]  ;;  %v12585_v41 = vld [vmem:[%s15163_s0 + $0x478] sm:$0xff] }
0x2a4b   :  { %v5763_v28 = vmul.f32 %v9195_v62, %v5754_v17 }
0x2a4c   :  { %10919 = vmatprep.mubr.msk.f32.mxu0 %vm140_vm4, %v14312_v10  ;;  %v5762_v47 = vmul.f32 %v9195_v62, %v5753_v14  ;;  %v12582_v62 = vld [vmem:[%s15163_s0 + $0x458] sm:$0xff] }
0x2a4d   :  { %v12409_v19 = vpop.eup %12408  ;;  %10920 = vmatmul.mubr.msk.f32.vlgmr.msra.gmra.mrb[92].mxu0 %vm140_vm4, %v14314_v40  ;;  %v14335_v29 = vadd.f32 %v9196_v35, %v5763_v28 }
0x2a4e   :  { %v4745_v12 = vmul.f32 %v12409_v19, %v14273_v56  ;;  %11979 = vmatpush3.bf16.msra.mxu0 %v11978_v58  ;;  %v14330_v20 = vadd.f32 %v9196_v35, %v5762_v47  ;;  %v12586_v58 = vld [vmem:[%s15163_s0 + $0x470] sm:$0xff] }
0x2a4f   :  { %11980 = vmatprep.subr.bf16.mxu0 %v12642_v26  ;;  %v9197_v26 = vld [vmem:[%s15163_s0 + $0x310] ss:$0 sm:$0xff] }
0x2a50   :  { %v4751_v45 = vmul.f32 %v9136_v23, %v4745_v12  ;;  %10922 = vmatprep.mubr.msk.f32.mxu0 %vm140_vm4, %v14330_v20  ;;  %v6164_v23 = vld [vmem:[%s15163_s0 + $0x740] sm:$0xff] }
0x2a51   :  { %10923 = vmatmul.mubr.msk.f32.gmra.mrb[94].mxu0 %vm140_vm4, %v14335_v29 }
0x2a52   :  { %v4757_v56 = vadd.f32 %v9137_v27, %v4751_v45  ;;  %11982 = vmatpush3.bf16.msra.mxu0 %v11981_v16  ;;  %10933 = vmatprep.mubr.msk.f32.mxu0 %vm12643_vm7, %v12644_v44  ;;  %v9202_v44 = vld [vmem:[%s15163_s0 + $0x338] ss:$0 sm:$0xff] }
0x2a53   :  { %v6163_v27 = vld [vmem:[%s15163_s0 + $0x738] sm:$0xff] }
0x2a55   :  { %10934 = vmatmul.mubr.msk.f32.vlgmr.msra.gmra.mrb[96].mxu0 %vm140_vm4, %v4757_v56 }
0x2a56   :  { %10938 = vmatprep.mubr.msk.f32.mxu0 %vm4103_vm10, %v12579_v50 }
0x2b20   :  { %v10921_v25 = vpop.f32.mrb[92].mxu0 }
0x2b21   :  { %v5860_v61 = vpop.f32.mrb[93].mxu0  ;;  %v5866_v54 = vadd.f32 %v10921_v25, %v9197_v26 }
0x2b22   :  { %v5861_v24 = vadd.f32 %v9197_v26, %v5860_v61 }
0x2b24   :  { %v10924_v0 = vpop.f32.mrb[94].mxu0  ;;  %10952 = vmatprep.mubr.msk.f32.mxu1 %vm573_vm5, %v5861_v24 }
0x2b25   :  { %v5870_v39 = vpop.f32.mrb[95].mxu0  ;;  %v5876_v47 = vadd.f32 %v10924_v0, %v9197_v26 }
0x2b26   :  { %v5871_v37 = vadd.f32 %v9197_v26, %v5870_v39  ;;  %v6166_v26 = vld [vmem:[%s15163_s0 + $0x750] sm:$0xff]  ;;  %v6165_v39 = vld [vmem:[%s15163_s0 + $0x748] sm:$0xff] }
0x2b28   :  { %v5957_v32 = vpop.f32.mrb[96].mxu0 }
0x2b29   :  { %v5958_v2 = vadd.f32 %v9202_v44, %v5957_v32  ;;  %v10935_v49 = vpop.f32.mrb[97].mxu0 }
0x2b2b   :  { %10936 = vmatprep.subr.mxu0 %v5958_v2 }
0x2b2c   :  { %10937 = vmatpush3.msra.mxu0 %v5958_v2 }
0x2b2d   :  { %10939 = vmatmul.mubr.msk.f32.vlgmr.msra.gmra.mrb[98].mxu0 %vm4103_vm10, %v12580_v9  ;;  %11996 = vmatprep.subr.bf16.mxu0 %v13802_v34 }
0x2b2e   :  { %10941 = vmatprep.mubr.msk.f32.mxu0 %vm4103_vm10, %v12581_v59  ;;  %11998 = vmatpush3.bf16.msra.mxu0 %v13802_v34 }
0x2b2f   :  { %12000 = vmatprep.subr.bf16.mxu0 %v13808_v33 }
0x2b31   :  { %10942 = vmatmul.mubr.msk.f32.gmra.mrb[100].mxu0 %vm4103_vm10, %v12582_v62 }
0x2b32   :  { %12002 = vmatpush3.bf16.msra.mxu0 %v13808_v33 }
0x2c00   :  { %v10940_v63 = vpop.f32.mrb[98].mxu0 }
0x2c01   :  { %v6047_v36 = vmul.f32 %v12583_v42, %v10940_v63  ;;  %v6027_v35 = vpop.f32.mrb[99].mxu0 }
0x2c02   :  { %v6046_v21 = vmul.f32 %v12584_v22, %v6027_v35 }
0x2c04   :  { %v14378_v30 = vpack.c.bf16 %v6047_v36, %v6046_v21  ;;  %v10943_v5 = vpop.f32.mrb[100].mxu0 }
0x2c05   :  { %v6049_v43 = vmul.f32 %v12585_v41, %v10943_v5  ;;  %v6037_v17 = vpop.f32.mrb[101].mxu0 }
0x2c06   :  { %11985 = vmatprep.subr.msk.bf16.mxu1 %vm12945_vm6, %v14378_v30  ;;  %12004 = vmatprep.subr.bf16.mxu0 %v14378_v30  ;;  %v6048_v14 = vmul.f32 %v12586_v58, %v6037_v17 }
0x2c07   :  { %11988 = vmatpush3.bf16.xpose.msk.msra.mxu1 %vm12945_vm6, %v14378_v30 }
0x2c08   :  { %v14393_v28 = vpack.c.bf16 %v6049_v43, %v6048_v14 }
0x2c0a   :  { %11991 = vmatprep.subr.msk.bf16.mxu1 %vm12945_vm6, %v14393_v28 }
0x2c0f   :  { %11994 = vmatpush3.bf16.xpose.msk.msra.mxu1 %vm12945_vm6, %v14393_v28 }
0x2c16   :  { %10953 = vmatmul.mubr.msk.f32.vlgmr.msra.gmra.mrb[78].mxu1 %vm573_vm5, %v5866_v54 }
0x2c17   :  { %10955 = vmatprep.mubr.msk.f32.mxu1 %vm573_vm5, %v5871_v37 }
0x2c1a   :  { %10956 = vmatmul.mubr.msk.f32.gmra.mrb[80].mxu1 %vm573_vm5, %v5876_v47 }
0x2ce9   :  { %v10954_v19 = vpop.f32.mrb[78].mxu1 }
0x2cea   :  { %v6160_v12 = vmul.f32 0.35355338, %v10954_v19  ;;  %v6140_v16 = vpop.f32.mrb[79].mxu1  ;;  %v6397_v19 = vld [vmem:[%s15163_s0 + $0x340] sm:$0xff] }
0x2ceb   :  { %v6159_v45 = vmul.f32 0.35355338, %v6140_v16 }
0x2cec   :  { %v6168_v56 = vadd.f32 %v6164_v23, %v6160_v12  ;;  %v6398_v23 = vld [vmem:[%s15163_s0 + $0x348] sm:$0xff]  ;;  %v6399_v12 = vld [vmem:[%s15163_s0 + $0x350] sm:$0xff] }
0x2ced   :  { %v10957_v50 = vpop.f32.mrb[80].mxu1  ;;  %v6167_v25 = vadd.f32 %v6163_v27, %v6159_v45  ;;  %v14436_v16 = vpack.c.bf16 %v6398_v23, %v6397_v19  ;;  %v6400_v27 = vld [vmem:[%s15163_s0 + $0x358] sm:$0xff] }
0x2cee   :  { %v6162_v61 = vmul.f32 0.35355338, %v10957_v50  ;;  %v6150_v24 = vpop.f32.mrb[81].mxu1  ;;  %v6174_v0 = vsel %vm140_vm4, %v6168_v56, -inf  ;;  %v14441_v45 = vpack.c.bf16 %v6400_v27, %v6399_v12  ;;  %v6402_v50 = vld [vmem:[%s15163_s0 + $0x368] sm:$0xff] }
0x2cef   :  { %v6161_v44 = vmul.f32 0.35355338, %v6150_v24  ;;  %6175 = vmax.xlane.f32.xlu0 %v6174_v0  ;;  %v6171_v32 = vsel %vm140_vm4, %v6167_v25, -inf  ;;  %12012 = vmatprep.subr.bf16.mxu1 %v14436_v16 }
0x2cf0   :  { %6172 = vmax.xlane.f32.xlu1 %v6171_v32  ;;  %v6170_v2 = vadd.f32 %v6166_v26, %v6162_v61  ;;  %12014 = vmatpush3.bf16.msra.mxu1 %v14436_v16  ;;  %v6403_v26 = vld [vmem:[%s15163_s0 + $0x370] sm:$0xff]  ;;  %v6404_v61 = vld [vmem:[%s15163_s0 + $0x378] sm:$0xff] }
0x2cf1   :  { %v6169_v49 = vadd.f32 %v6165_v39, %v6161_v44  ;;  %12016 = vmatprep.subr.bf16.mxu1 %v14441_v45  ;;  %v14462_v24 = vpack.c.bf16 %v6404_v61, %v6403_v26 }
0x2cf2   :  { %v6180_v9 = vsel %vm140_vm4, %v6170_v2, -inf }
0x2cf3   :  { %6181 = vmax.xlane.f32.xlu0 %v6180_v9  ;;  %v6177_v59 = vsel %vm140_vm4, %v6169_v49, -inf  ;;  %15186 = vst [vmem:[#allocation3_spill] sm:$0xff] %v14462_v24 }
0x2cf4   :  { %6178 = vmax.xlane.f32.xlu1 %v6177_v59  ;;  %12018 = vmatpush3.bf16.msra.mxu1 %v14441_v45 }
0x2d7c   :  { %v6176_v62 = vpop.xlane.xlu0 %6175 }
0x2d7d   :  { %v6184_v63 = vsub.f32 %v6168_v56, %v6176_v62  ;;  %v6173_v42 = vpop.xlane.xlu1 %6172  ;;  %v6401_v56 = vld [vmem:[%s15163_s0 + $0x360] sm:$0xff] }
0x2d7e   :  { %v6183_v36 = vsub.f32 %v6167_v25, %v6173_v42  ;;  %v14452_v25 = vpack.c.bf16 %v6402_v50, %v6401_v56 }
0x2d7f   :  { %v6189_v35 = vmul.f32 1.442695, %v6184_v63 }
0x2d80   :  { %v6187_v22 = vmul.f32 1.442695, %v6183_v36  ;;  %v6182_v21 = vpop.xlane.xlu0 %6181  ;;  %15185 = vst [vmem:[#allocation2_spill] sm:$0xff] %v14452_v25  ;;  %12020 = vmatprep.subr.bf16.mxu1 %v14452_v25 }
0x2d81   :  { %v6186_v5 = vsub.f32 %v6170_v2, %v6182_v21  ;;  %v6179_v41 = vpop.xlane.xlu1 %6178  ;;  %12022 = vmatpush3.bf16.msra.mxu1 %v14452_v25 }
0x2d82   :  { %12410 = vpow2.f32 %v6187_v22  ;;  %v6185_v43 = vsub.f32 %v6169_v49, %v6179_v41  ;;  %12024 = vmatprep.subr.bf16.mxu1 %v14462_v24  ;;  %v9224_v41 = vld [vmem:[%s15163_s0 + $0x380] ss:$0 sm:$0xff] }
0x2d83   :  { %12412 = vpow2.f32 %v6189_v35  ;;  %v6193_v17 = vmul.f32 1.442695, %v6186_v5 }
0x2d84   :  { %v6191_v58 = vmul.f32 1.442695, %v6185_v43 }
0x2d85   :  { %12026 = vmatpush3.bf16.msra.mxu1 %v14462_v24 }
0x2d86   :  { %12414 = vpow2.f32 %v6191_v58  ;;  %12044 = vmatprep.subr.bf16.mxu1 %v13889_v51 }
0x2d87   :  { %12416 = vpow2.f32 %v6193_v17 }
0x2d8c   :  { %v12411_v14 = vpop.eup %12410 }
0x2d8d   :  { %v12413_v54 = vpop.eup %12412  ;;  %10966 = vmatprep.mubr.msk.f32.mxu0 %vm140_vm4, %v12411_v14 }
0x2d8e   :  { %10967 = vmatmul.mubr.msk.f32.vlgmr.msra.gmra.mrb[102].mxu0 %vm140_vm4, %v12413_v54 }
0x2d8f   :  { %12006 = vmatpush3.bf16.msra.mxu0 %v14378_v30 }
0x2d90   :  { %v12415_v37 = vpop.eup %12414  ;;  %12008 = vmatprep.subr.bf16.mxu0 %v14393_v28 }
0x2d91   :  { %v12417_v47 = vpop.eup %12416  ;;  %10969 = vmatprep.mubr.msk.f32.mxu0 %vm140_vm4, %v12415_v37 }
0x2d92   :  { %10970 = vmatmul.mubr.msk.f32.gmra.mrb[104].mxu0 %vm140_vm4, %v12417_v47 }
0x2d93   :  { %12010 = vmatpush3.bf16.msra.mxu0 %v14393_v28 }
0x2e61   :  { %v10968_v0 = vpop.f32.mrb[102].mxu0 }
0x2e62   :  { %12418 = vrcp.f32 %v10968_v0  ;;  %v6273_v39 = vpop.f32.mrb[103].mxu0 }
0x2e63   :  { %12420 = vrcp.f32 %v6273_v39 }
0x2e65   :  { %v10971_v44 = vpop.f32.mrb[104].mxu0 }
0x2e66   :  { %12422 = vrcp.f32 %v10971_v44  ;;  %v6283_v32 = vpop.f32.mrb[105].mxu0 }
0x2e67   :  { %12424 = vrcp.f32 %v6283_v32 }
0x2e6c   :  { %v12419_v2 = vpop.eup %12418 }
0x2e6d   :  { %v12421_v49 = vpop.eup %12420  ;;  %v6297_v59 = vmul.f32 %v12419_v2, %v12413_v54 }
0x2e6e   :  { %v6296_v9 = vmul.f32 %v12421_v49, %v12411_v14 }
0x2e70   :  { %v12423_v62 = vpop.eup %12422  ;;  %10980 = vmatprep.mubr.msk.f32.mxu0 %vm140_vm4, %v6296_v9 }
0x2e71   :  { %v12425_v63 = vpop.eup %12424  ;;  %10981 = vmatmul.mubr.msk.f32.vlgmr.msra.gmra.mrb[106].mxu0 %vm140_vm4, %v6297_v59  ;;  %v6299_v36 = vmul.f32 %v12423_v62, %v12417_v47 }
0x2e72   :  { %v6298_v42 = vmul.f32 %v12425_v63, %v12415_v37 }
0x2e74   :  { %10983 = vmatprep.mubr.msk.f32.mxu0 %vm140_vm4, %v6298_v42 }
0x2e75   :  { %10984 = vmatmul.mubr.msk.f32.gmra.mrb[108].mxu0 %vm140_vm4, %v6299_v36 }
0x2f44   :  { %v10982_v35 = vpop.f32.mrb[106].mxu0 }
0x2f45   :  { %v6378_v22 = vpop.f32.mrb[107].mxu0 }
0x2f46   :  { %11002 = vmatprep.mubr.msk.f32.mxu1 %vm573_vm5, %v6378_v22 }
0x2f47   :  { %11003 = vmatmul.mubr.msk.f32.vlgmr.msra.gmra.mrb[82].mxu1 %vm573_vm5, %v10982_v35 }
0x2f48   :  { %v10985_v21 = vpop.f32.mrb[108].mxu0  ;;  %12046 = vmatpush3.bf16.msra.mxu1 %v13889_v51 }
0x2f49   :  { %v6388_v5 = vpop.f32.mrb[109].mxu0  ;;  %12048 = vmatprep.subr.bf16.mxu1 %v13905_v52 }
0x2f4a   :  { %11005 = vmatprep.mubr.msk.f32.mxu1 %vm573_vm5, %v6388_v5  ;;  %v6581_v5 = vld [vmem:[%s15163_s0 + $0x388] sm:$0xff] }
0x2f4b   :  { %11006 = vmatmul.mubr.msk.f32.gmra.mrb[84].mxu1 %vm573_vm5, %v10985_v21 }
0x2f4c   :  { %12050 = vmatpush3.bf16.msra.mxu1 %v13905_v52 }
0x301a   :  { %v11004_v43 = vpop.f32.mrb[82].mxu1 }
0x301b   :  { %v6494_v17 = vadd.f32 %v11004_v43, %v9224_v41  ;;  %v6488_v58 = vpop.f32.mrb[83].mxu1 }
0x301c   :  { %v6489_v14 = vadd.f32 %v9224_v41, %v6488_v58  ;;  %v6584_v58 = vld [vmem:[%s15163_s0 + $0x3a0] sm:$0xff] }
0x301d   :  { %v6508_v54 = vadd.f32 %v6494_v17, %v14314_v40  ;;  %v6583_v17 = vld [vmem:[%s15163_s0 + $0x398] sm:$0xff] }
0x301e   :  { %v11007_v51 = vpop.f32.mrb[84].mxu1  ;;  %v6507_v37 = vadd.f32 %v6489_v14, %v14312_v10  ;;  %v14510_v14 = vpack.c.bf16 %v6584_v58, %v6583_v17  ;;  %v6798_v17 = vld [vmem:[%s15163_s0 + $0x3c8] sm:$0xff] }
0x301f   :  { %v6504_v47 = vadd.f32 %v11007_v51, %v9224_v41  ;;  %v6498_v19 = vpop.f32.mrb[85].mxu1  ;;  %v6514_v23 = vsel %vm140_vm4, %v6508_v54, 0.0 }
0x3020   :  { %v6499_v12 = vadd.f32 %v9224_v41, %v6498_v19  ;;  %6515 = vadd.xlane.f32.xlu0 %v6514_v23  ;;  %v6511_v52 = vsel %vm140_vm4, %v6507_v37, 0.0  ;;  %v6582_v41 = vld [vmem:[%s15163_s0 + $0x390] sm:$0xff]  ;;  %15188 = vst [vmem:[#allocation5_spill] sm:$0xff] %v14510_v14 }
0x3021   :  { %6512 = vadd.xlane.f32.xlu1 %v6511_v52  ;;  %v6510_v27 = vadd.f32 %v6504_v47, %v14335_v29  ;;  %v14500_v43 = vpack.c.bf16 %v6582_v41, %v6581_v5  ;;  %v6797_v41 = vld [vmem:[%s15163_s0 + $0x3c0] sm:$0xff] }
0x3022   :  { %v6509_v56 = vadd.f32 %v6499_v12, %v14330_v20  ;;  %v14552_v58 = vpack.c.bf16 %v6798_v17, %v6797_v41 }
0x3023   :  { %v6520_v50 = vsel %vm140_vm4, %v6510_v27, 0.0  ;;  %15187 = vst [vmem:[#allocation4_spill] sm:$0xff] %v14500_v43  ;;  %12028 = vmatprep.subr.bf16.mxu0 %v14500_v43 }
0x3024   :  { %6521 = vadd.xlane.f32.xlu0 %v6520_v50  ;;  %v6517_v40 = vsel %vm140_vm4, %v6509_v56, 0.0  ;;  %12030 = vmatpush3.bf16.msra.mxu0 %v14500_v43  ;;  %15190 = vst [vmem:[#allocation7_spill] sm:$0xff] %v14552_v58 }
0x3025   :  { %6518 = vadd.xlane.f32.xlu1 %v6517_v40  ;;  %12032 = vmatprep.subr.bf16.mxu0 %v14510_v14 }
0x3028   :  { %12034 = vmatpush3.bf16.msra.mxu0 %v14510_v14 }
0x30ad   :  { %v6516_v10 = vpop.xlane.xlu0 %6515 }
0x30ae   :  { %v6524_v26 = vmul.f32 0.03125, %v6516_v10  ;;  %v6513_v61 = vpop.xlane.xlu1 %6512 }
0x30af   :  { %v6523_v0 = vmul.f32 0.03125, %v6513_v61 }
0x30b0   :  { %v6528_v39 = vsub.f32 %v6508_v54, %v6524_v26  ;;  %v9229_v26 = vld [vmem:[%s15163_s0 + $0x3e8] ss:$0 sm:$0xff] }
0x30b1   :  { %v6527_v44 = vsub.f32 %v6507_v37, %v6523_v0  ;;  %v6522_v32 = vpop.xlane.xlu0 %6521 }
0x30b2   :  { %v6526_v2 = vmul.f32 0.03125, %v6522_v32  ;;  %v6519_v49 = vpop.xlane.xlu1 %6518  ;;  %v6532_v9 = vmul.f32 %v6528_v39, %v6528_v39 }
0x30b3   :  { %v6525_v59 = vmul.f32 0.03125, %v6519_v49  ;;  %v6531_v29 = vmul.f32 %v6527_v44, %v6527_v44 }
0x30b4   :  { %v6530_v62 = vsub.f32 %v6510_v27, %v6526_v2  ;;  %v6538_v20 = vsel %vm140_vm4, %v6532_v9, 0.0  ;;  %v9230_v2 = vld [vmem:[%s15163_s0 + $0x3f0] ss:$0 sm:$0xff] }
0x30b5   :  { %v6529_v63 = vsub.f32 %v6509_v56, %v6525_v59  ;;  %6539 = vadd.xlane.f32.xlu0 %v6538_v20  ;;  %v6535_v42 = vsel %vm140_vm4, %v6531_v29, 0.0 }
0x30b6   :  { %6536 = vadd.xlane.f32.xlu1 %v6535_v42  ;;  %v6534_v36 = vmul.f32 %v6530_v62, %v6530_v62 }
0x30b7   :  { %v6533_v35 = vmul.f32 %v6529_v63, %v6529_v63 }
0x30b8   :  { %v6544_v22 = vsel %vm140_vm4, %v6534_v36, 0.0 }
0x30b9   :  { %6545 = vadd.xlane.f32.xlu0 %v6544_v22  ;;  %v6541_v21 = vsel %vm140_vm4, %v6533_v35, 0.0 }
0x30ba   :  { %6542 = vadd.xlane.f32.xlu1 %v6541_v21 }
0x3142   :  { %v6540_v54 = vpop.xlane.xlu0 %6539 }
0x3143   :  { %v6548_v51 = vmul.f32 0.03125, %v6540_v54  ;;  %v6537_v37 = vpop.xlane.xlu1 %6536  ;;  %v9231_v54 = vld [vmem:[%s15163_s0 + $0x3a8] ss:$0 sm:$0xff] }
0x3144   :  { %v6547_v47 = vmul.f32 0.03125, %v6537_v37 }
0x3145   :  { %v6552_v19 = vadd.f32 1e-05, %v6548_v51 }
0x3146   :  { %v6551_v23 = vadd.f32 1e-05, %v6547_v47  ;;  %v6546_v12 = vpop.xlane.xlu0 %6545 }
0x3147   :  { %12426 = vrsqrt.f32 %v6552_v19  ;;  %v6550_v52 = vmul.f32 0.03125, %v6546_v12  ;;  %v6543_v27 = vpop.xlane.xlu1 %6542 }
0x3148   :  { %12428 = vrsqrt.f32 %v6551_v23  ;;  %v6549_v56 = vmul.f32 0.03125, %v6543_v27 }
0x3149   :  { %v6554_v50 = vadd.f32 1e-05, %v6550_v52 }
0x314a   :  { %v6553_v40 = vadd.f32 1e-05, %v6549_v56 }
0x314b   :  { %12430 = vrsqrt.f32 %v6554_v50 }
0x314c   :  { %12432 = vrsqrt.f32 %v6553_v40 }
0x3151   :  { %v12427_v10 = vpop.eup %12426 }
0x3152   :  { %v12429_v61 = vpop.eup %12428  ;;  %v6560_v0 = vmul.f32 %v12427_v10, %v6528_v39 }
0x3153   :  { %v6559_v32 = vmul.f32 %v12429_v61, %v6527_v44 }
0x3154   :  { %v6569_v49 = vmul.f32 %v9229_v26, %v6560_v0 }
0x3155   :  { %v12431_v9 = vpop.eup %12430  ;;  %v6568_v59 = vmul.f32 %v9229_v26, %v6559_v32 }
0x3156   :  { %v12433_v29 = vpop.eup %12432  ;;  %v6562_v20 = vmul.f32 %v12431_v9, %v6530_v62  ;;  %v14522_v35 = vadd.f32 %v9230_v2, %v6569_v49  ;;  %v6795_v62 = vld [vmem:[%s15163_s0 + $0x3b0] sm:$0xff] }
0x3157   :  { %v14520_v42 = vadd.f32 %v9230_v2, %v6568_v59  ;;  %v6561_v36 = vmul.f32 %v12433_v29, %v6529_v63  ;;  %v6796_v63 = vld [vmem:[%s15163_s0 + $0x3b8] sm:$0xff] }
0x3158   :  { %v6571_v22 = vmul.f32 %v9229_v26, %v6562_v20  ;;  %v14542_v5 = vpack.c.bf16 %v6796_v63, %v6795_v62 }
0x3159   :  { %11016 = vmatprep.mubr.msk.f32.mxu0 %vm140_vm4, %v14520_v42  ;;  %v6570_v39 = vmul.f32 %v9229_v26, %v6561_v36 }
0x315a   :  { %11017 = vmatmul.mubr.msk.f32.vlgmr.msra.gmra.mrb[110].mxu0 %vm140_vm4, %v14522_v35  ;;  %v14530_v21 = vadd.f32 %v9230_v2, %v6571_v22  ;;  %15189 = vst [vmem:[#allocation6_spill] sm:$0xff] %v14542_v5  ;;  %12036 = vmatprep.subr.bf16.mxu0 %v14542_v5 }
0x315b   :  { %v14528_v44 = vadd.f32 %v9230_v2, %v6570_v39  ;;  %12038 = vmatpush3.bf16.msra.mxu0 %v14542_v5 }
0x315c   :  { %12040 = vmatprep.subr.bf16.mxu0 %v14552_v58 }
0x315d   :  { %11019 = vmatprep.mubr.msk.f32.mxu0 %vm140_vm4, %v14528_v44 }
0x315e   :  { %11020 = vmatmul.mubr.msk.f32.gmra.mrb[112].mxu0 %vm140_vm4, %v14530_v21 }
0x315f   :  { %12042 = vmatpush3.bf16.msra.mxu0 %v14552_v58 }
0x3160   :  { %12052 = vmatprep.subr.bf16.mxu0 %v13918_v13 }
0x322d   :  { %v11018_v51 = vpop.f32.mrb[110].mxu0 }
0x322e   :  { %v14560_v37 = vadd.f32 %v11018_v51, %v9231_v54  ;;  %v6668_v47 = vpop.f32.mrb[111].mxu0 }
0x322f   :  { %v14562_v19 = vadd.f32 %v9231_v54, %v6668_v47 }
0x3230   :  { %v14565_v23 = vmul.f32 0.70710677, %v14560_v37 }
0x3231   :  { %v14568_v12 = vmul.f32 0.70710677, %v14562_v19  ;;  %v11021_v52 = vpop.f32.mrb[112].mxu0 }
0x3232   :  { %v6704_v27 = vand.u32 2147483647, %v14565_v23  ;;  %v14571_v56 = vadd.f32 %v11021_v52, %v9231_v54  ;;  %v6678_v50 = vpop.f32.mrb[113].mxu0  ;;  %vm6696_vm3 = vcmp.ge.f32.partialorder %v14565_v23, 0.0 }
0x3233   :  { %v6703_v40 = vand.u32 2147483647, %v14568_v12  ;;  %v14574_v10 = vadd.f32 %v9231_v54, %v6678_v50  ;;  %vm6695_vm11 = vcmp.ge.f32.partialorder %v14568_v12, 0.0 }
0x3234   :  { %v6708_v26 = vmul.f32 0.3275911, %v6704_v27  ;;  %v14577_v0 = vmul.f32 0.70710677, %v14571_v56  ;;  %v6760_v22 = vsub.f32 0.0, %v6704_v27 }
0x3235   :  { %v6707_v61 = vmul.f32 0.3275911, %v6703_v40  ;;  %v14580_v2 = vmul.f32 0.70710677, %v14574_v10  ;;  %v6759_v62 = vsub.f32 0.0, %v6703_v40 }
0x3236   :  { %v6712_v32 = vadd.f32 1.0, %v6708_v26  ;;  %v6706_v9 = vand.u32 2147483647, %v14577_v0  ;;  %v6764_v41 = vmul.f32 %v6760_v22, %v6704_v27  ;;  %vm6698_vm12 = vcmp.ge.f32.partialorder %v14577_v0, 0.0 }
0x3237   :  { %v6711_v49 = vadd.f32 1.0, %v6707_v61  ;;  %v6705_v29 = vand.u32 2147483647, %v14580_v2  ;;  %v6763_v51 = vmul.f32 %v6759_v62, %v6703_v40  ;;  %vm6697_vm13 = vcmp.ge.f32.partialorder %v14580_v2, 0.0 }
0x3238   :  { %12434 = vrcp.f32 %v6712_v32  ;;  %v6710_v59 = vmul.f32 0.3275911, %v6706_v9  ;;  %v6762_v47 = vsub.f32 0.0, %v6706_v9  ;;  %v6769_v26 = vmul.f32 1.442695, %v6764_v41 }
0x3239   :  { %12436 = vrcp.f32 %v6711_v49  ;;  %v6709_v36 = vmul.f32 0.3275911, %v6705_v29  ;;  %v6761_v32 = vsub.f32 0.0, %v6705_v29  ;;  %v6690_v2 = vmul.f32 0.5, %v14571_v56 }
0x323a   :  { %v6714_v20 = vadd.f32 1.0, %v6710_v59  ;;  %v6767_v59 = vmul.f32 1.442695, %v6763_v51  ;;  %v6766_v58 = vmul.f32 %v6762_v47, %v6706_v9 }
0x323b   :  { %v6713_v39 = vadd.f32 1.0, %v6709_v36  ;;  %v6765_v22 = vmul.f32 %v6761_v32, %v6705_v29 }
0x323c   :  { %12438 = vrcp.f32 %v6714_v20  ;;  %v6773_v40 = vmul.f32 1.442695, %v6766_v58 }
0x323d   :  { %12440 = vrcp.f32 %v6713_v39  ;;  %v6771_v51 = vmul.f32 1.442695, %v6765_v22 }
0x323e   :  { %12442 = vpow2.f32 %v6769_v26 }
0x323f   :  { %12444 = vpow2.f32 %v6767_v59 }
0x3240   :  { %12446 = vpow2.f32 %v6773_v40 }
0x3241   :  { %12448 = vpow2.f32 %v6771_v51 }
0x3242   :  { %v12435_v63 = vpop.eup %12434 }
0x3243   :  { %v12437_v17 = vpop.eup %12436  ;;  %v6724_v54 = vmul.f32 1.0614054, %v12435_v63 }
0x3244   :  { %v6723_v52 = vmul.f32 1.0614054, %v12437_v17 }
0x3245   :  { %v6728_v50 = vadd.f32 -1.4531521, %v6724_v54 }
0x3246   :  { %v6727_v61 = vadd.f32 -1.4531521, %v6723_v52  ;;  %v12439_v49 = vpop.eup %12438 }
0x3247   :  { %v6732_v46 = vmul.f32 %v12435_v63, %v6728_v50  ;;  %v6726_v5 = vmul.f32 1.0614054, %v12439_v49  ;;  %v12441_v14 = vpop.eup %12440 }
0x3248   :  { %v6731_v20 = vmul.f32 %v12437_v17, %v6727_v61  ;;  %v6725_v62 = vmul.f32 1.0614054, %v12441_v14  ;;  %v12443_v59 = vpop.eup %12442 }
0x3249   :  { %v6736_v36 = vadd.f32 1.4214138, %v6732_v46  ;;  %v6730_v27 = vadd.f32 -1.4531521, %v6726_v5 }
0x324a   :  { %v6735_v39 = vadd.f32 1.4214138, %v6731_v20  ;;  %v6729_v24 = vadd.f32 -1.4531521, %v6725_v62 }
0x324b   :  { %v6740_v43 = vmul.f32 %v12435_v63, %v6736_v36  ;;  %v6734_v41 = vmul.f32 %v12439_v49, %v6730_v27 }
0x324c   :  { %v6739_v54 = vmul.f32 %v12437_v17, %v6735_v39  ;;  %v6733_v47 = vmul.f32 %v12441_v14, %v6729_v24 }
0x324d   :  { %v6744_v52 = vadd.f32 -0.28449672, %v6740_v43  ;;  %v6738_v50 = vadd.f32 1.4214138, %v6734_v41  ;;  %v12445_v43 = vpop.eup %12444 }
0x324e   :  { %v6743_v25 = vadd.f32 -0.28449672, %v6739_v54  ;;  %v6737_v20 = vadd.f32 1.4214138, %v6733_v47  ;;  %v15191_v54 = vmov -1.0  }
0x324f   :  { %v6748_v9 = vmul.f32 %v12435_v63, %v6744_v52  ;;  %v6742_v61 = vmul.f32 %v12439_v49, %v6738_v50  ;;  %v6700_v41 = vsel %vm6696_vm3, 1.0, %v15191_v54  ;;  %v6701_v0 = vsel %vm6697_vm13, 1.0, %v15191_v54 }
0x3250   :  { %v6747_v46 = vmul.f32 %v12437_v17, %v6743_v25  ;;  %v6741_v58 = vmul.f32 %v12441_v14, %v6737_v20 }
0x3251   :  { %v6752_v26 = vadd.f32 0.2548296, %v6748_v9  ;;  %v6746_v29 = vadd.f32 -0.28449672, %v6742_v61 }
0x3252   :  { %v6751_v5 = vadd.f32 0.2548296, %v6747_v46  ;;  %v6745_v22 = vadd.f32 -0.28449672, %v6741_v58 }
0x3253   :  { %v6756_v32 = vmul.f32 %v12435_v63, %v6752_v26  ;;  %v6750_v39 = vmul.f32 %v12439_v49, %v6746_v29  ;;  %v12447_v63 = vpop.eup %12446  ;;  %v6687_v26 = vmul.f32 0.5, %v14562_v19  ;;  %v6688_v29 = vmul.f32 0.5, %v14560_v37 }
0x3254   :  { %v6755_v36 = vmul.f32 %v12437_v17, %v6751_v5  ;;  %v6749_v62 = vmul.f32 %v12441_v14, %v6745_v22  ;;  %v6699_v17 = vsel %vm6695_vm11, 1.0, %v15191_v54  ;;  %v12449_v12 = vpop.eup %12448  ;;  %v6689_v37 = vmul.f32 0.5, %v14574_v10 }
0x3255   :  { %v6776_v27 = vmul.f32 %v12443_v59, %v6756_v32  ;;  %v6754_v25 = vadd.f32 0.2548296, %v6750_v39 }
0x3256   :  { %v6775_v24 = vmul.f32 %v12445_v43, %v6755_v36  ;;  %v6753_v9 = vadd.f32 0.2548296, %v6749_v62 }
0x3257   :  { %v6780_v40 = vsub.f32 1.0, %v6776_v27  ;;  %v6758_v50 = vmul.f32 %v12439_v49, %v6754_v25  ;;  %v6702_v49 = vsel %vm6698_vm12, 1.0, %v15191_v54 }
0x3258   :  { %v6779_v52 = vsub.f32 1.0, %v6775_v24  ;;  %v6757_v61 = vmul.f32 %v12441_v14, %v6753_v9  ;;  %v9236_v24 = vld [vmem:[%s15163_s0 + $0x3d0] ss:$0 sm:$0xff] }
0x3259   :  { %v6784_v51 = vmul.f32 %v6780_v40, %v6700_v41  ;;  %v6778_v23 = vmul.f32 %v12447_v63, %v6758_v50 }
0x325a   :  { %v6783_v47 = vmul.f32 %v6779_v52, %v6699_v17  ;;  %v6777_v32 = vmul.f32 %v12449_v12, %v6757_v61 }
0x325b   :  { %v6788_v46 = vadd.f32 1.0, %v6784_v51  ;;  %v6782_v5 = vsub.f32 1.0, %v6778_v23 }
0x325c   :  { %v6787_v20 = vadd.f32 1.0, %v6783_v47  ;;  %v6781_v39 = vsub.f32 1.0, %v6777_v32 }
0x325d   :  { %v6786_v59 = vmul.f32 %v6782_v5, %v6702_v49  ;;  %v6792_v36 = vmul.f32 %v6788_v46, %v6688_v29 }
0x325e   :  { %v6791_v58 = vmul.f32 %v6787_v20, %v6687_v26  ;;  %v6785_v14 = vmul.f32 %v6781_v39, %v6701_v0 }
0x325f   :  { %v6790_v19 = vadd.f32 1.0, %v6786_v59 }
0x3260   :  { %11030 = vmatprep.mubr.msk.f32.mxu0 %vm140_vm4, %v6791_v58  ;;  %v6789_v43 = vadd.f32 1.0, %v6785_v14 }
0x3261   :  { %11031 = vmatmul.mubr.msk.f32.vlgmr.msra.gmra.mrb[114].mxu0 %vm140_vm4, %v6792_v36  ;;  %v6794_v22 = vmul.f32 %v6790_v19, %v6690_v2 }
0x3262   :  { %12054 = vmatpush3.bf16.msra.mxu0 %v13918_v13  ;;  %v6793_v27 = vmul.f32 %v6789_v43, %v6689_v37 }
0x3263   :  { %12056 = vmatprep.subr.bf16.mxu0 %v13932_v57 }
0x3264   :  { %11033 = vmatprep.mubr.msk.f32.mxu0 %vm140_vm4, %v6793_v27 }
0x3265   :  { %11034 = vmatmul.mubr.msk.f32.gmra.mrb[116].mxu0 %vm140_vm4, %v6794_v22 }
0x3266   :  { %12058 = vmatpush3.bf16.msra.mxu0 %v13932_v57 }
0x3334   :  { %v11032_v13 = vpop.f32.mrb[114].mxu0 }
0x3335   :  { %v6888_v25 = vadd.f32 %v11032_v13, %v9236_v24  ;;  %v6882_v10 = vpop.f32.mrb[115].mxu0 }
0x3336   :  { %v6883_v40 = vadd.f32 %v9236_v24, %v6882_v10 }
0x3337   :  { %v6902_v62 = vadd.f32 %v6888_v25, %v14522_v35 }
0x3338   :  { %v6901_v56 = vadd.f32 %v6883_v40, %v14520_v42  ;;  %v11035_v52 = vpop.f32.mrb[116].mxu0 }
0x3339   :  { %v6908_v41 = vsel %vm140_vm4, %v6902_v62, 0.0  ;;  %v6898_v50 = vadd.f32 %v11035_v52, %v9236_v24  ;;  %v6892_v63 = vpop.f32.mrb[117].mxu0 }
0x333a   :  { %6909 = vadd.xlane.f32.xlu0 %v6908_v41  ;;  %v6905_v57 = vsel %vm140_vm4, %v6901_v56, 0.0  ;;  %v6893_v51 = vadd.f32 %v9236_v24, %v6892_v63 }
0x333b   :  { %6906 = vadd.xlane.f32.xlu1 %v6905_v57  ;;  %v6904_v17 = vadd.f32 %v6898_v50, %v14530_v21  ;;  %v9241_v57 = vld [vmem:[%s15163_s0 + $0x3f8] ss:$0 sm:$0xff] }
0x333c   :  { %v6903_v9 = vadd.f32 %v6893_v51, %v14528_v44  ;;  %v9242_v51 = vld [vmem:[%s15163_s0 + $0x400] ss:$0 sm:$0xff] }
0x333d   :  { %v6914_v47 = vsel %vm140_vm4, %v6904_v17, 0.0 }
0x333e   :  { %6915 = vadd.xlane.f32.xlu0 %v6914_v47  ;;  %v6911_v35 = vsel %vm140_vm4, %v6903_v9, 0.0 }
0x333f   :  { %6912 = vadd.xlane.f32.xlu1 %v6911_v35 }
0x33c7   :  { %v6910_v42 = vpop.xlane.xlu0 %6909 }
0x33c8   :  { %v6918_v23 = vmul.f32 0.03125, %v6910_v42  ;;  %v6907_v46 = vpop.xlane.xlu1 %6906 }
0x33c9   :  { %v6917_v61 = vmul.f32 0.03125, %v6907_v46 }
0x33ca   :  { %v6922_v12 = vsub.f32 %v6902_v62, %v6918_v23 }
0x33cb   :  { %v6921_v26 = vsub.f32 %v6901_v56, %v6917_v61  ;;  %v6916_v29 = vpop.xlane.xlu0 %6915 }
0x33cc   :  { %v6926_v20 = vmul.f32 %v6922_v12, %v6922_v12  ;;  %v6920_v21 = vmul.f32 0.03125, %v6916_v29  ;;  %v6913_v32 = vpop.xlane.xlu1 %6912  ;;  %v12587_v29 = vld [vmem:[%s15163_s0 + $0x560] sm:$0xff] }
0x33cd   :  { %v6925_v5 = vmul.f32 %v6921_v26, %v6921_v26  ;;  %v6919_v58 = vmul.f32 0.03125, %v6913_v32  ;;  %v12588_v32 = vld [vmem:[%s15163_s0 + $0x2a0] ss:$0 sm:$0xff] }
0x33ce   :  { %v6932_v49 = vsel %vm140_vm4, %v6926_v20, 0.0  ;;  %v6924_v59 = vsub.f32 %v6904_v17, %v6920_v21 }
0x33cf   :  { %6933 = vadd.xlane.f32.xlu0 %v6932_v49  ;;  %v6929_v44 = vsel %vm140_vm4, %v6925_v5, 0.0  ;;  %v6923_v36 = vsub.f32 %v6903_v9, %v6919_v58 }
0x33d0   :  { %6930 = vadd.xlane.f32.xlu1 %v6929_v44  ;;  %v6928_v39 = vmul.f32 %v6924_v59, %v6924_v59 }
0x33d1   :  { %v6927_v0 = vmul.f32 %v6923_v36, %v6923_v36 }
0x33d2   :  { %v6938_v14 = vsel %vm140_vm4, %v6928_v39, 0.0 }
0x33d3   :  { %6939 = vadd.xlane.f32.xlu0 %v6938_v14  ;;  %v6935_v19 = vsel %vm140_vm4, %v6927_v0, 0.0 }
0x33d4   :  { %6936 = vadd.xlane.f32.xlu1 %v6935_v19 }
0x345c   :  { %v6934_v37 = vpop.xlane.xlu0 %6933 }
0x345d   :  { %v6942_v43 = vmul.f32 0.03125, %v6934_v37  ;;  %v6931_v2 = vpop.xlane.xlu1 %6930 }
0x345e   :  { %v6941_v27 = vmul.f32 0.03125, %v6931_v2 }
0x345f   :  { %v6946_v22 = vadd.f32 1e-05, %v6942_v43 }
0x3460   :  { %v6945_v24 = vadd.f32 1e-05, %v6941_v27  ;;  %v6940_v13 = vpop.xlane.xlu0 %6939 }
0x3461   :  { %12450 = vrsqrt.f32 %v6946_v22  ;;  %v6944_v25 = vmul.f32 0.03125, %v6940_v13  ;;  %v6937_v10 = vpop.xlane.xlu1 %6936  ;;  %v12590_v13 = vld [vmem:[%s15163_s0 + $0x568] sm:$0xff] }
0x3462   :  { %12452 = vrsqrt.f32 %v6945_v24  ;;  %v6943_v40 = vmul.f32 0.03125, %v6937_v10  ;;  %v12592_v10 = vld [vmem:[%s15163_s0 + $0x578] sm:$0xff] }
0x3463   :  { %v6948_v62 = vadd.f32 1e-05, %v6944_v25  ;;  %v12591_v25 = vld [vmem:[%s15163_s0 + $0x570] sm:$0xff] }
0x3464   :  { %v6947_v56 = vadd.f32 1e-05, %v6943_v40  ;;  %v12593_v40 = vld [vmem:[%s15163_s0 + $0x580] sm:$0xff] }
0x3465   :  { %12454 = vrsqrt.f32 %v6948_v62  ;;  %v12595_v62 = vld [vmem:[%s15163_s0 + $0x590] sm:$0xff] }
0x3466   :  { %12456 = vrsqrt.f32 %v6947_v56  ;;  %v12597_v56 = vld [vmem:[%s15163_s0 + $0x5a0] sm:$0xff] }
0x346b   :  { %v12451_v41 = vpop.eup %12450 }
0x346c   :  { %v12453_v52 = vpop.eup %12452  ;;  %v6954_v50 = vmul.f32 %v12451_v41, %v6922_v12  ;;  %v12599_v41 = vld [vmem:[%s15163_s0 + $0x5b0] sm:$0xff] }
0x346d   :  { %v6953_v63 = vmul.f32 %v12453_v52, %v6921_v26  ;;  %v12603_v52 = vld [vmem:[%s15163_s0 + $0x5d0] sm:$0xff] }
0x346e   :  { %v6963_v17 = vmul.f32 %v9241_v57, %v6954_v50 }
0x346f   :  { %v6962_v9 = vmul.f32 %v9241_v57, %v6953_v63  ;;  %v12455_v35 = vpop.eup %12454  ;;  %v12605_v63 = vld [vmem:[%s15163_s0 + $0x5e8] sm:$0xff] }
0x3470   :  { %v14626_v42 = vadd.f32 %v9242_v51, %v6963_v17  ;;  %v12457_v23 = vpop.eup %12456  ;;  %v6956_v46 = vmul.f32 %v12455_v35, %v6924_v59 }
0x3471   :  { %v14624_v47 = vadd.f32 %v9242_v51, %v6962_v9  ;;  %v6955_v61 = vmul.f32 %v12457_v23, %v6923_v36  ;;  %v14660_v36 = vld [vmem:[%s15163_s0 + $0x278] ss:$0 sm:$0xff] }
0x3472   :  { %v6965_v12 = vmul.f32 %v9241_v57, %v6956_v46  ;;  %v12607_v46 = vld [vmem:[%s15163_s0 + $0x5f8] sm:$0xff] }
0x3473   :  { %11044 = vmatprep.mubr.msk.f32.mxu1 %vm140_vm4, %v14624_v47  ;;  %11058 = vmatprep.mubr.msk.f32.mxu0 %vm140_vm4, %v14624_v47  ;;  %v6964_v26 = vmul.f32 %v9241_v57, %v6955_v61  ;;  %v12601_v57 = vld [vmem:[%s15163_s0 + $0x5c0] sm:$0xff] }
0x3474   :  { %11045 = vmatmul.mubr.msk.f32.vlgmr.msra.gmra.mrb[86].mxu1 %vm140_vm4, %v14626_v42  ;;  %11059 = vmatmul.mubr.msk.f32.vlgmr.msra.gmra.mrb[118].mxu0 %vm140_vm4, %v14626_v42  ;;  %v14638_v5 = vadd.f32 %v9242_v51, %v6965_v12  ;;  %v12608_v12 = vld [vmem:[%s15163_s0 + $0x5f0] sm:$0xff] }
0x3475   :  { %v14636_v20 = vadd.f32 %v9242_v51, %v6964_v26 }
0x3477   :  { %11047 = vmatprep.mubr.msk.f32.mxu1 %vm140_vm4, %v14636_v20  ;;  %11061 = vmatprep.mubr.msk.f32.mxu0 %vm140_vm4, %v14636_v20 }
0x3478   :  { %11048 = vmatmul.mubr.msk.f32.gmra.mrb[88].mxu1 %vm140_vm4, %v14638_v5  ;;  %11062 = vmatmul.mubr.msk.f32.gmra.mrb[120].mxu0 %vm140_vm4, %v14638_v5 }
0x3479   :  { %11072 = vmatprep.mubr.msk.f32.mxu1 %vm140_vm4, %v12587_v29 }
0x3547   :  { %v14652_v49 = vpop.f32.mrb[86].mxu1  ;;  %v11060_v21 = vpop.f32.mrb[118].mxu0 }
0x3548   :  { %v7144_v44 = vadd.f32 %v12588_v32, %v11060_v21  ;;  %v7053_v58 = vpop.f32.mrb[87].mxu1  ;;  %v7138_v59 = vpop.f32.mrb[119].mxu0 }
0x3549   :  { %v7054_v39 = vadd.f32 %v14660_v36, %v7053_v58  ;;  %v7139_v0 = vadd.f32 %v12588_v32, %v7138_v59  ;;  %v12610_v59 = vld [vmem:[%s15163_s0 + $0x600] sm:$0xff] }
0x354b   :  { %v12059_v14 = vpack.c.bf16 %v7144_v44, %v7139_v0  ;;  %11128 = vmatprep.mubr.msk.f32.mxu0 %vm573_vm5, %v7054_v39  ;;  %v14664_v19 = vpop.f32.mrb[88].mxu1  ;;  %v11063_v37 = vpop.f32.mrb[120].mxu0 }
0x354c   :  { %v7154_v43 = vadd.f32 %v12588_v32, %v11063_v37  ;;  %v14666_v2 = vpop.f32.mrb[89].mxu1  ;;  %v7148_v27 = vpop.f32.mrb[121].mxu0  ;;  %v12611_v37 = vld [vmem:[%s15163_s0 + $0x618] sm:$0xff] }
0x354d   :  { %12060 = vmatprep.subr.bf16.mxu1 %v12059_v14  ;;  %v7149_v22 = vadd.f32 %v12588_v32, %v7148_v27  ;;  %v12609_v32 = vld [vmem:[%s15163_s0 + $0x608] sm:$0xff] }
0x354e   :  { %12062 = vmatpush3.bf16.msra.mxu1 %v12059_v14 }
0x354f   :  { %v12063_v24 = vpack.c.bf16 %v7154_v43, %v7149_v22  ;;  %v12612_v22 = vld [vmem:[%s15163_s0 + $0x610] sm:$0xff] }
0x3551   :  { %12064 = vmatprep.subr.bf16.mxu1 %v12063_v24 }
0x3552   :  { %12066 = vmatpush3.bf16.msra.mxu1 %v12063_v24 }
0x3553   :  { %12116 = vmatprep.subr.bf16.mxu1 %v12800_v55 }
0x3555   :  { %11073 = vmatmul.mubr.msk.f32.vlgmr.msra.gmra.mrb[90].mxu1 %vm140_vm4, %v12590_v13 }
0x3556   :  { %11075 = vmatprep.mubr.msk.f32.mxu1 %vm140_vm4, %v12591_v25  ;;  %12118 = vmatpush3.bf16.msra.mxu1 %v12800_v55  ;;  %v12594_v55 = vld [vmem:[%s15163_s0 + $0x588] sm:$0xff] }
0x3557   :  { %12120 = vmatprep.subr.bf16.mxu1 %v12815_v60 }
0x3559   :  { %11076 = vmatmul.mubr.msk.f32.gmra.mrb[92].mxu1 %vm140_vm4, %v12592_v10  ;;  %v12613_v10 = vld [vmem:[%s15163_s0 + $0x628] sm:$0xff] }
0x355a   :  { %11078 = vmatprep.mubr.msk.f32.mxu1 %vm140_vm4, %v12593_v40  ;;  %12122 = vmatpush3.bf16.msra.mxu1 %v12815_v60  ;;  %v12596_v60 = vld [vmem:[%s15163_s0 + $0x598] sm:$0xff] }
0x355b   :  { %12124 = vmatprep.subr.bf16.mxu1 %v12833_v1 }
0x355d   :  { %11079 = vmatmul.mubr.msk.f32.gmra.mrb[94].mxu1 %vm140_vm4, %v12594_v55 }
0x355e   :  { %11081 = vmatprep.mubr.msk.f32.mxu1 %vm140_vm4, %v12595_v62  ;;  %12126 = vmatpush3.bf16.msra.mxu1 %v12833_v1  ;;  %v12598_v1 = vld [vmem:[%s15163_s0 + $0x5a8] sm:$0xff]  ;;  %v12614_v62 = vld [vmem:[%s15163_s0 + $0x620] sm:$0xff] }
0x355f   :  { %12128 = vmatprep.subr.bf16.mxu1 %v12851_v6 }
0x3561   :  { %11082 = vmatmul.mubr.msk.f32.gmra.mrb[96].mxu1 %vm140_vm4, %v12596_v60 }
0x3562   :  { %11084 = vmatprep.mubr.msk.f32.mxu1 %vm140_vm4, %v12597_v56  ;;  %12130 = vmatpush3.bf16.msra.mxu1 %v12851_v6  ;;  %v12600_v6 = vld [vmem:[%s15163_s0 + $0x5b8] sm:$0xff] }
0x3563   :  { %12132 = vmatprep.subr.bf16.mxu1 %v12869_v11 }
0x3565   :  { %11085 = vmatmul.mubr.msk.f32.gmra.mrb[98].mxu1 %vm140_vm4, %v12598_v1 }
0x3566   :  { %11087 = vmatprep.mubr.msk.f32.mxu1 %vm140_vm4, %v12599_v41  ;;  %12134 = vmatpush3.bf16.msra.mxu1 %v12869_v11  ;;  %v12602_v11 = vld [vmem:[%s15163_s0 + $0x5c8] sm:$0xff]  ;;  %v12615_v41 = vld [vmem:[%s15163_s0 + $0x638] sm:$0xff] }
0x3567   :  { %12136 = vmatprep.subr.bf16.mxu1 %v12887_v18 }
0x3569   :  { %11088 = vmatmul.mubr.msk.f32.gmra.mrb[100].mxu1 %vm140_vm4, %v12600_v6 }
0x356a   :  { %11090 = vmatprep.mubr.msk.f32.mxu1 %vm140_vm4, %v12601_v57  ;;  %12138 = vmatpush3.bf16.msra.mxu1 %v12887_v18  ;;  %v12604_v18 = vld [vmem:[%s15163_s0 + $0x5d8] sm:$0xff] }
0x356b   :  { %12140 = vmatprep.subr.bf16.mxu1 %v12920_v31 }
0x356d   :  { %11091 = vmatmul.mubr.msk.f32.gmra.mrb[102].mxu1 %vm140_vm4, %v12602_v11  ;;  %v12616_v11 = vld [vmem:[%s15163_s0 + $0x630] sm:$0xff] }
0x356e   :  { %11093 = vmatprep.mubr.msk.f32.mxu1 %vm140_vm4, %v12603_v52  ;;  %12142 = vmatpush3.bf16.msra.mxu1 %v12920_v31  ;;  %v12606_v31 = vld [vmem:[%s15163_s0 + $0x5e0] sm:$0xff] }
0x356f   :  { %12144 = vmatprep.subr.bf16.mxu1 %v12930_v38 }
0x3571   :  { %11094 = vmatmul.mubr.msk.f32.gmra.mrb[104].mxu1 %vm140_vm4, %v12604_v18 }
0x3572   :  { %12146 = vmatpush3.bf16.msra.mxu1 %v12930_v38 }
0x3628   :  { %v11074_v50 = vpop.f32.mrb[90].mxu1 }
0x3629   :  { %v7303_v51 = vmul.f32 %v12605_v63, %v11074_v50  ;;  %v7223_v17 = vpop.f32.mrb[91].mxu1  ;;  %v12617_v63 = vld [vmem:[%s15163_s0 + $0x648] sm:$0xff] }
0x362a   :  { %v7302_v9 = vmul.f32 %v12606_v31, %v7223_v17  ;;  %v12618_v31 = vld [vmem:[%s15163_s0 + $0x640] sm:$0xff] }
0x362c   :  { %v14750_v35 = vpack.c.bf16 %v7303_v51, %v7302_v9  ;;  %v11077_v23 = vpop.f32.mrb[92].mxu1 }
0x362d   :  { %v7305_v38 = vmul.f32 %v12607_v46, %v11077_v23  ;;  %v7233_v61 = vpop.f32.mrb[93].mxu1 }
0x362e   :  { %12069 = vmatprep.subr.msk.bf16.mxu0 %vm12945_vm6, %v14750_v35  ;;  %12148 = vmatprep.subr.bf16.mxu1 %v14750_v35  ;;  %v7304_v26 = vmul.f32 %v12608_v12, %v7233_v61 }
0x362f   :  { %12072 = vmatpush3.bf16.xpose.msk.msra.mxu0 %vm12945_vm6, %v14750_v35 }
0x3630   :  { %v14765_v29 = vpack.c.bf16 %v7305_v38, %v7304_v26  ;;  %v11080_v21 = vpop.f32.mrb[94].mxu1  ;;  %v12619_v38 = vld [vmem:[%s15163_s0 + $0x658] sm:$0xff]  ;;  %v12620_v26 = vld [vmem:[%s15163_s0 + $0x650] sm:$0xff] }
0x3631   :  { %v7307_v44 = vmul.f32 %v12609_v32, %v11080_v21  ;;  %v7243_v58 = vpop.f32.mrb[95].mxu1 }
0x3632   :  { %12075 = vmatprep.subr.msk.bf16.mxu0 %vm12945_vm6, %v14765_v29  ;;  %v7306_v39 = vmul.f32 %v12610_v59, %v7243_v58  ;;  %v7064_v58 = vadd.f32 %v14660_v36, %v14666_v2  ;;  %v7069_v59 = vadd.f32 %v14660_v36, %v14664_v19  ;;  %v12621_v19 = vld [vmem:[%s15163_s0 + $0x720] sm:$0xff] }
0x3634   :  { %v14776_v0 = vpack.c.bf16 %v7307_v44, %v7306_v39  ;;  %v11083_v14 = vpop.f32.mrb[96].mxu1  ;;  %v7059_v44 = vadd.f32 %v14660_v36, %v14652_v49 }
0x3635   :  { %v7309_v43 = vmul.f32 %v12611_v37, %v11083_v14  ;;  %v7253_v27 = vpop.f32.mrb[97].mxu1 }
0x3636   :  { %v7308_v24 = vmul.f32 %v12612_v22, %v7253_v27  ;;  %v12623_v27 = vld [vmem:[%s15163_s0 + $0x730] sm:$0xff] }
0x3637   :  { %12078 = vmatpush3.bf16.xpose.msk.msra.mxu0 %vm12945_vm6, %v14765_v29 }
0x3638   :  { %12081 = vmatprep.subr.msk.bf16.mxu0 %vm12945_vm6, %v14776_v0  ;;  %v14790_v13 = vpack.c.bf16 %v7309_v43, %v7308_v24  ;;  %v11086_v25 = vpop.f32.mrb[98].mxu1  ;;  %v12624_v24 = vld [vmem:[%s15163_s0 + $0x728] sm:$0xff] }
0x3639   :  { %v7311_v40 = vmul.f32 %v12613_v10, %v11086_v25  ;;  %v7263_v55 = vpop.f32.mrb[99].mxu1 }
0x363a   :  { %v7310_v60 = vmul.f32 %v12614_v62, %v7263_v55 }
0x363c   :  { %v14798_v56 = vpack.c.bf16 %v7311_v40, %v7310_v60  ;;  %v11089_v1 = vpop.f32.mrb[100].mxu1 }
0x363d   :  { %v7313_v6 = vmul.f32 %v12615_v41, %v11089_v1  ;;  %v7273_v57 = vpop.f32.mrb[101].mxu1 }
0x363e   :  { %v7312_v52 = vmul.f32 %v12616_v11, %v7273_v57 }
0x363f   :  { %12084 = vmatpush3.bf16.xpose.msk.msra.mxu0 %vm12945_vm6, %v14776_v0 }
0x3640   :  { %12087 = vmatprep.subr.msk.bf16.mxu0 %vm12945_vm6, %v14790_v13  ;;  %v14812_v18 = vpack.c.bf16 %v7313_v6, %v7312_v52  ;;  %v11092_v50 = vpop.f32.mrb[102].mxu1 }
0x3641   :  { %v7315_v51 = vmul.f32 %v12617_v63, %v11092_v50  ;;  %v7283_v17 = vpop.f32.mrb[103].mxu1 }
0x3642   :  { %v7314_v9 = vmul.f32 %v12618_v31, %v7283_v17 }
0x3644   :  { %v14820_v23 = vpack.c.bf16 %v7315_v51, %v7314_v9  ;;  %v11095_v46 = vpop.f32.mrb[104].mxu1 }
0x3645   :  { %v7317_v61 = vmul.f32 %v12619_v38, %v11095_v46  ;;  %v7293_v12 = vpop.f32.mrb[105].mxu1 }
0x3646   :  { %v7316_v21 = vmul.f32 %v12620_v26, %v7293_v12 }
0x3647   :  { %12090 = vmatpush3.bf16.xpose.msk.msra.mxu0 %vm12945_vm6, %v14790_v13 }
0x3648   :  { %12093 = vmatprep.subr.msk.bf16.mxu0 %vm12945_vm6, %v14798_v56  ;;  %v14834_v32 = vpack.c.bf16 %v7317_v61, %v7316_v21 }
0x364f   :  { %12096 = vmatpush3.bf16.xpose.msk.msra.mxu0 %vm12945_vm6, %v14798_v56 }
0x3650   :  { %12099 = vmatprep.subr.msk.bf16.mxu0 %vm12945_vm6, %v14812_v18 }
0x3657   :  { %12102 = vmatpush3.bf16.xpose.msk.msra.mxu0 %vm12945_vm6, %v14812_v18 }
0x3658   :  { %12105 = vmatprep.subr.msk.bf16.mxu0 %vm12945_vm6, %v14820_v23 }
0x365f   :  { %12108 = vmatpush3.bf16.xpose.msk.msra.mxu0 %vm12945_vm6, %v14820_v23 }
0x3660   :  { %12111 = vmatprep.subr.msk.bf16.mxu0 %vm12945_vm6, %v14834_v32 }
0x3667   :  { %12114 = vmatpush3.bf16.xpose.msk.msra.mxu0 %vm12945_vm6, %v14834_v32 }
0x3668   :  { %12180 = vmatprep.subr.bf16.mxu0 %v14216_v53 }
0x366e   :  { %11129 = vmatmul.mubr.msk.f32.vlgmr.msra.gmra.mrb[122].mxu0 %vm573_vm5, %v7059_v44  ;;  %v12625_v44 = vld [vmem:[%s15163_s0 + $0x2e8] ss:$0 sm:$0xff] }
0x366f   :  { %11131 = vmatprep.mubr.msk.f32.mxu0 %vm573_vm5, %v7064_v58  ;;  %12182 = vmatpush3.bf16.msra.mxu0 %v14216_v53 }
0x3670   :  { %12184 = vmatprep.subr.bf16.mxu0 %v14221_v15 }
0x3672   :  { %11132 = vmatmul.mubr.msk.f32.gmra.mrb[124].mxu0 %vm573_vm5, %v7069_v59 }
0x3673   :  { %12186 = vmatpush3.bf16.msra.mxu0 %v14221_v15 }
0x3674   :  { %12188 = vmatprep.subr.bf16.mxu0 %v14232_v7 }
0x3677   :  { %12190 = vmatpush3.bf16.msra.mxu0 %v14232_v7  ;;  %v12622_v7 = vld [vmem:[%s15163_s0 + $0x718] sm:$0xff] }
0x3678   :  { %12192 = vmatprep.subr.bf16.mxu0 %v14242_v3 }
0x367b   :  { %12194 = vmatpush3.bf16.msra.mxu0 %v14242_v3 }
0x367c   :  { %12216 = vmatprep.subr.bf16.mxu0 %v13802_v34 }
0x3741   :  { %v11130_v53 = vpop.f32.mrb[122].mxu0 }
0x3742   :  { %v7464_v49 = vmul.f32 0.35355338, %v11130_v53  ;;  %v7444_v2 = vpop.f32.mrb[123].mxu0 }
0x3743   :  { %v7463_v36 = vmul.f32 0.35355338, %v7444_v2 }
0x3744   :  { %v7468_v39 = vadd.f32 %v12621_v19, %v7464_v49 }
0x3745   :  { %v11133_v15 = vpop.f32.mrb[124].mxu0  ;;  %v7467_v14 = vadd.f32 %v12622_v7, %v7463_v36 }
0x3746   :  { %v7466_v37 = vmul.f32 0.35355338, %v11133_v15  ;;  %7473 = vmax.xlane.f32.xlu0 %v7468_v39  ;;  %v7454_v3 = vpop.f32.mrb[125].mxu0 }
0x3747   :  { %v7465_v43 = vmul.f32 0.35355338, %v7454_v3  ;;  %7471 = vmax.xlane.f32.xlu1 %v7467_v14 }
0x3748   :  { %v7470_v22 = vadd.f32 %v12623_v27, %v7466_v37 }
0x3749   :  { %v7469_v25 = vadd.f32 %v12624_v24, %v7465_v43 }
0x374a   :  { %7477 = vmax.xlane.f32.xlu0 %v7470_v22 }
0x374b   :  { %7475 = vmax.xlane.f32.xlu1 %v7469_v25 }
0x37d3   :  { %v7474_v10 = vpop.xlane.xlu0 %7473 }
0x37d4   :  { %v7480_v40 = vsub.f32 %v7468_v39, %v7474_v10  ;;  %v7472_v55 = vpop.xlane.xlu1 %7471 }
0x37d5   :  { %v7479_v62 = vsub.f32 %v7467_v14, %v7472_v55 }
0x37d6   :  { %v7485_v60 = vmul.f32 1.442695, %v7480_v40 }
0x37d7   :  { %v7483_v1 = vmul.f32 1.442695, %v7479_v62  ;;  %v7478_v41 = vpop.xlane.xlu0 %7477 }
0x37d8   :  { %v7482_v6 = vsub.f32 %v7470_v22, %v7478_v41  ;;  %v7476_v57 = vpop.xlane.xlu1 %7475 }
0x37d9   :  { %12458 = vpow2.f32 %v7483_v1  ;;  %v7481_v11 = vsub.f32 %v7469_v25, %v7476_v57 }
0x37da   :  { %12460 = vpow2.f32 %v7485_v60  ;;  %v7489_v52 = vmul.f32 1.442695, %v7482_v6 }
0x37db   :  { %v7487_v50 = vmul.f32 1.442695, %v7481_v11 }
0x37dd   :  { %12462 = vpow2.f32 %v7487_v50 }
0x37de   :  { %12464 = vpow2.f32 %v7489_v52 }
0x37e3   :  { %v12459_v63 = vpop.eup %12458 }
0x37e4   :  { %v12461_v51 = vpop.eup %12460  ;;  %11166 = vmatprep.mubr.f32.mxu1 %v12459_v63 }
0x37e5   :  { %11167 = vmatmul.mubr.f32.vlgmr.msra.gmra.mrb[106].mxu1 %v12461_v51 }
0x37e6   :  { %12150 = vmatpush3.bf16.msra.mxu1 %v14750_v35 }
0x37e7   :  { %v12463_v17 = vpop.eup %12462  ;;  %12152 = vmatprep.subr.bf16.mxu1 %v14765_v29 }
0x37e8   :  { %v12465_v31 = vpop.eup %12464  ;;  %11169 = vmatprep.mubr.f32.mxu1 %v12463_v17 }
0x37e9   :  { %11170 = vmatmul.mubr.f32.gmra.mrb[108].mxu1 %v12465_v31 }
0x37ea   :  { %12154 = vmatpush3.bf16.msra.mxu1 %v14765_v29 }
0x37eb   :  { %12156 = vmatprep.subr.bf16.mxu1 %v14776_v0 }
0x37ee   :  { %12158 = vmatpush3.bf16.msra.mxu1 %v14776_v0 }
0x37ef   :  { %12160 = vmatprep.subr.bf16.mxu1 %v14790_v13 }
0x37f2   :  { %12162 = vmatpush3.bf16.msra.mxu1 %v14790_v13 }
0x37f3   :  { %12164 = vmatprep.subr.bf16.mxu1 %v14798_v56 }
0x37f6   :  { %12166 = vmatpush3.bf16.msra.mxu1 %v14798_v56 }
0x37f7   :  { %12168 = vmatprep.subr.bf16.mxu1 %v14812_v18 }
0x37fa   :  { %12170 = vmatpush3.bf16.msra.mxu1 %v14812_v18 }
0x37fb   :  { %12172 = vmatprep.subr.bf16.mxu1 %v14820_v23 }
0x37fe   :  { %12174 = vmatpush3.bf16.msra.mxu1 %v14820_v23 }
0x37ff   :  { %12176 = vmatprep.subr.bf16.mxu1 %v14834_v32 }
0x3802   :  { %12178 = vmatpush3.bf16.msra.mxu1 %v14834_v32 }
0x3803   :  { %12196 = vmatprep.subr.bf16.mxu1 %v14285_v8 }
0x38b8   :  { %v11168_v35 = vpop.f32.mrb[106].mxu1 }
0x38b9   :  { %12466 = vrcp.f32 %v11168_v35  ;;  %v7557_v29 = vpop.f32.mrb[107].mxu1 }
0x38ba   :  { %12468 = vrcp.f32 %v7557_v29 }
0x38bc   :  { %v11171_v0 = vpop.f32.mrb[108].mxu1 }
0x38bd   :  { %12470 = vrcp.f32 %v11171_v0  ;;  %v7567_v13 = vpop.f32.mrb[109].mxu1 }
0x38be   :  { %12472 = vrcp.f32 %v7567_v13 }
0x38c3   :  { %v12467_v56 = vpop.eup %12466 }
0x38c4   :  { %v12469_v18 = vpop.eup %12468  ;;  %v7581_v46 = vmul.f32 %v12467_v56, %v12461_v51 }
0x38c5   :  { %v7580_v9 = vmul.f32 %v12469_v18, %v12459_v63 }
0x38c7   :  { %v12471_v38 = vpop.eup %12470  ;;  %11204 = vmatprep.mubr.f32.mxu1 %v7580_v9 }
0x38c8   :  { %v12473_v23 = vpop.eup %12472  ;;  %11205 = vmatmul.mubr.f32.vlgmr.msra.gmra.mrb[110].mxu1 %v7581_v46  ;;  %v7583_v12 = vmul.f32 %v12471_v38, %v12465_v31 }
0x38c9   :  { %12198 = vmatpush3.bf16.msra.mxu1 %v14285_v8  ;;  %v7582_v61 = vmul.f32 %v12473_v23, %v12463_v17 }
0x38ca   :  { %12200 = vmatprep.subr.bf16.mxu1 %v14295_v4 }
0x38cb   :  { %11207 = vmatprep.mubr.f32.mxu1 %v7582_v61 }
0x38cc   :  { %11208 = vmatmul.mubr.f32.gmra.mrb[112].mxu1 %v7583_v12  ;;  %v12626_v12 = vld [vmem:[%s15163_s0 + $0x3d8] ss:$0 sm:$0xff] }
0x38cd   :  { %12202 = vmatpush3.bf16.msra.mxu1 %v14295_v4 }
0x38ce   :  { %12205 = vmatprep.subr.msk.bf16.mxu1 %vm12945_vm6, %v14378_v30 }
0x399b   :  { %v11206_v26 = vpop.f32.mrb[110].mxu1 }
0x399c   :  { %v7650_v21 = vpop.f32.mrb[111].mxu1 }
0x399d   :  { %11226 = vmatprep.mubr.msk.f32.mxu0 %vm573_vm5, %v7650_v21 }
0x399e   :  { %11227 = vmatmul.mubr.msk.f32.vlgmr.msra.gmra.mrb[126].mxu0 %vm573_vm5, %v11206_v26 }
0x399f   :  { %12218 = vmatpush3.bf16.msra.mxu0 %v13802_v34  ;;  %v11209_v8 = vpop.f32.mrb[112].mxu1 }
0x39a0   :  { %v7660_v32 = vpop.f32.mrb[113].mxu1  ;;  %12220 = vmatprep.subr.bf16.mxu0 %v13808_v33 }
0x39a1   :  { %11229 = vmatprep.mubr.msk.f32.mxu0 %vm573_vm5, %v7660_v32 }
0x39a2   :  { %11230 = vmatmul.mubr.msk.f32.gmra.mrb[128].mxu0 %vm573_vm5, %v11209_v8 }
0x39a3   :  { %12222 = vmatpush3.bf16.msra.mxu0 %v13808_v33 }
0x39a4   :  { %12224 = vmatprep.subr.bf16.mxu0 %v14378_v30 }
0x3a71   :  { %v11228_v4 = vpop.f32.mrb[126].mxu0 }
0x3a72   :  { %v7753_v58 = vadd.f32 %v12625_v44, %v11228_v4  ;;  %v7747_v59 = vpop.f32.mrb[127].mxu0 }
0x3a73   :  { %v7748_v34 = vadd.f32 %v12625_v44, %v7747_v59 }
0x3a74   :  { %v7767_v53 = vadd.f32 %v7753_v58, %v14626_v42 }
0x3a75   :  { %v11231_v49 = vpop.f32.mrb[128].mxu0  ;;  %v7766_v2 = vadd.f32 %v7748_v34, %v14624_v47 }
0x3a76   :  { %v7763_v36 = vadd.f32 %v12625_v44, %v11231_v49  ;;  %v7757_v19 = vpop.f32.mrb[129].mxu0  ;;  %v7773_v39 = vsel %vm140_vm4, %v7767_v53, 0.0 }
0x3a77   :  { %v7758_v33 = vadd.f32 %v12625_v44, %v7757_v19  ;;  %7774 = vadd.xlane.f32.xlu0 %v7773_v39  ;;  %v7770_v15 = vsel %vm140_vm4, %v7766_v2, 0.0  ;;  %v12627_v44 = vld [vmem:[%s15163_s0 + $0x3e0] ss:$0 sm:$0xff] }
0x3a78   :  { %7771 = vadd.xlane.f32.xlu1 %v7770_v15  ;;  %v7769_v7 = vadd.f32 %v7763_v36, %v14638_v5 }
0x3a79   :  { %v7768_v14 = vadd.f32 %v7758_v33, %v14636_v20  ;;  %v12628_v33 = vld [vmem:[%s15163_s0 + $0x310] ss:$0 sm:$0xff] }
0x3a7a   :  { %v7779_v37 = vsel %vm140_vm4, %v7769_v7, 0.0 }
0x3a7b   :  { %7780 = vadd.xlane.f32.xlu0 %v7779_v37  ;;  %v7776_v42 = vsel %vm140_vm4, %v7768_v14, 0.0 }
0x3a7c   :  { %7777 = vadd.xlane.f32.xlu1 %v7776_v42 }
0x3b04   :  { %v7775_v47 = vpop.xlane.xlu0 %7774 }
0x3b05   :  { %v7783_v3 = vmul.f32 0.03125, %v7775_v47  ;;  %v7772_v43 = vpop.xlane.xlu1 %7771  ;;  %v15192_v47 = vld [vmem:[#allocation2_spill] sm:$0xff] }
0x3b06   :  { %v7782_v27 = vmul.f32 0.03125, %v7772_v43 }
0x3b07   :  { %v7787_v22 = vsub.f32 %v7767_v53, %v7783_v3  ;;  %v15193_v3 = vld [vmem:[#allocation3_spill] sm:$0xff] }
0x3b08   :  { %v7786_v24 = vsub.f32 %v7766_v2, %v7782_v27  ;;  %v7781_v25 = vpop.xlane.xlu0 %7780 }
0x3b09   :  { %v7785_v10 = vmul.f32 0.03125, %v7781_v25  ;;  %v7778_v40 = vpop.xlane.xlu1 %7777  ;;  %v7791_v55 = vmul.f32 %v7787_v22, %v7787_v22 }
0x3b0a   :  { %v7784_v62 = vmul.f32 0.03125, %v7778_v40  ;;  %v7790_v5 = vmul.f32 %v7786_v24, %v7786_v24 }
0x3b0b   :  { %v7789_v60 = vsub.f32 %v7769_v7, %v7785_v10  ;;  %v7797_v20 = vsel %vm140_vm4, %v7791_v55, 0.0 }
0x3b0c   :  { %v7788_v1 = vsub.f32 %v7768_v14, %v7784_v62  ;;  %7798 = vadd.xlane.f32.xlu0 %v7797_v20  ;;  %v7794_v41 = vsel %vm140_vm4, %v7790_v5, 0.0 }
0x3b0d   :  { %7795 = vadd.xlane.f32.xlu1 %v7794_v41  ;;  %v7793_v6 = vmul.f32 %v7789_v60, %v7789_v60 }
0x3b0e   :  { %v7792_v57 = vmul.f32 %v7788_v1, %v7788_v1 }
0x3b0f   :  { %v7803_v11 = vsel %vm140_vm4, %v7793_v6, 0.0  ;;  %v12632_v6 = vld [vmem:[%s15163_s0 + $0x748] sm:$0xff] }
0x3b10   :  { %7804 = vadd.xlane.f32.xlu0 %v7803_v11  ;;  %v7800_v52 = vsel %vm140_vm4, %v7792_v57, 0.0 }
0x3b11   :  { %7801 = vadd.xlane.f32.xlu1 %v7800_v52 }
0x3b99   :  { %v7799_v50 = vpop.xlane.xlu0 %7798 }
0x3b9a   :  { %v7807_v63 = vmul.f32 0.03125, %v7799_v50  ;;  %v7796_v51 = vpop.xlane.xlu1 %7795 }
0x3b9b   :  { %v7806_v17 = vmul.f32 0.03125, %v7796_v51 }
0x3b9c   :  { %v7811_v31 = vadd.f32 1e-05, %v7807_v63 }
0x3b9d   :  { %v7810_v35 = vadd.f32 1e-05, %v7806_v17  ;;  %v7805_v29 = vpop.xlane.xlu0 %7804 }
0x3b9e   :  { %12474 = vrsqrt.f32 %v7811_v31  ;;  %v7809_v0 = vmul.f32 0.03125, %v7805_v29  ;;  %v7802_v13 = vpop.xlane.xlu1 %7801 }
0x3b9f   :  { %12476 = vrsqrt.f32 %v7810_v35  ;;  %v7808_v56 = vmul.f32 0.03125, %v7802_v13 }
0x3ba0   :  { %v7813_v18 = vadd.f32 1e-05, %v7809_v0 }
0x3ba1   :  { %v7812_v9 = vadd.f32 1e-05, %v7808_v56 }
0x3ba2   :  { %12478 = vrsqrt.f32 %v7813_v18 }
0x3ba3   :  { %12480 = vrsqrt.f32 %v7812_v9 }
0x3ba8   :  { %v12475_v46 = vpop.eup %12474 }
0x3ba9   :  { %v12477_v38 = vpop.eup %12476  ;;  %v7819_v23 = vmul.f32 %v12475_v46, %v7787_v22 }
0x3baa   :  { %v7818_v61 = vmul.f32 %v12477_v38, %v7786_v24  ;;  %v12629_v24 = vld [vmem:[%s15163_s0 + $0x740] sm:$0xff] }
0x3bab   :  { %v7823_v26 = vmul.f32 %v12626_v12, %v7819_v23 }
0x3bac   :  { %v12479_v21 = vpop.eup %12478  ;;  %v7822_v8 = vmul.f32 %v12626_v12, %v7818_v61 }
0x3bad   :  { %v12481_v32 = vpop.eup %12480  ;;  %v7821_v4 = vmul.f32 %v12479_v21, %v7789_v60  ;;  %v14940_v34 = vadd.f32 %v12627_v44, %v7823_v26 }
0x3bae   :  { %v14938_v58 = vadd.f32 %v12627_v44, %v7822_v8  ;;  %v7820_v59 = vmul.f32 %v12481_v32, %v7788_v1  ;;  %v12631_v1 = vld [vmem:[%s15163_s0 + $0x750] sm:$0xff] }
0x3baf   :  { %v7825_v53 = vmul.f32 %v12626_v12, %v7821_v4 }
0x3bb0   :  { %11240 = vmatprep.mubr.msk.f32.mxu1 %vm140_vm4, %v14938_v58  ;;  %v7824_v49 = vmul.f32 %v12626_v12, %v7820_v59  ;;  %v15194_v12 = vld [vmem:[#allocation4_spill] sm:$0xff] }
0x3bb1   :  { %11241 = vmatmul.mubr.msk.f32.vlgmr.msra.gmra.mrb[114].mxu1 %vm140_vm4, %v14940_v34  ;;  %v14954_v36 = vadd.f32 %v12627_v44, %v7825_v53 }
0x3bb2   :  { %12208 = vmatpush3.bf16.xpose.msk.msra.mxu1 %vm12945_vm6, %v14378_v30  ;;  %v14949_v2 = vadd.f32 %v12627_v44, %v7824_v49 }
0x3bb3   :  { %12211 = vmatprep.subr.msk.bf16.mxu1 %vm12945_vm6, %v14393_v28 }
0x3bb4   :  { %11243 = vmatprep.mubr.msk.f32.mxu1 %vm140_vm4, %v14949_v2 }
0x3bb5   :  { %11244 = vmatmul.mubr.msk.f32.gmra.mrb[116].mxu1 %vm140_vm4, %v14954_v36 }
0x3bba   :  { %12214 = vmatpush3.bf16.xpose.msk.msra.mxu1 %vm12945_vm6, %v14393_v28 }
0x3bbb   :  { %12232 = vmatprep.subr.bf16.mxu1 %v14436_v16 }
0x3c84   :  { %v11242_v19 = vpop.f32.mrb[114].mxu1 }
0x3c85   :  { %v7908_v39 = vpop.f32.mrb[115].mxu1  ;;  %v7914_v7 = vadd.f32 %v12628_v33, %v11242_v19 }
0x3c86   :  { %v7909_v15 = vadd.f32 %v12628_v33, %v7908_v39  ;;  %v15195_v39 = vld [vmem:[#allocation5_spill] sm:$0xff] }
0x3c88   :  { %v11245_v14 = vpop.f32.mrb[116].mxu1  ;;  %11254 = vmatprep.mubr.msk.f32.mxu1 %vm573_vm5, %v7909_v15 }
0x3c89   :  { %v7918_v37 = vpop.f32.mrb[117].mxu1  ;;  %11255 = vmatmul.mubr.msk.f32.vlgmr.msra.gmra.mrb[118].mxu1 %vm573_vm5, %v7914_v7  ;;  %v7924_v48 = vadd.f32 %v12628_v33, %v11245_v14 }
0x3c8a   :  { %v7919_v42 = vadd.f32 %v12628_v33, %v7918_v37  ;;  %12234 = vmatpush3.bf16.msra.mxu1 %v14436_v16  ;;  %v15196_v33 = vld [vmem:[#allocation6_spill] sm:$0xff] }
0x3c8b   :  { %12236 = vmatprep.subr.bf16.mxu1 %v14441_v45 }
0x3c8c   :  { %11257 = vmatprep.mubr.msk.f32.mxu1 %vm573_vm5, %v7919_v42 }
0x3c8d   :  { %11258 = vmatmul.mubr.msk.f32.gmra.mrb[120].mxu1 %vm573_vm5, %v7924_v48  ;;  %v12633_v48 = vld [vmem:[%s15163_s0 + $0x380] ss:$0 sm:$0xff] }
0x3c8e   :  { %12238 = vmatpush3.bf16.msra.mxu1 %v14441_v45  ;;  %v12630_v45 = vld [vmem:[%s15163_s0 + $0x738] sm:$0xff] }
0x3c8f   :  { %12240 = vmatprep.subr.bf16.mxu1 %v15192_v47 }
0x3c92   :  { %12242 = vmatpush3.bf16.msra.mxu1 %v15192_v47 }
0x3c93   :  { %12244 = vmatprep.subr.bf16.mxu1 %v15193_v3 }
0x3c96   :  { %12246 = vmatpush3.bf16.msra.mxu1 %v15193_v3 }
0x3d5c   :  { %v11256_v43 = vpop.f32.mrb[118].mxu1 }
0x3d5d   :  { %v8025_v27 = vmul.f32 0.35355338, %v11256_v43  ;;  %v8005_v16 = vpop.f32.mrb[119].mxu1 }
0x3d5e   :  { %v8024_v22 = vmul.f32 0.35355338, %v8005_v16 }
0x3d5f   :  { %v8029_v25 = vadd.f32 %v12629_v24, %v8025_v27 }
0x3d60   :  { %v11259_v10 = vpop.f32.mrb[120].mxu1  ;;  %v8028_v40 = vadd.f32 %v12630_v45, %v8024_v22 }
0x3d61   :  { %v8027_v55 = vmul.f32 0.35355338, %v11259_v10  ;;  %v8015_v62 = vpop.f32.mrb[121].mxu1  ;;  %v8035_v5 = vsel %vm140_vm4, %v8029_v25, -inf }
0x3d62   :  { %v8026_v60 = vmul.f32 0.35355338, %v8015_v62  ;;  %8036 = vmax.xlane.f32.xlu0 %v8035_v5  ;;  %v8032_v20 = vsel %vm140_vm4, %v8028_v40, -inf }
0x3d63   :  { %8033 = vmax.xlane.f32.xlu1 %v8032_v20  ;;  %v8031_v41 = vadd.f32 %v12631_v1, %v8027_v55 }
0x3d64   :  { %v8030_v57 = vadd.f32 %v12632_v6, %v8026_v60 }
0x3d65   :  { %v8041_v11 = vsel %vm140_vm4, %v8031_v41, -inf }
0x3d66   :  { %8042 = vmax.xlane.f32.xlu0 %v8041_v11  ;;  %v8038_v52 = vsel %vm140_vm4, %v8030_v57, -inf }
0x3d67   :  { %8039 = vmax.xlane.f32.xlu1 %v8038_v52 }
0x3def   :  { %v8037_v50 = vpop.xlane.xlu0 %8036 }
0x3df0   :  { %v8045_v63 = vsub.f32 %v8029_v25, %v8037_v50  ;;  %v8034_v51 = vpop.xlane.xlu1 %8033 }
0x3df1   :  { %v8044_v17 = vsub.f32 %v8028_v40, %v8034_v51 }
0x3df2   :  { %v8050_v31 = vmul.f32 1.442695, %v8045_v63 }
0x3df3   :  { %v8048_v35 = vmul.f32 1.442695, %v8044_v17  ;;  %v8043_v29 = vpop.xlane.xlu0 %8042 }
0x3df4   :  { %v8047_v0 = vsub.f32 %v8031_v41, %v8043_v29  ;;  %v8040_v13 = vpop.xlane.xlu1 %8039 }
0x3df5   :  { %12482 = vpow2.f32 %v8048_v35  ;;  %v8046_v56 = vsub.f32 %v8030_v57, %v8040_v13 }
0x3df6   :  { %12484 = vpow2.f32 %v8050_v31  ;;  %v8054_v18 = vmul.f32 1.442695, %v8047_v0 }
0x3df7   :  { %v8052_v9 = vmul.f32 1.442695, %v8046_v56 }
0x3df9   :  { %12486 = vpow2.f32 %v8052_v9 }
0x3dfa   :  { %12488 = vpow2.f32 %v8054_v18 }
0x3dff   :  { %v12483_v46 = vpop.eup %12482 }
0x3e00   :  { %v12485_v38 = vpop.eup %12484  ;;  %11268 = vmatprep.mubr.msk.f32.mxu0 %vm140_vm4, %v12483_v46 }
0x3e01   :  { %11269 = vmatmul.mubr.msk.f32.vlgmr.msra.gmra.mrb[130].mxu0 %vm140_vm4, %v12485_v38 }
0x3e02   :  { %12226 = vmatpush3.bf16.msra.mxu0 %v14378_v30 }
0x3e03   :  { %v12487_v23 = vpop.eup %12486  ;;  %12228 = vmatprep.subr.bf16.mxu0 %v14393_v28 }
0x3e04   :  { %v12489_v61 = vpop.eup %12488  ;;  %11271 = vmatprep.mubr.msk.f32.mxu0 %vm140_vm4, %v12487_v23 }
0x3e05   :  { %11272 = vmatmul.mubr.msk.f32.gmra.mrb[132].mxu0 %vm140_vm4, %v12489_v61 }
0x3e06   :  { %12230 = vmatpush3.bf16.msra.mxu0 %v14393_v28 }
0x3e07   :  { %12248 = vmatprep.subr.bf16.mxu0 %v15194_v12 }
0x3ed4   :  { %v11270_v26 = vpop.f32.mrb[130].mxu0 }
0x3ed5   :  { %12490 = vrcp.f32 %v11270_v26  ;;  %v8134_v21 = vpop.f32.mrb[131].mxu0 }
0x3ed6   :  { %12492 = vrcp.f32 %v8134_v21 }
0x3ed8   :  { %v11273_v8 = vpop.f32.mrb[132].mxu0 }
0x3ed9   :  { %12494 = vrcp.f32 %v11273_v8  ;;  %v8144_v32 = vpop.f32.mrb[133].mxu0 }
0x3eda   :  { %12496 = vrcp.f32 %v8144_v32 }
0x3edf   :  { %v12491_v30 = vpop.eup %12490 }
0x3ee0   :  { %v12493_v4 = vpop.eup %12492  ;;  %v8158_v59 = vmul.f32 %v12491_v30, %v12485_v38 }
0x3ee1   :  { %v8157_v44 = vmul.f32 %v12493_v4, %v12483_v46 }
0x3ee3   :  { %v12495_v53 = vpop.eup %12494  ;;  %11282 = vmatprep.mubr.msk.f32.mxu0 %vm140_vm4, %v8157_v44 }
0x3ee4   :  { %v12497_v49 = vpop.eup %12496  ;;  %11283 = vmatmul.mubr.msk.f32.vlgmr.msra.gmra.mrb[134].mxu0 %vm140_vm4, %v8158_v59  ;;  %v8160_v19 = vmul.f32 %v12495_v53, %v12489_v61  ;;  %v12634_v53 = vld [vmem:[%s15163_s0 + $0x3e8] ss:$0 sm:$0xff] }
0x3ee5   :  { %v8159_v28 = vmul.f32 %v12497_v49, %v12487_v23  ;;  %12250 = vmatpush3.bf16.msra.mxu0 %v15194_v12 }
0x3ee6   :  { %12252 = vmatprep.subr.bf16.mxu0 %v15195_v39 }
0x3ee7   :  { %11285 = vmatprep.mubr.msk.f32.mxu0 %vm140_vm4, %v8159_v28 }
0x3ee8   :  { %11286 = vmatmul.mubr.msk.f32.gmra.mrb[136].mxu0 %vm140_vm4, %v8160_v19 }
0x3ee9   :  { %12254 = vmatpush3.bf16.msra.mxu0 %v15195_v39 }
0x3eea   :  { %12256 = vmatprep.subr.bf16.mxu0 %v15196_v33 }
0x3fb7   :  { %v11284_v15 = vpop.f32.mrb[134].mxu0 }
0x3fb8   :  { %v8239_v7 = vpop.f32.mrb[135].mxu0 }
0x3fb9   :  { %11304 = vmatprep.mubr.msk.f32.mxu1 %vm573_vm5, %v8239_v7  ;;  %v12635_v7 = vld [vmem:[%s15163_s0 + $0x3f0] ss:$0 sm:$0xff] }
0x3fba   :  { %11305 = vmatmul.mubr.msk.f32.vlgmr.msra.gmra.mrb[122].mxu1 %vm573_vm5, %v11284_v15 }
0x3fbb   :  { %v11287_v14 = vpop.f32.mrb[136].mxu0 }
0x3fbc   :  { %v8249_v37 = vpop.f32.mrb[137].mxu0 }
0x3fbd   :  { %11307 = vmatprep.mubr.msk.f32.mxu1 %vm573_vm5, %v8249_v37 }
0x3fbe   :  { %11308 = vmatmul.mubr.msk.f32.gmra.mrb[124].mxu1 %vm573_vm5, %v11287_v14 }
0x408d   :  { %v11306_v42 = vpop.f32.mrb[122].mxu1 }
0x408e   :  { %v8342_v47 = vadd.f32 %v12633_v48, %v11306_v42  ;;  %v8336_v3 = vpop.f32.mrb[123].mxu1 }
0x408f   :  { %v8337_v43 = vadd.f32 %v12633_v48, %v8336_v3 }
0x4090   :  { %v8356_v27 = vadd.f32 %v8342_v47, %v14940_v34 }
0x4091   :  { %v11309_v16 = vpop.f32.mrb[124].mxu1  ;;  %v8355_v22 = vadd.f32 %v8337_v43, %v14938_v58 }
0x4092   :  { %v8352_v24 = vadd.f32 %v12633_v48, %v11309_v16  ;;  %v8346_v25 = vpop.f32.mrb[125].mxu1  ;;  %v8362_v10 = vsel %vm140_vm4, %v8356_v27, 0.0 }
0x4093   :  { %v8347_v45 = vadd.f32 %v12633_v48, %v8346_v25  ;;  %8363 = vadd.xlane.f32.xlu0 %v8362_v10  ;;  %v8359_v40 = vsel %vm140_vm4, %v8355_v22, 0.0 }
0x4094   :  { %8360 = vadd.xlane.f32.xlu1 %v8359_v40  ;;  %v8358_v55 = vadd.f32 %v8352_v24, %v14954_v36 }
0x4095   :  { %v8357_v62 = vadd.f32 %v8347_v45, %v14949_v2 }
0x4096   :  { %v8368_v5 = vsel %vm140_vm4, %v8358_v55, 0.0 }
0x4097   :  { %8369 = vadd.xlane.f32.xlu0 %v8368_v5  ;;  %v8365_v34 = vsel %vm140_vm4, %v8357_v62, 0.0 }
0x4098   :  { %8366 = vadd.xlane.f32.xlu1 %v8365_v34 }
0x4120   :  { %v8364_v58 = vpop.xlane.xlu0 %8363 }
0x4121   :  { %v8372_v60 = vmul.f32 0.03125, %v8364_v58  ;;  %v8361_v20 = vpop.xlane.xlu1 %8360 }
0x4122   :  { %v8371_v1 = vmul.f32 0.03125, %v8361_v20 }
0x4123   :  { %v8376_v41 = vsub.f32 %v8356_v27, %v8372_v60  ;;  %v15197_v27 = vld [vmem:[#allocation7_spill] sm:$0xff] }
0x4124   :  { %v8375_v6 = vsub.f32 %v8355_v22, %v8371_v1  ;;  %v8370_v57 = vpop.xlane.xlu0 %8369  ;;  %v12636_v22 = vld [vmem:[%s15163_s0 + $0x3a8] ss:$0 sm:$0xff] }
0x4125   :  { %v8374_v11 = vmul.f32 0.03125, %v8370_v57  ;;  %v8367_v52 = vpop.xlane.xlu1 %8366  ;;  %v8380_v50 = vmul.f32 %v8376_v41, %v8376_v41 }
0x4126   :  { %v8373_v63 = vmul.f32 0.03125, %v8367_v52  ;;  %v8379_v36 = vmul.f32 %v8375_v6, %v8375_v6 }
0x4127   :  { %v8378_v51 = vsub.f32 %v8358_v55, %v8374_v11  ;;  %v8386_v2 = vsel %vm140_vm4, %v8380_v50, 0.0 }
0x4128   :  { %v8377_v17 = vsub.f32 %v8357_v62, %v8373_v63  ;;  %8387 = vadd.xlane.f32.xlu0 %v8386_v2  ;;  %v8383_v31 = vsel %vm140_vm4, %v8379_v36, 0.0 }
0x4129   :  { %8384 = vadd.xlane.f32.xlu1 %v8383_v31  ;;  %v8382_v35 = vmul.f32 %v8378_v51, %v8378_v51 }
0x412a   :  { %v8381_v29 = vmul.f32 %v8377_v17, %v8377_v17 }
0x412b   :  { %v8392_v0 = vsel %vm140_vm4, %v8382_v35, 0.0 }
0x412c   :  { %8393 = vadd.xlane.f32.xlu0 %v8392_v0  ;;  %v8389_v13 = vsel %vm140_vm4, %v8381_v29, 0.0 }
0x412d   :  { %8390 = vadd.xlane.f32.xlu1 %v8389_v13 }
0x41b5   :  { %v8388_v56 = vpop.xlane.xlu0 %8387 }
0x41b6   :  { %v8396_v18 = vmul.f32 0.03125, %v8388_v56  ;;  %v8385_v9 = vpop.xlane.xlu1 %8384 }
0x41b7   :  { %v8395_v46 = vmul.f32 0.03125, %v8385_v9 }
0x41b8   :  { %v8400_v38 = vadd.f32 1e-05, %v8396_v18 }
0x41b9   :  { %v8399_v23 = vadd.f32 1e-05, %v8395_v46  ;;  %v8394_v61 = vpop.xlane.xlu0 %8393 }
0x41ba   :  { %12498 = vrsqrt.f32 %v8400_v38  ;;  %v8398_v12 = vmul.f32 0.03125, %v8394_v61  ;;  %v8391_v26 = vpop.xlane.xlu1 %8390 }
0x41bb   :  { %12500 = vrsqrt.f32 %v8399_v23  ;;  %v8397_v21 = vmul.f32 0.03125, %v8391_v26 }
0x41bc   :  { %v8402_v8 = vadd.f32 1e-05, %v8398_v12 }
0x41bd   :  { %v8401_v32 = vadd.f32 1e-05, %v8397_v21 }
0x41be   :  { %12502 = vrsqrt.f32 %v8402_v8 }
0x41bf   :  { %12504 = vrsqrt.f32 %v8401_v32 }
0x41c4   :  { %v12499_v30 = vpop.eup %12498 }
0x41c5   :  { %v12501_v4 = vpop.eup %12500  ;;  %v8408_v44 = vmul.f32 %v12499_v30, %v8376_v41 }
0x41c6   :  { %v8407_v59 = vmul.f32 %v12501_v4, %v8375_v6 }
0x41c7   :  { %v8412_v49 = vmul.f32 %v12634_v53, %v8408_v44 }
0x41c8   :  { %v12503_v28 = vpop.eup %12502  ;;  %v8411_v19 = vmul.f32 %v12634_v53, %v8407_v59 }
0x41c9   :  { %v12505_v39 = vpop.eup %12504  ;;  %v8410_v15 = vmul.f32 %v12503_v28, %v8378_v51  ;;  %v15037_v42 = vadd.f32 %v12635_v7, %v8412_v49 }
0x41ca   :  { %v15035_v14 = vadd.f32 %v12635_v7, %v8411_v19  ;;  %v8409_v37 = vmul.f32 %v12505_v39, %v8377_v17 }
0x41cb   :  { %v8414_v48 = vmul.f32 %v12634_v53, %v8410_v15 }
0x41cc   :  { %11318 = vmatprep.mubr.msk.f32.mxu0 %vm140_vm4, %v15035_v14  ;;  %v8413_v47 = vmul.f32 %v12634_v53, %v8409_v37 }
0x41cd   :  { %11319 = vmatmul.mubr.msk.f32.vlgmr.msra.gmra.mrb[138].mxu0 %vm140_vm4, %v15037_v42  ;;  %v15046_v43 = vadd.f32 %v12635_v7, %v8414_v48 }
0x41ce   :  { %v15043_v3 = vadd.f32 %v12635_v7, %v8413_v47  ;;  %12258 = vmatpush3.bf16.msra.mxu0 %v15196_v33 }
0x41cf   :  { %12260 = vmatprep.subr.bf16.mxu0 %v15197_v27 }
0x41d0   :  { %11321 = vmatprep.mubr.msk.f32.mxu0 %vm140_vm4, %v15043_v3 }
0x41d1   :  { %11322 = vmatmul.mubr.msk.f32.gmra.mrb[140].mxu0 %vm140_vm4, %v15046_v43 }
0x41d2   :  { %12262 = vmatpush3.bf16.msra.mxu0 %v15197_v27 }
0x42a0   :  { %v11320_v16 = vpop.f32.mrb[138].mxu0 }
0x42a1   :  { %v15057_v24 = vadd.f32 %v12636_v22, %v11320_v16  ;;  %v8497_v33 = vpop.f32.mrb[139].mxu0 }
0x42a2   :  { %v15059_v25 = vadd.f32 %v12636_v22, %v8497_v33 }
0x42a3   :  { %v15062_v10 = vmul.f32 0.70710677, %v15057_v24 }
0x42a4   :  { %v15065_v45 = vmul.f32 0.70710677, %v15059_v25  ;;  %v11323_v40 = vpop.f32.mrb[140].mxu0 }
0x42a5   :  { %v8533_v55 = vand.u32 2147483647, %v15062_v10  ;;  %v15068_v62 = vadd.f32 %v12636_v22, %v11323_v40  ;;  %v8507_v5 = vpop.f32.mrb[141].mxu0  ;;  %vm8525_vm5 = vcmp.ge.f32.partialorder %v15062_v10, 0.0 }
0x42a6   :  { %v8532_v34 = vand.u32 2147483647, %v15065_v45  ;;  %v15071_v58 = vadd.f32 %v12636_v22, %v8507_v5  ;;  %vm8524_vm6 = vcmp.ge.f32.partialorder %v15065_v45, 0.0 }
0x42a7   :  { %v8537_v60 = vmul.f32 0.3275911, %v8533_v55  ;;  %v15074_v1 = vmul.f32 0.70710677, %v15068_v62  ;;  %v8589_v51 = vsub.f32 0.0, %v8533_v55 }
0x42a8   :  { %v8536_v20 = vmul.f32 0.3275911, %v8532_v34  ;;  %v15077_v6 = vmul.f32 0.70710677, %v15071_v58  ;;  %v8588_v17 = vsub.f32 0.0, %v8532_v34 }
0x42a9   :  { %v8541_v41 = vadd.f32 1.0, %v8537_v60  ;;  %v8535_v11 = vand.u32 2147483647, %v15074_v1  ;;  %v8593_v35 = vmul.f32 %v8589_v51, %v8533_v55  ;;  %vm8527_vm14 = vcmp.ge.f32.partialorder %v15074_v1, 0.0 }
0x42aa   :  { %v8540_v57 = vadd.f32 1.0, %v8536_v20  ;;  %v8534_v50 = vand.u32 2147483647, %v15077_v6  ;;  %v8592_v13 = vmul.f32 %v8588_v17, %v8532_v34  ;;  %vm8526_vm15 = vcmp.ge.f32.partialorder %v15077_v6, 0.0 }
0x42ab   :  { %12506 = vrcp.f32 %v8541_v41  ;;  %v8539_v52 = vmul.f32 0.3275911, %v8535_v11  ;;  %v8591_v56 = vsub.f32 0.0, %v8535_v11  ;;  %v8598_v46 = vmul.f32 1.442695, %v8593_v35 }
0x42ac   :  { %12508 = vrcp.f32 %v8540_v57  ;;  %v8538_v36 = vmul.f32 0.3275911, %v8534_v50  ;;  %v8590_v23 = vsub.f32 0.0, %v8534_v50  ;;  %v8596_v26 = vmul.f32 1.442695, %v8592_v13 }
0x42ad   :  { %v8543_v63 = vadd.f32 1.0, %v8539_v52  ;;  %v8595_v21 = vmul.f32 %v8591_v56, %v8535_v11  ;;  %v8530_v1 = vsel %vm8526_vm15, 1.0, %v15191_v54 }
0x42ae   :  { %v8542_v2 = vadd.f32 1.0, %v8538_v36  ;;  %v8594_v53 = vmul.f32 %v8590_v23, %v8534_v50 }
0x42af   :  { %12510 = vrcp.f32 %v8543_v63  ;;  %v8602_v28 = vmul.f32 1.442695, %v8595_v21 }
0x42b0   :  { %12512 = vrcp.f32 %v8542_v2  ;;  %v8600_v27 = vmul.f32 1.442695, %v8594_v53 }
0x42b1   :  { %12514 = vpow2.f32 %v8598_v46 }
0x42b2   :  { %12516 = vpow2.f32 %v8596_v26 }
0x42b3   :  { %12518 = vpow2.f32 %v8602_v28  ;;  %v8519_v28 = vmul.f32 0.5, %v15068_v62 }
0x42b4   :  { %12520 = vpow2.f32 %v8600_v27 }
0x42b5   :  { %v12507_v31 = vpop.eup %12506 }
0x42b6   :  { %v12509_v29 = vpop.eup %12508  ;;  %v8553_v0 = vmul.f32 1.0614054, %v12507_v31 }
0x42b7   :  { %v8552_v18 = vmul.f32 1.0614054, %v12509_v29 }
0x42b8   :  { %v8557_v9 = vadd.f32 -1.4531521, %v8553_v0  ;;  %v8529_v0 = vsel %vm8525_vm5, 1.0, %v15191_v54 }
0x42b9   :  { %v8556_v38 = vadd.f32 -1.4531521, %v8552_v18  ;;  %v12511_v61 = vpop.eup %12510 }
0x42ba   :  { %v8561_v12 = vmul.f32 %v12507_v31, %v8557_v9  ;;  %v8555_v32 = vmul.f32 1.0614054, %v12511_v61  ;;  %v12513_v4 = vpop.eup %12512 }
0x42bb   :  { %v8560_v8 = vmul.f32 %v12509_v29, %v8556_v38  ;;  %v8554_v19 = vmul.f32 1.0614054, %v12513_v4  ;;  %v12515_v57 = vpop.eup %12514 }
0x42bc   :  { %v8565_v30 = vadd.f32 1.4214138, %v8561_v12  ;;  %v8559_v59 = vadd.f32 -1.4531521, %v8555_v32  ;;  %v12517_v50 = vpop.eup %12516  ;;  %v8516_v12 = vmul.f32 0.5, %v15059_v25 }
0x42bd   :  { %v8564_v44 = vadd.f32 1.4214138, %v8560_v8  ;;  %v8558_v37 = vadd.f32 -1.4531521, %v8554_v19  ;;  %v8517_v8 = vmul.f32 0.5, %v15057_v24 }
0x42be   :  { %v8569_v49 = vmul.f32 %v12507_v31, %v8565_v30  ;;  %v8563_v15 = vmul.f32 %v12511_v61, %v8559_v59 }
0x42bf   :  { %v8568_v39 = vmul.f32 %v12509_v29, %v8564_v44  ;;  %v8562_v22 = vmul.f32 %v12513_v4, %v8558_v37 }
0x42c0   :  { %v8573_v7 = vadd.f32 -0.28449672, %v8569_v49  ;;  %v8567_v47 = vadd.f32 1.4214138, %v8563_v15  ;;  %v8518_v49 = vmul.f32 0.5, %v15071_v58 }
0x42c1   :  { %v8572_v48 = vadd.f32 -0.28449672, %v8568_v39  ;;  %v8566_v5 = vadd.f32 1.4214138, %v8562_v22 }
0x42c2   :  { %v8577_v16 = vmul.f32 %v12507_v31, %v8573_v7  ;;  %v8571_v40 = vmul.f32 %v12511_v61, %v8567_v47 }
0x42c3   :  { %v8576_v33 = vmul.f32 %v12509_v29, %v8572_v48  ;;  %v8570_v41 = vmul.f32 %v12513_v4, %v8566_v5 }
0x42c4   :  { %v8581_v55 = vadd.f32 0.2548296, %v8577_v16  ;;  %v8575_v60 = vadd.f32 -0.28449672, %v8571_v40 }
0x42c5   :  { %v8580_v34 = vadd.f32 0.2548296, %v8576_v33  ;;  %v8574_v36 = vadd.f32 -0.28449672, %v8570_v41 }
0x42c6   :  { %v8585_v20 = vmul.f32 %v12507_v31, %v8581_v55  ;;  %v8579_v52 = vmul.f32 %v12511_v61, %v8575_v60  ;;  %v12519_v31 = vpop.eup %12518 }
0x42c7   :  { %v8584_v11 = vmul.f32 %v12509_v29, %v8580_v34  ;;  %v8578_v35 = vmul.f32 %v12513_v4, %v8574_v36  ;;  %v8528_v29 = vsel %vm8524_vm6, 1.0, %v15191_v54  ;;  %v12521_v45 = vpop.eup %12520 }
0x42c8   :  { %v8605_v63 = vmul.f32 %v12515_v57, %v8585_v20  ;;  %v8583_v2 = vadd.f32 0.2548296, %v8579_v52 }
0x42c9   :  { %v8604_v51 = vmul.f32 %v12517_v50, %v8584_v11  ;;  %v8582_v9 = vadd.f32 0.2548296, %v8578_v35 }
0x42ca   :  { %v8609_v17 = vsub.f32 1.0, %v8605_v63  ;;  %v8587_v56 = vmul.f32 %v12511_v61, %v8583_v2  ;;  %v8531_v61 = vsel %vm8527_vm14, 1.0, %v15191_v54  ;;  %v12637_v54 = vld [vmem:[%s15163_s0 + $0x3d0] ss:$0 sm:$0xff] }
0x42cb   :  { %v8608_v13 = vsub.f32 1.0, %v8604_v51  ;;  %v8586_v23 = vmul.f32 %v12513_v4, %v8582_v9 }
0x42cc   :  { %v8613_v18 = vmul.f32 %v8609_v17, %v8529_v0  ;;  %v8607_v10 = vmul.f32 %v12519_v31, %v8587_v56 }
0x42cd   :  { %v8612_v46 = vmul.f32 %v8608_v13, %v8528_v29  ;;  %v8606_v32 = vmul.f32 %v12521_v45, %v8586_v23 }
0x42ce   :  { %v8617_v38 = vadd.f32 1.0, %v8613_v18  ;;  %v8611_v21 = vsub.f32 1.0, %v8607_v10 }
0x42cf   :  { %v8616_v26 = vadd.f32 1.0, %v8612_v46  ;;  %v8610_v53 = vsub.f32 1.0, %v8606_v32 }
0x42d0   :  { %v8615_v44 = vmul.f32 %v8611_v21, %v8531_v61  ;;  %v8621_v59 = vmul.f32 %v8617_v38, %v8517_v8 }
0x42d1   :  { %v8620_v30 = vmul.f32 %v8616_v26, %v8516_v12  ;;  %v8614_v4 = vmul.f32 %v8610_v53, %v8530_v1  ;;  %v12639_v1 = vld [vmem:[%s15163_s0 + $0x400] ss:$0 sm:$0xff] }
0x42d2   :  { %v8619_v25 = vadd.f32 1.0, %v8615_v44  ;;  %v12638_v44 = vld [vmem:[%s15163_s0 + $0x3f8] ss:$0 sm:$0xff] }
0x42d3   :  { %11332 = vmatprep.mubr.msk.f32.mxu0 %vm140_vm4, %v8620_v30  ;;  %v8618_v24 = vadd.f32 1.0, %v8614_v4 }
0x42d4   :  { %11333 = vmatmul.mubr.msk.f32.vlgmr.msra.gmra.mrb[142].mxu0 %vm140_vm4, %v8621_v59  ;;  %v8623_v6 = vmul.f32 %v8619_v25, %v8519_v28 }
0x42d5   :  { %v8622_v19 = vmul.f32 %v8618_v24, %v8518_v49 }
0x42d7   :  { %11335 = vmatprep.mubr.msk.f32.mxu0 %vm140_vm4, %v8622_v19 }
0x42d8   :  { %11336 = vmatmul.mubr.msk.f32.gmra.mrb[144].mxu0 %vm140_vm4, %v8623_v6 }
0x43a7   :  { %v11334_v39 = vpop.f32.mrb[142].mxu0 }
0x43a8   :  { %v8708_v15 = vadd.f32 %v12637_v54, %v11334_v39  ;;  %v8702_v7 = vpop.f32.mrb[143].mxu0 }
0x43a9   :  { %v8703_v37 = vadd.f32 %v12637_v54, %v8702_v7 }
0x43aa   :  { %v8722_v48 = vadd.f32 %v8708_v15, %v15037_v42 }
0x43ab   :  { %v8721_v58 = vadd.f32 %v8703_v37, %v15035_v14  ;;  %v11337_v27 = vpop.f32.mrb[144].mxu0 }
0x43ac   :  { %v8728_v62 = vsel %vm140_vm4, %v8722_v48, 0.0  ;;  %v8718_v16 = vadd.f32 %v12637_v54, %v11337_v27  ;;  %v8712_v22 = vpop.f32.mrb[145].mxu0 }
0x43ad   :  { %8729 = vadd.xlane.f32.xlu0 %v8728_v62  ;;  %v8725_v47 = vsel %vm140_vm4, %v8721_v58, 0.0  ;;  %v8713_v33 = vadd.f32 %v12637_v54, %v8712_v22 }
0x43ae   :  { %8726 = vadd.xlane.f32.xlu1 %v8725_v47  ;;  %v8724_v40 = vadd.f32 %v8718_v16, %v15046_v43 }
0x43af   :  { %v8723_v55 = vadd.f32 %v8713_v33, %v15043_v3 }
0x43b0   :  { %v8734_v5 = vsel %vm140_vm4, %v8724_v40, 0.0 }
0x43b1   :  { %8735 = vadd.xlane.f32.xlu0 %v8734_v5  ;;  %v8731_v42 = vsel %vm140_vm4, %v8723_v55, 0.0 }
0x43b2   :  { %8732 = vadd.xlane.f32.xlu1 %v8731_v42 }
0x443a   :  { %v8730_v14 = vpop.xlane.xlu0 %8729 }
0x443b   :  { %v8738_v34 = vmul.f32 0.03125, %v8730_v14  ;;  %v8727_v60 = vpop.xlane.xlu1 %8726 }
0x443c   :  { %v8737_v20 = vmul.f32 0.03125, %v8727_v60 }
0x443d   :  { %v8742_v41 = vsub.f32 %v8722_v48, %v8738_v34 }
0x443e   :  { %v8741_v57 = vsub.f32 %v8721_v58, %v8737_v20  ;;  %v8736_v50 = vpop.xlane.xlu0 %8735 }
0x443f   :  { %v8746_v11 = vmul.f32 %v8742_v41, %v8742_v41  ;;  %v8740_v43 = vmul.f32 0.03125, %v8736_v50  ;;  %v8733_v36 = vpop.xlane.xlu1 %8732 }
0x4440   :  { %v8745_v52 = vmul.f32 %v8741_v57, %v8741_v57  ;;  %v8739_v51 = vmul.f32 0.03125, %v8733_v36  ;;  %v8856_v36 = vld [vmem:[%s15163_s0 + $0x420] sm:$0xff] }
0x4441   :  { %v8752_v63 = vsel %vm140_vm4, %v8746_v11, 0.0  ;;  %v8744_v2 = vsub.f32 %v8724_v40, %v8740_v43  ;;  %v8855_v43 = vld [vmem:[%s15163_s0 + $0x418] sm:$0xff] }
0x4442   :  { %8753 = vadd.xlane.f32.xlu0 %v8752_v63  ;;  %v8749_v3 = vsel %vm140_vm4, %v8745_v52, 0.0  ;;  %v8743_v17 = vsub.f32 %v8723_v55, %v8739_v51  ;;  %v12263_v51 = vpack.c.bf16 %v8856_v36, %v8855_v43 }
0x4443   :  { %8750 = vadd.xlane.f32.xlu1 %v8749_v3  ;;  %v8748_v35 = vmul.f32 %v8744_v2, %v8744_v2  ;;  %v8857_v3 = vld [vmem:[%s15163_s0 + $0x428] sm:$0xff] }
0x4444   :  { %v8747_v0 = vmul.f32 %v8743_v17, %v8743_v17  ;;  %12264 = vmatprep.subr.bf16.mxu1 %v12263_v51 }
0x4445   :  { %v8758_v13 = vsel %vm140_vm4, %v8748_v35, 0.0  ;;  %12266 = vmatpush3.bf16.msra.mxu1 %v12263_v51 }
0x4446   :  { %8759 = vadd.xlane.f32.xlu0 %v8758_v13  ;;  %v8755_v56 = vsel %vm140_vm4, %v8747_v0, 0.0 }
0x4447   :  { %8756 = vadd.xlane.f32.xlu1 %v8755_v56 }
0x44cf   :  { %v8754_v31 = vpop.xlane.xlu0 %8753 }
0x44d0   :  { %v8762_v18 = vmul.f32 0.03125, %v8754_v31  ;;  %v8751_v29 = vpop.xlane.xlu1 %8750 }
0x44d1   :  { %v8761_v9 = vmul.f32 0.03125, %v8751_v29 }
0x44d2   :  { %v8766_v46 = vadd.f32 1e-05, %v8762_v18 }
0x44d3   :  { %v8765_v10 = vadd.f32 1e-05, %v8761_v9  ;;  %v8760_v38 = vpop.xlane.xlu0 %8759 }
0x44d4   :  { %12522 = vrsqrt.f32 %v8766_v46  ;;  %v8764_v23 = vmul.f32 0.03125, %v8760_v38  ;;  %v8757_v45 = vpop.xlane.xlu1 %8756 }
0x44d5   :  { %12524 = vrsqrt.f32 %v8765_v10  ;;  %v8763_v12 = vmul.f32 0.03125, %v8757_v45 }
0x44d6   :  { %v8768_v26 = vadd.f32 1e-05, %v8764_v23 }
0x44d7   :  { %v8767_v21 = vadd.f32 1e-05, %v8763_v12  ;;  %v9323_v12 = vld [vmem:[%s15163_s0 + $0x408] ss:$0 sm:$0xff] }
0x44d8   :  { %12526 = vrsqrt.f32 %v8768_v26 }
0x44d9   :  { %12528 = vrsqrt.f32 %v8767_v21 }
0x44de   :  { %v12523_v8 = vpop.eup %12522 }
0x44df   :  { %v12525_v61 = vpop.eup %12524  ;;  %v8774_v32 = vmul.f32 %v12523_v8, %v8742_v41 }
0x44e0   :  { %v8773_v30 = vmul.f32 %v12525_v61, %v8741_v57 }
0x44e1   :  { %v8778_v59 = vmul.f32 %v12638_v44, %v8774_v32  ;;  %v9324_v32 = vld [vmem:[%s15163_s0 + $0x410] ss:$0 sm:$0xff] }
0x44e2   :  { %v8777_v53 = vmul.f32 %v12638_v44, %v8773_v30  ;;  %v12527_v49 = vpop.eup %12526 }
0x44e3   :  { %v8782_v4 = vadd.f32 %v12639_v1, %v8778_v59  ;;  %v12529_v28 = vpop.eup %12528  ;;  %v8776_v6 = vmul.f32 %v12527_v49, %v8744_v2  ;;  %v8858_v2 = vld [vmem:[%s15163_s0 + $0x430] sm:$0xff] }
0x44e4   :  { %v8781_v25 = vadd.f32 %v12639_v1, %v8777_v53  ;;  %v8775_v39 = vmul.f32 %v12529_v28, %v8743_v17  ;;  %v12267_v17 = vpack.c.bf16 %v8858_v2, %v8857_v3 }
0x44e5   :  { %v8788_v24 = vsel %vm140_vm4, %v8782_v4, 0.0  ;;  %v8780_v54 = vmul.f32 %v12638_v44, %v8776_v6  ;;  %v9325_v6 = vld [vmem:[%s15163_s0 + $0x438] ss:$0 sm:$0xff] }
0x44e6   :  { %8789 = vadd.xlane.f32.xlu0 %v8788_v24  ;;  %v8785_v19 = vsel %vm140_vm4, %v8781_v25, 0.0  ;;  %v8779_v15 = vmul.f32 %v12638_v44, %v8775_v39  ;;  %12268 = vmatprep.subr.bf16.mxu1 %v12267_v17 }
0x44e7   :  { %8786 = vadd.xlane.f32.xlu1 %v8785_v19  ;;  %v8784_v7 = vadd.f32 %v12639_v1, %v8780_v54  ;;  %12270 = vmatpush3.bf16.msra.mxu1 %v12267_v17 }
0x44e8   :  { %v8783_v37 = vadd.f32 %v12639_v1, %v8779_v15 }
0x44e9   :  { %v8794_v48 = vsel %vm140_vm4, %v8784_v7, 0.0 }
0x44ea   :  { %8795 = vadd.xlane.f32.xlu0 %v8794_v48  ;;  %v8791_v58 = vsel %vm140_vm4, %v8783_v37, 0.0 }
0x44eb   :  { %8792 = vadd.xlane.f32.xlu1 %v8791_v58 }
0x4573   :  { %v8790_v62 = vpop.xlane.xlu0 %8789 }
0x4574   :  { %v8798_v47 = vmul.f32 0.03125, %v8790_v62  ;;  %v8787_v27 = vpop.xlane.xlu1 %8786 }
0x4575   :  { %v8797_v16 = vmul.f32 0.03125, %v8787_v27 }
0x4576   :  { %v8802_v22 = vsub.f32 %v8782_v4, %v8798_v47 }
0x4577   :  { %v8801_v33 = vsub.f32 %v8781_v25, %v8797_v16  ;;  %v8796_v5 = vpop.xlane.xlu0 %8795 }
0x4578   :  { %v8806_v40 = vmul.f32 %v8802_v22, %v8802_v22  ;;  %v8800_v14 = vmul.f32 0.03125, %v8796_v5  ;;  %v8793_v34 = vpop.xlane.xlu1 %8792 }
0x4579   :  { %v8805_v55 = vmul.f32 %v8801_v33, %v8801_v33  ;;  %v8799_v20 = vmul.f32 0.03125, %v8793_v34 }
0x457a   :  { %v8812_v42 = vsel %vm140_vm4, %v8806_v40, 0.0  ;;  %v8804_v41 = vsub.f32 %v8784_v7, %v8800_v14 }
0x457b   :  { %8813 = vadd.xlane.f32.xlu0 %v8812_v42  ;;  %v8809_v60 = vsel %vm140_vm4, %v8805_v55, 0.0  ;;  %v8803_v57 = vsub.f32 %v8783_v37, %v8799_v20 }
0x457c   :  { %8810 = vadd.xlane.f32.xlu1 %v8809_v60  ;;  %v8808_v11 = vmul.f32 %v8804_v41, %v8804_v41 }
0x457d   :  { %v8807_v52 = vmul.f32 %v8803_v57, %v8803_v57 }
0x457e   :  { %v8818_v50 = vsel %vm140_vm4, %v8808_v11, 0.0 }
0x457f   :  { %8819 = vadd.xlane.f32.xlu0 %v8818_v50  ;;  %v8815_v63 = vsel %vm140_vm4, %v8807_v52, 0.0 }
0x4580   :  { %8816 = vadd.xlane.f32.xlu1 %v8815_v63 }
0x4608   :  { %v8814_v35 = vpop.xlane.xlu0 %8813 }
0x4609   :  { %v8822_v0 = vmul.f32 0.03125, %v8814_v35  ;;  %v8811_v13 = vpop.xlane.xlu1 %8810 }
0x460a   :  { %v8821_v56 = vmul.f32 0.03125, %v8811_v13 }
0x460b   :  { %v8826_v31 = vadd.f32 1e-05, %v8822_v0 }
0x460c   :  { %v8825_v18 = vadd.f32 1e-05, %v8821_v56  ;;  %v8820_v29 = vpop.xlane.xlu0 %8819 }
0x460d   :  { %12530 = vrsqrt.f32 %v8826_v31  ;;  %v8824_v9 = vmul.f32 0.03125, %v8820_v29  ;;  %v8817_v46 = vpop.xlane.xlu1 %8816 }
0x460e   :  { %12532 = vrsqrt.f32 %v8825_v18  ;;  %v8823_v10 = vmul.f32 0.03125, %v8817_v46 }
0x460f   :  { %v8828_v38 = vadd.f32 1e-05, %v8824_v9 }
0x4610   :  { %v8827_v23 = vadd.f32 1e-05, %v8823_v10 }
0x4611   :  { %12534 = vrsqrt.f32 %v8828_v38 }
0x4612   :  { %12536 = vrsqrt.f32 %v8827_v23 }
0x4617   :  { %v12531_v45 = vpop.eup %12530 }
0x4618   :  { %v12533_v26 = vpop.eup %12532  ;;  %v8834_v21 = vmul.f32 %v12531_v45, %v8802_v22 }
0x4619   :  { %v8833_v8 = vmul.f32 %v12533_v26, %v8801_v33 }
0x461a   :  { %v8843_v61 = vmul.f32 %v9323_v12, %v8834_v21 }
0x461b   :  { %v8842_v30 = vmul.f32 %v9323_v12, %v8833_v8  ;;  %v12535_v59 = vpop.eup %12534 }
0x461c   :  { %v8852_v53 = vadd.f32 %v9324_v32, %v8843_v61  ;;  %v12537_v1 = vpop.eup %12536  ;;  %v8836_v4 = vmul.f32 %v12535_v59, %v8804_v41 }
0x461d   :  { %v8851_v44 = vadd.f32 %v9324_v32, %v8842_v30  ;;  %v8835_v25 = vmul.f32 %v12537_v1, %v8803_v57 }
0x461e   :  { %v8845_v49 = vmul.f32 %v9323_v12, %v8836_v4 }
0x461f   :  { %11346 = vmatprep.mubr.msk.f32.mxu1 %vm140_vm4, %v8851_v44  ;;  %v8844_v24 = vmul.f32 %v9323_v12, %v8835_v25 }
0x4620   :  { %11347 = vmatmul.mubr.msk.f32.vlgmr.msra.gmra.mrb[126].mxu1 %vm140_vm4, %v8852_v53  ;;  %v8854_v19 = vadd.f32 %v9324_v32, %v8845_v49 }
0x4621   :  { %v8853_v28 = vadd.f32 %v9324_v32, %v8844_v24 }
0x4623   :  { %11349 = vmatprep.mubr.msk.f32.mxu1 %vm140_vm4, %v8853_v28 }
0x4624   :  { %11350 = vmatmul.mubr.msk.f32.gmra.mrb[128].mxu1 %vm140_vm4, %v8854_v19 }
0x46f3   :  { %v11348_v39 = vpop.f32.mrb[126].mxu1 }
0x46f4   :  { %v8948_v54 = vadd.f32 %v11348_v39, %v9325_v6  ;;  %v8942_v15 = vpop.f32.mrb[127].mxu1 }
0x46f5   :  { %v8943_v7 = vadd.f32 %v9325_v6, %v8942_v15 }
0x46f6   :  { %8963 = vst.msk [vmem:[%s15166_s3 + $0x8] sm:$0xff] %vm8961_vm1, %v8948_v54 }
0x46f7   :  { %8962 = vst.msk [vmem:[%s15166_s3] sm:$0xff] %vm8961_vm1, %v8943_v7  ;;  %v11351_v37 = vpop.f32.mrb[128].mxu1 }
0x46f8   :  { %v8958_v48 = vadd.f32 %v11351_v37, %v9325_v6  ;;  %v8952_v58 = vpop.f32.mrb[129].mxu1 }
0x46f9   :  { %v8953_v62 = vadd.f32 %v9325_v6, %v8952_v58 }
0x46fa   :  { %8965 = vst.msk [vmem:[%s15166_s3 + $0x18] sm:$0xff] %vm8961_vm1, %v8958_v48 }
0x46fb   :  { %8964 = vst.msk [vmem:[%s15166_s3 + $0x10] sm:$0xff] %vm8961_vm1, %v8953_v62 }

</bundles_post_ra>
